<compile_context>
chip_gen: v6e
topology: v6e:2x2x1
jax: 0.10.0
libtpu: 0.0.40
codegen_flags: <defaults>
</compile_context>

<pallas_src>
import jax
import jax.numpy as jnp
from jax.experimental import pallas as pl
from jax.experimental.pallas import tpu as pltpu


def sentiment_kernel(gx0_ref,                    # (Tc, B, 4H) precomputed layer-0 gate inputs
                     whh0_ref,                   # (H, 4H)  W_hh0^T
                     wih1_ref,                   # (H, 4H)  W_ih1^T
                     whh1_ref,                   # (H, 4H)  W_hh1^T
                     b1_ref,                     # (1, 4H)  b_ih1 + b_hh1
                     out_ref,                    # (B, H)   last-step hidden of layer 1
                     h0, c0, h1, c1,             # (B, H) carried state (VMEM scratch)
                     h0seq,                      # (Tc, B, H) layer-0 outputs for the chunk
                     gx1seq):                    # (Tc, B, 4H) layer-1 gate inputs for the chunk
    chunk = pl.program_id(0)
    TC, B, G = gx0_ref.shape
    H = whh0_ref.shape[0]

    @pl.when(chunk == 0)
    def _init():
        h0[...] = jnp.zeros_like(h0)
        c0[...] = jnp.zeros_like(c0)
        h1[...] = jnp.zeros_like(h1)
        c1[...] = jnp.zeros_like(c1)

    def cell(gates, c_prev):
        # PyTorch gate order: i, f, g, o.  H = 128 -> each slice is 128-lane aligned.
        i = jax.nn.sigmoid(gates[:, 0 * H:1 * H])
        f = jax.nn.sigmoid(gates[:, 1 * H:2 * H])
        g = jnp.tanh(gates[:, 2 * H:3 * H])
        o = jax.nn.sigmoid(gates[:, 3 * H:4 * H])
        c_new = f * c_prev + i * g
        h_new = o * jnp.tanh(c_new)
        return h_new, c_new

    # ---- Phase 1: layer-0 recurrence (input projection already hoisted outside the kernel) ----
    whh0 = whh0_ref[...]                         # loaded once per chunk, live only in this phase

    def step0(t, carry):
        h, c = carry
        gates = gx0_ref[t] + jnp.dot(h, whh0, preferred_element_type=jnp.float32)
        h, c = cell(gates, c)
        h0seq[t] = h
        return (h, c)

    h0f, c0f = jax.lax.fori_loop(0, TC, step0, (h0[...], c0[...]), unroll=True)
    h0[...] = h0f
    c0[...] = c0f

    # ---- Phase 2: layer-1 input projection, batched over the whole chunk (one MXU matmul) ----
    h0_flat = h0seq[...].reshape(TC * B, H)
    gx1 = jnp.dot(h0_flat, wih1_ref[...], preferred_element_type=jnp.float32) + b1_ref[...]
    gx1seq[...] = gx1.reshape(TC, B, 4 * H)

    # ---- Phase 3: layer-1 recurrence (only the hidden matmul on the serial path) ----
    whh1 = whh1_ref[...]                         # loaded after W_hh0's live range has ended

    def step1(t, carry):
        h, c = carry
        gates = gx1seq[t] + jnp.dot(h, whh1, preferred_element_type=jnp.float32)
        h, c = cell(gates, c)
        return (h, c)

    h1f, c1f = jax.lax.fori_loop(0, TC, step1, (h1[...], c1[...]), unroll=True)
    h1[...] = h1f
    c1[...] = c1f

    @pl.when(chunk == pl.num_programs(0) - 1)
    def _final():
        out_ref[...] = h1f


def sentiment_forward(x_ids, params, *, chunk=16):
    """x_ids: (B, T) int32 token ids. Returns (output (B,), hidden tuple of zeros)."""
    B, T = x_ids.shape
    emb_table = params["embedding"]                 # (V, E)
    H = params["w_hh0"].shape[1]                    # w_hh0: (4H, H)
    prec = jax.lax.Precision.HIGHEST

    # Largest divisor of T that is <= chunk (keeps full unroll bounded, no padded steps).
    Tc = 1
    for d in range(1, min(chunk, T) + 1):
        if T % d == 0:
            Tc = d
    num_chunks = T // Tc

    # --- glue (plain JAX) -----------------------------------------------------
    emb = jnp.take(emb_table, x_ids, axis=0)        # (B, T, E)

    wih0_t = params["w_ih0"].T                      # (E, 4H)
    whh0_t = params["w_hh0"].T                      # (H, 4H)
    b0 = (params["b_ih0"] + params["b_hh0"]).reshape(1, 1, 4 * H)
    wih1_t = params["w_ih1"].T                      # (H, 4H)
    whh1_t = params["w_hh1"].T                      # (H, 4H)
    b1 = (params["b_ih1"] + params["b_hh1"]).reshape(1, 4 * H)

    # Hoisted layer-0 input projection for the whole sequence: one (B*T, E) @ (E, 4H) matmul
    # instead of T tiny per-step matmuls inside the recurrence.  Produced time-major so the
    # kernel only does cheap leading-axis dynamic indexing per step.
    gx0 = jnp.einsum('bte,eg->tbg', emb, wih0_t, precision=prec) + b0   # (T, B, 4H)
    gx0 = gx0.astype(jnp.float32)

    full2d = lambda shape: pl.BlockSpec(shape, lambda c: (0, 0))

    h1_last = pl.pallas_call(
        sentiment_kernel,
        out_shape=jax.ShapeDtypeStruct((B, H), jnp.float32),
        grid_spec=pltpu.PrefetchScalarGridSpec(
            num_scalar_prefetch=0,
            grid=(num_chunks,),
            in_specs=[
                pl.BlockSpec((Tc, B, 4 * H), lambda c: (c, 0, 0)),   # one T-chunk per grid step
                full2d((H, 4 * H)),        # W_hh0^T
                full2d((H, 4 * H)),        # W_ih1^T
                full2d((H, 4 * H)),        # W_hh1^T
                full2d((1, 4 * H)),        # b1
            ],
            out_specs=pl.BlockSpec((B, H), lambda c: (0, 0)),
            scratch_shapes=[
                pltpu.VMEM((B, H), jnp.float32),            # h0
                pltpu.VMEM((B, H), jnp.float32),            # c0
                pltpu.VMEM((B, H), jnp.float32),            # h1
                pltpu.VMEM((B, H), jnp.float32),            # c1
                pltpu.VMEM((Tc, B, H), jnp.float32),        # layer-0 hidden sequence (chunk)
                pltpu.VMEM((Tc, B, 4 * H), jnp.float32),    # layer-1 gate inputs (chunk)
            ],
        ),
        compiler_params=pltpu.CompilerParams(
            dimension_semantics=("arbitrary",)),            # sequential recurrence over time
    )(gx0, whh0_t, wih1_t, whh1_t, b1)

    # Lane-dense kernel output; degenerate (H, 1) FC + sigmoid done here.
    logits = jnp.dot(h1_last, params["w_fc"].T, precision=prec) + params["b_fc"]   # (B, 1)
    output = jax.nn.sigmoid(logits)[:, 0]           # (B,)

    # PyTorch forward returns the hidden it was *given* (zeros when hidden=None).
    n_layers = 2
    hidden = (jnp.zeros((n_layers, B, H), jnp.float32),
              jnp.zeros((n_layers, B, H), jnp.float32))
    return output, hidden


def _reference_forward(x_ids, params):
    """Pure-JAX reference of the PyTorch forward (eval mode)."""
    prec = jax.lax.Precision.HIGHEST
    emb = jnp.take(params["embedding"], x_ids, axis=0)      # (B, T, E)
    B = emb.shape[0]
    H = params["w_hh0"].shape[1]

    def lstm_layer(x_seq, w_ih, w_hh, b_ih, b_hh):
        def step(carry, x_t):
            h, c = carry
            gates = (jnp.dot(x_t, w_ih.T, precision=prec)
                     + jnp.dot(h, w_hh.T, precision=prec) + b_ih + b_hh)
            i = jax.nn.sigmoid(gates[:, 0 * H:1 * H])
            f = jax.nn.sigmoid(gates[:, 1 * H:2 * H])
            g = jnp.tanh(gates[:, 2 * H:3 * H])
            o = jax.nn.sigmoid(gates[:, 3 * H:4 * H])
            c = f * c + i * g
            h = o * jnp.tanh(c)
            return (h, c), h
        init = (jnp.zeros((B, H), jnp.float32), jnp.zeros((B, H), jnp.float32))
        _, hs = jax.lax.scan(step, init, x_seq)
        return hs                                            # (T, B, H)

    x_tm = jnp.transpose(emb, (1, 0, 2))
    h0_seq = lstm_layer(x_tm, params["w_ih0"], params["w_hh0"],
                        params["b_ih0"], params["b_hh0"])
    h1_seq = lstm_layer(h0_seq, params["w_ih1"], params["w_hh1"],
                        params["b_ih1"], params["b_hh1"])
    h_last = h1_seq[-1]                                      # (B, H)
    logits = jnp.dot(h_last, params["w_fc"].T, precision=prec) + params["b_fc"]
    return jax.nn.sigmoid(logits)[:, 0]


def init_params(key, vocab_size, embedding_dim, hidden_nodes):
    ks = jax.random.split(key, 12)
    s = 0.1
    H, E = hidden_nodes, embedding_dim
    return {
        "embedding": jax.random.normal(ks[0], (vocab_size, E), jnp.float32) * s,
        "w_ih0": jax.random.normal(ks[1], (4 * H, E), jnp.float32) * s,
        "w_hh0": jax.random.normal(ks[2], (4 * H, H), jnp.float32) * s,
        "b_ih0": jax.random.normal(ks[3], (4 * H,), jnp.float32) * s,
        "b_hh0": jax.random.normal(ks[4], (4 * H,), jnp.float32) * s,
        "w_ih1": jax.random.normal(ks[5], (4 * H, H), jnp.float32) * s,
        "w_hh1": jax.random.normal(ks[6], (4 * H, H), jnp.float32) * s,
        "b_ih1": jax.random.normal(ks[7], (4 * H,), jnp.float32) * s,
        "b_hh1": jax.random.normal(ks[8], (4 * H,), jnp.float32) * s,
        "w_fc": jax.random.normal(ks[9], (1, H), jnp.float32) * s,
        "b_fc": jax.random.normal(ks[10], (1,), jnp.float32) * s,
    }


if __name__ == "__main__":
    key = jax.random.PRNGKey(0)
    k_param, k_data = jax.random.split(key)

    # Small shapes consistent with the module; H = E = 128 keeps gate slices 128-lane aligned,
    # B = 8 fills one sublane tile, T = 32 with Tc = 16 exercises cross-chunk state carry.
    VOCAB, B, T, E, H = 100, 8, 32, 128, 128
    params = init_params(k_param, VOCAB, E, H)
    x_ids = jax.random.randint(k_data, (B, T), 0, VOCAB, dtype=jnp.int32)

    output, hidden = sentiment_forward(x_ids, params, chunk=16)
    jax.block_until_ready(output)
    jax.block_until_ready(hidden)

    assert output.shape == (B,)
    assert bool(jnp.all(jnp.isfinite(output)))

    ref = _reference_forward(x_ids, params)
    jax.block_until_ready(ref)
    assert bool(jnp.allclose(output, ref, atol=2e-2, rtol=0)), (output, ref)

    print("KERNEL_OK")
</pallas_src>

<mosaic_0001>
module attributes {stable_mosaic.version = 11 : i64} {
  func.func @sentiment_kernel(%arg0: i32, %arg1: memref<16x8x512xf32, #tpu.memory_space<vmem>>, %arg2: memref<128x512xf32, #tpu.memory_space<vmem>>, %arg3: memref<128x512xf32, #tpu.memory_space<vmem>>, %arg4: memref<128x512xf32, #tpu.memory_space<vmem>>, %arg5: memref<1x512xf32, #tpu.memory_space<vmem>>, %arg6: memref<8x128xf32, #tpu.memory_space<vmem>>, %arg7: memref<8x128xf32, #tpu.memory_space<vmem>>, %arg8: memref<8x128xf32, #tpu.memory_space<vmem>>, %arg9: memref<8x128xf32, #tpu.memory_space<vmem>>, %arg10: memref<8x128xf32, #tpu.memory_space<vmem>>, %arg11: memref<16x8x128xf32, #tpu.memory_space<vmem>>, %arg12: memref<16x8x512xf32, #tpu.memory_space<vmem>>) attributes {dimension_semantics = [#tpu.dimension_semantics<arbitrary>], iteration_bounds = array<i64: 2>, scalar_prefetch = 0 : i64, scratch_operands = 6 : i64, tpu.core_type = #tpu.core_type<tc>, window_params = [{transform_indices = @transform_0, window_bounds = array<i64: 16, 8, 512>}, {pipeline_mode = #tpu.pipeline_mode<synchronous>, transform_indices = @transform_1, window_bounds = array<i64: 128, 512>}, {pipeline_mode = #tpu.pipeline_mode<synchronous>, transform_indices = @transform_2, window_bounds = array<i64: 128, 512>}, {pipeline_mode = #tpu.pipeline_mode<synchronous>, transform_indices = @transform_3, window_bounds = array<i64: 128, 512>}, {pipeline_mode = #tpu.pipeline_mode<synchronous>, transform_indices = @transform_4, window_bounds = array<i64: 1, 512>}, {pipeline_mode = #tpu.pipeline_mode<synchronous>, transform_indices = @transform_5, window_bounds = array<i64: 8, 128>}]} {
    %c0_i32 = arith.constant 0 : i32
    %0 = arith.cmpi eq, %arg0, %c0_i32 : i32
    %1 = arith.extui %0 : i1 to i32
    %c0_i32_0 = arith.constant 0 : i32
    %2 = arith.cmpi ne, %1, %c0_i32_0 : i32
    scf.if %2 {
      %cst_274 = arith.constant 0.000000e+00 : f32
      %1049 = vector.broadcast %cst_274 : f32 to vector<8x128xf32>
      %c0_275 = arith.constant 0 : index
      %c0_276 = arith.constant 0 : index
      %1050 = vector.load %arg7[%c0_275, %c0_276] : memref<8x128xf32, #tpu.memory_space<vmem>>, vector<8x128xf32>
      tpu.vector_store %arg7[%c0_275, %c0_276], %1049 {strides = array<i32>} : memref<8x128xf32, #tpu.memory_space<vmem>>, vector<8x128xf32>,
      %cst_277 = arith.constant 0.000000e+00 : f32
      %1051 = vector.broadcast %cst_277 : f32 to vector<8x128xf32>
      %c0_278 = arith.constant 0 : index
      %c0_279 = arith.constant 0 : index
      %1052 = vector.load %arg8[%c0_278, %c0_279] : memref<8x128xf32, #tpu.memory_space<vmem>>, vector<8x128xf32>
      tpu.vector_store %arg8[%c0_278, %c0_279], %1051 {strides = array<i32>} : memref<8x128xf32, #tpu.memory_space<vmem>>, vector<8x128xf32>,
      %cst_280 = arith.constant 0.000000e+00 : f32
      %1053 = vector.broadcast %cst_280 : f32 to vector<8x128xf32>
      %c0_281 = arith.constant 0 : index
      %c0_282 = arith.constant 0 : index
      %1054 = vector.load %arg9[%c0_281, %c0_282] : memref<8x128xf32, #tpu.memory_space<vmem>>, vector<8x128xf32>
      tpu.vector_store %arg9[%c0_281, %c0_282], %1053 {strides = array<i32>} : memref<8x128xf32, #tpu.memory_space<vmem>>, vector<8x128xf32>,
      %cst_283 = arith.constant 0.000000e+00 : f32
      %1055 = vector.broadcast %cst_283 : f32 to vector<8x128xf32>
      %c0_284 = arith.constant 0 : index
      %c0_285 = arith.constant 0 : index
      %1056 = vector.load %arg10[%c0_284, %c0_285] : memref<8x128xf32, #tpu.memory_space<vmem>>, vector<8x128xf32>
      tpu.vector_store %arg10[%c0_284, %c0_285], %1055 {strides = array<i32>} : memref<8x128xf32, #tpu.memory_space<vmem>>, vector<8x128xf32>,
    } else {
    }
    %c0 = arith.constant 0 : index
    %c0_1 = arith.constant 0 : index
    %3 = vector.load %arg2[%c0, %c0_1] : memref<128x512xf32, #tpu.memory_space<vmem>>, vector<128x512xf32>
    %c0_2 = arith.constant 0 : index
    %c0_3 = arith.constant 0 : index
    %4 = vector.load %arg7[%c0_2, %c0_3] : memref<8x128xf32, #tpu.memory_space<vmem>>, vector<8x128xf32>
    %c0_4 = arith.constant 0 : index
    %c0_5 = arith.constant 0 : index
    %5 = vector.load %arg8[%c0_4, %c0_5] : memref<8x128xf32, #tpu.memory_space<vmem>>, vector<8x128xf32>
    %c0_i32_6 = arith.constant 0 : i32
    %6 = arith.index_cast %c0_i32_6 : i32 to index
    %c0_7 = arith.constant 0 : index
    %c0_8 = arith.constant 0 : index
    %7 = vector.load %arg1[%6, %c0_7, %c0_8] : memref<16x8x512xf32, #tpu.memory_space<vmem>>, vector<1x8x512xf32>
    %8 = vector.shape_cast %7 : vector<1x8x512xf32> to vector<8x512xf32>
    %cst = arith.constant dense<0.000000e+00> : vector<8x512xf32>
    %9 = tpu.matmul %4, %3, %cst {dimension_numbers = #tpu.dot_dimension_numbers<[1], [0], [0], [1], [0, 0, 1, 1], [], []>} : vector<8x128xf32>, vector<128x512xf32>, vector<8x512xf32> -> vector<8x512xf32>
    %10 = arith.addf %8, %9 : vector<8x512xf32>
    %11 = vector.extract_strided_slice %10 {offsets = [0, 0], sizes = [8, 128], strides = [1, 1]} : vector<8x512xf32> to vector<8x128xf32>
    %12 = arith.negf %11 : vector<8x128xf32>
    %13 = math.exp %12 : vector<8x128xf32>
    %cst_9 = arith.constant 1.000000e+00 : f32
    %14 = vector.broadcast %cst_9 : f32 to vector<8x128xf32>
    %15 = arith.addf %14, %13 : vector<8x128xf32>
    %16 = arith.divf %14, %15 : vector<8x128xf32>
    %17 = vector.extract_strided_slice %10 {offsets = [0, 128], sizes = [8, 128], strides = [1, 1]} : vector<8x512xf32> to vector<8x128xf32>
    %18 = arith.negf %17 : vector<8x128xf32>
    %19 = math.exp %18 : vector<8x128xf32>
    %cst_10 = arith.constant 1.000000e+00 : f32
    %20 = vector.broadcast %cst_10 : f32 to vector<8x128xf32>
    %21 = arith.addf %20, %19 : vector<8x128xf32>
    %22 = arith.divf %20, %21 : vector<8x128xf32>
    %23 = vector.extract_strided_slice %10 {offsets = [0, 256], sizes = [8, 128], strides = [1, 1]} : vector<8x512xf32> to vector<8x128xf32>
    %24 = math.tanh %23 : vector<8x128xf32>
    %25 = vector.extract_strided_slice %10 {offsets = [0, 384], sizes = [8, 128], strides = [1, 1]} : vector<8x512xf32> to vector<8x128xf32>
    %26 = arith.negf %25 : vector<8x128xf32>
    %27 = math.exp %26 : vector<8x128xf32>
    %cst_11 = arith.constant 1.000000e+00 : f32
    %28 = vector.broadcast %cst_11 : f32 to vector<8x128xf32>
    %29 = arith.addf %28, %27 : vector<8x128xf32>
    %30 = arith.divf %28, %29 : vector<8x128xf32>
    %31 = arith.mulf %22, %5 : vector<8x128xf32>
    %32 = arith.mulf %16, %24 : vector<8x128xf32>
    %33 = arith.addf %31, %32 : vector<8x128xf32>
    %34 = math.tanh %33 : vector<8x128xf32>
    %35 = arith.mulf %30, %34 : vector<8x128xf32>
    %36 = arith.index_cast %c0_i32_6 : i32 to index
    %c0_12 = arith.constant 0 : index
    %c0_13 = arith.constant 0 : index
    %37 = vector.load %arg11[%36, %c0_12, %c0_13] : memref<16x8x128xf32, #tpu.memory_space<vmem>>, vector<1x8x128xf32>
    %38 = vector.shape_cast %37 : vector<1x8x128xf32> to vector<8x128xf32>
    %39 = vector.shape_cast %35 : vector<8x128xf32> to vector<1x8x128xf32>
    tpu.vector_store %arg11[%36, %c0_12, %c0_13], %39 {strides = array<i32>} : memref<16x8x128xf32, #tpu.memory_space<vmem>>, vector<1x8x128xf32>,
    %c1_i32 = arith.constant 1 : i32
    %40 = arith.index_cast %c1_i32 : i32 to index
    %c0_14 = arith.constant 0 : index
    %c0_15 = arith.constant 0 : index
    %41 = vector.load %arg1[%40, %c0_14, %c0_15] : memref<16x8x512xf32, #tpu.memory_space<vmem>>, vector<1x8x512xf32>
    %42 = vector.shape_cast %41 : vector<1x8x512xf32> to vector<8x512xf32>
    %cst_16 = arith.constant dense<0.000000e+00> : vector<8x512xf32>
    %43 = tpu.matmul %35, %3, %cst_16 {dimension_numbers = #tpu.dot_dimension_numbers<[1], [0], [0], [1], [0, 0, 1, 1], [], []>} : vector<8x128xf32>, vector<128x512xf32>, vector<8x512xf32> -> vector<8x512xf32>
    %44 = arith.addf %42, %43 : vector<8x512xf32>
    %45 = vector.extract_strided_slice %44 {offsets = [0, 0], sizes = [8, 128], strides = [1, 1]} : vector<8x512xf32> to vector<8x128xf32>
    %46 = arith.negf %45 : vector<8x128xf32>
    %47 = math.exp %46 : vector<8x128xf32>
    %cst_17 = arith.constant 1.000000e+00 : f32
    %48 = vector.broadcast %cst_17 : f32 to vector<8x128xf32>
    %49 = arith.addf %48, %47 : vector<8x128xf32>
    %50 = arith.divf %48, %49 : vector<8x128xf32>
    %51 = vector.extract_strided_slice %44 {offsets = [0, 128], sizes = [8, 128], strides = [1, 1]} : vector<8x512xf32> to vector<8x128xf32>
    %52 = arith.negf %51 : vector<8x128xf32>
    %53 = math.exp %52 : vector<8x128xf32>
    %cst_18 = arith.constant 1.000000e+00 : f32
    %54 = vector.broadcast %cst_18 : f32 to vector<8x128xf32>
    %55 = arith.addf %54, %53 : vector<8x128xf32>
    %56 = arith.divf %54, %55 : vector<8x128xf32>
    %57 = vector.extract_strided_slice %44 {offsets = [0, 256], sizes = [8, 128], strides = [1, 1]} : vector<8x512xf32> to vector<8x128xf32>
    %58 = math.tanh %57 : vector<8x128xf32>
    %59 = vector.extract_strided_slice %44 {offsets = [0, 384], sizes = [8, 128], strides = [1, 1]} : vector<8x512xf32> to vector<8x128xf32>
    %60 = arith.negf %59 : vector<8x128xf32>
    %61 = math.exp %60 : vector<8x128xf32>
    %cst_19 = arith.constant 1.000000e+00 : f32
    %62 = vector.broadcast %cst_19 : f32 to vector<8x128xf32>
    %63 = arith.addf %62, %61 : vector<8x128xf32>
    %64 = arith.divf %62, %63 : vector<8x128xf32>
    %65 = arith.mulf %56, %33 : vector<8x128xf32>
    %66 = arith.mulf %50, %58 : vector<8x128xf32>
    %67 = arith.addf %65, %66 : vector<8x128xf32>
    %68 = math.tanh %67 : vector<8x128xf32>
    %69 = arith.mulf %64, %68 : vector<8x128xf32>
    %70 = arith.index_cast %c1_i32 : i32 to index
    %c0_20 = arith.constant 0 : index
    %c0_21 = arith.constant 0 : index
    %71 = vector.load %arg11[%70, %c0_20, %c0_21] : memref<16x8x128xf32, #tpu.memory_space<vmem>>, vector<1x8x128xf32>
    %72 = vector.shape_cast %71 : vector<1x8x128xf32> to vector<8x128xf32>
    %73 = vector.shape_cast %69 : vector<8x128xf32> to vector<1x8x128xf32>
    tpu.vector_store %arg11[%70, %c0_20, %c0_21], %73 {strides = array<i32>} : memref<16x8x128xf32, #tpu.memory_space<vmem>>, vector<1x8x128xf32>,
    %c2_i32 = arith.constant 2 : i32
    %74 = arith.index_cast %c2_i32 : i32 to index
    %c0_22 = arith.constant 0 : index
    %c0_23 = arith.constant 0 : index
    %75 = vector.load %arg1[%74, %c0_22, %c0_23] : memref<16x8x512xf32, #tpu.memory_space<vmem>>, vector<1x8x512xf32>
    %76 = vector.shape_cast %75 : vector<1x8x512xf32> to vector<8x512xf32>
    %cst_24 = arith.constant dense<0.000000e+00> : vector<8x512xf32>
    %77 = tpu.matmul %69, %3, %cst_24 {dimension_numbers = #tpu.dot_dimension_numbers<[1], [0], [0], [1], [0, 0, 1, 1], [], []>} : vector<8x128xf32>, vector<128x512xf32>, vector<8x512xf32> -> vector<8x512xf32>
    %78 = arith.addf %76, %77 : vector<8x512xf32>
    %79 = vector.extract_strided_slice %78 {offsets = [0, 0], sizes = [8, 128], strides = [1, 1]} : vector<8x512xf32> to vector<8x128xf32>
    %80 = arith.negf %79 : vector<8x128xf32>
    %81 = math.exp %80 : vector<8x128xf32>
    %cst_25 = arith.constant 1.000000e+00 : f32
    %82 = vector.broadcast %cst_25 : f32 to vector<8x128xf32>
    %83 = arith.addf %82, %81 : vector<8x128xf32>
    %84 = arith.divf %82, %83 : vector<8x128xf32>
    %85 = vector.extract_strided_slice %78 {offsets = [0, 128], sizes = [8, 128], strides = [1, 1]} : vector<8x512xf32> to vector<8x128xf32>
    %86 = arith.negf %85 : vector<8x128xf32>
    %87 = math.exp %86 : vector<8x128xf32>
    %cst_26 = arith.constant 1.000000e+00 : f32
    %88 = vector.broadcast %cst_26 : f32 to vector<8x128xf32>
    %89 = arith.addf %88, %87 : vector<8x128xf32>
    %90 = arith.divf %88, %89 : vector<8x128xf32>
    %91 = vector.extract_strided_slice %78 {offsets = [0, 256], sizes = [8, 128], strides = [1, 1]} : vector<8x512xf32> to vector<8x128xf32>
    %92 = math.tanh %91 : vector<8x128xf32>
    %93 = vector.extract_strided_slice %78 {offsets = [0, 384], sizes = [8, 128], strides = [1, 1]} : vector<8x512xf32> to vector<8x128xf32>
    %94 = arith.negf %93 : vector<8x128xf32>
    %95 = math.exp %94 : vector<8x128xf32>
    %cst_27 = arith.constant 1.000000e+00 : f32
    %96 = vector.broadcast %cst_27 : f32 to vector<8x128xf32>
    %97 = arith.addf %96, %95 : vector<8x128xf32>
    %98 = arith.divf %96, %97 : vector<8x128xf32>
    %99 = arith.mulf %90, %67 : vector<8x128xf32>
    %100 = arith.mulf %84, %92 : vector<8x128xf32>
    %101 = arith.addf %99, %100 : vector<8x128xf32>
    %102 = math.tanh %101 : vector<8x128xf32>
    %103 = arith.mulf %98, %102 : vector<8x128xf32>
    %104 = arith.index_cast %c2_i32 : i32 to index
    %c0_28 = arith.constant 0 : index
    %c0_29 = arith.constant 0 : index
    %105 = vector.load %arg11[%104, %c0_28, %c0_29] : memref<16x8x128xf32, #tpu.memory_space<vmem>>, vector<1x8x128xf32>
    %106 = vector.shape_cast %105 : vector<1x8x128xf32> to vector<8x128xf32>
    %107 = vector.shape_cast %103 : vector<8x128xf32> to vector<1x8x128xf32>
    tpu.vector_store %arg11[%104, %c0_28, %c0_29], %107 {strides = array<i32>} : memref<16x8x128xf32, #tpu.memory_space<vmem>>, vector<1x8x128xf32>,
    %c3_i32 = arith.constant 3 : i32
    %108 = arith.index_cast %c3_i32 : i32 to index
    %c0_30 = arith.constant 0 : index
    %c0_31 = arith.constant 0 : index
    %109 = vector.load %arg1[%108, %c0_30, %c0_31] : memref<16x8x512xf32, #tpu.memory_space<vmem>>, vector<1x8x512xf32>
    %110 = vector.shape_cast %109 : vector<1x8x512xf32> to vector<8x512xf32>
    %cst_32 = arith.constant dense<0.000000e+00> : vector<8x512xf32>
    %111 = tpu.matmul %103, %3, %cst_32 {dimension_numbers = #tpu.dot_dimension_numbers<[1], [0], [0], [1], [0, 0, 1, 1], [], []>} : vector<8x128xf32>, vector<128x512xf32>, vector<8x512xf32> -> vector<8x512xf32>
    %112 = arith.addf %110, %111 : vector<8x512xf32>
    %113 = vector.extract_strided_slice %112 {offsets = [0, 0], sizes = [8, 128], strides = [1, 1]} : vector<8x512xf32> to vector<8x128xf32>
    %114 = arith.negf %113 : vector<8x128xf32>
    %115 = math.exp %114 : vector<8x128xf32>
    %cst_33 = arith.constant 1.000000e+00 : f32
    %116 = vector.broadcast %cst_33 : f32 to vector<8x128xf32>
    %117 = arith.addf %116, %115 : vector<8x128xf32>
    %118 = arith.divf %116, %117 : vector<8x128xf32>
    %119 = vector.extract_strided_slice %112 {offsets = [0, 128], sizes = [8, 128], strides = [1, 1]} : vector<8x512xf32> to vector<8x128xf32>
    %120 = arith.negf %119 : vector<8x128xf32>
    %121 = math.exp %120 : vector<8x128xf32>
    %cst_34 = arith.constant 1.000000e+00 : f32
    %122 = vector.broadcast %cst_34 : f32 to vector<8x128xf32>
    %123 = arith.addf %122, %121 : vector<8x128xf32>
    %124 = arith.divf %122, %123 : vector<8x128xf32>
    %125 = vector.extract_strided_slice %112 {offsets = [0, 256], sizes = [8, 128], strides = [1, 1]} : vector<8x512xf32> to vector<8x128xf32>
    %126 = math.tanh %125 : vector<8x128xf32>
    %127 = vector.extract_strided_slice %112 {offsets = [0, 384], sizes = [8, 128], strides = [1, 1]} : vector<8x512xf32> to vector<8x128xf32>
    %128 = arith.negf %127 : vector<8x128xf32>
    %129 = math.exp %128 : vector<8x128xf32>
    %cst_35 = arith.constant 1.000000e+00 : f32
    %130 = vector.broadcast %cst_35 : f32 to vector<8x128xf32>
    %131 = arith.addf %130, %129 : vector<8x128xf32>
    %132 = arith.divf %130, %131 : vector<8x128xf32>
    %133 = arith.mulf %124, %101 : vector<8x128xf32>
    %134 = arith.mulf %118, %126 : vector<8x128xf32>
    %135 = arith.addf %133, %134 : vector<8x128xf32>
    %136 = math.tanh %135 : vector<8x128xf32>
    %137 = arith.mulf %132, %136 : vector<8x128xf32>
    %138 = arith.index_cast %c3_i32 : i32 to index
    %c0_36 = arith.constant 0 : index
    %c0_37 = arith.constant 0 : index
    %139 = vector.load %arg11[%138, %c0_36, %c0_37] : memref<16x8x128xf32, #tpu.memory_space<vmem>>, vector<1x8x128xf32>
    %140 = vector.shape_cast %139 : vector<1x8x128xf32> to vector<8x128xf32>
    %141 = vector.shape_cast %137 : vector<8x128xf32> to vector<1x8x128xf32>
    tpu.vector_store %arg11[%138, %c0_36, %c0_37], %141 {strides = array<i32>} : memref<16x8x128xf32, #tpu.memory_space<vmem>>, vector<1x8x128xf32>,
    %c4_i32 = arith.constant 4 : i32
    %142 = arith.index_cast %c4_i32 : i32 to index
    %c0_38 = arith.constant 0 : index
    %c0_39 = arith.constant 0 : index
    %143 = vector.load %arg1[%142, %c0_38, %c0_39] : memref<16x8x512xf32, #tpu.memory_space<vmem>>, vector<1x8x512xf32>
    %144 = vector.shape_cast %143 : vector<1x8x512xf32> to vector<8x512xf32>
    %cst_40 = arith.constant dense<0.000000e+00> : vector<8x512xf32>
    %145 = tpu.matmul %137, %3, %cst_40 {dimension_numbers = #tpu.dot_dimension_numbers<[1], [0], [0], [1], [0, 0, 1, 1], [], []>} : vector<8x128xf32>, vector<128x512xf32>, vector<8x512xf32> -> vector<8x512xf32>
    %146 = arith.addf %144, %145 : vector<8x512xf32>
    %147 = vector.extract_strided_slice %146 {offsets = [0, 0], sizes = [8, 128], strides = [1, 1]} : vector<8x512xf32> to vector<8x128xf32>
    %148 = arith.negf %147 : vector<8x128xf32>
    %149 = math.exp %148 : vector<8x128xf32>
    %cst_41 = arith.constant 1.000000e+00 : f32
    %150 = vector.broadcast %cst_41 : f32 to vector<8x128xf32>
    %151 = arith.addf %150, %149 : vector<8x128xf32>
    %152 = arith.divf %150, %151 : vector<8x128xf32>
    %153 = vector.extract_strided_slice %146 {offsets = [0, 128], sizes = [8, 128], strides = [1, 1]} : vector<8x512xf32> to vector<8x128xf32>
    %154 = arith.negf %153 : vector<8x128xf32>
    %155 = math.exp %154 : vector<8x128xf32>
    %cst_42 = arith.constant 1.000000e+00 : f32
    %156 = vector.broadcast %cst_42 : f32 to vector<8x128xf32>
    %157 = arith.addf %156, %155 : vector<8x128xf32>
    %158 = arith.divf %156, %157 : vector<8x128xf32>
    %159 = vector.extract_strided_slice %146 {offsets = [0, 256], sizes = [8, 128], strides = [1, 1]} : vector<8x512xf32> to vector<8x128xf32>
    %160 = math.tanh %159 : vector<8x128xf32>
    %161 = vector.extract_strided_slice %146 {offsets = [0, 384], sizes = [8, 128], strides = [1, 1]} : vector<8x512xf32> to vector<8x128xf32>
    %162 = arith.negf %161 : vector<8x128xf32>
    %163 = math.exp %162 : vector<8x128xf32>
    %cst_43 = arith.constant 1.000000e+00 : f32
    %164 = vector.broadcast %cst_43 : f32 to vector<8x128xf32>
    %165 = arith.addf %164, %163 : vector<8x128xf32>
    %166 = arith.divf %164, %165 : vector<8x128xf32>
    %167 = arith.mulf %158, %135 : vector<8x128xf32>
    %168 = arith.mulf %152, %160 : vector<8x128xf32>
    %169 = arith.addf %167, %168 : vector<8x128xf32>
    %170 = math.tanh %169 : vector<8x128xf32>
    %171 = arith.mulf %166, %170 : vector<8x128xf32>
    %172 = arith.index_cast %c4_i32 : i32 to index
    %c0_44 = arith.constant 0 : index
    %c0_45 = arith.constant 0 : index
    %173 = vector.load %arg11[%172, %c0_44, %c0_45] : memref<16x8x128xf32, #tpu.memory_space<vmem>>, vector<1x8x128xf32>
    %174 = vector.shape_cast %173 : vector<1x8x128xf32> to vector<8x128xf32>
    %175 = vector.shape_cast %171 : vector<8x128xf32> to vector<1x8x128xf32>
    tpu.vector_store %arg11[%172, %c0_44, %c0_45], %175 {strides = array<i32>} : memref<16x8x128xf32, #tpu.memory_space<vmem>>, vector<1x8x128xf32>,
    %c5_i32 = arith.constant 5 : i32
    %176 = arith.index_cast %c5_i32 : i32 to index
    %c0_46 = arith.constant 0 : index
    %c0_47 = arith.constant 0 : index
    %177 = vector.load %arg1[%176, %c0_46, %c0_47] : memref<16x8x512xf32, #tpu.memory_space<vmem>>, vector<1x8x512xf32>
    %178 = vector.shape_cast %177 : vector<1x8x512xf32> to vector<8x512xf32>
    %cst_48 = arith.constant dense<0.000000e+00> : vector<8x512xf32>
    %179 = tpu.matmul %171, %3, %cst_48 {dimension_numbers = #tpu.dot_dimension_numbers<[1], [0], [0], [1], [0, 0, 1, 1], [], []>} : vector<8x128xf32>, vector<128x512xf32>, vector<8x512xf32> -> vector<8x512xf32>
    %180 = arith.addf %178, %179 : vector<8x512xf32>
    %181 = vector.extract_strided_slice %180 {offsets = [0, 0], sizes = [8, 128], strides = [1, 1]} : vector<8x512xf32> to vector<8x128xf32>
    %182 = arith.negf %181 : vector<8x128xf32>
    %183 = math.exp %182 : vector<8x128xf32>
    %cst_49 = arith.constant 1.000000e+00 : f32
    %184 = vector.broadcast %cst_49 : f32 to vector<8x128xf32>
    %185 = arith.addf %184, %183 : vector<8x128xf32>
    %186 = arith.divf %184, %185 : vector<8x128xf32>
    %187 = vector.extract_strided_slice %180 {offsets = [0, 128], sizes = [8, 128], strides = [1, 1]} : vector<8x512xf32> to vector<8x128xf32>
    %188 = arith.negf %187 : vector<8x128xf32>
    %189 = math.exp %188 : vector<8x128xf32>
    %cst_50 = arith.constant 1.000000e+00 : f32
    %190 = vector.broadcast %cst_50 : f32 to vector<8x128xf32>
    %191 = arith.addf %190, %189 : vector<8x128xf32>
    %192 = arith.divf %190, %191 : vector<8x128xf32>
    %193 = vector.extract_strided_slice %180 {offsets = [0, 256], sizes = [8, 128], strides = [1, 1]} : vector<8x512xf32> to vector<8x128xf32>
    %194 = math.tanh %193 : vector<8x128xf32>
    %195 = vector.extract_strided_slice %180 {offsets = [0, 384], sizes = [8, 128], strides = [1, 1]} : vector<8x512xf32> to vector<8x128xf32>
    %196 = arith.negf %195 : vector<8x128xf32>
    %197 = math.exp %196 : vector<8x128xf32>
    %cst_51 = arith.constant 1.000000e+00 : f32
    %198 = vector.broadcast %cst_51 : f32 to vector<8x128xf32>
    %199 = arith.addf %198, %197 : vector<8x128xf32>
    %200 = arith.divf %198, %199 : vector<8x128xf32>
    %201 = arith.mulf %192, %169 : vector<8x128xf32>
    %202 = arith.mulf %186, %194 : vector<8x128xf32>
    %203 = arith.addf %201, %202 : vector<8x128xf32>
    %204 = math.tanh %203 : vector<8x128xf32>
    %205 = arith.mulf %200, %204 : vector<8x128xf32>
    %206 = arith.index_cast %c5_i32 : i32 to index
    %c0_52 = arith.constant 0 : index
    %c0_53 = arith.constant 0 : index
    %207 = vector.load %arg11[%206, %c0_52, %c0_53] : memref<16x8x128xf32, #tpu.memory_space<vmem>>, vector<1x8x128xf32>
    %208 = vector.shape_cast %207 : vector<1x8x128xf32> to vector<8x128xf32>
    %209 = vector.shape_cast %205 : vector<8x128xf32> to vector<1x8x128xf32>
    tpu.vector_store %arg11[%206, %c0_52, %c0_53], %209 {strides = array<i32>} : memref<16x8x128xf32, #tpu.memory_space<vmem>>, vector<1x8x128xf32>,
    %c6_i32 = arith.constant 6 : i32
    %210 = arith.index_cast %c6_i32 : i32 to index
    %c0_54 = arith.constant 0 : index
    %c0_55 = arith.constant 0 : index
    %211 = vector.load %arg1[%210, %c0_54, %c0_55] : memref<16x8x512xf32, #tpu.memory_space<vmem>>, vector<1x8x512xf32>
    %212 = vector.shape_cast %211 : vector<1x8x512xf32> to vector<8x512xf32>
    %cst_56 = arith.constant dense<0.000000e+00> : vector<8x512xf32>
    %213 = tpu.matmul %205, %3, %cst_56 {dimension_numbers = #tpu.dot_dimension_numbers<[1], [0], [0], [1], [0, 0, 1, 1], [], []>} : vector<8x128xf32>, vector<128x512xf32>, vector<8x512xf32> -> vector<8x512xf32>
    %214 = arith.addf %212, %213 : vector<8x512xf32>
    %215 = vector.extract_strided_slice %214 {offsets = [0, 0], sizes = [8, 128], strides = [1, 1]} : vector<8x512xf32> to vector<8x128xf32>
    %216 = arith.negf %215 : vector<8x128xf32>
    %217 = math.exp %216 : vector<8x128xf32>
    %cst_57 = arith.constant 1.000000e+00 : f32
    %218 = vector.broadcast %cst_57 : f32 to vector<8x128xf32>
    %219 = arith.addf %218, %217 : vector<8x128xf32>
    %220 = arith.divf %218, %219 : vector<8x128xf32>
    %221 = vector.extract_strided_slice %214 {offsets = [0, 128], sizes = [8, 128], strides = [1, 1]} : vector<8x512xf32> to vector<8x128xf32>
    %222 = arith.negf %221 : vector<8x128xf32>
    %223 = math.exp %222 : vector<8x128xf32>
    %cst_58 = arith.constant 1.000000e+00 : f32
    %224 = vector.broadcast %cst_58 : f32 to vector<8x128xf32>
    %225 = arith.addf %224, %223 : vector<8x128xf32>
    %226 = arith.divf %224, %225 : vector<8x128xf32>
    %227 = vector.extract_strided_slice %214 {offsets = [0, 256], sizes = [8, 128], strides = [1, 1]} : vector<8x512xf32> to vector<8x128xf32>
    %228 = math.tanh %227 : vector<8x128xf32>
    %229 = vector.extract_strided_slice %214 {offsets = [0, 384], sizes = [8, 128], strides = [1, 1]} : vector<8x512xf32> to vector<8x128xf32>
    %230 = arith.negf %229 : vector<8x128xf32>
    %231 = math.exp %230 : vector<8x128xf32>
    %cst_59 = arith.constant 1.000000e+00 : f32
    %232 = vector.broadcast %cst_59 : f32 to vector<8x128xf32>
    %233 = arith.addf %232, %231 : vector<8x128xf32>
    %234 = arith.divf %232, %233 : vector<8x128xf32>
    %235 = arith.mulf %226, %203 : vector<8x128xf32>
    %236 = arith.mulf %220, %228 : vector<8x128xf32>
    %237 = arith.addf %235, %236 : vector<8x128xf32>
    %238 = math.tanh %237 : vector<8x128xf32>
    %239 = arith.mulf %234, %238 : vector<8x128xf32>
    %240 = arith.index_cast %c6_i32 : i32 to index
    %c0_60 = arith.constant 0 : index
    %c0_61 = arith.constant 0 : index
    %241 = vector.load %arg11[%240, %c0_60, %c0_61] : memref<16x8x128xf32, #tpu.memory_space<vmem>>, vector<1x8x128xf32>
    %242 = vector.shape_cast %241 : vector<1x8x128xf32> to vector<8x128xf32>
    %243 = vector.shape_cast %239 : vector<8x128xf32> to vector<1x8x128xf32>
    tpu.vector_store %arg11[%240, %c0_60, %c0_61], %243 {strides = array<i32>} : memref<16x8x128xf32, #tpu.memory_space<vmem>>, vector<1x8x128xf32>,
    %c7_i32 = arith.constant 7 : i32
    %244 = arith.index_cast %c7_i32 : i32 to index
    %c0_62 = arith.constant 0 : index
    %c0_63 = arith.constant 0 : index
    %245 = vector.load %arg1[%244, %c0_62, %c0_63] : memref<16x8x512xf32, #tpu.memory_space<vmem>>, vector<1x8x512xf32>
    %246 = vector.shape_cast %245 : vector<1x8x512xf32> to vector<8x512xf32>
    %cst_64 = arith.constant dense<0.000000e+00> : vector<8x512xf32>
    %247 = tpu.matmul %239, %3, %cst_64 {dimension_numbers = #tpu.dot_dimension_numbers<[1], [0], [0], [1], [0, 0, 1, 1], [], []>} : vector<8x128xf32>, vector<128x512xf32>, vector<8x512xf32> -> vector<8x512xf32>
    %248 = arith.addf %246, %247 : vector<8x512xf32>
    %249 = vector.extract_strided_slice %248 {offsets = [0, 0], sizes = [8, 128], strides = [1, 1]} : vector<8x512xf32> to vector<8x128xf32>
    %250 = arith.negf %249 : vector<8x128xf32>
    %251 = math.exp %250 : vector<8x128xf32>
    %cst_65 = arith.constant 1.000000e+00 : f32
    %252 = vector.broadcast %cst_65 : f32 to vector<8x128xf32>
    %253 = arith.addf %252, %251 : vector<8x128xf32>
    %254 = arith.divf %252, %253 : vector<8x128xf32>
    %255 = vector.extract_strided_slice %248 {offsets = [0, 128], sizes = [8, 128], strides = [1, 1]} : vector<8x512xf32> to vector<8x128xf32>
    %256 = arith.negf %255 : vector<8x128xf32>
    %257 = math.exp %256 : vector<8x128xf32>
    %cst_66 = arith.constant 1.000000e+00 : f32
    %258 = vector.broadcast %cst_66 : f32 to vector<8x128xf32>
    %259 = arith.addf %258, %257 : vector<8x128xf32>
    %260 = arith.divf %258, %259 : vector<8x128xf32>
    %261 = vector.extract_strided_slice %248 {offsets = [0, 256], sizes = [8, 128], strides = [1, 1]} : vector<8x512xf32> to vector<8x128xf32>
    %262 = math.tanh %261 : vector<8x128xf32>
    %263 = vector.extract_strided_slice %248 {offsets = [0, 384], sizes = [8, 128], strides = [1, 1]} : vector<8x512xf32> to vector<8x128xf32>
    %264 = arith.negf %263 : vector<8x128xf32>
    %265 = math.exp %264 : vector<8x128xf32>
    %cst_67 = arith.constant 1.000000e+00 : f32
    %266 = vector.broadcast %cst_67 : f32 to vector<8x128xf32>
    %267 = arith.addf %266, %265 : vector<8x128xf32>
    %268 = arith.divf %266, %267 : vector<8x128xf32>
    %269 = arith.mulf %260, %237 : vector<8x128xf32>
    %270 = arith.mulf %254, %262 : vector<8x128xf32>
    %271 = arith.addf %269, %270 : vector<8x128xf32>
    %272 = math.tanh %271 : vector<8x128xf32>
    %273 = arith.mulf %268, %272 : vector<8x128xf32>
    %274 = arith.index_cast %c7_i32 : i32 to index
    %c0_68 = arith.constant 0 : index
    %c0_69 = arith.constant 0 : index
    %275 = vector.load %arg11[%274, %c0_68, %c0_69] : memref<16x8x128xf32, #tpu.memory_space<vmem>>, vector<1x8x128xf32>
    %276 = vector.shape_cast %275 : vector<1x8x128xf32> to vector<8x128xf32>
    %277 = vector.shape_cast %273 : vector<8x128xf32> to vector<1x8x128xf32>
    tpu.vector_store %arg11[%274, %c0_68, %c0_69], %277 {strides = array<i32>} : memref<16x8x128xf32, #tpu.memory_space<vmem>>, vector<1x8x128xf32>,
    %c8_i32 = arith.constant 8 : i32
    %278 = arith.index_cast %c8_i32 : i32 to index
    %c0_70 = arith.constant 0 : index
    %c0_71 = arith.constant 0 : index
    %279 = vector.load %arg1[%278, %c0_70, %c0_71] : memref<16x8x512xf32, #tpu.memory_space<vmem>>, vector<1x8x512xf32>
    %280 = vector.shape_cast %279 : vector<1x8x512xf32> to vector<8x512xf32>
    %cst_72 = arith.constant dense<0.000000e+00> : vector<8x512xf32>
    %281 = tpu.matmul %273, %3, %cst_72 {dimension_numbers = #tpu.dot_dimension_numbers<[1], [0], [0], [1], [0, 0, 1, 1], [], []>} : vector<8x128xf32>, vector<128x512xf32>, vector<8x512xf32> -> vector<8x512xf32>
    %282 = arith.addf %280, %281 : vector<8x512xf32>
    %283 = vector.extract_strided_slice %282 {offsets = [0, 0], sizes = [8, 128], strides = [1, 1]} : vector<8x512xf32> to vector<8x128xf32>
    %284 = arith.negf %283 : vector<8x128xf32>
    %285 = math.exp %284 : vector<8x128xf32>
    %cst_73 = arith.constant 1.000000e+00 : f32
    %286 = vector.broadcast %cst_73 : f32 to vector<8x128xf32>
    %287 = arith.addf %286, %285 : vector<8x128xf32>
    %288 = arith.divf %286, %287 : vector<8x128xf32>
    %289 = vector.extract_strided_slice %282 {offsets = [0, 128], sizes = [8, 128], strides = [1, 1]} : vector<8x512xf32> to vector<8x128xf32>
    %290 = arith.negf %289 : vector<8x128xf32>
    %291 = math.exp %290 : vector<8x128xf32>
    %cst_74 = arith.constant 1.000000e+00 : f32
    %292 = vector.broadcast %cst_74 : f32 to vector<8x128xf32>
    %293 = arith.addf %292, %291 : vector<8x128xf32>
    %294 = arith.divf %292, %293 : vector<8x128xf32>
    %295 = vector.extract_strided_slice %282 {offsets = [0, 256], sizes = [8, 128], strides = [1, 1]} : vector<8x512xf32> to vector<8x128xf32>
    %296 = math.tanh %295 : vector<8x128xf32>
    %297 = vector.extract_strided_slice %282 {offsets = [0, 384], sizes = [8, 128], strides = [1, 1]} : vector<8x512xf32> to vector<8x128xf32>
    %298 = arith.negf %297 : vector<8x128xf32>
    %299 = math.exp %298 : vector<8x128xf32>
    %cst_75 = arith.constant 1.000000e+00 : f32
    %300 = vector.broadcast %cst_75 : f32 to vector<8x128xf32>
    %301 = arith.addf %300, %299 : vector<8x128xf32>
    %302 = arith.divf %300, %301 : vector<8x128xf32>
    %303 = arith.mulf %294, %271 : vector<8x128xf32>
    %304 = arith.mulf %288, %296 : vector<8x128xf32>
    %305 = arith.addf %303, %304 : vector<8x128xf32>
    %306 = math.tanh %305 : vector<8x128xf32>
    %307 = arith.mulf %302, %306 : vector<8x128xf32>
    %308 = arith.index_cast %c8_i32 : i32 to index
    %c0_76 = arith.constant 0 : index
    %c0_77 = arith.constant 0 : index
    %309 = vector.load %arg11[%308, %c0_76, %c0_77] : memref<16x8x128xf32, #tpu.memory_space<vmem>>, vector<1x8x128xf32>
    %310 = vector.shape_cast %309 : vector<1x8x128xf32> to vector<8x128xf32>
    %311 = vector.shape_cast %307 : vector<8x128xf32> to vector<1x8x128xf32>
    tpu.vector_store %arg11[%308, %c0_76, %c0_77], %311 {strides = array<i32>} : memref<16x8x128xf32, #tpu.memory_space<vmem>>, vector<1x8x128xf32>,
    %c9_i32 = arith.constant 9 : i32
    %312 = arith.index_cast %c9_i32 : i32 to index
    %c0_78 = arith.constant 0 : index
    %c0_79 = arith.constant 0 : index
    %313 = vector.load %arg1[%312, %c0_78, %c0_79] : memref<16x8x512xf32, #tpu.memory_space<vmem>>, vector<1x8x512xf32>
    %314 = vector.shape_cast %313 : vector<1x8x512xf32> to vector<8x512xf32>
    %cst_80 = arith.constant dense<0.000000e+00> : vector<8x512xf32>
    %315 = tpu.matmul %307, %3, %cst_80 {dimension_numbers = #tpu.dot_dimension_numbers<[1], [0], [0], [1], [0, 0, 1, 1], [], []>} : vector<8x128xf32>, vector<128x512xf32>, vector<8x512xf32> -> vector<8x512xf32>
    %316 = arith.addf %314, %315 : vector<8x512xf32>
    %317 = vector.extract_strided_slice %316 {offsets = [0, 0], sizes = [8, 128], strides = [1, 1]} : vector<8x512xf32> to vector<8x128xf32>
    %318 = arith.negf %317 : vector<8x128xf32>
    %319 = math.exp %318 : vector<8x128xf32>
    %cst_81 = arith.constant 1.000000e+00 : f32
    %320 = vector.broadcast %cst_81 : f32 to vector<8x128xf32>
    %321 = arith.addf %320, %319 : vector<8x128xf32>
    %322 = arith.divf %320, %321 : vector<8x128xf32>
    %323 = vector.extract_strided_slice %316 {offsets = [0, 128], sizes = [8, 128], strides = [1, 1]} : vector<8x512xf32> to vector<8x128xf32>
    %324 = arith.negf %323 : vector<8x128xf32>
    %325 = math.exp %324 : vector<8x128xf32>
    %cst_82 = arith.constant 1.000000e+00 : f32
    %326 = vector.broadcast %cst_82 : f32 to vector<8x128xf32>
    %327 = arith.addf %326, %325 : vector<8x128xf32>
    %328 = arith.divf %326, %327 : vector<8x128xf32>
    %329 = vector.extract_strided_slice %316 {offsets = [0, 256], sizes = [8, 128], strides = [1, 1]} : vector<8x512xf32> to vector<8x128xf32>
    %330 = math.tanh %329 : vector<8x128xf32>
    %331 = vector.extract_strided_slice %316 {offsets = [0, 384], sizes = [8, 128], strides = [1, 1]} : vector<8x512xf32> to vector<8x128xf32>
    %332 = arith.negf %331 : vector<8x128xf32>
    %333 = math.exp %332 : vector<8x128xf32>
    %cst_83 = arith.constant 1.000000e+00 : f32
    %334 = vector.broadcast %cst_83 : f32 to vector<8x128xf32>
    %335 = arith.addf %334, %333 : vector<8x128xf32>
    %336 = arith.divf %334, %335 : vector<8x128xf32>
    %337 = arith.mulf %328, %305 : vector<8x128xf32>
    %338 = arith.mulf %322, %330 : vector<8x128xf32>
    %339 = arith.addf %337, %338 : vector<8x128xf32>
    %340 = math.tanh %339 : vector<8x128xf32>
    %341 = arith.mulf %336, %340 : vector<8x128xf32>
    %342 = arith.index_cast %c9_i32 : i32 to index
    %c0_84 = arith.constant 0 : index
    %c0_85 = arith.constant 0 : index
    %343 = vector.load %arg11[%342, %c0_84, %c0_85] : memref<16x8x128xf32, #tpu.memory_space<vmem>>, vector<1x8x128xf32>
    %344 = vector.shape_cast %343 : vector<1x8x128xf32> to vector<8x128xf32>
    %345 = vector.shape_cast %341 : vector<8x128xf32> to vector<1x8x128xf32>
    tpu.vector_store %arg11[%342, %c0_84, %c0_85], %345 {strides = array<i32>} : memref<16x8x128xf32, #tpu.memory_space<vmem>>, vector<1x8x128xf32>,
    %c10_i32 = arith.constant 10 : i32
    %346 = arith.index_cast %c10_i32 : i32 to index
    %c0_86 = arith.constant 0 : index
    %c0_87 = arith.constant 0 : index
    %347 = vector.load %arg1[%346, %c0_86, %c0_87] : memref<16x8x512xf32, #tpu.memory_space<vmem>>, vector<1x8x512xf32>
    %348 = vector.shape_cast %347 : vector<1x8x512xf32> to vector<8x512xf32>
    %cst_88 = arith.constant dense<0.000000e+00> : vector<8x512xf32>
    %349 = tpu.matmul %341, %3, %cst_88 {dimension_numbers = #tpu.dot_dimension_numbers<[1], [0], [0], [1], [0, 0, 1, 1], [], []>} : vector<8x128xf32>, vector<128x512xf32>, vector<8x512xf32> -> vector<8x512xf32>
    %350 = arith.addf %348, %349 : vector<8x512xf32>
    %351 = vector.extract_strided_slice %350 {offsets = [0, 0], sizes = [8, 128], strides = [1, 1]} : vector<8x512xf32> to vector<8x128xf32>
    %352 = arith.negf %351 : vector<8x128xf32>
    %353 = math.exp %352 : vector<8x128xf32>
    %cst_89 = arith.constant 1.000000e+00 : f32
    %354 = vector.broadcast %cst_89 : f32 to vector<8x128xf32>
    %355 = arith.addf %354, %353 : vector<8x128xf32>
    %356 = arith.divf %354, %355 : vector<8x128xf32>
    %357 = vector.extract_strided_slice %350 {offsets = [0, 128], sizes = [8, 128], strides = [1, 1]} : vector<8x512xf32> to vector<8x128xf32>
    %358 = arith.negf %357 : vector<8x128xf32>
    %359 = math.exp %358 : vector<8x128xf32>
    %cst_90 = arith.constant 1.000000e+00 : f32
    %360 = vector.broadcast %cst_90 : f32 to vector<8x128xf32>
    %361 = arith.addf %360, %359 : vector<8x128xf32>
    %362 = arith.divf %360, %361 : vector<8x128xf32>
    %363 = vector.extract_strided_slice %350 {offsets = [0, 256], sizes = [8, 128], strides = [1, 1]} : vector<8x512xf32> to vector<8x128xf32>
    %364 = math.tanh %363 : vector<8x128xf32>
    %365 = vector.extract_strided_slice %350 {offsets = [0, 384], sizes = [8, 128], strides = [1, 1]} : vector<8x512xf32> to vector<8x128xf32>
    %366 = arith.negf %365 : vector<8x128xf32>
    %367 = math.exp %366 : vector<8x128xf32>
    %cst_91 = arith.constant 1.000000e+00 : f32
    %368 = vector.broadcast %cst_91 : f32 to vector<8x128xf32>
    %369 = arith.addf %368, %367 : vector<8x128xf32>
    %370 = arith.divf %368, %369 : vector<8x128xf32>
    %371 = arith.mulf %362, %339 : vector<8x128xf32>
    %372 = arith.mulf %356, %364 : vector<8x128xf32>
    %373 = arith.addf %371, %372 : vector<8x128xf32>
    %374 = math.tanh %373 : vector<8x128xf32>
    %375 = arith.mulf %370, %374 : vector<8x128xf32>
    %376 = arith.index_cast %c10_i32 : i32 to index
    %c0_92 = arith.constant 0 : index
    %c0_93 = arith.constant 0 : index
    %377 = vector.load %arg11[%376, %c0_92, %c0_93] : memref<16x8x128xf32, #tpu.memory_space<vmem>>, vector<1x8x128xf32>
    %378 = vector.shape_cast %377 : vector<1x8x128xf32> to vector<8x128xf32>
    %379 = vector.shape_cast %375 : vector<8x128xf32> to vector<1x8x128xf32>
    tpu.vector_store %arg11[%376, %c0_92, %c0_93], %379 {strides = array<i32>} : memref<16x8x128xf32, #tpu.memory_space<vmem>>, vector<1x8x128xf32>,
    %c11_i32 = arith.constant 11 : i32
    %380 = arith.index_cast %c11_i32 : i32 to index
    %c0_94 = arith.constant 0 : index
    %c0_95 = arith.constant 0 : index
    %381 = vector.load %arg1[%380, %c0_94, %c0_95] : memref<16x8x512xf32, #tpu.memory_space<vmem>>, vector<1x8x512xf32>
    %382 = vector.shape_cast %381 : vector<1x8x512xf32> to vector<8x512xf32>
    %cst_96 = arith.constant dense<0.000000e+00> : vector<8x512xf32>
    %383 = tpu.matmul %375, %3, %cst_96 {dimension_numbers = #tpu.dot_dimension_numbers<[1], [0], [0], [1], [0, 0, 1, 1], [], []>} : vector<8x128xf32>, vector<128x512xf32>, vector<8x512xf32> -> vector<8x512xf32>
    %384 = arith.addf %382, %383 : vector<8x512xf32>
    %385 = vector.extract_strided_slice %384 {offsets = [0, 0], sizes = [8, 128], strides = [1, 1]} : vector<8x512xf32> to vector<8x128xf32>
    %386 = arith.negf %385 : vector<8x128xf32>
    %387 = math.exp %386 : vector<8x128xf32>
    %cst_97 = arith.constant 1.000000e+00 : f32
    %388 = vector.broadcast %cst_97 : f32 to vector<8x128xf32>
    %389 = arith.addf %388, %387 : vector<8x128xf32>
    %390 = arith.divf %388, %389 : vector<8x128xf32>
    %391 = vector.extract_strided_slice %384 {offsets = [0, 128], sizes = [8, 128], strides = [1, 1]} : vector<8x512xf32> to vector<8x128xf32>
    %392 = arith.negf %391 : vector<8x128xf32>
    %393 = math.exp %392 : vector<8x128xf32>
    %cst_98 = arith.constant 1.000000e+00 : f32
    %394 = vector.broadcast %cst_98 : f32 to vector<8x128xf32>
    %395 = arith.addf %394, %393 : vector<8x128xf32>
    %396 = arith.divf %394, %395 : vector<8x128xf32>
    %397 = vector.extract_strided_slice %384 {offsets = [0, 256], sizes = [8, 128], strides = [1, 1]} : vector<8x512xf32> to vector<8x128xf32>
    %398 = math.tanh %397 : vector<8x128xf32>
    %399 = vector.extract_strided_slice %384 {offsets = [0, 384], sizes = [8, 128], strides = [1, 1]} : vector<8x512xf32> to vector<8x128xf32>
    %400 = arith.negf %399 : vector<8x128xf32>
    %401 = math.exp %400 : vector<8x128xf32>
    %cst_99 = arith.constant 1.000000e+00 : f32
    %402 = vector.broadcast %cst_99 : f32 to vector<8x128xf32>
    %403 = arith.addf %402, %401 : vector<8x128xf32>
    %404 = arith.divf %402, %403 : vector<8x128xf32>
    %405 = arith.mulf %396, %373 : vector<8x128xf32>
    %406 = arith.mulf %390, %398 : vector<8x128xf32>
    %407 = arith.addf %405, %406 : vector<8x128xf32>
    %408 = math.tanh %407 : vector<8x128xf32>
    %409 = arith.mulf %404, %408 : vector<8x128xf32>
    %410 = arith.index_cast %c11_i32 : i32 to index
    %c0_100 = arith.constant 0 : index
    %c0_101 = arith.constant 0 : index
    %411 = vector.load %arg11[%410, %c0_100, %c0_101] : memref<16x8x128xf32, #tpu.memory_space<vmem>>, vector<1x8x128xf32>
    %412 = vector.shape_cast %411 : vector<1x8x128xf32> to vector<8x128xf32>
    %413 = vector.shape_cast %409 : vector<8x128xf32> to vector<1x8x128xf32>
    tpu.vector_store %arg11[%410, %c0_100, %c0_101], %413 {strides = array<i32>} : memref<16x8x128xf32, #tpu.memory_space<vmem>>, vector<1x8x128xf32>,
    %c12_i32 = arith.constant 12 : i32
    %414 = arith.index_cast %c12_i32 : i32 to index
    %c0_102 = arith.constant 0 : index
    %c0_103 = arith.constant 0 : index
    %415 = vector.load %arg1[%414, %c0_102, %c0_103] : memref<16x8x512xf32, #tpu.memory_space<vmem>>, vector<1x8x512xf32>
    %416 = vector.shape_cast %415 : vector<1x8x512xf32> to vector<8x512xf32>
    %cst_104 = arith.constant dense<0.000000e+00> : vector<8x512xf32>
    %417 = tpu.matmul %409, %3, %cst_104 {dimension_numbers = #tpu.dot_dimension_numbers<[1], [0], [0], [1], [0, 0, 1, 1], [], []>} : vector<8x128xf32>, vector<128x512xf32>, vector<8x512xf32> -> vector<8x512xf32>
    %418 = arith.addf %416, %417 : vector<8x512xf32>
    %419 = vector.extract_strided_slice %418 {offsets = [0, 0], sizes = [8, 128], strides = [1, 1]} : vector<8x512xf32> to vector<8x128xf32>
    %420 = arith.negf %419 : vector<8x128xf32>
    %421 = math.exp %420 : vector<8x128xf32>
    %cst_105 = arith.constant 1.000000e+00 : f32
    %422 = vector.broadcast %cst_105 : f32 to vector<8x128xf32>
    %423 = arith.addf %422, %421 : vector<8x128xf32>
    %424 = arith.divf %422, %423 : vector<8x128xf32>
    %425 = vector.extract_strided_slice %418 {offsets = [0, 128], sizes = [8, 128], strides = [1, 1]} : vector<8x512xf32> to vector<8x128xf32>
    %426 = arith.negf %425 : vector<8x128xf32>
    %427 = math.exp %426 : vector<8x128xf32>
    %cst_106 = arith.constant 1.000000e+00 : f32
    %428 = vector.broadcast %cst_106 : f32 to vector<8x128xf32>
    %429 = arith.addf %428, %427 : vector<8x128xf32>
    %430 = arith.divf %428, %429 : vector<8x128xf32>
    %431 = vector.extract_strided_slice %418 {offsets = [0, 256], sizes = [8, 128], strides = [1, 1]} : vector<8x512xf32> to vector<8x128xf32>
    %432 = math.tanh %431 : vector<8x128xf32>
    %433 = vector.extract_strided_slice %418 {offsets = [0, 384], sizes = [8, 128], strides = [1, 1]} : vector<8x512xf32> to vector<8x128xf32>
    %434 = arith.negf %433 : vector<8x128xf32>
    %435 = math.exp %434 : vector<8x128xf32>
    %cst_107 = arith.constant 1.000000e+00 : f32
    %436 = vector.broadcast %cst_107 : f32 to vector<8x128xf32>
    %437 = arith.addf %436, %435 : vector<8x128xf32>
    %438 = arith.divf %436, %437 : vector<8x128xf32>
    %439 = arith.mulf %430, %407 : vector<8x128xf32>
    %440 = arith.mulf %424, %432 : vector<8x128xf32>
    %441 = arith.addf %439, %440 : vector<8x128xf32>
    %442 = math.tanh %441 : vector<8x128xf32>
    %443 = arith.mulf %438, %442 : vector<8x128xf32>
    %444 = arith.index_cast %c12_i32 : i32 to index
    %c0_108 = arith.constant 0 : index
    %c0_109 = arith.constant 0 : index
    %445 = vector.load %arg11[%444, %c0_108, %c0_109] : memref<16x8x128xf32, #tpu.memory_space<vmem>>, vector<1x8x128xf32>
    %446 = vector.shape_cast %445 : vector<1x8x128xf32> to vector<8x128xf32>
    %447 = vector.shape_cast %443 : vector<8x128xf32> to vector<1x8x128xf32>
    tpu.vector_store %arg11[%444, %c0_108, %c0_109], %447 {strides = array<i32>} : memref<16x8x128xf32, #tpu.memory_space<vmem>>, vector<1x8x128xf32>,
    %c13_i32 = arith.constant 13 : i32
    %448 = arith.index_cast %c13_i32 : i32 to index
    %c0_110 = arith.constant 0 : index
    %c0_111 = arith.constant 0 : index
    %449 = vector.load %arg1[%448, %c0_110, %c0_111] : memref<16x8x512xf32, #tpu.memory_space<vmem>>, vector<1x8x512xf32>
    %450 = vector.shape_cast %449 : vector<1x8x512xf32> to vector<8x512xf32>
    %cst_112 = arith.constant dense<0.000000e+00> : vector<8x512xf32>
    %451 = tpu.matmul %443, %3, %cst_112 {dimension_numbers = #tpu.dot_dimension_numbers<[1], [0], [0], [1], [0, 0, 1, 1], [], []>} : vector<8x128xf32>, vector<128x512xf32>, vector<8x512xf32> -> vector<8x512xf32>
    %452 = arith.addf %450, %451 : vector<8x512xf32>
    %453 = vector.extract_strided_slice %452 {offsets = [0, 0], sizes = [8, 128], strides = [1, 1]} : vector<8x512xf32> to vector<8x128xf32>
    %454 = arith.negf %453 : vector<8x128xf32>
    %455 = math.exp %454 : vector<8x128xf32>
    %cst_113 = arith.constant 1.000000e+00 : f32
    %456 = vector.broadcast %cst_113 : f32 to vector<8x128xf32>
    %457 = arith.addf %456, %455 : vector<8x128xf32>
    %458 = arith.divf %456, %457 : vector<8x128xf32>
    %459 = vector.extract_strided_slice %452 {offsets = [0, 128], sizes = [8, 128], strides = [1, 1]} : vector<8x512xf32> to vector<8x128xf32>
    %460 = arith.negf %459 : vector<8x128xf32>
    %461 = math.exp %460 : vector<8x128xf32>
    %cst_114 = arith.constant 1.000000e+00 : f32
    %462 = vector.broadcast %cst_114 : f32 to vector<8x128xf32>
    %463 = arith.addf %462, %461 : vector<8x128xf32>
    %464 = arith.divf %462, %463 : vector<8x128xf32>
    %465 = vector.extract_strided_slice %452 {offsets = [0, 256], sizes = [8, 128], strides = [1, 1]} : vector<8x512xf32> to vector<8x128xf32>
    %466 = math.tanh %465 : vector<8x128xf32>
    %467 = vector.extract_strided_slice %452 {offsets = [0, 384], sizes = [8, 128], strides = [1, 1]} : vector<8x512xf32> to vector<8x128xf32>
    %468 = arith.negf %467 : vector<8x128xf32>
    %469 = math.exp %468 : vector<8x128xf32>
    %cst_115 = arith.constant 1.000000e+00 : f32
    %470 = vector.broadcast %cst_115 : f32 to vector<8x128xf32>
    %471 = arith.addf %470, %469 : vector<8x128xf32>
    %472 = arith.divf %470, %471 : vector<8x128xf32>
    %473 = arith.mulf %464, %441 : vector<8x128xf32>
    %474 = arith.mulf %458, %466 : vector<8x128xf32>
    %475 = arith.addf %473, %474 : vector<8x128xf32>
    %476 = math.tanh %475 : vector<8x128xf32>
    %477 = arith.mulf %472, %476 : vector<8x128xf32>
    %478 = arith.index_cast %c13_i32 : i32 to index
    %c0_116 = arith.constant 0 : index
    %c0_117 = arith.constant 0 : index
    %479 = vector.load %arg11[%478, %c0_116, %c0_117] : memref<16x8x128xf32, #tpu.memory_space<vmem>>, vector<1x8x128xf32>
    %480 = vector.shape_cast %479 : vector<1x8x128xf32> to vector<8x128xf32>
    %481 = vector.shape_cast %477 : vector<8x128xf32> to vector<1x8x128xf32>
    tpu.vector_store %arg11[%478, %c0_116, %c0_117], %481 {strides = array<i32>} : memref<16x8x128xf32, #tpu.memory_space<vmem>>, vector<1x8x128xf32>,
    %c14_i32 = arith.constant 14 : i32
    %482 = arith.index_cast %c14_i32 : i32 to index
    %c0_118 = arith.constant 0 : index
    %c0_119 = arith.constant 0 : index
    %483 = vector.load %arg1[%482, %c0_118, %c0_119] : memref<16x8x512xf32, #tpu.memory_space<vmem>>, vector<1x8x512xf32>
    %484 = vector.shape_cast %483 : vector<1x8x512xf32> to vector<8x512xf32>
    %cst_120 = arith.constant dense<0.000000e+00> : vector<8x512xf32>
    %485 = tpu.matmul %477, %3, %cst_120 {dimension_numbers = #tpu.dot_dimension_numbers<[1], [0], [0], [1], [0, 0, 1, 1], [], []>} : vector<8x128xf32>, vector<128x512xf32>, vector<8x512xf32> -> vector<8x512xf32>
    %486 = arith.addf %484, %485 : vector<8x512xf32>
    %487 = vector.extract_strided_slice %486 {offsets = [0, 0], sizes = [8, 128], strides = [1, 1]} : vector<8x512xf32> to vector<8x128xf32>
    %488 = arith.negf %487 : vector<8x128xf32>
    %489 = math.exp %488 : vector<8x128xf32>
    %cst_121 = arith.constant 1.000000e+00 : f32
    %490 = vector.broadcast %cst_121 : f32 to vector<8x128xf32>
    %491 = arith.addf %490, %489 : vector<8x128xf32>
    %492 = arith.divf %490, %491 : vector<8x128xf32>
    %493 = vector.extract_strided_slice %486 {offsets = [0, 128], sizes = [8, 128], strides = [1, 1]} : vector<8x512xf32> to vector<8x128xf32>
    %494 = arith.negf %493 : vector<8x128xf32>
    %495 = math.exp %494 : vector<8x128xf32>
    %cst_122 = arith.constant 1.000000e+00 : f32
    %496 = vector.broadcast %cst_122 : f32 to vector<8x128xf32>
    %497 = arith.addf %496, %495 : vector<8x128xf32>
    %498 = arith.divf %496, %497 : vector<8x128xf32>
    %499 = vector.extract_strided_slice %486 {offsets = [0, 256], sizes = [8, 128], strides = [1, 1]} : vector<8x512xf32> to vector<8x128xf32>
    %500 = math.tanh %499 : vector<8x128xf32>
    %501 = vector.extract_strided_slice %486 {offsets = [0, 384], sizes = [8, 128], strides = [1, 1]} : vector<8x512xf32> to vector<8x128xf32>
    %502 = arith.negf %501 : vector<8x128xf32>
    %503 = math.exp %502 : vector<8x128xf32>
    %cst_123 = arith.constant 1.000000e+00 : f32
    %504 = vector.broadcast %cst_123 : f32 to vector<8x128xf32>
    %505 = arith.addf %504, %503 : vector<8x128xf32>
    %506 = arith.divf %504, %505 : vector<8x128xf32>
    %507 = arith.mulf %498, %475 : vector<8x128xf32>
    %508 = arith.mulf %492, %500 : vector<8x128xf32>
    %509 = arith.addf %507, %508 : vector<8x128xf32>
    %510 = math.tanh %509 : vector<8x128xf32>
    %511 = arith.mulf %506, %510 : vector<8x128xf32>
    %512 = arith.index_cast %c14_i32 : i32 to index
    %c0_124 = arith.constant 0 : index
    %c0_125 = arith.constant 0 : index
    %513 = vector.load %arg11[%512, %c0_124, %c0_125] : memref<16x8x128xf32, #tpu.memory_space<vmem>>, vector<1x8x128xf32>
    %514 = vector.shape_cast %513 : vector<1x8x128xf32> to vector<8x128xf32>
    %515 = vector.shape_cast %511 : vector<8x128xf32> to vector<1x8x128xf32>
    tpu.vector_store %arg11[%512, %c0_124, %c0_125], %515 {strides = array<i32>} : memref<16x8x128xf32, #tpu.memory_space<vmem>>, vector<1x8x128xf32>,
    %c15_i32 = arith.constant 15 : i32
    %516 = arith.index_cast %c15_i32 : i32 to index
    %c0_126 = arith.constant 0 : index
    %c0_127 = arith.constant 0 : index
    %517 = vector.load %arg1[%516, %c0_126, %c0_127] : memref<16x8x512xf32, #tpu.memory_space<vmem>>, vector<1x8x512xf32>
    %518 = vector.shape_cast %517 : vector<1x8x512xf32> to vector<8x512xf32>
    %cst_128 = arith.constant dense<0.000000e+00> : vector<8x512xf32>
    %519 = tpu.matmul %511, %3, %cst_128 {dimension_numbers = #tpu.dot_dimension_numbers<[1], [0], [0], [1], [0, 0, 1, 1], [], []>} : vector<8x128xf32>, vector<128x512xf32>, vector<8x512xf32> -> vector<8x512xf32>
    %520 = arith.addf %518, %519 : vector<8x512xf32>
    %521 = vector.extract_strided_slice %520 {offsets = [0, 0], sizes = [8, 128], strides = [1, 1]} : vector<8x512xf32> to vector<8x128xf32>
    %522 = arith.negf %521 : vector<8x128xf32>
    %523 = math.exp %522 : vector<8x128xf32>
    %cst_129 = arith.constant 1.000000e+00 : f32
    %524 = vector.broadcast %cst_129 : f32 to vector<8x128xf32>
    %525 = arith.addf %524, %523 : vector<8x128xf32>
    %526 = arith.divf %524, %525 : vector<8x128xf32>
    %527 = vector.extract_strided_slice %520 {offsets = [0, 128], sizes = [8, 128], strides = [1, 1]} : vector<8x512xf32> to vector<8x128xf32>
    %528 = arith.negf %527 : vector<8x128xf32>
    %529 = math.exp %528 : vector<8x128xf32>
    %cst_130 = arith.constant 1.000000e+00 : f32
    %530 = vector.broadcast %cst_130 : f32 to vector<8x128xf32>
    %531 = arith.addf %530, %529 : vector<8x128xf32>
    %532 = arith.divf %530, %531 : vector<8x128xf32>
    %533 = vector.extract_strided_slice %520 {offsets = [0, 256], sizes = [8, 128], strides = [1, 1]} : vector<8x512xf32> to vector<8x128xf32>
    %534 = math.tanh %533 : vector<8x128xf32>
    %535 = vector.extract_strided_slice %520 {offsets = [0, 384], sizes = [8, 128], strides = [1, 1]} : vector<8x512xf32> to vector<8x128xf32>
    %536 = arith.negf %535 : vector<8x128xf32>
    %537 = math.exp %536 : vector<8x128xf32>
    %cst_131 = arith.constant 1.000000e+00 : f32
    %538 = vector.broadcast %cst_131 : f32 to vector<8x128xf32>
    %539 = arith.addf %538, %537 : vector<8x128xf32>
    %540 = arith.divf %538, %539 : vector<8x128xf32>
    %541 = arith.mulf %532, %509 : vector<8x128xf32>
    %542 = arith.mulf %526, %534 : vector<8x128xf32>
    %543 = arith.addf %541, %542 : vector<8x128xf32>
    %544 = math.tanh %543 : vector<8x128xf32>
    %545 = arith.mulf %540, %544 : vector<8x128xf32>
    %546 = arith.index_cast %c15_i32 : i32 to index
    %c0_132 = arith.constant 0 : index
    %c0_133 = arith.constant 0 : index
    %547 = vector.load %arg11[%546, %c0_132, %c0_133] : memref<16x8x128xf32, #tpu.memory_space<vmem>>, vector<1x8x128xf32>
    %548 = vector.shape_cast %547 : vector<1x8x128xf32> to vector<8x128xf32>
    %549 = vector.shape_cast %545 : vector<8x128xf32> to vector<1x8x128xf32>
    tpu.vector_store %arg11[%546, %c0_132, %c0_133], %549 {strides = array<i32>} : memref<16x8x128xf32, #tpu.memory_space<vmem>>, vector<1x8x128xf32>,
    %c16_i32 = arith.constant 16 : i32
    %c0_134 = arith.constant 0 : index
    %c0_135 = arith.constant 0 : index
    %550 = vector.load %arg7[%c0_134, %c0_135] : memref<8x128xf32, #tpu.memory_space<vmem>>, vector<8x128xf32>
    tpu.vector_store %arg7[%c0_134, %c0_135], %545 {strides = array<i32>} : memref<8x128xf32, #tpu.memory_space<vmem>>, vector<8x128xf32>,
    %c0_136 = arith.constant 0 : index
    %c0_137 = arith.constant 0 : index
    %551 = vector.load %arg8[%c0_136, %c0_137] : memref<8x128xf32, #tpu.memory_space<vmem>>, vector<8x128xf32>
    tpu.vector_store %arg8[%c0_136, %c0_137], %543 {strides = array<i32>} : memref<8x128xf32, #tpu.memory_space<vmem>>, vector<8x128xf32>,
    %c0_138 = arith.constant 0 : index
    %c0_139 = arith.constant 0 : index
    %c0_140 = arith.constant 0 : index
    %552 = vector.load %arg11[%c0_138, %c0_139, %c0_140] : memref<16x8x128xf32, #tpu.memory_space<vmem>>, vector<16x8x128xf32>
    %553 = vector.shape_cast %552 : vector<16x8x128xf32> to vector<128x128xf32>
    %c0_141 = arith.constant 0 : index
    %c0_142 = arith.constant 0 : index
    %554 = vector.load %arg3[%c0_141, %c0_142] : memref<128x512xf32, #tpu.memory_space<vmem>>, vector<128x512xf32>
    %cst_143 = arith.constant dense<0.000000e+00> : vector<128x512xf32>
    %555 = tpu.matmul %553, %554, %cst_143 {dimension_numbers = #tpu.dot_dimension_numbers<[1], [0], [0], [1], [0, 0, 1, 1], [], []>} : vector<128x128xf32>, vector<128x512xf32>, vector<128x512xf32> -> vector<128x512xf32>
    %c0_144 = arith.constant 0 : index
    %c0_145 = arith.constant 0 : index
    %556 = vector.load %arg5[%c0_144, %c0_145] : memref<1x512xf32, #tpu.memory_space<vmem>>, vector<1x512xf32>
    %557 = vector.broadcast %556 : vector<1x512xf32> to vector<128x512xf32>
    %558 = arith.addf %555, %557 : vector<128x512xf32>
    %559 = vector.shape_cast %558 : vector<128x512xf32> to vector<16x8x512xf32>
    %c0_146 = arith.constant 0 : index
    %c0_147 = arith.constant 0 : index
    %c0_148 = arith.constant 0 : index
    %560 = vector.load %arg12[%c0_146, %c0_147, %c0_148] : memref<16x8x512xf32, #tpu.memory_space<vmem>>, vector<16x8x512xf32>
    tpu.vector_store %arg12[%c0_146, %c0_147, %c0_148], %559 {strides = array<i32>} : memref<16x8x512xf32, #tpu.memory_space<vmem>>, vector<16x8x512xf32>,
    %c0_149 = arith.constant 0 : index
    %c0_150 = arith.constant 0 : index
    %561 = vector.load %arg4[%c0_149, %c0_150] : memref<128x512xf32, #tpu.memory_space<vmem>>, vector<128x512xf32>
    %c0_151 = arith.constant 0 : index
    %c0_152 = arith.constant 0 : index
    %562 = vector.load %arg9[%c0_151, %c0_152] : memref<8x128xf32, #tpu.memory_space<vmem>>, vector<8x128xf32>
    %c0_153 = arith.constant 0 : index
    %c0_154 = arith.constant 0 : index
    %563 = vector.load %arg10[%c0_153, %c0_154] : memref<8x128xf32, #tpu.memory_space<vmem>>, vector<8x128xf32>
    %c0_i32_155 = arith.constant 0 : i32
    %564 = arith.index_cast %c0_i32_155 : i32 to index
    %c0_156 = arith.constant 0 : index
    %c0_157 = arith.constant 0 : index
    %565 = vector.load %arg12[%564, %c0_156, %c0_157] : memref<16x8x512xf32, #tpu.memory_space<vmem>>, vector<1x8x512xf32>
    %566 = vector.shape_cast %565 : vector<1x8x512xf32> to vector<8x512xf32>
    %cst_158 = arith.constant dense<0.000000e+00> : vector<8x512xf32>
    %567 = tpu.matmul %562, %561, %cst_158 {dimension_numbers = #tpu.dot_dimension_numbers<[1], [0], [0], [1], [0, 0, 1, 1], [], []>} : vector<8x128xf32>, vector<128x512xf32>, vector<8x512xf32> -> vector<8x512xf32>
    %568 = arith.addf %566, %567 : vector<8x512xf32>
    %569 = vector.extract_strided_slice %568 {offsets = [0, 0], sizes = [8, 128], strides = [1, 1]} : vector<8x512xf32> to vector<8x128xf32>
    %570 = arith.negf %569 : vector<8x128xf32>
    %571 = math.exp %570 : vector<8x128xf32>
    %cst_159 = arith.constant 1.000000e+00 : f32
    %572 = vector.broadcast %cst_159 : f32 to vector<8x128xf32>
    %573 = arith.addf %572, %571 : vector<8x128xf32>
    %574 = arith.divf %572, %573 : vector<8x128xf32>
    %575 = vector.extract_strided_slice %568 {offsets = [0, 128], sizes = [8, 128], strides = [1, 1]} : vector<8x512xf32> to vector<8x128xf32>
    %576 = arith.negf %575 : vector<8x128xf32>
    %577 = math.exp %576 : vector<8x128xf32>
    %cst_160 = arith.constant 1.000000e+00 : f32
    %578 = vector.broadcast %cst_160 : f32 to vector<8x128xf32>
    %579 = arith.addf %578, %577 : vector<8x128xf32>
    %580 = arith.divf %578, %579 : vector<8x128xf32>
    %581 = vector.extract_strided_slice %568 {offsets = [0, 256], sizes = [8, 128], strides = [1, 1]} : vector<8x512xf32> to vector<8x128xf32>
    %582 = math.tanh %581 : vector<8x128xf32>
    %583 = vector.extract_strided_slice %568 {offsets = [0, 384], sizes = [8, 128], strides = [1, 1]} : vector<8x512xf32> to vector<8x128xf32>
    %584 = arith.negf %583 : vector<8x128xf32>
    %585 = math.exp %584 : vector<8x128xf32>
    %cst_161 = arith.constant 1.000000e+00 : f32
    %586 = vector.broadcast %cst_161 : f32 to vector<8x128xf32>
    %587 = arith.addf %586, %585 : vector<8x128xf32>
    %588 = arith.divf %586, %587 : vector<8x128xf32>
    %589 = arith.mulf %580, %563 : vector<8x128xf32>
    %590 = arith.mulf %574, %582 : vector<8x128xf32>
    %591 = arith.addf %589, %590 : vector<8x128xf32>
    %592 = math.tanh %591 : vector<8x128xf32>
    %593 = arith.mulf %588, %592 : vector<8x128xf32>
    %c1_i32_162 = arith.constant 1 : i32
    %594 = arith.index_cast %c1_i32_162 : i32 to index
    %c0_163 = arith.constant 0 : index
    %c0_164 = arith.constant 0 : index
    %595 = vector.load %arg12[%594, %c0_163, %c0_164] : memref<16x8x512xf32, #tpu.memory_space<vmem>>, vector<1x8x512xf32>
    %596 = vector.shape_cast %595 : vector<1x8x512xf32> to vector<8x512xf32>
    %cst_165 = arith.constant dense<0.000000e+00> : vector<8x512xf32>
    %597 = tpu.matmul %593, %561, %cst_165 {dimension_numbers = #tpu.dot_dimension_numbers<[1], [0], [0], [1], [0, 0, 1, 1], [], []>} : vector<8x128xf32>, vector<128x512xf32>, vector<8x512xf32> -> vector<8x512xf32>
    %598 = arith.addf %596, %597 : vector<8x512xf32>
    %599 = vector.extract_strided_slice %598 {offsets = [0, 0], sizes = [8, 128], strides = [1, 1]} : vector<8x512xf32> to vector<8x128xf32>
    %600 = arith.negf %599 : vector<8x128xf32>
    %601 = math.exp %600 : vector<8x128xf32>
    %cst_166 = arith.constant 1.000000e+00 : f32
    %602 = vector.broadcast %cst_166 : f32 to vector<8x128xf32>
    %603 = arith.addf %602, %601 : vector<8x128xf32>
    %604 = arith.divf %602, %603 : vector<8x128xf32>
    %605 = vector.extract_strided_slice %598 {offsets = [0, 128], sizes = [8, 128], strides = [1, 1]} : vector<8x512xf32> to vector<8x128xf32>
    %606 = arith.negf %605 : vector<8x128xf32>
    %607 = math.exp %606 : vector<8x128xf32>
    %cst_167 = arith.constant 1.000000e+00 : f32
    %608 = vector.broadcast %cst_167 : f32 to vector<8x128xf32>
    %609 = arith.addf %608, %607 : vector<8x128xf32>
    %610 = arith.divf %608, %609 : vector<8x128xf32>
    %611 = vector.extract_strided_slice %598 {offsets = [0, 256], sizes = [8, 128], strides = [1, 1]} : vector<8x512xf32> to vector<8x128xf32>
    %612 = math.tanh %611 : vector<8x128xf32>
    %613 = vector.extract_strided_slice %598 {offsets = [0, 384], sizes = [8, 128], strides = [1, 1]} : vector<8x512xf32> to vector<8x128xf32>
    %614 = arith.negf %613 : vector<8x128xf32>
    %615 = math.exp %614 : vector<8x128xf32>
    %cst_168 = arith.constant 1.000000e+00 : f32
    %616 = vector.broadcast %cst_168 : f32 to vector<8x128xf32>
    %617 = arith.addf %616, %615 : vector<8x128xf32>
    %618 = arith.divf %616, %617 : vector<8x128xf32>
    %619 = arith.mulf %610, %591 : vector<8x128xf32>
    %620 = arith.mulf %604, %612 : vector<8x128xf32>
    %621 = arith.addf %619, %620 : vector<8x128xf32>
    %622 = math.tanh %621 : vector<8x128xf32>
    %623 = arith.mulf %618, %622 : vector<8x128xf32>
    %c2_i32_169 = arith.constant 2 : i32
    %624 = arith.index_cast %c2_i32_169 : i32 to index
    %c0_170 = arith.constant 0 : index
    %c0_171 = arith.constant 0 : index
    %625 = vector.load %arg12[%624, %c0_170, %c0_171] : memref<16x8x512xf32, #tpu.memory_space<vmem>>, vector<1x8x512xf32>
    %626 = vector.shape_cast %625 : vector<1x8x512xf32> to vector<8x512xf32>
    %cst_172 = arith.constant dense<0.000000e+00> : vector<8x512xf32>
    %627 = tpu.matmul %623, %561, %cst_172 {dimension_numbers = #tpu.dot_dimension_numbers<[1], [0], [0], [1], [0, 0, 1, 1], [], []>} : vector<8x128xf32>, vector<128x512xf32>, vector<8x512xf32> -> vector<8x512xf32>
    %628 = arith.addf %626, %627 : vector<8x512xf32>
    %629 = vector.extract_strided_slice %628 {offsets = [0, 0], sizes = [8, 128], strides = [1, 1]} : vector<8x512xf32> to vector<8x128xf32>
    %630 = arith.negf %629 : vector<8x128xf32>
    %631 = math.exp %630 : vector<8x128xf32>
    %cst_173 = arith.constant 1.000000e+00 : f32
    %632 = vector.broadcast %cst_173 : f32 to vector<8x128xf32>
    %633 = arith.addf %632, %631 : vector<8x128xf32>
    %634 = arith.divf %632, %633 : vector<8x128xf32>
    %635 = vector.extract_strided_slice %628 {offsets = [0, 128], sizes = [8, 128], strides = [1, 1]} : vector<8x512xf32> to vector<8x128xf32>
    %636 = arith.negf %635 : vector<8x128xf32>
    %637 = math.exp %636 : vector<8x128xf32>
    %cst_174 = arith.constant 1.000000e+00 : f32
    %638 = vector.broadcast %cst_174 : f32 to vector<8x128xf32>
    %639 = arith.addf %638, %637 : vector<8x128xf32>
    %640 = arith.divf %638, %639 : vector<8x128xf32>
    %641 = vector.extract_strided_slice %628 {offsets = [0, 256], sizes = [8, 128], strides = [1, 1]} : vector<8x512xf32> to vector<8x128xf32>
    %642 = math.tanh %641 : vector<8x128xf32>
    %643 = vector.extract_strided_slice %628 {offsets = [0, 384], sizes = [8, 128], strides = [1, 1]} : vector<8x512xf32> to vector<8x128xf32>
    %644 = arith.negf %643 : vector<8x128xf32>
    %645 = math.exp %644 : vector<8x128xf32>
    %cst_175 = arith.constant 1.000000e+00 : f32
    %646 = vector.broadcast %cst_175 : f32 to vector<8x128xf32>
    %647 = arith.addf %646, %645 : vector<8x128xf32>
    %648 = arith.divf %646, %647 : vector<8x128xf32>
    %649 = arith.mulf %640, %621 : vector<8x128xf32>
    %650 = arith.mulf %634, %642 : vector<8x128xf32>
    %651 = arith.addf %649, %650 : vector<8x128xf32>
    %652 = math.tanh %651 : vector<8x128xf32>
    %653 = arith.mulf %648, %652 : vector<8x128xf32>
    %c3_i32_176 = arith.constant 3 : i32
    %654 = arith.index_cast %c3_i32_176 : i32 to index
    %c0_177 = arith.constant 0 : index
    %c0_178 = arith.constant 0 : index
    %655 = vector.load %arg12[%654, %c0_177, %c0_178] : memref<16x8x512xf32, #tpu.memory_space<vmem>>, vector<1x8x512xf32>
    %656 = vector.shape_cast %655 : vector<1x8x512xf32> to vector<8x512xf32>
    %cst_179 = arith.constant dense<0.000000e+00> : vector<8x512xf32>
    %657 = tpu.matmul %653, %561, %cst_179 {dimension_numbers = #tpu.dot_dimension_numbers<[1], [0], [0], [1], [0, 0, 1, 1], [], []>} : vector<8x128xf32>, vector<128x512xf32>, vector<8x512xf32> -> vector<8x512xf32>
    %658 = arith.addf %656, %657 : vector<8x512xf32>
    %659 = vector.extract_strided_slice %658 {offsets = [0, 0], sizes = [8, 128], strides = [1, 1]} : vector<8x512xf32> to vector<8x128xf32>
    %660 = arith.negf %659 : vector<8x128xf32>
    %661 = math.exp %660 : vector<8x128xf32>
    %cst_180 = arith.constant 1.000000e+00 : f32
    %662 = vector.broadcast %cst_180 : f32 to vector<8x128xf32>
    %663 = arith.addf %662, %661 : vector<8x128xf32>
    %664 = arith.divf %662, %663 : vector<8x128xf32>
    %665 = vector.extract_strided_slice %658 {offsets = [0, 128], sizes = [8, 128], strides = [1, 1]} : vector<8x512xf32> to vector<8x128xf32>
    %666 = arith.negf %665 : vector<8x128xf32>
    %667 = math.exp %666 : vector<8x128xf32>
    %cst_181 = arith.constant 1.000000e+00 : f32
    %668 = vector.broadcast %cst_181 : f32 to vector<8x128xf32>
    %669 = arith.addf %668, %667 : vector<8x128xf32>
    %670 = arith.divf %668, %669 : vector<8x128xf32>
    %671 = vector.extract_strided_slice %658 {offsets = [0, 256], sizes = [8, 128], strides = [1, 1]} : vector<8x512xf32> to vector<8x128xf32>
    %672 = math.tanh %671 : vector<8x128xf32>
    %673 = vector.extract_strided_slice %658 {offsets = [0, 384], sizes = [8, 128], strides = [1, 1]} : vector<8x512xf32> to vector<8x128xf32>
    %674 = arith.negf %673 : vector<8x128xf32>
    %675 = math.exp %674 : vector<8x128xf32>
    %cst_182 = arith.constant 1.000000e+00 : f32
    %676 = vector.broadcast %cst_182 : f32 to vector<8x128xf32>
    %677 = arith.addf %676, %675 : vector<8x128xf32>
    %678 = arith.divf %676, %677 : vector<8x128xf32>
    %679 = arith.mulf %670, %651 : vector<8x128xf32>
    %680 = arith.mulf %664, %672 : vector<8x128xf32>
    %681 = arith.addf %679, %680 : vector<8x128xf32>
    %682 = math.tanh %681 : vector<8x128xf32>
    %683 = arith.mulf %678, %682 : vector<8x128xf32>
    %c4_i32_183 = arith.constant 4 : i32
    %684 = arith.index_cast %c4_i32_183 : i32 to index
    %c0_184 = arith.constant 0 : index
    %c0_185 = arith.constant 0 : index
    %685 = vector.load %arg12[%684, %c0_184, %c0_185] : memref<16x8x512xf32, #tpu.memory_space<vmem>>, vector<1x8x512xf32>
    %686 = vector.shape_cast %685 : vector<1x8x512xf32> to vector<8x512xf32>
    %cst_186 = arith.constant dense<0.000000e+00> : vector<8x512xf32>
    %687 = tpu.matmul %683, %561, %cst_186 {dimension_numbers = #tpu.dot_dimension_numbers<[1], [0], [0], [1], [0, 0, 1, 1], [], []>} : vector<8x128xf32>, vector<128x512xf32>, vector<8x512xf32> -> vector<8x512xf32>
    %688 = arith.addf %686, %687 : vector<8x512xf32>
    %689 = vector.extract_strided_slice %688 {offsets = [0, 0], sizes = [8, 128], strides = [1, 1]} : vector<8x512xf32> to vector<8x128xf32>
    %690 = arith.negf %689 : vector<8x128xf32>
    %691 = math.exp %690 : vector<8x128xf32>
    %cst_187 = arith.constant 1.000000e+00 : f32
    %692 = vector.broadcast %cst_187 : f32 to vector<8x128xf32>
    %693 = arith.addf %692, %691 : vector<8x128xf32>
    %694 = arith.divf %692, %693 : vector<8x128xf32>
    %695 = vector.extract_strided_slice %688 {offsets = [0, 128], sizes = [8, 128], strides = [1, 1]} : vector<8x512xf32> to vector<8x128xf32>
    %696 = arith.negf %695 : vector<8x128xf32>
    %697 = math.exp %696 : vector<8x128xf32>
    %cst_188 = arith.constant 1.000000e+00 : f32
    %698 = vector.broadcast %cst_188 : f32 to vector<8x128xf32>
    %699 = arith.addf %698, %697 : vector<8x128xf32>
    %700 = arith.divf %698, %699 : vector<8x128xf32>
    %701 = vector.extract_strided_slice %688 {offsets = [0, 256], sizes = [8, 128], strides = [1, 1]} : vector<8x512xf32> to vector<8x128xf32>
    %702 = math.tanh %701 : vector<8x128xf32>
    %703 = vector.extract_strided_slice %688 {offsets = [0, 384], sizes = [8, 128], strides = [1, 1]} : vector<8x512xf32> to vector<8x128xf32>
    %704 = arith.negf %703 : vector<8x128xf32>
    %705 = math.exp %704 : vector<8x128xf32>
    %cst_189 = arith.constant 1.000000e+00 : f32
    %706 = vector.broadcast %cst_189 : f32 to vector<8x128xf32>
    %707 = arith.addf %706, %705 : vector<8x128xf32>
    %708 = arith.divf %706, %707 : vector<8x128xf32>
    %709 = arith.mulf %700, %681 : vector<8x128xf32>
    %710 = arith.mulf %694, %702 : vector<8x128xf32>
    %711 = arith.addf %709, %710 : vector<8x128xf32>
    %712 = math.tanh %711 : vector<8x128xf32>
    %713 = arith.mulf %708, %712 : vector<8x128xf32>
    %c5_i32_190 = arith.constant 5 : i32
    %714 = arith.index_cast %c5_i32_190 : i32 to index
    %c0_191 = arith.constant 0 : index
    %c0_192 = arith.constant 0 : index
    %715 = vector.load %arg12[%714, %c0_191, %c0_192] : memref<16x8x512xf32, #tpu.memory_space<vmem>>, vector<1x8x512xf32>
    %716 = vector.shape_cast %715 : vector<1x8x512xf32> to vector<8x512xf32>
    %cst_193 = arith.constant dense<0.000000e+00> : vector<8x512xf32>
    %717 = tpu.matmul %713, %561, %cst_193 {dimension_numbers = #tpu.dot_dimension_numbers<[1], [0], [0], [1], [0, 0, 1, 1], [], []>} : vector<8x128xf32>, vector<128x512xf32>, vector<8x512xf32> -> vector<8x512xf32>
    %718 = arith.addf %716, %717 : vector<8x512xf32>
    %719 = vector.extract_strided_slice %718 {offsets = [0, 0], sizes = [8, 128], strides = [1, 1]} : vector<8x512xf32> to vector<8x128xf32>
    %720 = arith.negf %719 : vector<8x128xf32>
    %721 = math.exp %720 : vector<8x128xf32>
    %cst_194 = arith.constant 1.000000e+00 : f32
    %722 = vector.broadcast %cst_194 : f32 to vector<8x128xf32>
    %723 = arith.addf %722, %721 : vector<8x128xf32>
    %724 = arith.divf %722, %723 : vector<8x128xf32>
    %725 = vector.extract_strided_slice %718 {offsets = [0, 128], sizes = [8, 128], strides = [1, 1]} : vector<8x512xf32> to vector<8x128xf32>
    %726 = arith.negf %725 : vector<8x128xf32>
    %727 = math.exp %726 : vector<8x128xf32>
    %cst_195 = arith.constant 1.000000e+00 : f32
    %728 = vector.broadcast %cst_195 : f32 to vector<8x128xf32>
    %729 = arith.addf %728, %727 : vector<8x128xf32>
    %730 = arith.divf %728, %729 : vector<8x128xf32>
    %731 = vector.extract_strided_slice %718 {offsets = [0, 256], sizes = [8, 128], strides = [1, 1]} : vector<8x512xf32> to vector<8x128xf32>
    %732 = math.tanh %731 : vector<8x128xf32>
    %733 = vector.extract_strided_slice %718 {offsets = [0, 384], sizes = [8, 128], strides = [1, 1]} : vector<8x512xf32> to vector<8x128xf32>
    %734 = arith.negf %733 : vector<8x128xf32>
    %735 = math.exp %734 : vector<8x128xf32>
    %cst_196 = arith.constant 1.000000e+00 : f32
    %736 = vector.broadcast %cst_196 : f32 to vector<8x128xf32>
    %737 = arith.addf %736, %735 : vector<8x128xf32>
    %738 = arith.divf %736, %737 : vector<8x128xf32>
    %739 = arith.mulf %730, %711 : vector<8x128xf32>
    %740 = arith.mulf %724, %732 : vector<8x128xf32>
    %741 = arith.addf %739, %740 : vector<8x128xf32>
    %742 = math.tanh %741 : vector<8x128xf32>
    %743 = arith.mulf %738, %742 : vector<8x128xf32>
    %c6_i32_197 = arith.constant 6 : i32
    %744 = arith.index_cast %c6_i32_197 : i32 to index
    %c0_198 = arith.constant 0 : index
    %c0_199 = arith.constant 0 : index
    %745 = vector.load %arg12[%744, %c0_198, %c0_199] : memref<16x8x512xf32, #tpu.memory_space<vmem>>, vector<1x8x512xf32>
    %746 = vector.shape_cast %745 : vector<1x8x512xf32> to vector<8x512xf32>
    %cst_200 = arith.constant dense<0.000000e+00> : vector<8x512xf32>
    %747 = tpu.matmul %743, %561, %cst_200 {dimension_numbers = #tpu.dot_dimension_numbers<[1], [0], [0], [1], [0, 0, 1, 1], [], []>} : vector<8x128xf32>, vector<128x512xf32>, vector<8x512xf32> -> vector<8x512xf32>
    %748 = arith.addf %746, %747 : vector<8x512xf32>
    %749 = vector.extract_strided_slice %748 {offsets = [0, 0], sizes = [8, 128], strides = [1, 1]} : vector<8x512xf32> to vector<8x128xf32>
    %750 = arith.negf %749 : vector<8x128xf32>
    %751 = math.exp %750 : vector<8x128xf32>
    %cst_201 = arith.constant 1.000000e+00 : f32
    %752 = vector.broadcast %cst_201 : f32 to vector<8x128xf32>
    %753 = arith.addf %752, %751 : vector<8x128xf32>
    %754 = arith.divf %752, %753 : vector<8x128xf32>
    %755 = vector.extract_strided_slice %748 {offsets = [0, 128], sizes = [8, 128], strides = [1, 1]} : vector<8x512xf32> to vector<8x128xf32>
    %756 = arith.negf %755 : vector<8x128xf32>
    %757 = math.exp %756 : vector<8x128xf32>
    %cst_202 = arith.constant 1.000000e+00 : f32
    %758 = vector.broadcast %cst_202 : f32 to vector<8x128xf32>
    %759 = arith.addf %758, %757 : vector<8x128xf32>
    %760 = arith.divf %758, %759 : vector<8x128xf32>
    %761 = vector.extract_strided_slice %748 {offsets = [0, 256], sizes = [8, 128], strides = [1, 1]} : vector<8x512xf32> to vector<8x128xf32>
    %762 = math.tanh %761 : vector<8x128xf32>
    %763 = vector.extract_strided_slice %748 {offsets = [0, 384], sizes = [8, 128], strides = [1, 1]} : vector<8x512xf32> to vector<8x128xf32>
    %764 = arith.negf %763 : vector<8x128xf32>
    %765 = math.exp %764 : vector<8x128xf32>
    %cst_203 = arith.constant 1.000000e+00 : f32
    %766 = vector.broadcast %cst_203 : f32 to vector<8x128xf32>
    %767 = arith.addf %766, %765 : vector<8x128xf32>
    %768 = arith.divf %766, %767 : vector<8x128xf32>
    %769 = arith.mulf %760, %741 : vector<8x128xf32>
    %770 = arith.mulf %754, %762 : vector<8x128xf32>
    %771 = arith.addf %769, %770 : vector<8x128xf32>
    %772 = math.tanh %771 : vector<8x128xf32>
    %773 = arith.mulf %768, %772 : vector<8x128xf32>
    %c7_i32_204 = arith.constant 7 : i32
    %774 = arith.index_cast %c7_i32_204 : i32 to index
    %c0_205 = arith.constant 0 : index
    %c0_206 = arith.constant 0 : index
    %775 = vector.load %arg12[%774, %c0_205, %c0_206] : memref<16x8x512xf32, #tpu.memory_space<vmem>>, vector<1x8x512xf32>
    %776 = vector.shape_cast %775 : vector<1x8x512xf32> to vector<8x512xf32>
    %cst_207 = arith.constant dense<0.000000e+00> : vector<8x512xf32>
    %777 = tpu.matmul %773, %561, %cst_207 {dimension_numbers = #tpu.dot_dimension_numbers<[1], [0], [0], [1], [0, 0, 1, 1], [], []>} : vector<8x128xf32>, vector<128x512xf32>, vector<8x512xf32> -> vector<8x512xf32>
    %778 = arith.addf %776, %777 : vector<8x512xf32>
    %779 = vector.extract_strided_slice %778 {offsets = [0, 0], sizes = [8, 128], strides = [1, 1]} : vector<8x512xf32> to vector<8x128xf32>
    %780 = arith.negf %779 : vector<8x128xf32>
    %781 = math.exp %780 : vector<8x128xf32>
    %cst_208 = arith.constant 1.000000e+00 : f32
    %782 = vector.broadcast %cst_208 : f32 to vector<8x128xf32>
    %783 = arith.addf %782, %781 : vector<8x128xf32>
    %784 = arith.divf %782, %783 : vector<8x128xf32>
    %785 = vector.extract_strided_slice %778 {offsets = [0, 128], sizes = [8, 128], strides = [1, 1]} : vector<8x512xf32> to vector<8x128xf32>
    %786 = arith.negf %785 : vector<8x128xf32>
    %787 = math.exp %786 : vector<8x128xf32>
    %cst_209 = arith.constant 1.000000e+00 : f32
    %788 = vector.broadcast %cst_209 : f32 to vector<8x128xf32>
    %789 = arith.addf %788, %787 : vector<8x128xf32>
    %790 = arith.divf %788, %789 : vector<8x128xf32>
    %791 = vector.extract_strided_slice %778 {offsets = [0, 256], sizes = [8, 128], strides = [1, 1]} : vector<8x512xf32> to vector<8x128xf32>
    %792 = math.tanh %791 : vector<8x128xf32>
    %793 = vector.extract_strided_slice %778 {offsets = [0, 384], sizes = [8, 128], strides = [1, 1]} : vector<8x512xf32> to vector<8x128xf32>
    %794 = arith.negf %793 : vector<8x128xf32>
    %795 = math.exp %794 : vector<8x128xf32>
    %cst_210 = arith.constant 1.000000e+00 : f32
    %796 = vector.broadcast %cst_210 : f32 to vector<8x128xf32>
    %797 = arith.addf %796, %795 : vector<8x128xf32>
    %798 = arith.divf %796, %797 : vector<8x128xf32>
    %799 = arith.mulf %790, %771 : vector<8x128xf32>
    %800 = arith.mulf %784, %792 : vector<8x128xf32>
    %801 = arith.addf %799, %800 : vector<8x128xf32>
    %802 = math.tanh %801 : vector<8x128xf32>
    %803 = arith.mulf %798, %802 : vector<8x128xf32>
    %c8_i32_211 = arith.constant 8 : i32
    %804 = arith.index_cast %c8_i32_211 : i32 to index
    %c0_212 = arith.constant 0 : index
    %c0_213 = arith.constant 0 : index
    %805 = vector.load %arg12[%804, %c0_212, %c0_213] : memref<16x8x512xf32, #tpu.memory_space<vmem>>, vector<1x8x512xf32>
    %806 = vector.shape_cast %805 : vector<1x8x512xf32> to vector<8x512xf32>
    %cst_214 = arith.constant dense<0.000000e+00> : vector<8x512xf32>
    %807 = tpu.matmul %803, %561, %cst_214 {dimension_numbers = #tpu.dot_dimension_numbers<[1], [0], [0], [1], [0, 0, 1, 1], [], []>} : vector<8x128xf32>, vector<128x512xf32>, vector<8x512xf32> -> vector<8x512xf32>
    %808 = arith.addf %806, %807 : vector<8x512xf32>
    %809 = vector.extract_strided_slice %808 {offsets = [0, 0], sizes = [8, 128], strides = [1, 1]} : vector<8x512xf32> to vector<8x128xf32>
    %810 = arith.negf %809 : vector<8x128xf32>
    %811 = math.exp %810 : vector<8x128xf32>
    %cst_215 = arith.constant 1.000000e+00 : f32
    %812 = vector.broadcast %cst_215 : f32 to vector<8x128xf32>
    %813 = arith.addf %812, %811 : vector<8x128xf32>
    %814 = arith.divf %812, %813 : vector<8x128xf32>
    %815 = vector.extract_strided_slice %808 {offsets = [0, 128], sizes = [8, 128], strides = [1, 1]} : vector<8x512xf32> to vector<8x128xf32>
    %816 = arith.negf %815 : vector<8x128xf32>
    %817 = math.exp %816 : vector<8x128xf32>
    %cst_216 = arith.constant 1.000000e+00 : f32
    %818 = vector.broadcast %cst_216 : f32 to vector<8x128xf32>
    %819 = arith.addf %818, %817 : vector<8x128xf32>
    %820 = arith.divf %818, %819 : vector<8x128xf32>
    %821 = vector.extract_strided_slice %808 {offsets = [0, 256], sizes = [8, 128], strides = [1, 1]} : vector<8x512xf32> to vector<8x128xf32>
    %822 = math.tanh %821 : vector<8x128xf32>
    %823 = vector.extract_strided_slice %808 {offsets = [0, 384], sizes = [8, 128], strides = [1, 1]} : vector<8x512xf32> to vector<8x128xf32>
    %824 = arith.negf %823 : vector<8x128xf32>
    %825 = math.exp %824 : vector<8x128xf32>
    %cst_217 = arith.constant 1.000000e+00 : f32
    %826 = vector.broadcast %cst_217 : f32 to vector<8x128xf32>
    %827 = arith.addf %826, %825 : vector<8x128xf32>
    %828 = arith.divf %826, %827 : vector<8x128xf32>
    %829 = arith.mulf %820, %801 : vector<8x128xf32>
    %830 = arith.mulf %814, %822 : vector<8x128xf32>
    %831 = arith.addf %829, %830 : vector<8x128xf32>
    %832 = math.tanh %831 : vector<8x128xf32>
    %833 = arith.mulf %828, %832 : vector<8x128xf32>
    %c9_i32_218 = arith.constant 9 : i32
    %834 = arith.index_cast %c9_i32_218 : i32 to index
    %c0_219 = arith.constant 0 : index
    %c0_220 = arith.constant 0 : index
    %835 = vector.load %arg12[%834, %c0_219, %c0_220] : memref<16x8x512xf32, #tpu.memory_space<vmem>>, vector<1x8x512xf32>
    %836 = vector.shape_cast %835 : vector<1x8x512xf32> to vector<8x512xf32>
    %cst_221 = arith.constant dense<0.000000e+00> : vector<8x512xf32>
    %837 = tpu.matmul %833, %561, %cst_221 {dimension_numbers = #tpu.dot_dimension_numbers<[1], [0], [0], [1], [0, 0, 1, 1], [], []>} : vector<8x128xf32>, vector<128x512xf32>, vector<8x512xf32> -> vector<8x512xf32>
    %838 = arith.addf %836, %837 : vector<8x512xf32>
    %839 = vector.extract_strided_slice %838 {offsets = [0, 0], sizes = [8, 128], strides = [1, 1]} : vector<8x512xf32> to vector<8x128xf32>
    %840 = arith.negf %839 : vector<8x128xf32>
    %841 = math.exp %840 : vector<8x128xf32>
    %cst_222 = arith.constant 1.000000e+00 : f32
    %842 = vector.broadcast %cst_222 : f32 to vector<8x128xf32>
    %843 = arith.addf %842, %841 : vector<8x128xf32>
    %844 = arith.divf %842, %843 : vector<8x128xf32>
    %845 = vector.extract_strided_slice %838 {offsets = [0, 128], sizes = [8, 128], strides = [1, 1]} : vector<8x512xf32> to vector<8x128xf32>
    %846 = arith.negf %845 : vector<8x128xf32>
    %847 = math.exp %846 : vector<8x128xf32>
    %cst_223 = arith.constant 1.000000e+00 : f32
    %848 = vector.broadcast %cst_223 : f32 to vector<8x128xf32>
    %849 = arith.addf %848, %847 : vector<8x128xf32>
    %850 = arith.divf %848, %849 : vector<8x128xf32>
    %851 = vector.extract_strided_slice %838 {offsets = [0, 256], sizes = [8, 128], strides = [1, 1]} : vector<8x512xf32> to vector<8x128xf32>
    %852 = math.tanh %851 : vector<8x128xf32>
    %853 = vector.extract_strided_slice %838 {offsets = [0, 384], sizes = [8, 128], strides = [1, 1]} : vector<8x512xf32> to vector<8x128xf32>
    %854 = arith.negf %853 : vector<8x128xf32>
    %855 = math.exp %854 : vector<8x128xf32>
    %cst_224 = arith.constant 1.000000e+00 : f32
    %856 = vector.broadcast %cst_224 : f32 to vector<8x128xf32>
    %857 = arith.addf %856, %855 : vector<8x128xf32>
    %858 = arith.divf %856, %857 : vector<8x128xf32>
    %859 = arith.mulf %850, %831 : vector<8x128xf32>
    %860 = arith.mulf %844, %852 : vector<8x128xf32>
    %861 = arith.addf %859, %860 : vector<8x128xf32>
    %862 = math.tanh %861 : vector<8x128xf32>
    %863 = arith.mulf %858, %862 : vector<8x128xf32>
    %c10_i32_225 = arith.constant 10 : i32
    %864 = arith.index_cast %c10_i32_225 : i32 to index
    %c0_226 = arith.constant 0 : index
    %c0_227 = arith.constant 0 : index
    %865 = vector.load %arg12[%864, %c0_226, %c0_227] : memref<16x8x512xf32, #tpu.memory_space<vmem>>, vector<1x8x512xf32>
    %866 = vector.shape_cast %865 : vector<1x8x512xf32> to vector<8x512xf32>
    %cst_228 = arith.constant dense<0.000000e+00> : vector<8x512xf32>
    %867 = tpu.matmul %863, %561, %cst_228 {dimension_numbers = #tpu.dot_dimension_numbers<[1], [0], [0], [1], [0, 0, 1, 1], [], []>} : vector<8x128xf32>, vector<128x512xf32>, vector<8x512xf32> -> vector<8x512xf32>
    %868 = arith.addf %866, %867 : vector<8x512xf32>
    %869 = vector.extract_strided_slice %868 {offsets = [0, 0], sizes = [8, 128], strides = [1, 1]} : vector<8x512xf32> to vector<8x128xf32>
    %870 = arith.negf %869 : vector<8x128xf32>
    %871 = math.exp %870 : vector<8x128xf32>
    %cst_229 = arith.constant 1.000000e+00 : f32
    %872 = vector.broadcast %cst_229 : f32 to vector<8x128xf32>
    %873 = arith.addf %872, %871 : vector<8x128xf32>
    %874 = arith.divf %872, %873 : vector<8x128xf32>
    %875 = vector.extract_strided_slice %868 {offsets = [0, 128], sizes = [8, 128], strides = [1, 1]} : vector<8x512xf32> to vector<8x128xf32>
    %876 = arith.negf %875 : vector<8x128xf32>
    %877 = math.exp %876 : vector<8x128xf32>
    %cst_230 = arith.constant 1.000000e+00 : f32
    %878 = vector.broadcast %cst_230 : f32 to vector<8x128xf32>
    %879 = arith.addf %878, %877 : vector<8x128xf32>
    %880 = arith.divf %878, %879 : vector<8x128xf32>
    %881 = vector.extract_strided_slice %868 {offsets = [0, 256], sizes = [8, 128], strides = [1, 1]} : vector<8x512xf32> to vector<8x128xf32>
    %882 = math.tanh %881 : vector<8x128xf32>
    %883 = vector.extract_strided_slice %868 {offsets = [0, 384], sizes = [8, 128], strides = [1, 1]} : vector<8x512xf32> to vector<8x128xf32>
    %884 = arith.negf %883 : vector<8x128xf32>
    %885 = math.exp %884 : vector<8x128xf32>
    %cst_231 = arith.constant 1.000000e+00 : f32
    %886 = vector.broadcast %cst_231 : f32 to vector<8x128xf32>
    %887 = arith.addf %886, %885 : vector<8x128xf32>
    %888 = arith.divf %886, %887 : vector<8x128xf32>
    %889 = arith.mulf %880, %861 : vector<8x128xf32>
    %890 = arith.mulf %874, %882 : vector<8x128xf32>
    %891 = arith.addf %889, %890 : vector<8x128xf32>
    %892 = math.tanh %891 : vector<8x128xf32>
    %893 = arith.mulf %888, %892 : vector<8x128xf32>
    %c11_i32_232 = arith.constant 11 : i32
    %894 = arith.index_cast %c11_i32_232 : i32 to index
    %c0_233 = arith.constant 0 : index
    %c0_234 = arith.constant 0 : index
    %895 = vector.load %arg12[%894, %c0_233, %c0_234] : memref<16x8x512xf32, #tpu.memory_space<vmem>>, vector<1x8x512xf32>
    %896 = vector.shape_cast %895 : vector<1x8x512xf32> to vector<8x512xf32>
    %cst_235 = arith.constant dense<0.000000e+00> : vector<8x512xf32>
    %897 = tpu.matmul %893, %561, %cst_235 {dimension_numbers = #tpu.dot_dimension_numbers<[1], [0], [0], [1], [0, 0, 1, 1], [], []>} : vector<8x128xf32>, vector<128x512xf32>, vector<8x512xf32> -> vector<8x512xf32>
    %898 = arith.addf %896, %897 : vector<8x512xf32>
    %899 = vector.extract_strided_slice %898 {offsets = [0, 0], sizes = [8, 128], strides = [1, 1]} : vector<8x512xf32> to vector<8x128xf32>
    %900 = arith.negf %899 : vector<8x128xf32>
    %901 = math.exp %900 : vector<8x128xf32>
    %cst_236 = arith.constant 1.000000e+00 : f32
    %902 = vector.broadcast %cst_236 : f32 to vector<8x128xf32>
    %903 = arith.addf %902, %901 : vector<8x128xf32>
    %904 = arith.divf %902, %903 : vector<8x128xf32>
    %905 = vector.extract_strided_slice %898 {offsets = [0, 128], sizes = [8, 128], strides = [1, 1]} : vector<8x512xf32> to vector<8x128xf32>
    %906 = arith.negf %905 : vector<8x128xf32>
    %907 = math.exp %906 : vector<8x128xf32>
    %cst_237 = arith.constant 1.000000e+00 : f32
    %908 = vector.broadcast %cst_237 : f32 to vector<8x128xf32>
    %909 = arith.addf %908, %907 : vector<8x128xf32>
    %910 = arith.divf %908, %909 : vector<8x128xf32>
    %911 = vector.extract_strided_slice %898 {offsets = [0, 256], sizes = [8, 128], strides = [1, 1]} : vector<8x512xf32> to vector<8x128xf32>
    %912 = math.tanh %911 : vector<8x128xf32>
    %913 = vector.extract_strided_slice %898 {offsets = [0, 384], sizes = [8, 128], strides = [1, 1]} : vector<8x512xf32> to vector<8x128xf32>
    %914 = arith.negf %913 : vector<8x128xf32>
    %915 = math.exp %914 : vector<8x128xf32>
    %cst_238 = arith.constant 1.000000e+00 : f32
    %916 = vector.broadcast %cst_238 : f32 to vector<8x128xf32>
    %917 = arith.addf %916, %915 : vector<8x128xf32>
    %918 = arith.divf %916, %917 : vector<8x128xf32>
    %919 = arith.mulf %910, %891 : vector<8x128xf32>
    %920 = arith.mulf %904, %912 : vector<8x128xf32>
    %921 = arith.addf %919, %920 : vector<8x128xf32>
    %922 = math.tanh %921 : vector<8x128xf32>
    %923 = arith.mulf %918, %922 : vector<8x128xf32>
    %c12_i32_239 = arith.constant 12 : i32
    %924 = arith.index_cast %c12_i32_239 : i32 to index
    %c0_240 = arith.constant 0 : index
    %c0_241 = arith.constant 0 : index
    %925 = vector.load %arg12[%924, %c0_240, %c0_241] : memref<16x8x512xf32, #tpu.memory_space<vmem>>, vector<1x8x512xf32>
    %926 = vector.shape_cast %925 : vector<1x8x512xf32> to vector<8x512xf32>
    %cst_242 = arith.constant dense<0.000000e+00> : vector<8x512xf32>
    %927 = tpu.matmul %923, %561, %cst_242 {dimension_numbers = #tpu.dot_dimension_numbers<[1], [0], [0], [1], [0, 0, 1, 1], [], []>} : vector<8x128xf32>, vector<128x512xf32>, vector<8x512xf32> -> vector<8x512xf32>
    %928 = arith.addf %926, %927 : vector<8x512xf32>
    %929 = vector.extract_strided_slice %928 {offsets = [0, 0], sizes = [8, 128], strides = [1, 1]} : vector<8x512xf32> to vector<8x128xf32>
    %930 = arith.negf %929 : vector<8x128xf32>
    %931 = math.exp %930 : vector<8x128xf32>
    %cst_243 = arith.constant 1.000000e+00 : f32
    %932 = vector.broadcast %cst_243 : f32 to vector<8x128xf32>
    %933 = arith.addf %932, %931 : vector<8x128xf32>
    %934 = arith.divf %932, %933 : vector<8x128xf32>
    %935 = vector.extract_strided_slice %928 {offsets = [0, 128], sizes = [8, 128], strides = [1, 1]} : vector<8x512xf32> to vector<8x128xf32>
    %936 = arith.negf %935 : vector<8x128xf32>
    %937 = math.exp %936 : vector<8x128xf32>
    %cst_244 = arith.constant 1.000000e+00 : f32
    %938 = vector.broadcast %cst_244 : f32 to vector<8x128xf32>
    %939 = arith.addf %938, %937 : vector<8x128xf32>
    %940 = arith.divf %938, %939 : vector<8x128xf32>
    %941 = vector.extract_strided_slice %928 {offsets = [0, 256], sizes = [8, 128], strides = [1, 1]} : vector<8x512xf32> to vector<8x128xf32>
    %942 = math.tanh %941 : vector<8x128xf32>
    %943 = vector.extract_strided_slice %928 {offsets = [0, 384], sizes = [8, 128], strides = [1, 1]} : vector<8x512xf32> to vector<8x128xf32>
    %944 = arith.negf %943 : vector<8x128xf32>
    %945 = math.exp %944 : vector<8x128xf32>
    %cst_245 = arith.constant 1.000000e+00 : f32
    %946 = vector.broadcast %cst_245 : f32 to vector<8x128xf32>
    %947 = arith.addf %946, %945 : vector<8x128xf32>
    %948 = arith.divf %946, %947 : vector<8x128xf32>
    %949 = arith.mulf %940, %921 : vector<8x128xf32>
    %950 = arith.mulf %934, %942 : vector<8x128xf32>
    %951 = arith.addf %949, %950 : vector<8x128xf32>
    %952 = math.tanh %951 : vector<8x128xf32>
    %953 = arith.mulf %948, %952 : vector<8x128xf32>
    %c13_i32_246 = arith.constant 13 : i32
    %954 = arith.index_cast %c13_i32_246 : i32 to index
    %c0_247 = arith.constant 0 : index
    %c0_248 = arith.constant 0 : index
    %955 = vector.load %arg12[%954, %c0_247, %c0_248] : memref<16x8x512xf32, #tpu.memory_space<vmem>>, vector<1x8x512xf32>
    %956 = vector.shape_cast %955 : vector<1x8x512xf32> to vector<8x512xf32>
    %cst_249 = arith.constant dense<0.000000e+00> : vector<8x512xf32>
    %957 = tpu.matmul %953, %561, %cst_249 {dimension_numbers = #tpu.dot_dimension_numbers<[1], [0], [0], [1], [0, 0, 1, 1], [], []>} : vector<8x128xf32>, vector<128x512xf32>, vector<8x512xf32> -> vector<8x512xf32>
    %958 = arith.addf %956, %957 : vector<8x512xf32>
    %959 = vector.extract_strided_slice %958 {offsets = [0, 0], sizes = [8, 128], strides = [1, 1]} : vector<8x512xf32> to vector<8x128xf32>
    %960 = arith.negf %959 : vector<8x128xf32>
    %961 = math.exp %960 : vector<8x128xf32>
    %cst_250 = arith.constant 1.000000e+00 : f32
    %962 = vector.broadcast %cst_250 : f32 to vector<8x128xf32>
    %963 = arith.addf %962, %961 : vector<8x128xf32>
    %964 = arith.divf %962, %963 : vector<8x128xf32>
    %965 = vector.extract_strided_slice %958 {offsets = [0, 128], sizes = [8, 128], strides = [1, 1]} : vector<8x512xf32> to vector<8x128xf32>
    %966 = arith.negf %965 : vector<8x128xf32>
    %967 = math.exp %966 : vector<8x128xf32>
    %cst_251 = arith.constant 1.000000e+00 : f32
    %968 = vector.broadcast %cst_251 : f32 to vector<8x128xf32>
    %969 = arith.addf %968, %967 : vector<8x128xf32>
    %970 = arith.divf %968, %969 : vector<8x128xf32>
    %971 = vector.extract_strided_slice %958 {offsets = [0, 256], sizes = [8, 128], strides = [1, 1]} : vector<8x512xf32> to vector<8x128xf32>
    %972 = math.tanh %971 : vector<8x128xf32>
    %973 = vector.extract_strided_slice %958 {offsets = [0, 384], sizes = [8, 128], strides = [1, 1]} : vector<8x512xf32> to vector<8x128xf32>
    %974 = arith.negf %973 : vector<8x128xf32>
    %975 = math.exp %974 : vector<8x128xf32>
    %cst_252 = arith.constant 1.000000e+00 : f32
    %976 = vector.broadcast %cst_252 : f32 to vector<8x128xf32>
    %977 = arith.addf %976, %975 : vector<8x128xf32>
    %978 = arith.divf %976, %977 : vector<8x128xf32>
    %979 = arith.mulf %970, %951 : vector<8x128xf32>
    %980 = arith.mulf %964, %972 : vector<8x128xf32>
    %981 = arith.addf %979, %980 : vector<8x128xf32>
    %982 = math.tanh %981 : vector<8x128xf32>
    %983 = arith.mulf %978, %982 : vector<8x128xf32>
    %c14_i32_253 = arith.constant 14 : i32
    %984 = arith.index_cast %c14_i32_253 : i32 to index
    %c0_254 = arith.constant 0 : index
    %c0_255 = arith.constant 0 : index
    %985 = vector.load %arg12[%984, %c0_254, %c0_255] : memref<16x8x512xf32, #tpu.memory_space<vmem>>, vector<1x8x512xf32>
    %986 = vector.shape_cast %985 : vector<1x8x512xf32> to vector<8x512xf32>
    %cst_256 = arith.constant dense<0.000000e+00> : vector<8x512xf32>
    %987 = tpu.matmul %983, %561, %cst_256 {dimension_numbers = #tpu.dot_dimension_numbers<[1], [0], [0], [1], [0, 0, 1, 1], [], []>} : vector<8x128xf32>, vector<128x512xf32>, vector<8x512xf32> -> vector<8x512xf32>
    %988 = arith.addf %986, %987 : vector<8x512xf32>
    %989 = vector.extract_strided_slice %988 {offsets = [0, 0], sizes = [8, 128], strides = [1, 1]} : vector<8x512xf32> to vector<8x128xf32>
    %990 = arith.negf %989 : vector<8x128xf32>
    %991 = math.exp %990 : vector<8x128xf32>
    %cst_257 = arith.constant 1.000000e+00 : f32
    %992 = vector.broadcast %cst_257 : f32 to vector<8x128xf32>
    %993 = arith.addf %992, %991 : vector<8x128xf32>
    %994 = arith.divf %992, %993 : vector<8x128xf32>
    %995 = vector.extract_strided_slice %988 {offsets = [0, 128], sizes = [8, 128], strides = [1, 1]} : vector<8x512xf32> to vector<8x128xf32>
    %996 = arith.negf %995 : vector<8x128xf32>
    %997 = math.exp %996 : vector<8x128xf32>
    %cst_258 = arith.constant 1.000000e+00 : f32
    %998 = vector.broadcast %cst_258 : f32 to vector<8x128xf32>
    %999 = arith.addf %998, %997 : vector<8x128xf32>
    %1000 = arith.divf %998, %999 : vector<8x128xf32>
    %1001 = vector.extract_strided_slice %988 {offsets = [0, 256], sizes = [8, 128], strides = [1, 1]} : vector<8x512xf32> to vector<8x128xf32>
    %1002 = math.tanh %1001 : vector<8x128xf32>
    %1003 = vector.extract_strided_slice %988 {offsets = [0, 384], sizes = [8, 128], strides = [1, 1]} : vector<8x512xf32> to vector<8x128xf32>
    %1004 = arith.negf %1003 : vector<8x128xf32>
    %1005 = math.exp %1004 : vector<8x128xf32>
    %cst_259 = arith.constant 1.000000e+00 : f32
    %1006 = vector.broadcast %cst_259 : f32 to vector<8x128xf32>
    %1007 = arith.addf %1006, %1005 : vector<8x128xf32>
    %1008 = arith.divf %1006, %1007 : vector<8x128xf32>
    %1009 = arith.mulf %1000, %981 : vector<8x128xf32>
    %1010 = arith.mulf %994, %1002 : vector<8x128xf32>
    %1011 = arith.addf %1009, %1010 : vector<8x128xf32>
    %1012 = math.tanh %1011 : vector<8x128xf32>
    %1013 = arith.mulf %1008, %1012 : vector<8x128xf32>
    %c15_i32_260 = arith.constant 15 : i32
    %1014 = arith.index_cast %c15_i32_260 : i32 to index
    %c0_261 = arith.constant 0 : index
    %c0_262 = arith.constant 0 : index
    %1015 = vector.load %arg12[%1014, %c0_261, %c0_262] : memref<16x8x512xf32, #tpu.memory_space<vmem>>, vector<1x8x512xf32>
    %1016 = vector.shape_cast %1015 : vector<1x8x512xf32> to vector<8x512xf32>
    %cst_263 = arith.constant dense<0.000000e+00> : vector<8x512xf32>
    %1017 = tpu.matmul %1013, %561, %cst_263 {dimension_numbers = #tpu.dot_dimension_numbers<[1], [0], [0], [1], [0, 0, 1, 1], [], []>} : vector<8x128xf32>, vector<128x512xf32>, vector<8x512xf32> -> vector<8x512xf32>
    %1018 = arith.addf %1016, %1017 : vector<8x512xf32>
    %1019 = vector.extract_strided_slice %1018 {offsets = [0, 0], sizes = [8, 128], strides = [1, 1]} : vector<8x512xf32> to vector<8x128xf32>
    %1020 = arith.negf %1019 : vector<8x128xf32>
    %1021 = math.exp %1020 : vector<8x128xf32>
    %cst_264 = arith.constant 1.000000e+00 : f32
    %1022 = vector.broadcast %cst_264 : f32 to vector<8x128xf32>
    %1023 = arith.addf %1022, %1021 : vector<8x128xf32>
    %1024 = arith.divf %1022, %1023 : vector<8x128xf32>
    %1025 = vector.extract_strided_slice %1018 {offsets = [0, 128], sizes = [8, 128], strides = [1, 1]} : vector<8x512xf32> to vector<8x128xf32>
    %1026 = arith.negf %1025 : vector<8x128xf32>
    %1027 = math.exp %1026 : vector<8x128xf32>
    %cst_265 = arith.constant 1.000000e+00 : f32
    %1028 = vector.broadcast %cst_265 : f32 to vector<8x128xf32>
    %1029 = arith.addf %1028, %1027 : vector<8x128xf32>
    %1030 = arith.divf %1028, %1029 : vector<8x128xf32>
    %1031 = vector.extract_strided_slice %1018 {offsets = [0, 256], sizes = [8, 128], strides = [1, 1]} : vector<8x512xf32> to vector<8x128xf32>
    %1032 = math.tanh %1031 : vector<8x128xf32>
    %1033 = vector.extract_strided_slice %1018 {offsets = [0, 384], sizes = [8, 128], strides = [1, 1]} : vector<8x512xf32> to vector<8x128xf32>
    %1034 = arith.negf %1033 : vector<8x128xf32>
    %1035 = math.exp %1034 : vector<8x128xf32>
    %cst_266 = arith.constant 1.000000e+00 : f32
    %1036 = vector.broadcast %cst_266 : f32 to vector<8x128xf32>
    %1037 = arith.addf %1036, %1035 : vector<8x128xf32>
    %1038 = arith.divf %1036, %1037 : vector<8x128xf32>
    %1039 = arith.mulf %1030, %1011 : vector<8x128xf32>
    %1040 = arith.mulf %1024, %1032 : vector<8x128xf32>
    %1041 = arith.addf %1039, %1040 : vector<8x128xf32>
    %1042 = math.tanh %1041 : vector<8x128xf32>
    %1043 = arith.mulf %1038, %1042 : vector<8x128xf32>
    %c16_i32_267 = arith.constant 16 : i32
    %c0_268 = arith.constant 0 : index
    %c0_269 = arith.constant 0 : index
    %1044 = vector.load %arg9[%c0_268, %c0_269] : memref<8x128xf32, #tpu.memory_space<vmem>>, vector<8x128xf32>
    tpu.vector_store %arg9[%c0_268, %c0_269], %1043 {strides = array<i32>} : memref<8x128xf32, #tpu.memory_space<vmem>>, vector<8x128xf32>,
    %c0_270 = arith.constant 0 : index
    %c0_271 = arith.constant 0 : index
    %1045 = vector.load %arg10[%c0_270, %c0_271] : memref<8x128xf32, #tpu.memory_space<vmem>>, vector<8x128xf32>
    tpu.vector_store %arg10[%c0_270, %c0_271], %1041 {strides = array<i32>} : memref<8x128xf32, #tpu.memory_space<vmem>>, vector<8x128xf32>,
    %c1_i32_272 = arith.constant 1 : i32
    %1046 = arith.cmpi eq, %arg0, %c1_i32_272 : i32
    %1047 = arith.extui %1046 : i1 to i32
    %c0_i32_273 = arith.constant 0 : i32
    %1048 = arith.cmpi ne, %1047, %c0_i32_273 : i32
    scf.if %1048 {
      %c0_274 = arith.constant 0 : index
      %c0_275 = arith.constant 0 : index
      %1049 = vector.load %arg6[%c0_274, %c0_275] : memref<8x128xf32, #tpu.memory_space<vmem>>, vector<8x128xf32>
      tpu.vector_store %arg6[%c0_274, %c0_275], %1043 {strides = array<i32>} : memref<8x128xf32, #tpu.memory_space<vmem>>, vector<8x128xf32>,
    } else {
    }
    return
  }
  func.func @transform_0(%arg0: i32) -> (i32, i32, i32) {
    %c0_i32 = arith.constant 0 : i32
    %c0_i32_0 = arith.constant 0 : i32
    %c0_i32_1 = arith.constant 0 : i32
    return %arg0, %c0_i32, %c0_i32_0 : i32, i32, i32
  }
  func.func @transform_1(%arg0: i32) -> (i32, i32) {
    %c0_i32 = arith.constant 0 : i32
    %c0_i32_0 = arith.constant 0 : i32
    %c0_i32_1 = arith.constant 0 : i32
    return %c0_i32, %c0_i32_0 : i32, i32
  }
  func.func @transform_2(%arg0: i32) -> (i32, i32) {
    %c0_i32 = arith.constant 0 : i32
    %c0_i32_0 = arith.constant 0 : i32
    %c0_i32_1 = arith.constant 0 : i32
    return %c0_i32, %c0_i32_0 : i32, i32
  }
  func.func @transform_3(%arg0: i32) -> (i32, i32) {
    %c0_i32 = arith.constant 0 : i32
    %c0_i32_0 = arith.constant 0 : i32
    %c0_i32_1 = arith.constant 0 : i32
    return %c0_i32, %c0_i32_0 : i32, i32
  }
  func.func @transform_4(%arg0: i32) -> (i32, i32) {
    %c0_i32 = arith.constant 0 : i32
    %c0_i32_0 = arith.constant 0 : i32
    %c0_i32_1 = arith.constant 0 : i32
    return %c0_i32, %c0_i32_0 : i32, i32
  }
  func.func @transform_5(%arg0: i32) -> (i32, i32) {
    %c0_i32 = arith.constant 0 : i32
    %c0_i32_0 = arith.constant 0 : i32
    %c0_i32_1 = arith.constant 0 : i32
    return %c0_i32, %c0_i32_0 : i32, i32
  }
}

</mosaic_0001>

<bundles_post_ra>
// kernel: tpu_custom_call.1
= control target key start
LH: loop header
LB: loop body
LE: loop exit
PB: predicated region body
PF: predicated region fallthrough
CT: control target
= control target key end

     0   :  { %10 = vsyncpa [#allocation9], 0  ;;  %s11680_s0 = inlined_call_operand.hbm [shape: f32[32,8,512], index: 0, kind: input, shape index: {}]   ;;  %s11681_s1 = inlined_call_operand.hbm [shape: f32[128,512], index: 1, kind: input, shape index: {}]   ;;  %s11682_s2 = inlined_call_operand.hbm [shape: f32[128,512], index: 2, kind: input, shape index: {}]   ;;  %s11683_s3 = inlined_call_operand.hbm [shape: f32[128,512], index: 3, kind: input, shape index: {}]   ;;  %s11684_s4 = inlined_call_operand.vmem [shape: f32[1,512], index: 4, kind: input, shape index: {}]   ;;  %s11685_s5 = inlined_call_operand.hbm [shape: f32[8,128], index: 5, kind: output, shape index: {}]  }
   0x1   :  { %12 = vsyncpa [#allocation9 + $0x1], 0 }
   0x2   :  { %13 = vsyncpa [#allocation12], 0 }
   0x3   :  { %14 = vsyncpa [#allocation15], 0 }
   0x4   :  { %15 = vsyncpa [#allocation10], 0  ;;  %s7987_s18 = smov 0   ;;  %s7989_s19 = smov 0  }
   0x5   :  { %s7991_s20 = smov 0   ;;  %s7993_s21 = smov 0  }
   0x6 LB: > { %s8006_s22 = sadd.s32 4294967295, %s7946_s21   ;;  %p41_p0 = scmp.ne.s32.totalorder %s7938_s19, %s7934_s18  ;;  %s7946_s21 = sphi %s7993_s21, %s12802_s21   ;;  %s7942_s20 = sphi %s7991_s20, %s12801_s20   ;;  %s7938_s19 = sphi %s7989_s19, %s12800_s19   ;;  %s7934_s18 = sphi %s7987_s18, %s12799_s18  }
   0x7   : > { %p11686_p1 = scmp.eq.s32.totalorder %s8006_s22, 0  ;;  %p6630_p2 = scmp.ge.s32.totalorder %s7946_s21, 1 }
   0x8   : > { %p157_p3 = scmp.lt.s32.totalorder %s7946_s21, 3  ;;  %s7948_s25 = smov [#allocation11]  }
   0x9   : > { %p8015_p5 = por %p11686_p1, %p41_p0  ;;  %s169_s26 = sshll.u32 %s7948_s25, 4  ;;  %s170_s26 = int_to_ptr.vmem [resolvable:$true] %s169_s26 }
   0xa   : > { %p8019_p6 = pnand %p6630_p2, %p157_p3  ;;  %s7949_s28 = smov [#allocation13]  }
   0xb   : > { %s12018_s23 = scalar_select %p8015_p5, 1, 0 }
   0xc   : > { %s12019_s24 = scalar_select %p8019_p6, 1, 0 }
   0xd   : > { %p6826_p7 = pneg %p8019_p6  ;;  %s182_s29 = sshll.u32 %s7949_s28, 4  ;;  %s183_s29 = int_to_ptr.vmem [resolvable:$true] %s182_s29 }
   0xe   : > { %s7950_s30 = smov [#allocation14]   ;;  %s7781_s7 = scalar_lea.vmem %s170_s26, 8192 }
   0xf   : > { %p8027_p8 = pnand %p6826_p7, %p11686_p1  ;;  %s195_s6 = sshll.u32 %s7950_s30, 4  ;;  %s196_s6 = int_to_ptr.vmem [resolvable:$true] %s195_s6 }
  0x10   : > { %p7782_p10 = scmp.ne.s32.totalorder %s170_s26, %s7781_s7  ;;  %p7789_p13 = scmp.lt.s32.totalorder %s170_s26, %s170_s26 }
  0x11   : > { %p7772_p9 = pneg %p8027_p8  ;;  %p7790_p0 = scmp.lt.s32.totalorder %s7781_s7, %s7781_s7 }
  0x13   : > { %p7784_p11 = pnand %p7782_p10, %p7772_p9  ;;  %p7791_p2 = por %p7790_p0, %p7789_p13 }
  0x15   : > { %p7785_p12 = pneg %p7784_p11 }
  0x17   : > { %p7792_p3 = pnand %p7791_p2, %p7785_p12 }
  0x19   : > { %7795 = shalt.err (!%p7792_p3)
}
  0x1a   : > { %s7951_s8 = smov 512   ;;  %s7952_s9 = smov 32  }
  0x1b   : > { %6829 = dma.hbm_to_vmem [thread:$0]  (!%p8027_p8), %s11681_s1, 8192, %s170_s26, [#allocation12], %s7951_s8, %s7951_s8, %s7952_s9  }
  0x1c   : > { %s7807_s12 = scalar_lea.vmem %s183_s29, 8192  ;;  %p7815_p12 = scmp.lt.s32.totalorder %s183_s29, %s183_s29 }
  0x1d   : > { %p7808_p7 = scmp.ne.s32.totalorder %s183_s29, %s7807_s12  ;;  %p7816_p13 = scmp.lt.s32.totalorder %s7807_s12, %s7807_s12 }
  0x1f   : > { %p7810_p10 = pnand %p7808_p7, %p7772_p9  ;;  %p7817_p0 = por %p7816_p13, %p7815_p12 }
  0x21   : > { %p7811_p11 = pneg %p7810_p10 }
  0x23   : > { %p7818_p2 = pnand %p7817_p0, %p7811_p11 }
  0x25   : > { %7821 = shalt.err (!%p7818_p2)
}
  0x26   : > { %6832 = dma.hbm_to_vmem [thread:$0]  (!%p8027_p8), %s11682_s2, 8192, %s183_s29, [#allocation12], %s7951_s8, %s7951_s8, %s7952_s9  }
  0x27   : > { %s7833_s15 = scalar_lea.vmem %s196_s6, 8192  ;;  %p7841_p12 = scmp.lt.s32.totalorder %s196_s6, %s196_s6 }
  0x28   : > { %p7834_p3 = scmp.ne.s32.totalorder %s196_s6, %s7833_s15  ;;  %p7842_p11 = scmp.lt.s32.totalorder %s7833_s15, %s7833_s15 }
  0x2a   : > { %p7836_p7 = pnand %p7834_p3, %p7772_p9  ;;  %p7843_p13 = por %p7842_p11, %p7841_p12 }
  0x2c   : > { %p7837_p10 = pneg %p7836_p7 }
  0x2e   : > { %p7844_p0 = pnand %p7843_p13, %p7837_p10 }
  0x30   : > { %7847 = shalt.err (!%p7844_p0)
}
  0x31   : > { %6835 = dma.hbm_to_vmem [thread:$0]  (!%p8027_p8), %s11683_s3, 8192, %s196_s6, [#allocation15], %s7951_s8, %s7951_s8, %s7952_s9  }
  0x32   : > { %s8067_s18 = sadd.s32 1, %s7946_s21   ;;  %s28_s26 = sadd.s32 1, %s7942_s20 }
  0x33   : > { %s25_s25 = ssub.s32 %s7946_s21, %s8067_s18  ;;  %p35_p2 = scmp.ne.s32.totalorder %s7942_s20, %s7938_s19 }
  0x34   : > { %p26_p9 = scmp.eq.s32.totalorder %s25_s25, 0  ;;  %p36_p3 = scmp.eq.s32.totalorder %s7946_s21, 0 }
  0x35   : > { %p6843_p7 = scmp.lt.s32.totalorder %s7946_s21, 2  ;;  %s212_s28 = sand.u32 1, %s7942_s20  }
  0x36   : > { %s8077_s27 = scalar_select %p26_p9, %s7942_s20, %s28_s26  }
  0x37   : > { %p37_p10 = por %p36_p3, %p35_p2  ;;  %s6635_s29 = sshll.u32 %s212_s28, 9 }
  0x38   : > { %s6807_s30 = sshll.u32 %s7946_s21, 13  ;;  %s216_s6 = scalar_lea.vmem [#allocation8], %s6635_s29 }
  0x39   : > { %s8084_s11 = scalar_lea.hbm %s11680_s0, %s6807_s30  ;;  %s224_s12 = sshll.u32 %s216_s6, 4  ;;  %s8086_s12 = int_to_ptr.vmem [resolvable:$true] %s224_s12 }
  0x3a   : > { %p8088_p8 = pnand %p6843_p7, %p37_p10  ;;  %s8092_s14 = scalar_lea.sflag [#allocation9], %s212_s28 }
  0x3b   : > { %s7848_s21 = scalar_lea.hbm %s8084_s11, 8192  ;;  %s7853_s17 = scalar_lea.hbm %s11680_s0, 16384 }
  0x3c   : > { %p7849_p12 = scmp.ne.s32.totalorder %s8084_s11, %s7848_s21  ;;  %p7850_p11 = pneg %p8088_p8 }
  0x3d   : > { %p7854_p9 = scmp.lt.s32.totalorder %s8084_s11, %s11680_s0  ;;  %p7855_p2 = scmp.lt.s32.totalorder %s7853_s17, %s7848_s21 }
  0x3e   : > { %p7851_p13 = pnand %p7850_p11, %p7849_p12 }
  0x3f   : > { %p7856_p3 = por %p7855_p2, %p7854_p9 }
  0x40   : > { %p7852_p0 = pneg %p7851_p13 }
  0x42   : > { %p7857_p7 = pnand %p7856_p3, %p7852_p0 }
  0x44   : > { %7860 = shalt.err (!%p7857_p7)
}
  0x45   : > { %s7861_s28 = scalar_lea.vmem %s8086_s12, 8192  ;;  %s7953_s29 = smov [#allocation8]  }
  0x46   : > { %p7862_p10 = scmp.ne.s32.totalorder %s8086_s12, %s7861_s28  ;;  %s7866_s30 = sshll.u32 %s7953_s29, 4  ;;  %s7867_s30 = int_to_ptr.vmem [resolvable:$false] %s7866_s30 }
  0x47   : > { %s7868_s7 = scalar_lea.vmem %s7867_s30, 16384  ;;  %p7869_p13 = scmp.lt.s32.totalorder %s8086_s12, %s7867_s30 }
  0x48   : > { %p7864_p4 = pnand %p7862_p10, %p7850_p11  ;;  %p7870_p1 = scmp.lt.s32.totalorder %s7868_s7, %s7861_s28 }
  0x4a   : > { %p7865_p12 = pneg %p7864_p4  ;;  %p7871_p5 = por %p7870_p1, %p7869_p13 }
  0x4c   : > { %p7872_p6 = pnand %p7871_p5, %p7865_p12 }
  0x4e   : > { %7875 = shalt.err (!%p7872_p6)
}
  0x4f   : > { %6839 = dma.hbm_to_vmem [thread:$0]  (!%p8088_p8), %s8084_s11, 8192, %s8086_s12, %s8092_s14, %s7951_s8, %s7951_s8, %s7952_s9  }
  0x50   : > { %p12022_p4 = scmp.ne.s32.totalorder %s12019_s24, 0 }
  0x52   : > { %236 = sbr.rel (%p12022_p4) target bundleno = 8129 (0x1fc1), region = 40 }
  0x57   : > { %s238_s10 = sand.u32 1, %s7938_s19   ;;  %p12023_p1 = scmp.ne.s32.totalorder %s12018_s23, 0 }
  0x58   : > { %s6640_s6 = sshll.u32 %s238_s10, 9  ;;  %s239_s21 = scalar_lea.sflag [#allocation9], %s238_s10 }
  0x59   : > { %s8119_s15 = scalar_lea.vmem [#allocation8], %s6640_s6 }
  0x5a   : > { %7917 = dma.done.wait (%p12023_p1), %s239_s21, 8192  }
  0x5b   : > { %7919 = vsyncadd (%p12023_p1), %s239_s21, 4294959104  ;;  %p12024_p5 = scmp.eq.s32.totalorder %s8006_s22, 0 }
  0x5d   : > { %7921 = dma.done.wait (%p12024_p5), [#allocation12], 16384   ;;  %p12025_p6 = pmov %p12024_p5 }
  0x5e   : > { %p12026_p8 = pmov %p12024_p5 }
  0x5f   : > { %7923 = vsyncadd (%p12025_p6), [#allocation12], 4294950912 }
  0x60   : > { %7925 = dma.done.wait (%p12026_p8), [#allocation15], 8192   ;;  %p12027_p11 = pmov %p12024_p5 }
  0x61   : > { %p12028_p0 = scmp.ne.s32.totalorder %s8006_s22, 0 }
  0x62   : > { %7927 = vsyncadd (%p12027_p11), [#allocation15], 4294959104 }
  0x63   : > { %280 = sbr.rel (%p12028_p0) target bundleno = 107 (0x6b), region = 60 }
  0x68   : > { %v7954_v0 = vmov 0.0  }
  0x69   : > { %281 = vst [vmem:[#allocation2] sm:$0xff] %v7954_v0  ;;  %282 = vst [vmem:[#allocation3] sm:$0xff] %v7954_v0 }
  0x6a   : > { %283 = vst [vmem:[#allocation4] sm:$0xff] %v7954_v0  ;;  %284 = vst [vmem:[#allocation5] sm:$0xff] %v7954_v0 }
  0x6b PF: > { %v8135_v1 = vld [vmem:[#allocation11 + $0x1e8] sm:$0xff]  ;;  %v8137_v2 = vld [vmem:[#allocation11 + $0x1e0] sm:$0xff]  ;;  %v11689_v5 = vmov 0.0   ;;  %v8158_v10 = vld [vmem:[#allocation11 + $0x1f8] sm:$0xff]  ;;  %p6801_p9 = scmp.ne.s32.totalorder %s8006_s22, 1 }
  0x6c   : > { %12029 = vst [vmem:[#allocation21_spill] sm:$0xff] %v8135_v1  ;;  %v8139_v3 = vld [vmem:[#allocation11 + $0x1c8] sm:$0xff]  ;;  %355 = vmatprep.subr.mxu0 %v8135_v1  ;;  %v8142_v4 = vld [vmem:[#allocation11 + $0x1c0] sm:$0xff]  ;;  %419 = vmatprep.mubr.f32.mxu0 %v11689_v5  ;;  %12030 = vst [vmem:[#allocation22_spill] sm:$0xff] %v8158_v10 }
  0x6d   : > { %356 = vmatpush1.msra.mxu0 %v8137_v2  ;;  %v8146_v6 = vld [vmem:[#allocation11 + $0x1a8] sm:$0xff]  ;;  %490 = vmatprep.mubr.f32.mxu1 %v11689_v5  ;;  %v8150_v7 = vld [vmem:[#allocation11 + $0x1a0] sm:$0xff]  ;;  %v8164_v12 = vld [vmem:[#allocation11 + $0x1f0] sm:$0xff] }
  0x6e   : > { %357 = vmatprep.subr.mxu0 %v8139_v3  ;;  %v8153_v8 = vld [vmem:[#allocation11 + $0x188] sm:$0xff]  ;;  %v8156_v9 = vld [vmem:[#allocation11 + $0x180] sm:$0xff]  ;;  %426 = vmatprep.subr.mxu1 %v8158_v10  ;;  %v8170_v14 = vld [vmem:[#allocation11 + $0x1d8] sm:$0xff] }
  0x6f   : > { %358 = vmatpush1.msra.mxu0 %v8142_v4  ;;  %v8161_v11 = vld [vmem:[#allocation11 + $0x168] sm:$0xff]  ;;  %v8167_v13 = vld [vmem:[#allocation11 + $0x160] sm:$0xff]  ;;  %427 = vmatpush1.msra.mxu1 %v8164_v12  ;;  %v8172_v15 = vld [vmem:[#allocation11 + $0x1d0] sm:$0xff] }
  0x70   : > { %359 = vmatprep.subr.mxu0 %v8146_v6  ;;  %v8175_v16 = vld [vmem:[#allocation11 + $0x148] sm:$0xff]  ;;  %428 = vmatprep.subr.mxu1 %v8170_v14  ;;  %v8178_v17 = vld [vmem:[#allocation11 + $0x1b8] sm:$0xff]  ;;  %v8181_v18 = vld [vmem:[#allocation11 + $0x140] sm:$0xff] }
  0x71   : > { %360 = vmatpush1.msra.mxu0 %v8150_v7  ;;  %429 = vmatpush1.msra.mxu1 %v8172_v15  ;;  %v8184_v19 = vld [vmem:[#allocation11 + $0x1b0] sm:$0xff]  ;;  %v8186_v20 = vld [vmem:[#allocation11 + $0x198] sm:$0xff]  ;;  %v8189_v21 = vld [vmem:[#allocation11 + $0x128] sm:$0xff] }
  0x72   : > { %361 = vmatprep.subr.mxu0 %v8153_v8  ;;  %430 = vmatprep.subr.mxu1 %v8178_v17  ;;  %v8192_v22 = vld [vmem:[#allocation11 + $0x190] sm:$0xff]  ;;  %v8195_v23 = vld [vmem:[#allocation11 + $0x120] sm:$0xff]  ;;  %v8198_v24 = vld [vmem:[#allocation11 + $0x178] sm:$0xff] }
  0x73   : > { %362 = vmatpush1.msra.mxu0 %v8156_v9  ;;  %431 = vmatpush1.msra.mxu1 %v8184_v19  ;;  %v8201_v25 = vld [vmem:[#allocation11 + $0x108] sm:$0xff]  ;;  %v8204_v26 = vld [vmem:[#allocation11 + $0x170] sm:$0xff]  ;;  %v8207_v27 = vld [vmem:[#allocation11 + $0x100] sm:$0xff] }
  0x74   : > { %363 = vmatprep.subr.mxu0 %v8161_v11  ;;  %432 = vmatprep.subr.mxu1 %v8186_v20  ;;  %v8210_v28 = vld [vmem:[#allocation11 + $0x158] sm:$0xff]  ;;  %v8213_v29 = vld [vmem:[#allocation11 + $0xe8] sm:$0xff]  ;;  %v8216_v30 = vld [vmem:[#allocation11 + $0x150] sm:$0xff] }
  0x75   : > { %364 = vmatpush1.msra.mxu0 %v8167_v13  ;;  %433 = vmatpush1.msra.mxu1 %v8192_v22  ;;  %v8219_v31 = vld [vmem:[#allocation11 + $0xe0] sm:$0xff]  ;;  %v8222_v32 = vld [vmem:[#allocation11 + $0x138] sm:$0xff]  ;;  %v8225_v33 = vld [vmem:[#allocation11 + $0xc8] sm:$0xff] }
  0x76   : > { %365 = vmatprep.subr.mxu0 %v8175_v16  ;;  %434 = vmatprep.subr.mxu1 %v8198_v24  ;;  %v8228_v34 = vld [vmem:[#allocation11 + $0x130] sm:$0xff]  ;;  %v8231_v35 = vld [vmem:[#allocation11 + $0xc0] sm:$0xff]  ;;  %v8234_v36 = vld [vmem:[#allocation11 + $0x118] sm:$0xff] }
  0x77   : > { %366 = vmatpush1.msra.mxu0 %v8181_v18  ;;  %435 = vmatpush1.msra.mxu1 %v8204_v26  ;;  %v8237_v37 = vld [vmem:[#allocation11 + $0xa8] sm:$0xff]  ;;  %v8240_v38 = vld [vmem:[#allocation11 + $0x110] sm:$0xff]  ;;  %v8243_v39 = vld [vmem:[#allocation11 + $0xa0] sm:$0xff] }
  0x78   : > { %367 = vmatprep.subr.mxu0 %v8189_v21  ;;  %436 = vmatprep.subr.mxu1 %v8210_v28  ;;  %v8246_v40 = vld [vmem:[#allocation11 + $0xf8] sm:$0xff]  ;;  %v8249_v41 = vld [vmem:[#allocation11 + $0x88] sm:$0xff]  ;;  %v8252_v42 = vld [vmem:[#allocation11 + $0xf0] sm:$0xff] }
  0x79   : > { %368 = vmatpush1.msra.mxu0 %v8195_v23  ;;  %437 = vmatpush1.msra.mxu1 %v8216_v30  ;;  %v8255_v43 = vld [vmem:[#allocation11 + $0x80] sm:$0xff]  ;;  %v8258_v44 = vld [vmem:[#allocation11 + $0xd8] sm:$0xff]  ;;  %v8261_v45 = vld [vmem:[#allocation11 + $0x68] sm:$0xff] }
  0x7a   : > { %369 = vmatprep.subr.mxu0 %v8201_v25  ;;  %438 = vmatprep.subr.mxu1 %v8222_v32  ;;  %12031 = vst [vmem:[#allocation23_spill] sm:$0xff] %v8255_v43  ;;  %12032 = vst [vmem:[#allocation24_spill] sm:$0xff] %v8261_v45  ;;  %v8264_v46 = vld [vmem:[#allocation11 + $0xd0] sm:$0xff]  ;;  %v8267_v47 = vld [vmem:[#allocation11 + $0x60] sm:$0xff] }
  0x7b   : > { %370 = vmatpush1.msra.mxu0 %v8207_v27  ;;  %439 = vmatpush1.msra.mxu1 %v8228_v34  ;;  %12033 = vst [vmem:[#allocation25_spill] sm:$0xff] %v8267_v47  ;;  %v8270_v48 = vld [vmem:[#allocation11 + $0xb8] sm:$0xff]  ;;  %v8273_v49 = vld [vmem:[#allocation11 + $0x48] sm:$0xff]  ;;  %v8276_v50 = vld [vmem:[#allocation11 + $0xb0] sm:$0xff] }
  0x7c   : > { %371 = vmatprep.subr.mxu0 %v8213_v29  ;;  %440 = vmatprep.subr.mxu1 %v8234_v36  ;;  %12034 = vst [vmem:[#allocation26_spill] sm:$0xff] %v8273_v49  ;;  %v8279_v51 = vld [vmem:[#allocation11 + $0x40] sm:$0xff]  ;;  %v8282_v52 = vld [vmem:[#allocation11 + $0x98] sm:$0xff]  ;;  %v8285_v53 = vld [vmem:[#allocation11 + $0x28] sm:$0xff] }
  0x7d   : > { %372 = vmatpush1.msra.mxu0 %v8219_v31  ;;  %441 = vmatpush1.msra.mxu1 %v8240_v38  ;;  %12035 = vst [vmem:[#allocation27_spill] sm:$0xff] %v8279_v51  ;;  %12036 = vst [vmem:[#allocation28_spill] sm:$0xff] %v8285_v53  ;;  %v8288_v54 = vld [vmem:[#allocation11 + $0x90] sm:$0xff]  ;;  %v8291_v55 = vld [vmem:[#allocation11 + $0x20] sm:$0xff] }
  0x7e   : > { %373 = vmatprep.subr.mxu0 %v8225_v33  ;;  %442 = vmatprep.subr.mxu1 %v8246_v40  ;;  %12037 = vst [vmem:[#allocation29_spill] sm:$0xff] %v8288_v54  ;;  %12038 = vst [vmem:[#allocation30_spill] sm:$0xff] %v8291_v55  ;;  %v8294_v56 = vld [vmem:[#allocation11 + $0x78] sm:$0xff]  ;;  %v8297_v57 = vld [vmem:[#allocation11 + $0x8] sm:$0xff] }
  0x7f   : > { %374 = vmatpush1.msra.mxu0 %v8231_v35  ;;  %443 = vmatpush1.msra.mxu1 %v8252_v42  ;;  %12039 = vst [vmem:[#allocation31_spill] sm:$0xff] %v8294_v56  ;;  %12040 = vst [vmem:[#allocation32_spill] sm:$0xff] %v8297_v57  ;;  %v8300_v58 = vld [vmem:[#allocation11 + $0x70] sm:$0xff]  ;;  %v8303_v59 = vld [vmem:[#allocation11] sm:$0xff] }
  0x80   : > { %375 = vmatprep.subr.mxu0 %v8237_v37  ;;  %444 = vmatprep.subr.mxu1 %v8258_v44  ;;  %12041 = vst [vmem:[#allocation33_spill] sm:$0xff] %v8300_v58  ;;  %12042 = vst [vmem:[#allocation34_spill] sm:$0xff] %v8303_v59  ;;  %v8306_v60 = vld [vmem:[#allocation11 + $0x58] sm:$0xff]  ;;  %v349_v61 = vld [vmem:[#allocation2] sm:$0xff] }
  0x81   : > { %376 = vmatpush1.msra.mxu0 %v8243_v39  ;;  %445 = vmatpush1.msra.mxu1 %v8264_v46  ;;  %12043 = vst [vmem:[#allocation35_spill] sm:$0xff] %v8306_v60  ;;  %v8310_v62 = vld [vmem:[#allocation11 + $0x50] sm:$0xff]  ;;  %v8314_v63 = vld [vmem:[#allocation11 + $0x38] sm:$0xff] }
  0x82   : > { %377 = vmatprep.subr.mxu0 %v8249_v41  ;;  %446 = vmatprep.subr.mxu1 %v8270_v48  ;;  %12044 = vst [vmem:[#allocation36_spill] sm:$0xff] %v8310_v62  ;;  %12045 = vst [vmem:[#allocation37_spill] sm:$0xff] %v8314_v63  ;;  %v8318_v0 = vld [vmem:[#allocation11 + $0x30] sm:$0xff]  ;;  %v8321_v5 = vld [vmem:[#allocation11 + $0x18] sm:$0xff] }
  0x83   : > { %378 = vmatpush1.msra.mxu0 %v8255_v43  ;;  %447 = vmatpush1.msra.mxu1 %v8276_v50  ;;  %12046 = vst [vmem:[#allocation38_spill] sm:$0xff] %v8318_v0  ;;  %12047 = vst [vmem:[#allocation39_spill] sm:$0xff] %v8321_v5 }
  0x84   : > { %379 = vmatprep.subr.mxu0 %v8261_v45  ;;  %448 = vmatprep.subr.mxu1 %v8282_v52 }
  0x85   : > { %380 = vmatpush1.msra.mxu0 %v8267_v47  ;;  %449 = vmatpush1.msra.mxu1 %v8288_v54 }
  0x86   : > { %381 = vmatprep.subr.mxu0 %v8273_v49  ;;  %450 = vmatprep.subr.mxu1 %v8294_v56 }
  0x87   : > { %382 = vmatpush1.msra.mxu0 %v8279_v51  ;;  %451 = vmatpush1.msra.mxu1 %v8300_v58 }
  0x88   : > { %383 = vmatprep.subr.mxu0 %v8285_v53  ;;  %452 = vmatprep.subr.mxu1 %v8306_v60 }
  0x89   : > { %384 = vmatpush1.msra.mxu0 %v8291_v55  ;;  %453 = vmatpush1.msra.mxu1 %v8310_v62  ;;  %v8324_v55 = vld [vmem:[#allocation11 + $0x10] sm:$0xff] }
  0x8a   : > { %385 = vmatprep.subr.mxu0 %v8297_v57  ;;  %454 = vmatprep.subr.mxu1 %v8314_v63  ;;  %12048 = vst [vmem:[#allocation40_spill] sm:$0xff] %v8324_v55 }
  0x8b   : > { %386 = vmatpush1.msra.mxu0 %v8303_v59  ;;  %455 = vmatpush1.msra.mxu1 %v8318_v0 }
  0x8c   : > { %420 = vmatmul.mubr.f32.vlgmr.msra.gmra.mxu0 %v349_v61  ;;  %531 = vmatprep.subr.mxu0 %v8135_v1 }
  0x8d   : > { %532 = vmatpush1.msra.mxu0 %v8137_v2  ;;  %456 = vmatprep.subr.mxu1 %v8321_v5 }
  0x8e   : > { %533 = vmatprep.subr.mxu0 %v8139_v3  ;;  %457 = vmatpush1.msra.mxu1 %v8324_v55 }
  0x8f   : > { %534 = vmatpush1.msra.mxu0 %v8142_v4  ;;  %491 = vmatmul.mubr.f32.vlgmr.msra.gmra.mxu1 %v349_v61  ;;  %v12049_v61 = vld [vmem:[#allocation30_spill] sm:$0xff] }
  0x90   : > { %602 = vmatprep.subr.mxu1 %v8158_v10  ;;  %535 = vmatprep.subr.mxu0 %v8146_v6 }
  0x91   : > { %603 = vmatpush1.msra.mxu1 %v8164_v12  ;;  %536 = vmatpush1.msra.mxu0 %v8150_v7 }
  0x92   : > { %604 = vmatprep.subr.mxu1 %v8170_v14  ;;  %537 = vmatprep.subr.mxu0 %v8153_v8 }
  0x93   : > { %605 = vmatpush1.msra.mxu1 %v8172_v15  ;;  %538 = vmatpush1.msra.mxu0 %v8156_v9 }
  0x94   : > { %606 = vmatprep.subr.mxu1 %v8178_v17  ;;  %539 = vmatprep.subr.mxu0 %v8161_v11 }
  0x95   : > { %607 = vmatpush1.msra.mxu1 %v8184_v19  ;;  %540 = vmatpush1.msra.mxu0 %v8167_v13 }
  0x96   : > { %608 = vmatprep.subr.mxu1 %v8186_v20  ;;  %541 = vmatprep.subr.mxu0 %v8175_v16 }
  0x97   : > { %609 = vmatpush1.msra.mxu1 %v8192_v22  ;;  %542 = vmatpush1.msra.mxu0 %v8181_v18 }
  0x98   : > { %610 = vmatprep.subr.mxu1 %v8198_v24  ;;  %543 = vmatprep.subr.mxu0 %v8189_v21 }
  0x99   : > { %611 = vmatpush1.msra.mxu1 %v8204_v26  ;;  %544 = vmatpush1.msra.mxu0 %v8195_v23 }
  0x9a   : > { %612 = vmatprep.subr.mxu1 %v8210_v28  ;;  %545 = vmatprep.subr.mxu0 %v8201_v25 }
  0x9b   : > { %613 = vmatpush1.msra.mxu1 %v8216_v30  ;;  %546 = vmatpush1.msra.mxu0 %v8207_v27 }
  0x9c   : > { %614 = vmatprep.subr.mxu1 %v8222_v32  ;;  %547 = vmatprep.subr.mxu0 %v8213_v29 }
  0x9d   : > { %615 = vmatpush1.msra.mxu1 %v8228_v34  ;;  %548 = vmatpush1.msra.mxu0 %v8219_v31 }
  0x9e   : > { %616 = vmatprep.subr.mxu1 %v8234_v36  ;;  %549 = vmatprep.subr.mxu0 %v8225_v33 }
  0x9f   : > { %617 = vmatpush1.msra.mxu1 %v8240_v38  ;;  %550 = vmatpush1.msra.mxu0 %v8231_v35 }
  0xa0   : > { %618 = vmatprep.subr.mxu1 %v8246_v40  ;;  %551 = vmatprep.subr.mxu0 %v8237_v37 }
  0xa1   : > { %619 = vmatpush1.msra.mxu1 %v8252_v42  ;;  %552 = vmatpush1.msra.mxu0 %v8243_v39 }
  0xa2   : > { %620 = vmatprep.subr.mxu1 %v8258_v44  ;;  %553 = vmatprep.subr.mxu0 %v8249_v41 }
  0xa3   : > { %621 = vmatpush1.msra.mxu1 %v8264_v46  ;;  %554 = vmatpush1.msra.mxu0 %v8255_v43 }
  0xa4   : > { %622 = vmatprep.subr.mxu1 %v8270_v48  ;;  %555 = vmatprep.subr.mxu0 %v8261_v45 }
  0xa5   : > { %623 = vmatpush1.msra.mxu1 %v8276_v50  ;;  %556 = vmatpush1.msra.mxu0 %v8267_v47 }
  0xa6   : > { %624 = vmatprep.subr.mxu1 %v8282_v52  ;;  %557 = vmatprep.subr.mxu0 %v8273_v49  ;;  %v354_v49 = vld [vmem:[%s8119_s15 + $0x18] sm:$0xff] }
  0xa7   : > { %625 = vmatpush1.msra.mxu1 %v8288_v54  ;;  %558 = vmatpush1.msra.mxu0 %v8279_v51  ;;  %v12050_v51 = vmov 0.0  }
  0xa8   : > { %626 = vmatprep.subr.mxu1 %v8294_v56  ;;  %559 = vmatprep.subr.mxu0 %v8285_v53 }
  0xa9   : > { %627 = vmatpush1.msra.mxu1 %v8300_v58  ;;  %560 = vmatpush1.msra.mxu0 %v12049_v61  ;;  %v353_v58 = vld [vmem:[%s8119_s15 + $0x10] sm:$0xff] }
  0xaa   : > { %628 = vmatprep.subr.mxu1 %v8306_v60  ;;  %561 = vmatprep.subr.mxu0 %v8297_v57  ;;  %v351_v57 = vld [vmem:[%s8119_s15] sm:$0xff] }
  0xab   : > { %629 = vmatpush1.msra.mxu1 %v8310_v62  ;;  %562 = vmatpush1.msra.mxu0 %v8303_v59 }
  0xac   : > { %630 = vmatprep.subr.mxu1 %v8314_v63  ;;  %595 = vmatprep.mubr.f32.mxu0 %v12050_v51  ;;  %v352_v63 = vld [vmem:[%s8119_s15 + $0x8] sm:$0xff] }
  0xad   : > { %631 = vmatpush1.msra.mxu1 %v8318_v0  ;;  %666 = vmatprep.mubr.f32.mxu1 %v12050_v51 }
  0xae   : > { %632 = vmatprep.subr.mxu1 %v8321_v5  ;;  %708 = vmatprep.subr.mxu0 %v8135_v1 }
  0xaf   : > { %633 = vmatpush1.msra.mxu1 %v8324_v55 }
  0xb0   : > { %779 = vmatprep.subr.mxu1 %v8158_v10 }
 0x14c   : > { %v421_v61 = vpop.f32.mrf.mxu0 }
 0x14d   : > { %v497_v59 = vadd.f32 %v421_v61, %v351_v57 }
 0x14e   : > { %v423_v53 = vpop.f32.mrf.mxu0 }
 0x14f   : > { %v6645_v0 = vmul.f32 -1.442695, %v497_v59  ;;  %v498_v62 = vadd.f32 %v423_v53, %v352_v63  ;;  %v492_v5 = vpop.f32.mrf.mxu1 }
 0x150   : > { %v499_v47 = vadd.f32 %v492_v5, %v353_v58  ;;  %v12059_v58 = vld [vmem:[#allocation35_spill] sm:$0xff] }
 0x151   : > { %6889 = vpow2.f32 %v6645_v0  ;;  %v6646_v60 = vmul.f32 -1.442695, %v498_v62  ;;  %v494_v51 = vpop.f32.mrf.mxu1  ;;  %v350_v62 = vld [vmem:[#allocation3] sm:$0xff] }
 0x152   : > { %v500_v55 = vadd.f32 %v494_v51, %v354_v49  ;;  %v12054_v49 = vld [vmem:[#allocation24_spill] sm:$0xff]  ;;  %v12055_v51 = vld [vmem:[#allocation31_spill] sm:$0xff] }
 0x153   : > { %6891 = vpow2.f32 %v6646_v60 }
 0x154   : > { %v6647_v56 = vmul.f32 -1.442695, %v500_v55  ;;  %6893 = vtanh.f32 %v499_v47  ;;  %v12057_v55 = vld [vmem:[#allocation33_spill] sm:$0xff] }
 0x156   : > { %6895 = vpow2.f32 %v6647_v56  ;;  %v12058_v56 = vld [vmem:[#allocation26_spill] sm:$0xff] }
 0x15e   : > { %v6890_v1 = vpop.eup %6889 }
 0x15f   : > { %v504_v45 = vadd.f32 1.0, %v6890_v1 }
 0x160   : > { %v6892_v10 = vpop.eup %6891 }
 0x161   : > { %6897 = vrcp.f32 %v504_v45  ;;  %v510_v57 = vadd.f32 1.0, %v6892_v10  ;;  %v6894_v59 = vpop.eup %6893  ;;  %v12052_v10 = vld [vmem:[#allocation23_spill] sm:$0xff]  ;;  %v12053_v45 = vld [vmem:[#allocation29_spill] sm:$0xff] }
 0x163   : > { %6899 = vrcp.f32 %v510_v57  ;;  %v6896_v53 = vpop.eup %6895  ;;  %v12060_v57 = vld [vmem:[#allocation27_spill] sm:$0xff] }
 0x164   : > { %v517_v60 = vadd.f32 1.0, %v6896_v53  ;;  %v12062_v53 = vld [vmem:[#allocation28_spill] sm:$0xff] }
 0x166   : > { %6901 = vrcp.f32 %v517_v60  ;;  %v12066_v60 = vld [vmem:[#allocation32_spill] sm:$0xff] }
 0x16e   : > { %v6898_v63 = vpop.eup %6897 }
 0x16f   : > { %v521_v54 = vmul.f32 %v6898_v63, %v6894_v59  ;;  %v12061_v59 = vld [vmem:[#allocation36_spill] sm:$0xff]  ;;  %v12063_v63 = vld [vmem:[#allocation37_spill] sm:$0xff] }
 0x170   : > { %v6900_v0 = vpop.eup %6899 }
 0x171   : > { %v520_v61 = vmul.f32 %v6900_v0, %v350_v62  ;;  %v12064_v62 = vld [vmem:[#allocation30_spill] sm:$0xff] }
 0x172   : > { %v12065_v0 = vld [vmem:[#allocation38_spill] sm:$0xff] }
 0x173   : > { %v8401_v43 = vadd.f32 %v521_v54, %v520_v61  ;;  %v6902_v1 = vpop.eup %6901  ;;  %v12056_v54 = vld [vmem:[#allocation25_spill] sm:$0xff]  ;;  %v12067_v61 = vld [vmem:[#allocation39_spill] sm:$0xff] }
 0x175   : > { %6903 = vtanh.f32 %v8401_v43 }
 0x182   : > { %v6904_v5 = vpop.eup %6903 }
 0x183   : > { %v8404_v47 = vmul.f32 %v6904_v5, %v6902_v1  ;;  %v12068_v1 = vld [vmem:[#allocation34_spill] sm:$0xff]  ;;  %v12069_v5 = vmov 0.0  }
 0x185   : > { %12051 = vst [vmem:[#allocation41_spill] sm:$0xff] %v8404_v47  ;;  %596 = vmatmul.mubr.f32.vlgmr.msra.gmra.mxu0 %v8404_v47  ;;  %667 = vmatmul.mubr.f32.vlgmr.msra.gmra.mxu1 %v8404_v47  ;;  %v12070_v47 = vld [vmem:[#allocation40_spill] sm:$0xff] }
 0x186   : > { %709 = vmatpush1.msra.mxu0 %v8137_v2  ;;  %780 = vmatpush1.msra.mxu1 %v8164_v12 }
 0x187   : > { %710 = vmatprep.subr.mxu0 %v8139_v3  ;;  %781 = vmatprep.subr.mxu1 %v8170_v14 }
 0x188   : > { %711 = vmatpush1.msra.mxu0 %v8142_v4  ;;  %782 = vmatpush1.msra.mxu1 %v8172_v15 }
 0x189   : > { %712 = vmatprep.subr.mxu0 %v8146_v6  ;;  %783 = vmatprep.subr.mxu1 %v8178_v17 }
 0x18a   : > { %713 = vmatpush1.msra.mxu0 %v8150_v7  ;;  %784 = vmatpush1.msra.mxu1 %v8184_v19 }
 0x18b   : > { %714 = vmatprep.subr.mxu0 %v8153_v8  ;;  %785 = vmatprep.subr.mxu1 %v8186_v20 }
 0x18c   : > { %715 = vmatpush1.msra.mxu0 %v8156_v9  ;;  %786 = vmatpush1.msra.mxu1 %v8192_v22 }
 0x18d   : > { %716 = vmatprep.subr.mxu0 %v8161_v11  ;;  %787 = vmatprep.subr.mxu1 %v8198_v24 }
 0x18e   : > { %717 = vmatpush1.msra.mxu0 %v8167_v13  ;;  %788 = vmatpush1.msra.mxu1 %v8204_v26 }
 0x18f   : > { %718 = vmatprep.subr.mxu0 %v8175_v16  ;;  %789 = vmatprep.subr.mxu1 %v8210_v28 }
 0x190   : > { %719 = vmatpush1.msra.mxu0 %v8181_v18  ;;  %790 = vmatpush1.msra.mxu1 %v8216_v30 }
 0x191   : > { %720 = vmatprep.subr.mxu0 %v8189_v21  ;;  %791 = vmatprep.subr.mxu1 %v8222_v32 }
 0x192   : > { %721 = vmatpush1.msra.mxu0 %v8195_v23  ;;  %792 = vmatpush1.msra.mxu1 %v8228_v34 }
 0x193   : > { %722 = vmatprep.subr.mxu0 %v8201_v25  ;;  %793 = vmatprep.subr.mxu1 %v8234_v36 }
 0x194   : > { %723 = vmatpush1.msra.mxu0 %v8207_v27  ;;  %794 = vmatpush1.msra.mxu1 %v8240_v38 }
 0x195   : > { %724 = vmatprep.subr.mxu0 %v8213_v29  ;;  %795 = vmatprep.subr.mxu1 %v8246_v40 }
 0x196   : > { %725 = vmatpush1.msra.mxu0 %v8219_v31  ;;  %796 = vmatpush1.msra.mxu1 %v8252_v42 }
 0x197   : > { %726 = vmatprep.subr.mxu0 %v8225_v33  ;;  %797 = vmatprep.subr.mxu1 %v8258_v44 }
 0x198   : > { %727 = vmatpush1.msra.mxu0 %v8231_v35  ;;  %798 = vmatpush1.msra.mxu1 %v8264_v46 }
 0x199   : > { %728 = vmatprep.subr.mxu0 %v8237_v37  ;;  %799 = vmatprep.subr.mxu1 %v8270_v48 }
 0x19a   : > { %729 = vmatpush1.msra.mxu0 %v8243_v39  ;;  %800 = vmatpush1.msra.mxu1 %v8276_v50 }
 0x19b   : > { %730 = vmatprep.subr.mxu0 %v8249_v41  ;;  %801 = vmatprep.subr.mxu1 %v8282_v52 }
 0x19c   : > { %731 = vmatpush1.msra.mxu0 %v12052_v10  ;;  %802 = vmatpush1.msra.mxu1 %v12053_v45 }
 0x19d   : > { %732 = vmatprep.subr.mxu0 %v12054_v49  ;;  %803 = vmatprep.subr.mxu1 %v12055_v51 }
 0x19e   : > { %733 = vmatpush1.msra.mxu0 %v12056_v54  ;;  %804 = vmatpush1.msra.mxu1 %v12057_v55  ;;  %v6651_v55 = vld [vmem:[%s8119_s15 + $0x38] sm:$0xff] }
 0x19f   : > { %734 = vmatprep.subr.mxu0 %v12058_v56  ;;  %805 = vmatprep.subr.mxu1 %v12059_v58 }
 0x1a0   : > { %735 = vmatpush1.msra.mxu0 %v12060_v57  ;;  %806 = vmatpush1.msra.mxu1 %v12061_v59  ;;  %v6649_v59 = vld [vmem:[%s8119_s15 + $0x28] sm:$0xff] }
 0x1a1   : > { %736 = vmatprep.subr.mxu0 %v12062_v53  ;;  %807 = vmatprep.subr.mxu1 %v12063_v63  ;;  %v12071_v53 = vld [vmem:[#allocation21_spill] sm:$0xff]  ;;  %v12072_v63 = vld [vmem:[#allocation22_spill] sm:$0xff] }
 0x1a2   : > { %737 = vmatpush1.msra.mxu0 %v12064_v62  ;;  %808 = vmatpush1.msra.mxu1 %v12065_v0  ;;  %v6648_v62 = vld [vmem:[%s8119_s15 + $0x20] sm:$0xff] }
 0x1a3   : > { %738 = vmatprep.subr.mxu0 %v12066_v60  ;;  %809 = vmatprep.subr.mxu1 %v12067_v61 }
 0x1a4   : > { %739 = vmatpush1.msra.mxu0 %v12068_v1  ;;  %772 = vmatprep.mubr.f32.mxu0 %v12069_v5 }
 0x1a5   : > { %810 = vmatpush1.msra.mxu1 %v12070_v47  ;;  %843 = vmatprep.mubr.f32.mxu1 %v12069_v5  ;;  %v6650_v5 = vld [vmem:[%s8119_s15 + $0x30] sm:$0xff] }
 0x1a6   : > { %885 = vmatprep.subr.mxu0 %v12071_v53  ;;  %956 = vmatprep.subr.mxu1 %v12072_v63 }
 0x245   : > { %v597_v0 = vpop.f32.mrf.mxu0  ;;  %v668_v1 = vpop.f32.mrf.mxu1 }
 0x246   : > { %v673_v60 = vadd.f32 %v6648_v62, %v597_v0  ;;  %v675_v49 = vadd.f32 %v6650_v5, %v668_v1  ;;  %v12081_v1 = vld [vmem:[#allocation35_spill] sm:$0xff] }
 0x247   : > { %v599_v57 = vpop.f32.mrf.mxu0  ;;  %v670_v47 = vpop.f32.mrf.mxu1  ;;  %v12082_v5 = vld [vmem:[#allocation27_spill] sm:$0xff] }
 0x248   : > { %v6652_v61 = vmul.f32 -1.442695, %v673_v60  ;;  %v674_v58 = vadd.f32 %v6649_v59, %v599_v57  ;;  %v676_v54 = vadd.f32 %v6651_v55, %v670_v47 }
 0x24a   : > { %6905 = vpow2.f32 %v6652_v61  ;;  %v6653_v56 = vmul.f32 -1.442695, %v674_v58  ;;  %v6654_v51 = vmul.f32 -1.442695, %v676_v54  ;;  %v12080_v61 = vld [vmem:[#allocation26_spill] sm:$0xff] }
 0x24c   : > { %6907 = vpow2.f32 %v6653_v56 }
 0x24d   : > { %6909 = vpow2.f32 %v6654_v51 }
 0x257   : > { %v6906_v53 = vpop.eup %6905 }
 0x258   : > { %v680_v45 = vadd.f32 1.0, %v6906_v53  ;;  %v12078_v53 = vld [vmem:[#allocation25_spill] sm:$0xff] }
 0x259   : > { %v6908_v63 = vpop.eup %6907 }
 0x25a   : > { %6911 = vrcp.f32 %v680_v45  ;;  %v686_v10 = vadd.f32 1.0, %v6908_v63  ;;  %v6910_v62 = vpop.eup %6909  ;;  %v12076_v45 = vld [vmem:[#allocation24_spill] sm:$0xff]  ;;  %v12079_v63 = vld [vmem:[#allocation33_spill] sm:$0xff] }
 0x25b   : > { %6913 = vtanh.f32 %v675_v49  ;;  %v693_v58 = vadd.f32 1.0, %v6910_v62  ;;  %v12077_v49 = vld [vmem:[#allocation31_spill] sm:$0xff]  ;;  %v12083_v62 = vld [vmem:[#allocation36_spill] sm:$0xff] }
 0x25c   : > { %6915 = vrcp.f32 %v686_v10  ;;  %v12075_v10 = vld [vmem:[#allocation29_spill] sm:$0xff] }
 0x25d   : > { %6917 = vrcp.f32 %v693_v58  ;;  %v12087_v58 = vld [vmem:[#allocation38_spill] sm:$0xff] }
 0x267   : > { %v6912_v57 = vpop.eup %6911 }
 0x268   : > { %v6914_v59 = vpop.eup %6913 }
 0x269   : > { %v6916_v0 = vpop.eup %6915  ;;  %v697_v56 = vmul.f32 %v6914_v59, %v6912_v57  ;;  %v12084_v57 = vld [vmem:[#allocation28_spill] sm:$0xff]  ;;  %v12085_v59 = vld [vmem:[#allocation37_spill] sm:$0xff] }
 0x26a   : > { %v696_v60 = vmul.f32 %v6916_v0, %v8401_v43  ;;  %v6918_v54 = vpop.eup %6917  ;;  %v12074_v43 = vld [vmem:[#allocation23_spill] sm:$0xff]  ;;  %v12086_v0 = vld [vmem:[#allocation30_spill] sm:$0xff] }
 0x26c   : > { %v8479_v47 = vadd.f32 %v697_v56, %v696_v60  ;;  %v12088_v56 = vld [vmem:[#allocation32_spill] sm:$0xff]  ;;  %v12089_v60 = vld [vmem:[#allocation39_spill] sm:$0xff] }
 0x26e   : > { %6919 = vtanh.f32 %v8479_v47 }
 0x27b   : > { %v6920_v55 = vpop.eup %6919 }
 0x27c   : > { %v8482_v51 = vmul.f32 %v6920_v55, %v6918_v54  ;;  %v12090_v54 = vld [vmem:[#allocation34_spill] sm:$0xff]  ;;  %v12091_v55 = vmov 0.0  }
 0x27e   : > { %12073 = vst [vmem:[#allocation42_spill] sm:$0xff] %v8482_v51  ;;  %773 = vmatmul.mubr.f32.vlgmr.msra.gmra.mxu0 %v8482_v51  ;;  %844 = vmatmul.mubr.f32.vlgmr.msra.gmra.mxu1 %v8482_v51  ;;  %v12092_v51 = vld [vmem:[#allocation40_spill] sm:$0xff] }
 0x27f   : > { %886 = vmatpush1.msra.mxu0 %v8137_v2  ;;  %957 = vmatpush1.msra.mxu1 %v8164_v12 }
 0x280   : > { %887 = vmatprep.subr.mxu0 %v8139_v3  ;;  %958 = vmatprep.subr.mxu1 %v8170_v14 }
 0x281   : > { %888 = vmatpush1.msra.mxu0 %v8142_v4  ;;  %959 = vmatpush1.msra.mxu1 %v8172_v15 }
 0x282   : > { %889 = vmatprep.subr.mxu0 %v8146_v6  ;;  %960 = vmatprep.subr.mxu1 %v8178_v17 }
 0x283   : > { %890 = vmatpush1.msra.mxu0 %v8150_v7  ;;  %961 = vmatpush1.msra.mxu1 %v8184_v19 }
 0x284   : > { %891 = vmatprep.subr.mxu0 %v8153_v8  ;;  %962 = vmatprep.subr.mxu1 %v8186_v20 }
 0x285   : > { %892 = vmatpush1.msra.mxu0 %v8156_v9  ;;  %963 = vmatpush1.msra.mxu1 %v8192_v22 }
 0x286   : > { %893 = vmatprep.subr.mxu0 %v8161_v11  ;;  %964 = vmatprep.subr.mxu1 %v8198_v24 }
 0x287   : > { %894 = vmatpush1.msra.mxu0 %v8167_v13  ;;  %965 = vmatpush1.msra.mxu1 %v8204_v26 }
 0x288   : > { %895 = vmatprep.subr.mxu0 %v8175_v16  ;;  %966 = vmatprep.subr.mxu1 %v8210_v28 }
 0x289   : > { %896 = vmatpush1.msra.mxu0 %v8181_v18  ;;  %967 = vmatpush1.msra.mxu1 %v8216_v30 }
 0x28a   : > { %897 = vmatprep.subr.mxu0 %v8189_v21  ;;  %968 = vmatprep.subr.mxu1 %v8222_v32 }
 0x28b   : > { %898 = vmatpush1.msra.mxu0 %v8195_v23  ;;  %969 = vmatpush1.msra.mxu1 %v8228_v34 }
 0x28c   : > { %899 = vmatprep.subr.mxu0 %v8201_v25  ;;  %970 = vmatprep.subr.mxu1 %v8234_v36 }
 0x28d   : > { %900 = vmatpush1.msra.mxu0 %v8207_v27  ;;  %971 = vmatpush1.msra.mxu1 %v8240_v38 }
 0x28e   : > { %901 = vmatprep.subr.mxu0 %v8213_v29  ;;  %972 = vmatprep.subr.mxu1 %v8246_v40 }
 0x28f   : > { %902 = vmatpush1.msra.mxu0 %v8219_v31  ;;  %973 = vmatpush1.msra.mxu1 %v8252_v42 }
 0x290   : > { %903 = vmatprep.subr.mxu0 %v8225_v33  ;;  %974 = vmatprep.subr.mxu1 %v8258_v44 }
 0x291   : > { %904 = vmatpush1.msra.mxu0 %v8231_v35  ;;  %975 = vmatpush1.msra.mxu1 %v8264_v46 }
 0x292   : > { %905 = vmatprep.subr.mxu0 %v8237_v37  ;;  %976 = vmatprep.subr.mxu1 %v8270_v48 }
 0x293   : > { %906 = vmatpush1.msra.mxu0 %v8243_v39  ;;  %977 = vmatpush1.msra.mxu1 %v8276_v50 }
 0x294   : > { %907 = vmatprep.subr.mxu0 %v8249_v41  ;;  %978 = vmatprep.subr.mxu1 %v8282_v52 }
 0x295   : > { %908 = vmatpush1.msra.mxu0 %v12074_v43  ;;  %979 = vmatpush1.msra.mxu1 %v12075_v10 }
 0x296   : > { %909 = vmatprep.subr.mxu0 %v12076_v45  ;;  %980 = vmatprep.subr.mxu1 %v12077_v49 }
 0x297   : > { %910 = vmatpush1.msra.mxu0 %v12078_v53  ;;  %981 = vmatpush1.msra.mxu1 %v12079_v63  ;;  %v6658_v63 = vld [vmem:[%s8119_s15 + $0x58] sm:$0xff] }
 0x298   : > { %911 = vmatprep.subr.mxu0 %v12080_v61  ;;  %982 = vmatprep.subr.mxu1 %v12081_v1 }
 0x299   : > { %912 = vmatpush1.msra.mxu0 %v12082_v5  ;;  %983 = vmatpush1.msra.mxu1 %v12083_v62  ;;  %v6656_v62 = vld [vmem:[%s8119_s15 + $0x48] sm:$0xff] }
 0x29a   : > { %913 = vmatprep.subr.mxu0 %v12084_v57  ;;  %984 = vmatprep.subr.mxu1 %v12085_v59  ;;  %v12093_v57 = vld [vmem:[#allocation21_spill] sm:$0xff]  ;;  %v12094_v59 = vld [vmem:[#allocation22_spill] sm:$0xff] }
 0x29b   : > { %914 = vmatpush1.msra.mxu0 %v12086_v0  ;;  %985 = vmatpush1.msra.mxu1 %v12087_v58  ;;  %v6655_v0 = vld [vmem:[%s8119_s15 + $0x40] sm:$0xff] }
 0x29c   : > { %915 = vmatprep.subr.mxu0 %v12088_v56  ;;  %986 = vmatprep.subr.mxu1 %v12089_v60 }
 0x29d   : > { %916 = vmatpush1.msra.mxu0 %v12090_v54  ;;  %949 = vmatprep.mubr.f32.mxu0 %v12091_v55 }
 0x29e   : > { %987 = vmatpush1.msra.mxu1 %v12092_v51  ;;  %1020 = vmatprep.mubr.f32.mxu1 %v12091_v55  ;;  %v6657_v55 = vld [vmem:[%s8119_s15 + $0x50] sm:$0xff] }
 0x29f   : > { %1062 = vmatprep.subr.mxu0 %v12093_v57  ;;  %1133 = vmatprep.subr.mxu1 %v12094_v59 }
 0x33e   : > { %v774_v58 = vpop.f32.mrf.mxu0  ;;  %v845_v54 = vpop.f32.mrf.mxu1 }
 0x33f   : > { %v850_v56 = vadd.f32 %v6655_v0, %v774_v58  ;;  %v852_v45 = vadd.f32 %v6657_v55, %v845_v54 }
 0x340   : > { %v776_v5 = vpop.f32.mrf.mxu0  ;;  %v847_v51 = vpop.f32.mrf.mxu1 }
 0x341   : > { %v6659_v60 = vmul.f32 -1.442695, %v850_v56  ;;  %v851_v1 = vadd.f32 %v6656_v62, %v776_v5  ;;  %v853_v53 = vadd.f32 %v6658_v63, %v847_v51 }
 0x343   : > { %6921 = vpow2.f32 %v6659_v60  ;;  %v6660_v61 = vmul.f32 -1.442695, %v851_v1  ;;  %v6661_v49 = vmul.f32 -1.442695, %v853_v53 }
 0x345   : > { %6923 = vpow2.f32 %v6660_v61 }
 0x346   : > { %6925 = vpow2.f32 %v6661_v49 }
 0x350   : > { %v6922_v57 = vpop.eup %6921 }
 0x351   : > { %v857_v10 = vadd.f32 1.0, %v6922_v57 }
 0x352   : > { %v6924_v59 = vpop.eup %6923 }
 0x353   : > { %6927 = vrcp.f32 %v857_v10  ;;  %v863_v43 = vadd.f32 1.0, %v6924_v59  ;;  %v6926_v0 = vpop.eup %6925 }
 0x354   : > { %6929 = vtanh.f32 %v852_v45  ;;  %v870_v1 = vadd.f32 1.0, %v6926_v0 }
 0x355   : > { %6931 = vrcp.f32 %v863_v43 }
 0x356   : > { %6933 = vrcp.f32 %v870_v1  ;;  %v8653_v1 = vld [vmem:[#allocation11 + $0x1d8] sm:$0xff] }
 0x360   : > { %v6928_v5 = vpop.eup %6927 }
 0x361   : > { %v6930_v62 = vpop.eup %6929 }
 0x362   : > { %v6932_v58 = vpop.eup %6931  ;;  %v874_v61 = vmul.f32 %v6930_v62, %v6928_v5  ;;  %v8644_v5 = vld [vmem:[#allocation11 + $0x1e0] sm:$0xff]  ;;  %v8647_v62 = vld [vmem:[#allocation11 + $0x1f0] sm:$0xff] }
 0x363   : > { %v873_v56 = vmul.f32 %v6932_v58, %v8479_v47  ;;  %v6934_v53 = vpop.eup %6933  ;;  %v8650_v58 = vld [vmem:[#allocation11 + $0x1c8] sm:$0xff] }
 0x365   : > { %v8557_v51 = vadd.f32 %v874_v61, %v873_v56  ;;  %v8656_v61 = vld [vmem:[#allocation11 + $0x1c0] sm:$0xff]  ;;  %v8659_v56 = vld [vmem:[#allocation11 + $0x1d0] sm:$0xff] }
 0x367   : > { %6935 = vtanh.f32 %v8557_v51 }
 0x374   : > { %v6936_v63 = vpop.eup %6935 }
 0x375   : > { %v8560_v49 = vmul.f32 %v6936_v63, %v6934_v53  ;;  %v8665_v53 = vld [vmem:[#allocation11 + $0x1b8] sm:$0xff]  ;;  %v8668_v63 = vld [vmem:[#allocation11 + $0x1a0] sm:$0xff] }
 0x377   : > { %12095 = vst [vmem:[#allocation21_spill] sm:$0xff] %v8560_v49  ;;  %950 = vmatmul.mubr.f32.vlgmr.msra.gmra.mxu0 %v8560_v49  ;;  %1021 = vmatmul.mubr.f32.vlgmr.msra.gmra.mxu1 %v8560_v49 }
 0x378   : > { %1063 = vmatpush1.msra.mxu0 %v8137_v2  ;;  %1134 = vmatpush1.msra.mxu1 %v8164_v12  ;;  %v12096_v2 = vld [vmem:[#allocation23_spill] sm:$0xff] }
 0x379   : > { %1064 = vmatprep.subr.mxu0 %v8139_v3  ;;  %1135 = vmatprep.subr.mxu1 %v8170_v14  ;;  %v12097_v3 = vld [vmem:[#allocation29_spill] sm:$0xff]  ;;  %v12104_v12 = vld [vmem:[#allocation27_spill] sm:$0xff]  ;;  %v12106_v14 = vld [vmem:[#allocation28_spill] sm:$0xff] }
 0x37a   : > { %1065 = vmatpush1.msra.mxu0 %v8142_v4  ;;  %1136 = vmatpush1.msra.mxu1 %v8172_v15  ;;  %v12098_v4 = vld [vmem:[#allocation24_spill] sm:$0xff]  ;;  %v12107_v15 = vld [vmem:[#allocation37_spill] sm:$0xff] }
 0x37b   : > { %1066 = vmatprep.subr.mxu0 %v8146_v6  ;;  %1137 = vmatprep.subr.mxu1 %v8178_v17  ;;  %v12099_v6 = vld [vmem:[#allocation31_spill] sm:$0xff]  ;;  %v12109_v17 = vld [vmem:[#allocation38_spill] sm:$0xff] }
 0x37c   : > { %1067 = vmatpush1.msra.mxu0 %v8150_v7  ;;  %1138 = vmatpush1.msra.mxu1 %v8184_v19  ;;  %v12100_v7 = vld [vmem:[#allocation25_spill] sm:$0xff]  ;;  %v12111_v19 = vld [vmem:[#allocation39_spill] sm:$0xff] }
 0x37d   : > { %1068 = vmatprep.subr.mxu0 %v8153_v8  ;;  %1139 = vmatprep.subr.mxu1 %v8186_v20  ;;  %v12101_v8 = vld [vmem:[#allocation33_spill] sm:$0xff]  ;;  %v12112_v20 = vld [vmem:[#allocation34_spill] sm:$0xff] }
 0x37e   : > { %1069 = vmatpush1.msra.mxu0 %v8156_v9  ;;  %1140 = vmatpush1.msra.mxu1 %v8192_v22  ;;  %v12102_v9 = vld [vmem:[#allocation26_spill] sm:$0xff]  ;;  %v12114_v22 = vld [vmem:[#allocation40_spill] sm:$0xff] }
 0x37f   : > { %1070 = vmatprep.subr.mxu0 %v8161_v11  ;;  %1141 = vmatprep.subr.mxu1 %v8198_v24  ;;  %v12103_v11 = vld [vmem:[#allocation35_spill] sm:$0xff]  ;;  %v12116_v24 = vld [vmem:[#allocation22_spill] sm:$0xff] }
 0x380   : > { %1071 = vmatpush1.msra.mxu0 %v8167_v13  ;;  %1142 = vmatpush1.msra.mxu1 %v8204_v26  ;;  %v12105_v13 = vld [vmem:[#allocation36_spill] sm:$0xff] }
 0x381   : > { %1072 = vmatprep.subr.mxu0 %v8175_v16  ;;  %1143 = vmatprep.subr.mxu1 %v8210_v28  ;;  %v12108_v16 = vld [vmem:[#allocation30_spill] sm:$0xff] }
 0x382   : > { %1073 = vmatpush1.msra.mxu0 %v8181_v18  ;;  %1144 = vmatpush1.msra.mxu1 %v8216_v30  ;;  %v12110_v18 = vld [vmem:[#allocation32_spill] sm:$0xff] }
 0x383   : > { %1074 = vmatprep.subr.mxu0 %v8189_v21  ;;  %1145 = vmatprep.subr.mxu1 %v8222_v32  ;;  %v12113_v21 = vmov 0.0  }
 0x384   : > { %1075 = vmatpush1.msra.mxu0 %v8195_v23  ;;  %1146 = vmatpush1.msra.mxu1 %v8228_v34  ;;  %v8628_v23 = vld [vmem:[#allocation11 + $0x1e8] sm:$0xff]  ;;  %v6665_v34 = vld [vmem:[%s8119_s15 + $0x78] sm:$0xff] }
 0x385   : > { %1076 = vmatprep.subr.mxu0 %v8201_v25  ;;  %1147 = vmatprep.subr.mxu1 %v8234_v36  ;;  %12115 = vst [vmem:[#allocation23_spill] sm:$0xff] %v8628_v23  ;;  %v6662_v25 = vld [vmem:[%s8119_s15 + $0x60] sm:$0xff] }
 0x386   : > { %1077 = vmatpush1.msra.mxu0 %v8207_v27  ;;  %1148 = vmatpush1.msra.mxu1 %v8240_v38  ;;  %v6663_v27 = vld [vmem:[%s8119_s15 + $0x68] sm:$0xff] }
 0x387   : > { %1078 = vmatprep.subr.mxu0 %v8213_v29  ;;  %1149 = vmatprep.subr.mxu1 %v8246_v40 }
 0x388   : > { %1079 = vmatpush1.msra.mxu0 %v8219_v31  ;;  %1150 = vmatpush1.msra.mxu1 %v8252_v42 }
 0x389   : > { %1080 = vmatprep.subr.mxu0 %v8225_v33  ;;  %1151 = vmatprep.subr.mxu1 %v8258_v44 }
 0x38a   : > { %1081 = vmatpush1.msra.mxu0 %v8231_v35  ;;  %1152 = vmatpush1.msra.mxu1 %v8264_v46 }
 0x38b   : > { %1082 = vmatprep.subr.mxu0 %v8237_v37  ;;  %1153 = vmatprep.subr.mxu1 %v8270_v48  ;;  %v6664_v37 = vld [vmem:[%s8119_s15 + $0x70] sm:$0xff] }
 0x38c   : > { %1083 = vmatpush1.msra.mxu0 %v8243_v39  ;;  %1154 = vmatpush1.msra.mxu1 %v8276_v50 }
 0x38d   : > { %1084 = vmatprep.subr.mxu0 %v8249_v41  ;;  %1155 = vmatprep.subr.mxu1 %v8282_v52 }
 0x38e   : > { %1085 = vmatpush1.msra.mxu0 %v12096_v2  ;;  %1156 = vmatpush1.msra.mxu1 %v12097_v3  ;;  %v8671_v2 = vld [vmem:[#allocation11 + $0x1b0] sm:$0xff] }
 0x38f   : > { %1086 = vmatprep.subr.mxu0 %v12098_v4  ;;  %1157 = vmatprep.subr.mxu1 %v12099_v6  ;;  %v8674_v4 = vld [vmem:[#allocation11 + $0x188] sm:$0xff] }
 0x390   : > { %1087 = vmatpush1.msra.mxu0 %v12100_v7  ;;  %1158 = vmatpush1.msra.mxu1 %v12101_v8  ;;  %v8677_v7 = vld [vmem:[#allocation11 + $0x198] sm:$0xff] }
 0x391   : > { %1088 = vmatprep.subr.mxu0 %v12102_v9  ;;  %1159 = vmatprep.subr.mxu1 %v12103_v11  ;;  %v8680_v9 = vld [vmem:[#allocation11 + $0x180] sm:$0xff] }
 0x392   : > { %1089 = vmatpush1.msra.mxu0 %v12104_v12  ;;  %1160 = vmatpush1.msra.mxu1 %v12105_v13  ;;  %v8683_v12 = vld [vmem:[#allocation11 + $0x190] sm:$0xff] }
 0x393   : > { %1090 = vmatprep.subr.mxu0 %v12106_v14  ;;  %1161 = vmatprep.subr.mxu1 %v12107_v15  ;;  %v8686_v14 = vld [vmem:[#allocation11 + $0x168] sm:$0xff] }
 0x394   : > { %1091 = vmatpush1.msra.mxu0 %v12108_v16  ;;  %1162 = vmatpush1.msra.mxu1 %v12109_v17  ;;  %v8689_v16 = vld [vmem:[#allocation11 + $0x178] sm:$0xff] }
 0x395   : > { %1092 = vmatprep.subr.mxu0 %v12110_v18  ;;  %1163 = vmatprep.subr.mxu1 %v12111_v19 }
 0x396   : > { %1093 = vmatpush1.msra.mxu0 %v12112_v20  ;;  %1126 = vmatprep.mubr.f32.mxu0 %v12113_v21 }
 0x397   : > { %1164 = vmatpush1.msra.mxu1 %v12114_v22  ;;  %1197 = vmatprep.mubr.f32.mxu1 %v12113_v21 }
 0x398   : > { %1239 = vmatprep.subr.mxu0 %v8628_v23  ;;  %1310 = vmatprep.subr.mxu1 %v12116_v24  ;;  %v8692_v24 = vld [vmem:[#allocation11 + $0x160] sm:$0xff] }
 0x437   : > { %v951_v26 = vpop.f32.mrf.mxu0  ;;  %v1022_v32 = vpop.f32.mrf.mxu1 }
 0x438   : > { %v1027_v28 = vadd.f32 %v6662_v25, %v951_v26  ;;  %v1029_v40 = vadd.f32 %v6664_v37, %v1022_v32  ;;  %v8695_v25 = vld [vmem:[#allocation11 + $0x170] sm:$0xff]  ;;  %v8698_v26 = vld [vmem:[#allocation11 + $0x148] sm:$0xff]  ;;  %v8716_v32 = vld [vmem:[#allocation11 + $0x120] sm:$0xff] }
 0x439   : > { %v953_v29 = vpop.f32.mrf.mxu0  ;;  %v1024_v35 = vpop.f32.mrf.mxu1  ;;  %v8731_v37 = vld [vmem:[#allocation11 + $0x110] sm:$0xff] }
 0x43a   : > { %v6666_v30 = vmul.f32 -1.442695, %v1027_v28  ;;  %v1028_v31 = vadd.f32 %v6663_v27, %v953_v29  ;;  %v1030_v36 = vadd.f32 %v6665_v34, %v1024_v35  ;;  %v8701_v27 = vld [vmem:[#allocation11 + $0x158] sm:$0xff]  ;;  %v8704_v28 = vld [vmem:[#allocation11 + $0x140] sm:$0xff]  ;;  %v8707_v29 = vld [vmem:[#allocation11 + $0x150] sm:$0xff] }
 0x43b   : > { %v8722_v34 = vld [vmem:[#allocation11 + $0x108] sm:$0xff]  ;;  %v8725_v35 = vld [vmem:[#allocation11 + $0x118] sm:$0xff] }
 0x43c   : > { %6937 = vpow2.f32 %v6666_v30  ;;  %v6667_v33 = vmul.f32 -1.442695, %v1028_v31  ;;  %v6668_v38 = vmul.f32 -1.442695, %v1030_v36  ;;  %v8710_v30 = vld [vmem:[#allocation11 + $0x128] sm:$0xff]  ;;  %v8713_v31 = vld [vmem:[#allocation11 + $0x138] sm:$0xff] }
 0x43d   : > { %v8728_v36 = vld [vmem:[#allocation11 + $0x100] sm:$0xff] }
 0x43e   : > { %6939 = vpow2.f32 %v6667_v33  ;;  %v8719_v33 = vld [vmem:[#allocation11 + $0x130] sm:$0xff] }
 0x43f   : > { %6941 = vpow2.f32 %v6668_v38  ;;  %v8734_v38 = vld [vmem:[#allocation11 + $0xe8] sm:$0xff] }
 0x449   : > { %v6938_v39 = vpop.eup %6937 }
 0x44a   : > { %v1034_v41 = vadd.f32 1.0, %v6938_v39  ;;  %v8737_v39 = vld [vmem:[#allocation11 + $0xf8] sm:$0xff] }
 0x44b   : > { %v6940_v42 = vpop.eup %6939 }
 0x44c   : > { %6943 = vrcp.f32 %v1034_v41  ;;  %v1040_v44 = vadd.f32 1.0, %v6940_v42  ;;  %v6942_v46 = vpop.eup %6941  ;;  %v8743_v41 = vld [vmem:[#allocation11 + $0xf0] sm:$0xff]  ;;  %v8746_v42 = vld [vmem:[#allocation11 + $0xc8] sm:$0xff] }
 0x44d   : > { %6945 = vtanh.f32 %v1029_v40  ;;  %v1047_v45 = vadd.f32 1.0, %v6942_v46  ;;  %v8740_v40 = vld [vmem:[#allocation11 + $0xe0] sm:$0xff] }
 0x44e   : > { %6947 = vrcp.f32 %v1040_v44  ;;  %v8749_v44 = vld [vmem:[#allocation11 + $0xd8] sm:$0xff]  ;;  %v8752_v46 = vld [vmem:[#allocation11 + $0xc0] sm:$0xff] }
 0x44f   : > { %6949 = vrcp.f32 %v1047_v45  ;;  %v8766_v45 = vld [vmem:[#allocation11 + $0x88] sm:$0xff] }
 0x459   : > { %v6944_v47 = vpop.eup %6943 }
 0x45a   : > { %v6946_v43 = vpop.eup %6945 }
 0x45b   : > { %v6948_v10 = vpop.eup %6947  ;;  %v1051_v59 = vmul.f32 %v6946_v43, %v6944_v47  ;;  %v8755_v47 = vld [vmem:[#allocation11 + $0xd0] sm:$0xff]  ;;  %v8758_v43 = vld [vmem:[#allocation11 + $0xa8] sm:$0xff] }
 0x45c   : > { %v1050_v60 = vmul.f32 %v6948_v10, %v8557_v51  ;;  %v6950_v55 = vpop.eup %6949  ;;  %v8662_v51 = vld [vmem:[#allocation11 + $0x1a8] sm:$0xff]  ;;  %v8762_v10 = vld [vmem:[#allocation11 + $0xa0] sm:$0xff] }
 0x45e   : > { %v8637_v54 = vadd.f32 %v1051_v59, %v1050_v60  ;;  %v8770_v59 = vld [vmem:[#allocation11 + $0x80] sm:$0xff]  ;;  %v8774_v60 = vld [vmem:[#allocation11 + $0x68] sm:$0xff] }
 0x45f   : > { %12118 = vst [vmem:[#allocation24_spill] sm:$0xff] %v8770_v59  ;;  %12119 = vst [vmem:[#allocation31_spill] sm:$0xff] %v8774_v60 }
 0x460   : > { %6951 = vtanh.f32 %v8637_v54 }
 0x46d   : > { %v6952_v57 = vpop.eup %6951 }
 0x46e   : > { %v8640_v0 = vmul.f32 %v6952_v57, %v6950_v55  ;;  %v6672_v57 = vld [vmem:[%s8119_s15 + $0x98] sm:$0xff] }
 0x470   : > { %12117 = vst [vmem:[#allocation29_spill] sm:$0xff] %v8640_v0  ;;  %1127 = vmatmul.mubr.f32.vlgmr.msra.gmra.mxu0 %v8640_v0  ;;  %1198 = vmatmul.mubr.f32.vlgmr.msra.gmra.mxu1 %v8640_v0 }
 0x471   : > { %1240 = vmatpush1.msra.mxu0 %v8644_v5  ;;  %1311 = vmatpush1.msra.mxu1 %v8647_v62 }
 0x472   : > { %1241 = vmatprep.subr.mxu0 %v8650_v58  ;;  %1312 = vmatprep.subr.mxu1 %v8653_v1 }
 0x473   : > { %1242 = vmatpush1.msra.mxu0 %v8656_v61  ;;  %1313 = vmatpush1.msra.mxu1 %v8659_v56 }
 0x474   : > { %1243 = vmatprep.subr.mxu0 %v8662_v51  ;;  %1314 = vmatprep.subr.mxu1 %v8665_v53 }
 0x475   : > { %1244 = vmatpush1.msra.mxu0 %v8668_v63  ;;  %1315 = vmatpush1.msra.mxu1 %v8671_v2 }
 0x476   : > { %1245 = vmatprep.subr.mxu0 %v8674_v4  ;;  %1316 = vmatprep.subr.mxu1 %v8677_v7 }
 0x477   : > { %1246 = vmatpush1.msra.mxu0 %v8680_v9  ;;  %1317 = vmatpush1.msra.mxu1 %v8683_v12 }
 0x478   : > { %1247 = vmatprep.subr.mxu0 %v8686_v14  ;;  %1318 = vmatprep.subr.mxu1 %v8689_v16 }
 0x479   : > { %1248 = vmatpush1.msra.mxu0 %v8692_v24  ;;  %1319 = vmatpush1.msra.mxu1 %v8695_v25 }
 0x47a   : > { %1249 = vmatprep.subr.mxu0 %v8698_v26  ;;  %1320 = vmatprep.subr.mxu1 %v8701_v27 }
 0x47b   : > { %1250 = vmatpush1.msra.mxu0 %v8704_v28  ;;  %1321 = vmatpush1.msra.mxu1 %v8707_v29 }
 0x47c   : > { %1251 = vmatprep.subr.mxu0 %v8710_v30  ;;  %1322 = vmatprep.subr.mxu1 %v8713_v31 }
 0x47d   : > { %1252 = vmatpush1.msra.mxu0 %v8716_v32  ;;  %1323 = vmatpush1.msra.mxu1 %v8719_v33 }
 0x47e   : > { %1253 = vmatprep.subr.mxu0 %v8722_v34  ;;  %1324 = vmatprep.subr.mxu1 %v8725_v35 }
 0x47f   : > { %1254 = vmatpush1.msra.mxu0 %v8728_v36  ;;  %1325 = vmatpush1.msra.mxu1 %v8731_v37 }
 0x480   : > { %1255 = vmatprep.subr.mxu0 %v8734_v38  ;;  %1326 = vmatprep.subr.mxu1 %v8737_v39 }
 0x481   : > { %1256 = vmatpush1.msra.mxu0 %v8740_v40  ;;  %1327 = vmatpush1.msra.mxu1 %v8743_v41 }
 0x482   : > { %1257 = vmatprep.subr.mxu0 %v8746_v42  ;;  %1328 = vmatprep.subr.mxu1 %v8749_v44 }
 0x483   : > { %1258 = vmatpush1.msra.mxu0 %v8752_v46  ;;  %1329 = vmatpush1.msra.mxu1 %v8755_v47 }
 0x484   : > { %1259 = vmatprep.subr.mxu0 %v8758_v43  ;;  %1330 = vmatprep.subr.mxu1 %v8270_v48  ;;  %v8778_v48 = vld [vmem:[#allocation11 + $0x60] sm:$0xff] }
 0x485   : > { %1260 = vmatpush1.msra.mxu0 %v8762_v10  ;;  %1331 = vmatpush1.msra.mxu1 %v8276_v50  ;;  %12120 = vst [vmem:[#allocation25_spill] sm:$0xff] %v8778_v48  ;;  %v8782_v50 = vld [vmem:[#allocation11 + $0x48] sm:$0xff] }
 0x486   : > { %1261 = vmatprep.subr.mxu0 %v8766_v45  ;;  %1332 = vmatprep.subr.mxu1 %v8282_v52  ;;  %12121 = vst [vmem:[#allocation33_spill] sm:$0xff] %v8782_v50  ;;  %v8786_v52 = vld [vmem:[#allocation11 + $0x40] sm:$0xff] }
 0x487   : > { %1262 = vmatpush1.msra.mxu0 %v8770_v59  ;;  %1333 = vmatpush1.msra.mxu1 %v12097_v3  ;;  %12122 = vst [vmem:[#allocation26_spill] sm:$0xff] %v8786_v52  ;;  %v8790_v3 = vld [vmem:[#allocation11 + $0x28] sm:$0xff] }
 0x488   : > { %1263 = vmatprep.subr.mxu0 %v8774_v60  ;;  %1334 = vmatprep.subr.mxu1 %v12099_v6  ;;  %12123 = vst [vmem:[#allocation35_spill] sm:$0xff] %v8790_v3  ;;  %v8794_v6 = vld [vmem:[#allocation11 + $0x20] sm:$0xff] }
 0x489   : > { %1264 = vmatpush1.msra.mxu0 %v8778_v48  ;;  %1335 = vmatpush1.msra.mxu1 %v12101_v8  ;;  %12124 = vst [vmem:[#allocation27_spill] sm:$0xff] %v8794_v6  ;;  %v8805_v8 = vld [vmem:[#allocation11 + $0x1f8] sm:$0xff] }
 0x48a   : > { %1265 = vmatprep.subr.mxu0 %v8782_v50  ;;  %1336 = vmatprep.subr.mxu1 %v12103_v11  ;;  %12125 = vst [vmem:[#allocation36_spill] sm:$0xff] %v8805_v8  ;;  %v6669_v11 = vld [vmem:[%s8119_s15 + $0x80] sm:$0xff] }
 0x48b   : > { %1266 = vmatpush1.msra.mxu0 %v8786_v52  ;;  %1337 = vmatpush1.msra.mxu1 %v12105_v13 }
 0x48c   : > { %1267 = vmatprep.subr.mxu0 %v8790_v3  ;;  %1338 = vmatprep.subr.mxu1 %v12107_v15  ;;  %v6670_v15 = vld [vmem:[%s8119_s15 + $0x88] sm:$0xff] }
 0x48d   : > { %1268 = vmatpush1.msra.mxu0 %v8794_v6  ;;  %1339 = vmatpush1.msra.mxu1 %v12109_v17 }
 0x48e   : > { %1269 = vmatprep.subr.mxu0 %v12110_v18  ;;  %1340 = vmatprep.subr.mxu1 %v12111_v19 }
 0x48f   : > { %1270 = vmatpush1.msra.mxu0 %v12112_v20  ;;  %1303 = vmatprep.mubr.f32.mxu0 %v12113_v21 }
 0x490   : > { %1341 = vmatpush1.msra.mxu1 %v12114_v22  ;;  %1374 = vmatprep.mubr.f32.mxu1 %v12113_v21 }
 0x491   : > { %1416 = vmatprep.subr.mxu0 %v8628_v23  ;;  %1487 = vmatprep.subr.mxu1 %v8805_v8  ;;  %v6671_v23 = vld [vmem:[%s8119_s15 + $0x90] sm:$0xff] }
 0x530   : > { %v1128_v13 = vpop.f32.mrf.mxu0  ;;  %v1199_v55 = vpop.f32.mrf.mxu1 }
 0x531   : > { %v1204_v17 = vadd.f32 %v6669_v11, %v1128_v13  ;;  %v1206_v3 = vadd.f32 %v6671_v23, %v1199_v55  ;;  %v12130_v55 = vld [vmem:[#allocation33_spill] sm:$0xff] }
 0x532   : > { %v1130_v18 = vpop.f32.mrf.mxu0  ;;  %v1201_v0 = vpop.f32.mrf.mxu1 }
 0x533   : > { %v6673_v19 = vmul.f32 -1.442695, %v1204_v17  ;;  %v1205_v20 = vadd.f32 %v6670_v15, %v1130_v18  ;;  %v1207_v49 = vadd.f32 %v6672_v57, %v1201_v0  ;;  %v12132_v57 = vld [vmem:[#allocation26_spill] sm:$0xff] }
 0x535   : > { %6953 = vpow2.f32 %v6673_v19  ;;  %v6674_v22 = vmul.f32 -1.442695, %v1205_v20  ;;  %v6675_v21 = vmul.f32 -1.442695, %v1207_v49 }
 0x537   : > { %6955 = vpow2.f32 %v6674_v22  ;;  %v8883_v22 = vld [vmem:[#allocation11 + $0x58] sm:$0xff] }
 0x538   : > { %6957 = vpow2.f32 %v6675_v21  ;;  %12131 = vst [vmem:[#allocation32_spill] sm:$0xff] %v8883_v22 }
 0x542   : > { %v6954_v6 = vpop.eup %6953 }
 0x543   : > { %v1211_v52 = vadd.f32 1.0, %v6954_v6  ;;  %v8875_v6 = vld [vmem:[#allocation11 + $0x78] sm:$0xff] }
 0x544   : > { %v6956_v8 = vpop.eup %6955  ;;  %12128 = vst [vmem:[#allocation30_spill] sm:$0xff] %v8875_v6 }
 0x545   : > { %6959 = vrcp.f32 %v1211_v52  ;;  %v1217_v50 = vadd.f32 1.0, %v6956_v8  ;;  %v6958_v11 = vpop.eup %6957  ;;  %v8867_v52 = vld [vmem:[#allocation11 + $0x98] sm:$0xff]  ;;  %v8879_v8 = vld [vmem:[#allocation11 + $0x70] sm:$0xff] }
 0x546   : > { %6961 = vtanh.f32 %v1206_v3  ;;  %v1224_v18 = vadd.f32 1.0, %v6958_v11  ;;  %v8871_v3 = vld [vmem:[#allocation11 + $0x90] sm:$0xff]  ;;  %12129 = vst [vmem:[#allocation38_spill] sm:$0xff] %v8879_v8 }
 0x547   : > { %6963 = vrcp.f32 %v1217_v50  ;;  %v8863_v50 = vld [vmem:[#allocation11 + $0xb0] sm:$0xff]  ;;  %12127 = vst [vmem:[#allocation37_spill] sm:$0xff] %v8871_v3 }
 0x548   : > { %6965 = vrcp.f32 %v1224_v18  ;;  %v8887_v11 = vld [vmem:[#allocation11 + $0x50] sm:$0xff] }
 0x549   : > { %12133 = vst [vmem:[#allocation39_spill] sm:$0xff] %v8887_v11  ;;  %v8895_v18 = vld [vmem:[#allocation11 + $0x30] sm:$0xff] }
 0x54a   : > { %12137 = vst [vmem:[#allocation40_spill] sm:$0xff] %v8895_v18 }
 0x552   : > { %v6960_v13 = vpop.eup %6959 }
 0x553   : > { %v6962_v15 = vpop.eup %6961 }
 0x554   : > { %v6964_v17 = vpop.eup %6963  ;;  %v1228_v19 = vmul.f32 %v6962_v15, %v6960_v13  ;;  %v12134_v13 = vld [vmem:[#allocation35_spill] sm:$0xff] }
 0x555   : > { %v1227_v20 = vmul.f32 %v6964_v17, %v8637_v54  ;;  %v6966_v49 = vpop.eup %6965  ;;  %v8859_v54 = vld [vmem:[#allocation11 + $0xb8] sm:$0xff] }
 0x556   : > { %v8891_v15 = vld [vmem:[#allocation11 + $0x38] sm:$0xff] }
 0x557   : > { %v8813_v0 = vadd.f32 %v1228_v19, %v1227_v20  ;;  %12135 = vst [vmem:[#allocation34_spill] sm:$0xff] %v8891_v15  ;;  %v12136_v17 = vld [vmem:[#allocation27_spill] sm:$0xff]  ;;  %v8898_v19 = vld [vmem:[#allocation11 + $0x8] sm:$0xff] }
 0x558   : > { %12138 = vst [vmem:[#allocation22_spill] sm:$0xff] %v8898_v19  ;;  %v8901_v20 = vld [vmem:[#allocation11 + $0x18] sm:$0xff] }
 0x559   : > { %6967 = vtanh.f32 %v8813_v0  ;;  %12139 = vst [vmem:[#allocation43_spill] sm:$0xff] %v8901_v20 }
 0x566   : > { %v6968_v23 = vpop.eup %6967 }
 0x567   : > { %v8816_v21 = vmul.f32 %v6968_v23, %v6966_v49  ;;  %v8904_v49 = vld [vmem:[#allocation11] sm:$0xff]  ;;  %v12141_v23 = vmov 0.0  }
 0x568   : > { %12140 = vst [vmem:[#allocation44_spill] sm:$0xff] %v8904_v49 }
 0x569   : > { %12126 = vst [vmem:[#allocation28_spill] sm:$0xff] %v8816_v21  ;;  %1304 = vmatmul.mubr.f32.vlgmr.msra.gmra.mxu0 %v8816_v21  ;;  %1375 = vmatmul.mubr.f32.vlgmr.msra.gmra.mxu1 %v8816_v21  ;;  %v8908_v21 = vld [vmem:[#allocation11 + $0x10] sm:$0xff] }
 0x56a   : > { %1417 = vmatpush1.msra.mxu0 %v8644_v5  ;;  %1488 = vmatpush1.msra.mxu1 %v8647_v62  ;;  %12142 = vst [vmem:[#allocation45_spill] sm:$0xff] %v8908_v21 }
 0x56b   : > { %1418 = vmatprep.subr.mxu0 %v8650_v58  ;;  %1489 = vmatprep.subr.mxu1 %v8653_v1 }
 0x56c   : > { %1419 = vmatpush1.msra.mxu0 %v8656_v61  ;;  %1490 = vmatpush1.msra.mxu1 %v8659_v56 }
 0x56d   : > { %1420 = vmatprep.subr.mxu0 %v8662_v51  ;;  %1491 = vmatprep.subr.mxu1 %v8665_v53 }
 0x56e   : > { %1421 = vmatpush1.msra.mxu0 %v8668_v63  ;;  %1492 = vmatpush1.msra.mxu1 %v8671_v2 }
 0x56f   : > { %1422 = vmatprep.subr.mxu0 %v8674_v4  ;;  %1493 = vmatprep.subr.mxu1 %v8677_v7 }
 0x570   : > { %1423 = vmatpush1.msra.mxu0 %v8680_v9  ;;  %1494 = vmatpush1.msra.mxu1 %v8683_v12 }
 0x571   : > { %1424 = vmatprep.subr.mxu0 %v8686_v14  ;;  %1495 = vmatprep.subr.mxu1 %v8689_v16 }
 0x572   : > { %1425 = vmatpush1.msra.mxu0 %v8692_v24  ;;  %1496 = vmatpush1.msra.mxu1 %v8695_v25 }
 0x573   : > { %1426 = vmatprep.subr.mxu0 %v8698_v26  ;;  %1497 = vmatprep.subr.mxu1 %v8701_v27 }
 0x574   : > { %1427 = vmatpush1.msra.mxu0 %v8704_v28  ;;  %1498 = vmatpush1.msra.mxu1 %v8707_v29 }
 0x575   : > { %1428 = vmatprep.subr.mxu0 %v8710_v30  ;;  %1499 = vmatprep.subr.mxu1 %v8713_v31 }
 0x576   : > { %1429 = vmatpush1.msra.mxu0 %v8716_v32  ;;  %1500 = vmatpush1.msra.mxu1 %v8719_v33 }
 0x577   : > { %1430 = vmatprep.subr.mxu0 %v8722_v34  ;;  %1501 = vmatprep.subr.mxu1 %v8725_v35 }
 0x578   : > { %1431 = vmatpush1.msra.mxu0 %v8728_v36  ;;  %1502 = vmatpush1.msra.mxu1 %v8731_v37 }
 0x579   : > { %1432 = vmatprep.subr.mxu0 %v8734_v38  ;;  %1503 = vmatprep.subr.mxu1 %v8737_v39 }
 0x57a   : > { %1433 = vmatpush1.msra.mxu0 %v8740_v40  ;;  %1504 = vmatpush1.msra.mxu1 %v8743_v41 }
 0x57b   : > { %1434 = vmatprep.subr.mxu0 %v8746_v42  ;;  %1505 = vmatprep.subr.mxu1 %v8749_v44 }
 0x57c   : > { %1435 = vmatpush1.msra.mxu0 %v8752_v46  ;;  %1506 = vmatpush1.msra.mxu1 %v8755_v47 }
 0x57d   : > { %1436 = vmatprep.subr.mxu0 %v8758_v43  ;;  %1507 = vmatprep.subr.mxu1 %v8859_v54 }
 0x57e   : > { %1437 = vmatpush1.msra.mxu0 %v8762_v10  ;;  %1508 = vmatpush1.msra.mxu1 %v8863_v50 }
 0x57f   : > { %1438 = vmatprep.subr.mxu0 %v8766_v45  ;;  %1509 = vmatprep.subr.mxu1 %v8867_v52 }
 0x580   : > { %1439 = vmatpush1.msra.mxu0 %v8770_v59  ;;  %1510 = vmatpush1.msra.mxu1 %v8871_v3 }
 0x581   : > { %1440 = vmatprep.subr.mxu0 %v8774_v60  ;;  %1511 = vmatprep.subr.mxu1 %v8875_v6 }
 0x582   : > { %1441 = vmatpush1.msra.mxu0 %v8778_v48  ;;  %1512 = vmatpush1.msra.mxu1 %v8879_v8  ;;  %v6679_v8 = vld [vmem:[%s8119_s15 + $0xb8] sm:$0xff] }
 0x583   : > { %1442 = vmatprep.subr.mxu0 %v12130_v55  ;;  %1513 = vmatprep.subr.mxu1 %v8883_v22 }
 0x584   : > { %1443 = vmatpush1.msra.mxu0 %v12132_v57  ;;  %1514 = vmatpush1.msra.mxu1 %v8887_v11 }
 0x585   : > { %1444 = vmatprep.subr.mxu0 %v12134_v13  ;;  %1515 = vmatprep.subr.mxu1 %v8891_v15  ;;  %v6677_v15 = vld [vmem:[%s8119_s15 + $0xa8] sm:$0xff] }
 0x586   : > { %1445 = vmatpush1.msra.mxu0 %v12136_v17  ;;  %1516 = vmatpush1.msra.mxu1 %v8895_v18  ;;  %v12143_v18 = vld [vmem:[#allocation23_spill] sm:$0xff]  ;;  %v6676_v17 = vld [vmem:[%s8119_s15 + $0xa0] sm:$0xff] }
 0x587   : > { %1446 = vmatprep.subr.mxu0 %v8898_v19  ;;  %1517 = vmatprep.subr.mxu1 %v8901_v20  ;;  %v12144_v19 = vld [vmem:[#allocation36_spill] sm:$0xff] }
 0x588   : > { %1447 = vmatpush1.msra.mxu0 %v8904_v49  ;;  %1480 = vmatprep.mubr.f32.mxu0 %v12141_v23 }
 0x589   : > { %1518 = vmatpush1.msra.mxu1 %v8908_v21  ;;  %1551 = vmatprep.mubr.f32.mxu1 %v12141_v23  ;;  %v6678_v23 = vld [vmem:[%s8119_s15 + $0xb0] sm:$0xff] }
 0x58a   : > { %1593 = vmatprep.subr.mxu0 %v12143_v18  ;;  %1664 = vmatprep.subr.mxu1 %v12144_v19 }
 0x629   : > { %v1305_v20 = vpop.f32.mrf.mxu0  ;;  %v1376_v22 = vpop.f32.mrf.mxu1 }
 0x62a   : > { %v1381_v13 = vadd.f32 %v6676_v17, %v1305_v20  ;;  %v1383_v60 = vadd.f32 %v6678_v23, %v1376_v22  ;;  %v12150_v22 = vld [vmem:[#allocation25_spill] sm:$0xff]  ;;  %v12154_v23 = vld [vmem:[#allocation26_spill] sm:$0xff] }
 0x62b   : > { %v1307_v11 = vpop.f32.mrf.mxu0  ;;  %v1378_v21 = vpop.f32.mrf.mxu1 }
 0x62c   : > { %v6680_v49 = vmul.f32 -1.442695, %v1381_v13  ;;  %v1382_v57 = vadd.f32 %v6677_v15, %v1307_v11  ;;  %v1384_v48 = vadd.f32 %v6679_v8, %v1378_v21 }
 0x62e   : > { %6969 = vpow2.f32 %v6680_v49  ;;  %v6681_v55 = vmul.f32 -1.442695, %v1382_v57  ;;  %v6682_v6 = vmul.f32 -1.442695, %v1384_v48  ;;  %v12153_v49 = vld [vmem:[#allocation32_spill] sm:$0xff] }
 0x630   : > { %6971 = vpow2.f32 %v6681_v55 }
 0x631   : > { %6973 = vpow2.f32 %v6682_v6 }
 0x63b   : > { %v6970_v18 = vpop.eup %6969 }
 0x63c   : > { %v1388_v3 = vadd.f32 1.0, %v6970_v18  ;;  %v12151_v18 = vld [vmem:[#allocation38_spill] sm:$0xff] }
 0x63d   : > { %v6972_v19 = vpop.eup %6971 }
 0x63e   : > { %6975 = vrcp.f32 %v1388_v3  ;;  %v1394_v59 = vadd.f32 1.0, %v6972_v19  ;;  %v6974_v13 = vpop.eup %6973  ;;  %v12149_v3 = vld [vmem:[#allocation30_spill] sm:$0xff]  ;;  %v12152_v19 = vld [vmem:[#allocation33_spill] sm:$0xff] }
 0x63f   : > { %6977 = vtanh.f32 %v1383_v60  ;;  %v1401_v57 = vadd.f32 1.0, %v6974_v13  ;;  %v12147_v60 = vld [vmem:[#allocation37_spill] sm:$0xff]  ;;  %v12155_v13 = vld [vmem:[#allocation39_spill] sm:$0xff] }
 0x640   : > { %6979 = vrcp.f32 %v1394_v59  ;;  %v12146_v59 = vld [vmem:[#allocation24_spill] sm:$0xff] }
 0x641   : > { %6981 = vrcp.f32 %v1401_v57  ;;  %v12159_v57 = vld [vmem:[#allocation40_spill] sm:$0xff] }
 0x64b   : > { %v6976_v11 = vpop.eup %6975 }
 0x64c   : > { %v6978_v15 = vpop.eup %6977 }
 0x64d   : > { %v6980_v17 = vpop.eup %6979  ;;  %v1405_v55 = vmul.f32 %v6978_v15, %v6976_v11  ;;  %v12156_v11 = vld [vmem:[#allocation35_spill] sm:$0xff]  ;;  %v12157_v15 = vld [vmem:[#allocation34_spill] sm:$0xff] }
 0x64e   : > { %v1404_v20 = vmul.f32 %v6980_v17, %v8813_v0  ;;  %v6982_v48 = vpop.eup %6981  ;;  %v12148_v0 = vld [vmem:[#allocation31_spill] sm:$0xff] }
 0x64f   : > { %v12158_v17 = vld [vmem:[#allocation27_spill] sm:$0xff] }
 0x650   : > { %v8919_v21 = vadd.f32 %v1405_v55, %v1404_v20  ;;  %v12160_v55 = vld [vmem:[#allocation22_spill] sm:$0xff]  ;;  %v12161_v20 = vld [vmem:[#allocation43_spill] sm:$0xff] }
 0x652   : > { %6983 = vtanh.f32 %v8919_v21 }
 0x65f   : > { %v6984_v8 = vpop.eup %6983 }
 0x660   : > { %v8922_v6 = vmul.f32 %v6984_v8, %v6982_v48  ;;  %v12162_v48 = vld [vmem:[#allocation44_spill] sm:$0xff]  ;;  %v12163_v8 = vmov 0.0  }
 0x662   : > { %12145 = vst [vmem:[#allocation46_spill] sm:$0xff] %v8922_v6  ;;  %1481 = vmatmul.mubr.f32.vlgmr.msra.gmra.mxu0 %v8922_v6  ;;  %1552 = vmatmul.mubr.f32.vlgmr.msra.gmra.mxu1 %v8922_v6  ;;  %v12164_v6 = vld [vmem:[#allocation45_spill] sm:$0xff] }
 0x663   : > { %1594 = vmatpush1.msra.mxu0 %v8644_v5  ;;  %1665 = vmatpush1.msra.mxu1 %v8647_v62 }
 0x664   : > { %1595 = vmatprep.subr.mxu0 %v8650_v58  ;;  %1666 = vmatprep.subr.mxu1 %v8653_v1 }
 0x665   : > { %1596 = vmatpush1.msra.mxu0 %v8656_v61  ;;  %1667 = vmatpush1.msra.mxu1 %v8659_v56 }
 0x666   : > { %1597 = vmatprep.subr.mxu0 %v8662_v51  ;;  %1668 = vmatprep.subr.mxu1 %v8665_v53 }
 0x667   : > { %1598 = vmatpush1.msra.mxu0 %v8668_v63  ;;  %1669 = vmatpush1.msra.mxu1 %v8671_v2 }
 0x668   : > { %1599 = vmatprep.subr.mxu0 %v8674_v4  ;;  %1670 = vmatprep.subr.mxu1 %v8677_v7 }
 0x669   : > { %1600 = vmatpush1.msra.mxu0 %v8680_v9  ;;  %1671 = vmatpush1.msra.mxu1 %v8683_v12 }
 0x66a   : > { %1601 = vmatprep.subr.mxu0 %v8686_v14  ;;  %1672 = vmatprep.subr.mxu1 %v8689_v16 }
 0x66b   : > { %1602 = vmatpush1.msra.mxu0 %v8692_v24  ;;  %1673 = vmatpush1.msra.mxu1 %v8695_v25 }
 0x66c   : > { %1603 = vmatprep.subr.mxu0 %v8698_v26  ;;  %1674 = vmatprep.subr.mxu1 %v8701_v27 }
 0x66d   : > { %1604 = vmatpush1.msra.mxu0 %v8704_v28  ;;  %1675 = vmatpush1.msra.mxu1 %v8707_v29 }
 0x66e   : > { %1605 = vmatprep.subr.mxu0 %v8710_v30  ;;  %1676 = vmatprep.subr.mxu1 %v8713_v31 }
 0x66f   : > { %1606 = vmatpush1.msra.mxu0 %v8716_v32  ;;  %1677 = vmatpush1.msra.mxu1 %v8719_v33 }
 0x670   : > { %1607 = vmatprep.subr.mxu0 %v8722_v34  ;;  %1678 = vmatprep.subr.mxu1 %v8725_v35 }
 0x671   : > { %1608 = vmatpush1.msra.mxu0 %v8728_v36  ;;  %1679 = vmatpush1.msra.mxu1 %v8731_v37 }
 0x672   : > { %1609 = vmatprep.subr.mxu0 %v8734_v38  ;;  %1680 = vmatprep.subr.mxu1 %v8737_v39 }
 0x673   : > { %1610 = vmatpush1.msra.mxu0 %v8740_v40  ;;  %1681 = vmatpush1.msra.mxu1 %v8743_v41 }
 0x674   : > { %1611 = vmatprep.subr.mxu0 %v8746_v42  ;;  %1682 = vmatprep.subr.mxu1 %v8749_v44 }
 0x675   : > { %1612 = vmatpush1.msra.mxu0 %v8752_v46  ;;  %1683 = vmatpush1.msra.mxu1 %v8755_v47 }
 0x676   : > { %1613 = vmatprep.subr.mxu0 %v8758_v43  ;;  %1684 = vmatprep.subr.mxu1 %v8859_v54 }
 0x677   : > { %1614 = vmatpush1.msra.mxu0 %v8762_v10  ;;  %1685 = vmatpush1.msra.mxu1 %v8863_v50 }
 0x678   : > { %1615 = vmatprep.subr.mxu0 %v8766_v45  ;;  %1686 = vmatprep.subr.mxu1 %v8867_v52 }
 0x679   : > { %1616 = vmatpush1.msra.mxu0 %v12146_v59  ;;  %1687 = vmatpush1.msra.mxu1 %v12147_v60 }
 0x67a   : > { %1617 = vmatprep.subr.mxu0 %v12148_v0  ;;  %1688 = vmatprep.subr.mxu1 %v12149_v3 }
 0x67b   : > { %1618 = vmatpush1.msra.mxu0 %v12150_v22  ;;  %1689 = vmatpush1.msra.mxu1 %v12151_v18  ;;  %v6686_v18 = vld [vmem:[%s8119_s15 + $0xd8] sm:$0xff] }
 0x67c   : > { %1619 = vmatprep.subr.mxu0 %v12152_v19  ;;  %1690 = vmatprep.subr.mxu1 %v12153_v49 }
 0x67d   : > { %1620 = vmatpush1.msra.mxu0 %v12154_v23  ;;  %1691 = vmatpush1.msra.mxu1 %v12155_v13  ;;  %v6684_v13 = vld [vmem:[%s8119_s15 + $0xc8] sm:$0xff] }
 0x67e   : > { %1621 = vmatprep.subr.mxu0 %v12156_v11  ;;  %1692 = vmatprep.subr.mxu1 %v12157_v15  ;;  %v12165_v11 = vld [vmem:[#allocation23_spill] sm:$0xff]  ;;  %v12166_v15 = vld [vmem:[#allocation36_spill] sm:$0xff] }
 0x67f   : > { %1622 = vmatpush1.msra.mxu0 %v12158_v17  ;;  %1693 = vmatpush1.msra.mxu1 %v12159_v57  ;;  %v6683_v17 = vld [vmem:[%s8119_s15 + $0xc0] sm:$0xff] }
 0x680   : > { %1623 = vmatprep.subr.mxu0 %v12160_v55  ;;  %1694 = vmatprep.subr.mxu1 %v12161_v20 }
 0x681   : > { %1624 = vmatpush1.msra.mxu0 %v12162_v48  ;;  %1657 = vmatprep.mubr.f32.mxu0 %v12163_v8 }
 0x682   : > { %1695 = vmatpush1.msra.mxu1 %v12164_v6  ;;  %1728 = vmatprep.mubr.f32.mxu1 %v12163_v8  ;;  %v6685_v8 = vld [vmem:[%s8119_s15 + $0xd0] sm:$0xff] }
 0x683   : > { %1770 = vmatprep.subr.mxu0 %v12165_v11  ;;  %1841 = vmatprep.subr.mxu1 %v12166_v15 }
 0x722   : > { %v1482_v57 = vpop.f32.mrf.mxu0  ;;  %v1553_v48 = vpop.f32.mrf.mxu1 }
 0x723   : > { %v1558_v55 = vadd.f32 %v6683_v17, %v1482_v57  ;;  %v1560_v0 = vadd.f32 %v6685_v8, %v1553_v48  ;;  %v12175_v48 = vld [vmem:[#allocation32_spill] sm:$0xff]  ;;  %v12176_v8 = vld [vmem:[#allocation26_spill] sm:$0xff] }
 0x724   : > { %v1484_v23 = vpop.f32.mrf.mxu0  ;;  %v1555_v6 = vpop.f32.mrf.mxu1 }
 0x725   : > { %v6687_v20 = vmul.f32 -1.442695, %v1558_v55  ;;  %v1559_v49 = vadd.f32 %v6684_v13, %v1484_v23  ;;  %v1561_v22 = vadd.f32 %v6686_v18, %v1555_v6 }
 0x727   : > { %6985 = vpow2.f32 %v6687_v20  ;;  %v6688_v19 = vmul.f32 -1.442695, %v1559_v49  ;;  %v6689_v3 = vmul.f32 -1.442695, %v1561_v22  ;;  %v12174_v20 = vld [vmem:[#allocation33_spill] sm:$0xff] }
 0x729   : > { %6987 = vpow2.f32 %v6688_v19 }
 0x72a   : > { %6989 = vpow2.f32 %v6689_v3 }
 0x734   : > { %v6986_v11 = vpop.eup %6985 }
 0x735   : > { %v1565_v60 = vadd.f32 1.0, %v6986_v11  ;;  %v12172_v11 = vld [vmem:[#allocation25_spill] sm:$0xff] }
 0x736   : > { %v6988_v15 = vpop.eup %6987 }
 0x737   : > { %6991 = vrcp.f32 %v1565_v60  ;;  %v1571_v59 = vadd.f32 1.0, %v6988_v15  ;;  %v6990_v17 = vpop.eup %6989  ;;  %v12170_v60 = vld [vmem:[#allocation31_spill] sm:$0xff]  ;;  %v12173_v15 = vld [vmem:[#allocation38_spill] sm:$0xff] }
 0x738   : > { %6993 = vtanh.f32 %v1560_v0  ;;  %v1578_v49 = vadd.f32 1.0, %v6990_v17  ;;  %v12171_v0 = vld [vmem:[#allocation30_spill] sm:$0xff]  ;;  %v12177_v17 = vld [vmem:[#allocation39_spill] sm:$0xff] }
 0x739   : > { %6995 = vrcp.f32 %v1571_v59  ;;  %v12169_v59 = vld [vmem:[#allocation37_spill] sm:$0xff] }
 0x73a   : > { %6997 = vrcp.f32 %v1578_v49  ;;  %v12181_v49 = vld [vmem:[#allocation40_spill] sm:$0xff] }
 0x744   : > { %v6992_v23 = vpop.eup %6991 }
 0x745   : > { %v6994_v13 = vpop.eup %6993 }
 0x746   : > { %v6996_v57 = vpop.eup %6995  ;;  %v1582_v19 = vmul.f32 %v6994_v13, %v6992_v23  ;;  %v12178_v23 = vld [vmem:[#allocation35_spill] sm:$0xff]  ;;  %v12179_v13 = vld [vmem:[#allocation34_spill] sm:$0xff] }
 0x747   : > { %v1581_v55 = vmul.f32 %v6996_v57, %v8919_v21  ;;  %v6998_v22 = vpop.eup %6997  ;;  %v12168_v21 = vld [vmem:[#allocation24_spill] sm:$0xff]  ;;  %v12180_v57 = vld [vmem:[#allocation27_spill] sm:$0xff] }
 0x749   : > { %v8997_v6 = vadd.f32 %v1582_v19, %v1581_v55  ;;  %v12182_v19 = vld [vmem:[#allocation22_spill] sm:$0xff]  ;;  %v12183_v55 = vld [vmem:[#allocation43_spill] sm:$0xff] }
 0x74b   : > { %6999 = vtanh.f32 %v8997_v6 }
 0x758   : > { %v7000_v18 = vpop.eup %6999 }
 0x759   : > { %v9000_v3 = vmul.f32 %v7000_v18, %v6998_v22  ;;  %v12184_v22 = vld [vmem:[#allocation44_spill] sm:$0xff]  ;;  %v12185_v18 = vmov 0.0  }
 0x75b   : > { %12167 = vst [vmem:[#allocation47_spill] sm:$0xff] %v9000_v3  ;;  %1658 = vmatmul.mubr.f32.vlgmr.msra.gmra.mxu0 %v9000_v3  ;;  %1729 = vmatmul.mubr.f32.vlgmr.msra.gmra.mxu1 %v9000_v3  ;;  %v12186_v3 = vld [vmem:[#allocation45_spill] sm:$0xff] }
 0x75c   : > { %1771 = vmatpush1.msra.mxu0 %v8644_v5  ;;  %1842 = vmatpush1.msra.mxu1 %v8647_v62 }
 0x75d   : > { %1772 = vmatprep.subr.mxu0 %v8650_v58  ;;  %1843 = vmatprep.subr.mxu1 %v8653_v1 }
 0x75e   : > { %1773 = vmatpush1.msra.mxu0 %v8656_v61  ;;  %1844 = vmatpush1.msra.mxu1 %v8659_v56 }
 0x75f   : > { %1774 = vmatprep.subr.mxu0 %v8662_v51  ;;  %1845 = vmatprep.subr.mxu1 %v8665_v53 }
 0x760   : > { %1775 = vmatpush1.msra.mxu0 %v8668_v63  ;;  %1846 = vmatpush1.msra.mxu1 %v8671_v2 }
 0x761   : > { %1776 = vmatprep.subr.mxu0 %v8674_v4  ;;  %1847 = vmatprep.subr.mxu1 %v8677_v7 }
 0x762   : > { %1777 = vmatpush1.msra.mxu0 %v8680_v9  ;;  %1848 = vmatpush1.msra.mxu1 %v8683_v12 }
 0x763   : > { %1778 = vmatprep.subr.mxu0 %v8686_v14  ;;  %1849 = vmatprep.subr.mxu1 %v8689_v16 }
 0x764   : > { %1779 = vmatpush1.msra.mxu0 %v8692_v24  ;;  %1850 = vmatpush1.msra.mxu1 %v8695_v25 }
 0x765   : > { %1780 = vmatprep.subr.mxu0 %v8698_v26  ;;  %1851 = vmatprep.subr.mxu1 %v8701_v27 }
 0x766   : > { %1781 = vmatpush1.msra.mxu0 %v8704_v28  ;;  %1852 = vmatpush1.msra.mxu1 %v8707_v29 }
 0x767   : > { %1782 = vmatprep.subr.mxu0 %v8710_v30  ;;  %1853 = vmatprep.subr.mxu1 %v8713_v31 }
 0x768   : > { %1783 = vmatpush1.msra.mxu0 %v8716_v32  ;;  %1854 = vmatpush1.msra.mxu1 %v8719_v33 }
 0x769   : > { %1784 = vmatprep.subr.mxu0 %v8722_v34  ;;  %1855 = vmatprep.subr.mxu1 %v8725_v35 }
 0x76a   : > { %1785 = vmatpush1.msra.mxu0 %v8728_v36  ;;  %1856 = vmatpush1.msra.mxu1 %v8731_v37 }
 0x76b   : > { %1786 = vmatprep.subr.mxu0 %v8734_v38  ;;  %1857 = vmatprep.subr.mxu1 %v8737_v39 }
 0x76c   : > { %1787 = vmatpush1.msra.mxu0 %v8740_v40  ;;  %1858 = vmatpush1.msra.mxu1 %v8743_v41 }
 0x76d   : > { %1788 = vmatprep.subr.mxu0 %v8746_v42  ;;  %1859 = vmatprep.subr.mxu1 %v8749_v44 }
 0x76e   : > { %1789 = vmatpush1.msra.mxu0 %v8752_v46  ;;  %1860 = vmatpush1.msra.mxu1 %v8755_v47 }
 0x76f   : > { %1790 = vmatprep.subr.mxu0 %v8758_v43  ;;  %1861 = vmatprep.subr.mxu1 %v8859_v54 }
 0x770   : > { %1791 = vmatpush1.msra.mxu0 %v8762_v10  ;;  %1862 = vmatpush1.msra.mxu1 %v8863_v50 }
 0x771   : > { %1792 = vmatprep.subr.mxu0 %v8766_v45  ;;  %1863 = vmatprep.subr.mxu1 %v8867_v52 }
 0x772   : > { %1793 = vmatpush1.msra.mxu0 %v12168_v21  ;;  %1864 = vmatpush1.msra.mxu1 %v12169_v59 }
 0x773   : > { %1794 = vmatprep.subr.mxu0 %v12170_v60  ;;  %1865 = vmatprep.subr.mxu1 %v12171_v0 }
 0x774   : > { %1795 = vmatpush1.msra.mxu0 %v12172_v11  ;;  %1866 = vmatpush1.msra.mxu1 %v12173_v15  ;;  %v6693_v15 = vld [vmem:[%s8119_s15 + $0xf8] sm:$0xff] }
 0x775   : > { %1796 = vmatprep.subr.mxu0 %v12174_v20  ;;  %1867 = vmatprep.subr.mxu1 %v12175_v48 }
 0x776   : > { %1797 = vmatpush1.msra.mxu0 %v12176_v8  ;;  %1868 = vmatpush1.msra.mxu1 %v12177_v17  ;;  %v6691_v17 = vld [vmem:[%s8119_s15 + $0xe8] sm:$0xff] }
 0x777   : > { %1798 = vmatprep.subr.mxu0 %v12178_v23  ;;  %1869 = vmatprep.subr.mxu1 %v12179_v13  ;;  %v12187_v23 = vld [vmem:[#allocation23_spill] sm:$0xff]  ;;  %v12188_v13 = vld [vmem:[#allocation36_spill] sm:$0xff] }
 0x778   : > { %1799 = vmatpush1.msra.mxu0 %v12180_v57  ;;  %1870 = vmatpush1.msra.mxu1 %v12181_v49  ;;  %v6690_v57 = vld [vmem:[%s8119_s15 + $0xe0] sm:$0xff] }
 0x779   : > { %1800 = vmatprep.subr.mxu0 %v12182_v19  ;;  %1871 = vmatprep.subr.mxu1 %v12183_v55 }
 0x77a   : > { %1801 = vmatpush1.msra.mxu0 %v12184_v22  ;;  %1834 = vmatprep.mubr.f32.mxu0 %v12185_v18 }
 0x77b   : > { %1872 = vmatpush1.msra.mxu1 %v12186_v3  ;;  %1905 = vmatprep.mubr.f32.mxu1 %v12185_v18  ;;  %v6692_v18 = vld [vmem:[%s8119_s15 + $0xf0] sm:$0xff] }
 0x77c   : > { %1947 = vmatprep.subr.mxu0 %v12187_v23  ;;  %2018 = vmatprep.subr.mxu1 %v12188_v13 }
 0x81b   : > { %v1659_v49 = vpop.f32.mrf.mxu0  ;;  %v1730_v22 = vpop.f32.mrf.mxu1 }
 0x81c   : > { %v1735_v19 = vadd.f32 %v6690_v57, %v1659_v49  ;;  %v1737_v60 = vadd.f32 %v6692_v18, %v1730_v22 }
 0x81d   : > { %v1661_v8 = vpop.f32.mrf.mxu0  ;;  %v1732_v3 = vpop.f32.mrf.mxu1 }
 0x81e   : > { %v6694_v55 = vmul.f32 -1.442695, %v1735_v19  ;;  %v1736_v48 = vadd.f32 %v6691_v17, %v1661_v8  ;;  %v1738_v11 = vadd.f32 %v6693_v15, %v1732_v3 }
 0x820   : > { %7001 = vpow2.f32 %v6694_v55  ;;  %v6695_v20 = vmul.f32 -1.442695, %v1736_v48  ;;  %v6696_v0 = vmul.f32 -1.442695, %v1738_v11 }
 0x822   : > { %7003 = vpow2.f32 %v6695_v20 }
 0x823   : > { %7005 = vpow2.f32 %v6696_v0 }
 0x82d   : > { %v7002_v23 = vpop.eup %7001 }
 0x82e   : > { %v1742_v59 = vadd.f32 1.0, %v7002_v23 }
 0x82f   : > { %v7004_v13 = vpop.eup %7003 }
 0x830   : > { %7007 = vrcp.f32 %v1742_v59  ;;  %v1748_v21 = vadd.f32 1.0, %v7004_v13  ;;  %v7006_v57 = vpop.eup %7005 }
 0x831   : > { %7009 = vtanh.f32 %v1737_v60  ;;  %v1755_v48 = vadd.f32 1.0, %v7006_v57 }
 0x832   : > { %7011 = vrcp.f32 %v1748_v21 }
 0x833   : > { %7013 = vrcp.f32 %v1755_v48  ;;  %v9171_v48 = vld [vmem:[#allocation11 + $0x1d8] sm:$0xff] }
 0x83d   : > { %v7008_v8 = vpop.eup %7007 }
 0x83e   : > { %v7010_v17 = vpop.eup %7009 }
 0x83f   : > { %v7012_v49 = vpop.eup %7011  ;;  %v1759_v20 = vmul.f32 %v7010_v17, %v7008_v8  ;;  %v9162_v8 = vld [vmem:[#allocation11 + $0x1e0] sm:$0xff]  ;;  %v9165_v17 = vld [vmem:[#allocation11 + $0x1f0] sm:$0xff] }
 0x840   : > { %v1758_v19 = vmul.f32 %v7012_v49, %v8997_v6  ;;  %v7014_v11 = vpop.eup %7013  ;;  %v9168_v49 = vld [vmem:[#allocation11 + $0x1c8] sm:$0xff] }
 0x842   : > { %v9075_v3 = vadd.f32 %v1759_v20, %v1758_v19  ;;  %v9174_v20 = vld [vmem:[#allocation11 + $0x1c0] sm:$0xff]  ;;  %v9177_v19 = vld [vmem:[#allocation11 + $0x1d0] sm:$0xff] }
 0x844   : > { %7015 = vtanh.f32 %v9075_v3 }
 0x851   : > { %v7016_v15 = vpop.eup %7015 }
 0x852   : > { %v9078_v0 = vmul.f32 %v7016_v15, %v7014_v11  ;;  %v9183_v11 = vld [vmem:[#allocation11 + $0x1b8] sm:$0xff]  ;;  %v9186_v15 = vld [vmem:[#allocation11 + $0x1a0] sm:$0xff] }
 0x854   : > { %12189 = vst [vmem:[#allocation23_spill] sm:$0xff] %v9078_v0  ;;  %1835 = vmatmul.mubr.f32.vlgmr.msra.gmra.mxu0 %v9078_v0  ;;  %1906 = vmatmul.mubr.f32.vlgmr.msra.gmra.mxu1 %v9078_v0 }
 0x855   : > { %1948 = vmatpush1.msra.mxu0 %v8644_v5  ;;  %2019 = vmatpush1.msra.mxu1 %v8647_v62  ;;  %v12190_v5 = vld [vmem:[#allocation24_spill] sm:$0xff]  ;;  %v12191_v62 = vld [vmem:[#allocation37_spill] sm:$0xff] }
 0x856   : > { %1949 = vmatprep.subr.mxu0 %v8650_v58  ;;  %2020 = vmatprep.subr.mxu1 %v8653_v1  ;;  %v12192_v58 = vld [vmem:[#allocation31_spill] sm:$0xff]  ;;  %v12193_v1 = vld [vmem:[#allocation30_spill] sm:$0xff] }
 0x857   : > { %1950 = vmatpush1.msra.mxu0 %v8656_v61  ;;  %2021 = vmatpush1.msra.mxu1 %v8659_v56  ;;  %v12194_v61 = vld [vmem:[#allocation25_spill] sm:$0xff]  ;;  %v12195_v56 = vld [vmem:[#allocation38_spill] sm:$0xff] }
 0x858   : > { %1951 = vmatprep.subr.mxu0 %v8662_v51  ;;  %2022 = vmatprep.subr.mxu1 %v8665_v53  ;;  %v12196_v51 = vld [vmem:[#allocation33_spill] sm:$0xff]  ;;  %v12197_v53 = vld [vmem:[#allocation32_spill] sm:$0xff] }
 0x859   : > { %1952 = vmatpush1.msra.mxu0 %v8668_v63  ;;  %2023 = vmatpush1.msra.mxu1 %v8671_v2  ;;  %v12198_v63 = vld [vmem:[#allocation26_spill] sm:$0xff]  ;;  %v12199_v2 = vld [vmem:[#allocation39_spill] sm:$0xff] }
 0x85a   : > { %1953 = vmatprep.subr.mxu0 %v8674_v4  ;;  %2024 = vmatprep.subr.mxu1 %v8677_v7  ;;  %v12200_v4 = vld [vmem:[#allocation35_spill] sm:$0xff]  ;;  %v12201_v7 = vld [vmem:[#allocation34_spill] sm:$0xff] }
 0x85b   : > { %1954 = vmatpush1.msra.mxu0 %v8680_v9  ;;  %2025 = vmatpush1.msra.mxu1 %v8683_v12  ;;  %v12202_v9 = vld [vmem:[#allocation27_spill] sm:$0xff]  ;;  %v12203_v12 = vld [vmem:[#allocation40_spill] sm:$0xff] }
 0x85c   : > { %1955 = vmatprep.subr.mxu0 %v8686_v14  ;;  %2026 = vmatprep.subr.mxu1 %v8689_v16  ;;  %v12204_v14 = vld [vmem:[#allocation22_spill] sm:$0xff]  ;;  %v12205_v16 = vld [vmem:[#allocation43_spill] sm:$0xff] }
 0x85d   : > { %1956 = vmatpush1.msra.mxu0 %v8692_v24  ;;  %2027 = vmatpush1.msra.mxu1 %v8695_v25  ;;  %v12206_v24 = vld [vmem:[#allocation44_spill] sm:$0xff]  ;;  %v12207_v25 = vmov 0.0  }
 0x85e   : > { %1957 = vmatprep.subr.mxu0 %v8698_v26  ;;  %2028 = vmatprep.subr.mxu1 %v8701_v27  ;;  %v12208_v26 = vld [vmem:[#allocation45_spill] sm:$0xff] }
 0x85f   : > { %1958 = vmatpush1.msra.mxu0 %v8704_v28  ;;  %2029 = vmatpush1.msra.mxu1 %v8707_v29  ;;  %v9146_v27 = vld [vmem:[#allocation11 + $0x1e8] sm:$0xff]  ;;  %v12210_v28 = vld [vmem:[#allocation36_spill] sm:$0xff] }
 0x860   : > { %1959 = vmatprep.subr.mxu0 %v8710_v30  ;;  %2030 = vmatprep.subr.mxu1 %v8713_v31  ;;  %12209 = vst [vmem:[#allocation24_spill] sm:$0xff] %v9146_v27  ;;  %v6697_v29 = vld [vmem:[%s8119_s15 + $0x100] sm:$0xff]  ;;  %v6698_v31 = vld [vmem:[%s8119_s15 + $0x108] sm:$0xff] }
 0x861   : > { %1960 = vmatpush1.msra.mxu0 %v8716_v32  ;;  %2031 = vmatpush1.msra.mxu1 %v8719_v33 }
 0x862   : > { %1961 = vmatprep.subr.mxu0 %v8722_v34  ;;  %2032 = vmatprep.subr.mxu1 %v8725_v35 }
 0x863   : > { %1962 = vmatpush1.msra.mxu0 %v8728_v36  ;;  %2033 = vmatpush1.msra.mxu1 %v8731_v37 }
 0x864   : > { %1963 = vmatprep.subr.mxu0 %v8734_v38  ;;  %2034 = vmatprep.subr.mxu1 %v8737_v39  ;;  %v6700_v38 = vld [vmem:[%s8119_s15 + $0x118] sm:$0xff] }
 0x865   : > { %1964 = vmatpush1.msra.mxu0 %v8740_v40  ;;  %2035 = vmatpush1.msra.mxu1 %v8743_v41  ;;  %v6699_v41 = vld [vmem:[%s8119_s15 + $0x110] sm:$0xff] }
 0x866   : > { %1965 = vmatprep.subr.mxu0 %v8746_v42  ;;  %2036 = vmatprep.subr.mxu1 %v8749_v44 }
 0x867   : > { %1966 = vmatpush1.msra.mxu0 %v8752_v46  ;;  %2037 = vmatpush1.msra.mxu1 %v8755_v47 }
 0x868   : > { %1967 = vmatprep.subr.mxu0 %v8758_v43  ;;  %2038 = vmatprep.subr.mxu1 %v8859_v54 }
 0x869   : > { %1968 = vmatpush1.msra.mxu0 %v8762_v10  ;;  %2039 = vmatpush1.msra.mxu1 %v8863_v50 }
 0x86a   : > { %1969 = vmatprep.subr.mxu0 %v8766_v45  ;;  %2040 = vmatprep.subr.mxu1 %v8867_v52 }
 0x86b   : > { %1970 = vmatpush1.msra.mxu0 %v12190_v5  ;;  %2041 = vmatpush1.msra.mxu1 %v12191_v62  ;;  %v9189_v5 = vld [vmem:[#allocation11 + $0x1b0] sm:$0xff] }
 0x86c   : > { %1971 = vmatprep.subr.mxu0 %v12192_v58  ;;  %2042 = vmatprep.subr.mxu1 %v12193_v1  ;;  %v9192_v58 = vld [vmem:[#allocation11 + $0x188] sm:$0xff] }
 0x86d   : > { %1972 = vmatpush1.msra.mxu0 %v12194_v61  ;;  %2043 = vmatpush1.msra.mxu1 %v12195_v56  ;;  %v9195_v61 = vld [vmem:[#allocation11 + $0x198] sm:$0xff] }
 0x86e   : > { %1973 = vmatprep.subr.mxu0 %v12196_v51  ;;  %2044 = vmatprep.subr.mxu1 %v12197_v53  ;;  %v9198_v51 = vld [vmem:[#allocation11 + $0x180] sm:$0xff] }
 0x86f   : > { %1974 = vmatpush1.msra.mxu0 %v12198_v63  ;;  %2045 = vmatpush1.msra.mxu1 %v12199_v2  ;;  %v9201_v63 = vld [vmem:[#allocation11 + $0x190] sm:$0xff] }
 0x870   : > { %1975 = vmatprep.subr.mxu0 %v12200_v4  ;;  %2046 = vmatprep.subr.mxu1 %v12201_v7  ;;  %v9204_v4 = vld [vmem:[#allocation11 + $0x168] sm:$0xff] }
 0x871   : > { %1976 = vmatpush1.msra.mxu0 %v12202_v9  ;;  %2047 = vmatpush1.msra.mxu1 %v12203_v12  ;;  %v9207_v9 = vld [vmem:[#allocation11 + $0x178] sm:$0xff] }
 0x872   : > { %1977 = vmatprep.subr.mxu0 %v12204_v14  ;;  %2048 = vmatprep.subr.mxu1 %v12205_v16 }
 0x873   : > { %1978 = vmatpush1.msra.mxu0 %v12206_v24  ;;  %2011 = vmatprep.mubr.f32.mxu0 %v12207_v25 }
 0x874   : > { %2049 = vmatpush1.msra.mxu1 %v12208_v26  ;;  %2082 = vmatprep.mubr.f32.mxu1 %v12207_v25 }
 0x875   : > { %2124 = vmatprep.subr.mxu0 %v9146_v27  ;;  %2195 = vmatprep.subr.mxu1 %v12210_v28  ;;  %v9210_v28 = vld [vmem:[#allocation11 + $0x160] sm:$0xff] }
 0x914   : > { %v1836_v30 = vpop.f32.mrf.mxu0  ;;  %v1907_v36 = vpop.f32.mrf.mxu1 }
 0x915   : > { %v1912_v32 = vadd.f32 %v6697_v29, %v1836_v30  ;;  %v1914_v46 = vadd.f32 %v6699_v41, %v1907_v36  ;;  %v9213_v29 = vld [vmem:[#allocation11 + $0x170] sm:$0xff]  ;;  %v9216_v30 = vld [vmem:[#allocation11 + $0x148] sm:$0xff]  ;;  %v9234_v36 = vld [vmem:[#allocation11 + $0x120] sm:$0xff] }
 0x916   : > { %v1838_v33 = vpop.f32.mrf.mxu0  ;;  %v1909_v39 = vpop.f32.mrf.mxu1  ;;  %v9249_v41 = vld [vmem:[#allocation11 + $0x110] sm:$0xff] }
 0x917   : > { %v6701_v34 = vmul.f32 -1.442695, %v1912_v32  ;;  %v1913_v35 = vadd.f32 %v6698_v31, %v1838_v33  ;;  %v1915_v40 = vadd.f32 %v6700_v38, %v1909_v39  ;;  %v9219_v31 = vld [vmem:[#allocation11 + $0x158] sm:$0xff]  ;;  %v9222_v32 = vld [vmem:[#allocation11 + $0x140] sm:$0xff]  ;;  %v9225_v33 = vld [vmem:[#allocation11 + $0x150] sm:$0xff] }
 0x918   : > { %v9240_v38 = vld [vmem:[#allocation11 + $0x108] sm:$0xff]  ;;  %v9243_v39 = vld [vmem:[#allocation11 + $0x118] sm:$0xff] }
 0x919   : > { %7017 = vpow2.f32 %v6701_v34  ;;  %v6702_v37 = vmul.f32 -1.442695, %v1913_v35  ;;  %v6703_v42 = vmul.f32 -1.442695, %v1915_v40  ;;  %v9228_v34 = vld [vmem:[#allocation11 + $0x128] sm:$0xff]  ;;  %v9231_v35 = vld [vmem:[#allocation11 + $0x138] sm:$0xff] }
 0x91a   : > { %v9246_v40 = vld [vmem:[#allocation11 + $0x100] sm:$0xff] }
 0x91b   : > { %7019 = vpow2.f32 %v6702_v37  ;;  %v9237_v37 = vld [vmem:[#allocation11 + $0x130] sm:$0xff] }
 0x91c   : > { %7021 = vpow2.f32 %v6703_v42  ;;  %v9252_v42 = vld [vmem:[#allocation11 + $0xe8] sm:$0xff] }
 0x926   : > { %v7018_v44 = vpop.eup %7017 }
 0x927   : > { %v1919_v47 = vadd.f32 1.0, %v7018_v44  ;;  %v9255_v44 = vld [vmem:[#allocation11 + $0xf8] sm:$0xff] }
 0x928   : > { %v7020_v43 = vpop.eup %7019 }
 0x929   : > { %7023 = vrcp.f32 %v1919_v47  ;;  %v1925_v10 = vadd.f32 1.0, %v7020_v43  ;;  %v7022_v45 = vpop.eup %7021  ;;  %v9261_v47 = vld [vmem:[#allocation11 + $0xf0] sm:$0xff]  ;;  %v9264_v43 = vld [vmem:[#allocation11 + $0xc8] sm:$0xff] }
 0x92a   : > { %7025 = vtanh.f32 %v1914_v46  ;;  %v1932_v60 = vadd.f32 1.0, %v7022_v45  ;;  %v9258_v46 = vld [vmem:[#allocation11 + $0xe0] sm:$0xff] }
 0x92b   : > { %7027 = vrcp.f32 %v1925_v10  ;;  %v9267_v10 = vld [vmem:[#allocation11 + $0xd8] sm:$0xff]  ;;  %v9270_v45 = vld [vmem:[#allocation11 + $0xc0] sm:$0xff] }
 0x92c   : > { %7029 = vrcp.f32 %v1932_v60  ;;  %v9284_v60 = vld [vmem:[#allocation11 + $0x88] sm:$0xff] }
 0x936   : > { %v7024_v6 = vpop.eup %7023 }
 0x937   : > { %v7026_v21 = vpop.eup %7025 }
 0x938   : > { %v7028_v59 = vpop.eup %7027  ;;  %v1936_v13 = vmul.f32 %v7026_v21, %v7024_v6  ;;  %v9273_v6 = vld [vmem:[#allocation11 + $0xd0] sm:$0xff]  ;;  %v9276_v21 = vld [vmem:[#allocation11 + $0xa8] sm:$0xff] }
 0x939   : > { %v1935_v55 = vmul.f32 %v7028_v59, %v9075_v3  ;;  %v7030_v18 = vpop.eup %7029  ;;  %v9180_v3 = vld [vmem:[#allocation11 + $0x1a8] sm:$0xff]  ;;  %v9280_v59 = vld [vmem:[#allocation11 + $0xa0] sm:$0xff] }
 0x93b   : > { %v9155_v22 = vadd.f32 %v1936_v13, %v1935_v55  ;;  %v9288_v13 = vld [vmem:[#allocation11 + $0x80] sm:$0xff]  ;;  %v9292_v55 = vld [vmem:[#allocation11 + $0x68] sm:$0xff] }
 0x93c   : > { %12212 = vst [vmem:[#allocation31_spill] sm:$0xff] %v9288_v13  ;;  %12213 = vst [vmem:[#allocation30_spill] sm:$0xff] %v9292_v55 }
 0x93d   : > { %7031 = vtanh.f32 %v9155_v22 }
 0x94a   : > { %v7032_v23 = vpop.eup %7031 }
 0x94b   : > { %v9158_v57 = vmul.f32 %v7032_v23, %v7030_v18  ;;  %v6707_v23 = vld [vmem:[%s8119_s15 + $0x138] sm:$0xff] }
 0x94d   : > { %12211 = vst [vmem:[#allocation37_spill] sm:$0xff] %v9158_v57  ;;  %2012 = vmatmul.mubr.f32.vlgmr.msra.gmra.mxu0 %v9158_v57  ;;  %2083 = vmatmul.mubr.f32.vlgmr.msra.gmra.mxu1 %v9158_v57 }
 0x94e   : > { %2125 = vmatpush1.msra.mxu0 %v9162_v8  ;;  %2196 = vmatpush1.msra.mxu1 %v9165_v17 }
 0x94f   : > { %2126 = vmatprep.subr.mxu0 %v9168_v49  ;;  %2197 = vmatprep.subr.mxu1 %v9171_v48 }
 0x950   : > { %2127 = vmatpush1.msra.mxu0 %v9174_v20  ;;  %2198 = vmatpush1.msra.mxu1 %v9177_v19 }
 0x951   : > { %2128 = vmatprep.subr.mxu0 %v9180_v3  ;;  %2199 = vmatprep.subr.mxu1 %v9183_v11 }
 0x952   : > { %2129 = vmatpush1.msra.mxu0 %v9186_v15  ;;  %2200 = vmatpush1.msra.mxu1 %v9189_v5 }
 0x953   : > { %2130 = vmatprep.subr.mxu0 %v9192_v58  ;;  %2201 = vmatprep.subr.mxu1 %v9195_v61 }
 0x954   : > { %2131 = vmatpush1.msra.mxu0 %v9198_v51  ;;  %2202 = vmatpush1.msra.mxu1 %v9201_v63 }
 0x955   : > { %2132 = vmatprep.subr.mxu0 %v9204_v4  ;;  %2203 = vmatprep.subr.mxu1 %v9207_v9 }
 0x956   : > { %2133 = vmatpush1.msra.mxu0 %v9210_v28  ;;  %2204 = vmatpush1.msra.mxu1 %v9213_v29 }
 0x957   : > { %2134 = vmatprep.subr.mxu0 %v9216_v30  ;;  %2205 = vmatprep.subr.mxu1 %v9219_v31 }
 0x958   : > { %2135 = vmatpush1.msra.mxu0 %v9222_v32  ;;  %2206 = vmatpush1.msra.mxu1 %v9225_v33 }
 0x959   : > { %2136 = vmatprep.subr.mxu0 %v9228_v34  ;;  %2207 = vmatprep.subr.mxu1 %v9231_v35 }
 0x95a   : > { %2137 = vmatpush1.msra.mxu0 %v9234_v36  ;;  %2208 = vmatpush1.msra.mxu1 %v9237_v37 }
 0x95b   : > { %2138 = vmatprep.subr.mxu0 %v9240_v38  ;;  %2209 = vmatprep.subr.mxu1 %v9243_v39 }
 0x95c   : > { %2139 = vmatpush1.msra.mxu0 %v9246_v40  ;;  %2210 = vmatpush1.msra.mxu1 %v9249_v41 }
 0x95d   : > { %2140 = vmatprep.subr.mxu0 %v9252_v42  ;;  %2211 = vmatprep.subr.mxu1 %v9255_v44 }
 0x95e   : > { %2141 = vmatpush1.msra.mxu0 %v9258_v46  ;;  %2212 = vmatpush1.msra.mxu1 %v9261_v47 }
 0x95f   : > { %2142 = vmatprep.subr.mxu0 %v9264_v43  ;;  %2213 = vmatprep.subr.mxu1 %v9267_v10 }
 0x960   : > { %2143 = vmatpush1.msra.mxu0 %v9270_v45  ;;  %2214 = vmatpush1.msra.mxu1 %v9273_v6 }
 0x961   : > { %2144 = vmatprep.subr.mxu0 %v9276_v21  ;;  %2215 = vmatprep.subr.mxu1 %v8859_v54  ;;  %v9296_v54 = vld [vmem:[#allocation11 + $0x60] sm:$0xff] }
 0x962   : > { %2145 = vmatpush1.msra.mxu0 %v9280_v59  ;;  %2216 = vmatpush1.msra.mxu1 %v8863_v50  ;;  %12214 = vst [vmem:[#allocation25_spill] sm:$0xff] %v9296_v54  ;;  %v9300_v50 = vld [vmem:[#allocation11 + $0x48] sm:$0xff] }
 0x963   : > { %2146 = vmatprep.subr.mxu0 %v9284_v60  ;;  %2217 = vmatprep.subr.mxu1 %v8867_v52  ;;  %12215 = vst [vmem:[#allocation38_spill] sm:$0xff] %v9300_v50  ;;  %v9304_v52 = vld [vmem:[#allocation11 + $0x40] sm:$0xff] }
 0x964   : > { %2147 = vmatpush1.msra.mxu0 %v9288_v13  ;;  %2218 = vmatpush1.msra.mxu1 %v12191_v62  ;;  %12216 = vst [vmem:[#allocation33_spill] sm:$0xff] %v9304_v52  ;;  %v9308_v62 = vld [vmem:[#allocation11 + $0x28] sm:$0xff] }
 0x965   : > { %2148 = vmatprep.subr.mxu0 %v9292_v55  ;;  %2219 = vmatprep.subr.mxu1 %v12193_v1  ;;  %12217 = vst [vmem:[#allocation32_spill] sm:$0xff] %v9308_v62  ;;  %v9312_v1 = vld [vmem:[#allocation11 + $0x20] sm:$0xff] }
 0x966   : > { %2149 = vmatpush1.msra.mxu0 %v9296_v54  ;;  %2220 = vmatpush1.msra.mxu1 %v12195_v56  ;;  %12218 = vst [vmem:[#allocation26_spill] sm:$0xff] %v9312_v1  ;;  %v9323_v56 = vld [vmem:[#allocation11 + $0x1f8] sm:$0xff] }
 0x967   : > { %2150 = vmatprep.subr.mxu0 %v9300_v50  ;;  %2221 = vmatprep.subr.mxu1 %v12197_v53  ;;  %12219 = vst [vmem:[#allocation39_spill] sm:$0xff] %v9323_v56  ;;  %v6704_v53 = vld [vmem:[%s8119_s15 + $0x120] sm:$0xff] }
 0x968   : > { %2151 = vmatpush1.msra.mxu0 %v9304_v52  ;;  %2222 = vmatpush1.msra.mxu1 %v12199_v2 }
 0x969   : > { %2152 = vmatprep.subr.mxu0 %v9308_v62  ;;  %2223 = vmatprep.subr.mxu1 %v12201_v7  ;;  %v6705_v7 = vld [vmem:[%s8119_s15 + $0x128] sm:$0xff] }
 0x96a   : > { %2153 = vmatpush1.msra.mxu0 %v9312_v1  ;;  %2224 = vmatpush1.msra.mxu1 %v12203_v12 }
 0x96b   : > { %2154 = vmatprep.subr.mxu0 %v12204_v14  ;;  %2225 = vmatprep.subr.mxu1 %v12205_v16 }
 0x96c   : > { %2155 = vmatpush1.msra.mxu0 %v12206_v24  ;;  %2188 = vmatprep.mubr.f32.mxu0 %v12207_v25 }
 0x96d   : > { %2226 = vmatpush1.msra.mxu1 %v12208_v26  ;;  %2259 = vmatprep.mubr.f32.mxu1 %v12207_v25 }
 0x96e   : > { %2301 = vmatprep.subr.mxu0 %v9146_v27  ;;  %2372 = vmatprep.subr.mxu1 %v9323_v56  ;;  %v6706_v27 = vld [vmem:[%s8119_s15 + $0x130] sm:$0xff] }
 0xa0d   : > { %v2013_v2 = vpop.f32.mrf.mxu0  ;;  %v2084_v18 = vpop.f32.mrf.mxu1 }
 0xa0e   : > { %v2089_v12 = vadd.f32 %v6704_v53, %v2013_v2  ;;  %v2091_v62 = vadd.f32 %v6706_v27, %v2084_v18  ;;  %v12224_v18 = vld [vmem:[#allocation38_spill] sm:$0xff] }
 0xa0f   : > { %v2015_v14 = vpop.f32.mrf.mxu0  ;;  %v2086_v57 = vpop.f32.mrf.mxu1 }
 0xa10   : > { %v6708_v16 = vmul.f32 -1.442695, %v2089_v12  ;;  %v2090_v24 = vadd.f32 %v6705_v7, %v2015_v14  ;;  %v2092_v0 = vadd.f32 %v6707_v23, %v2086_v57  ;;  %v12226_v23 = vld [vmem:[#allocation33_spill] sm:$0xff] }
 0xa12   : > { %7033 = vpow2.f32 %v6708_v16  ;;  %v6709_v26 = vmul.f32 -1.442695, %v2090_v24  ;;  %v6710_v25 = vmul.f32 -1.442695, %v2092_v0 }
 0xa14   : > { %7035 = vpow2.f32 %v6709_v26  ;;  %v9401_v26 = vld [vmem:[#allocation11 + $0x58] sm:$0xff] }
 0xa15   : > { %7037 = vpow2.f32 %v6710_v25  ;;  %12225 = vst [vmem:[#allocation22_spill] sm:$0xff] %v9401_v26 }
 0xa1f   : > { %v7034_v1 = vpop.eup %7033 }
 0xa20   : > { %v2096_v52 = vadd.f32 1.0, %v7034_v1  ;;  %v9393_v1 = vld [vmem:[#allocation11 + $0x78] sm:$0xff] }
 0xa21   : > { %v7036_v56 = vpop.eup %7035  ;;  %12222 = vst [vmem:[#allocation27_spill] sm:$0xff] %v9393_v1 }
 0xa22   : > { %7039 = vrcp.f32 %v2096_v52  ;;  %v2102_v50 = vadd.f32 1.0, %v7036_v56  ;;  %v7038_v53 = vpop.eup %7037  ;;  %v9385_v52 = vld [vmem:[#allocation11 + $0x98] sm:$0xff]  ;;  %v9397_v56 = vld [vmem:[#allocation11 + $0x70] sm:$0xff] }
 0xa23   : > { %7041 = vtanh.f32 %v2091_v62  ;;  %v2109_v14 = vadd.f32 1.0, %v7038_v53  ;;  %v9389_v62 = vld [vmem:[#allocation11 + $0x90] sm:$0xff]  ;;  %12223 = vst [vmem:[#allocation40_spill] sm:$0xff] %v9397_v56 }
 0xa24   : > { %7043 = vrcp.f32 %v2102_v50  ;;  %v9381_v50 = vld [vmem:[#allocation11 + $0xb0] sm:$0xff]  ;;  %12221 = vst [vmem:[#allocation34_spill] sm:$0xff] %v9389_v62 }
 0xa25   : > { %7045 = vrcp.f32 %v2109_v14  ;;  %v9405_v53 = vld [vmem:[#allocation11 + $0x50] sm:$0xff] }
 0xa26   : > { %12227 = vst [vmem:[#allocation43_spill] sm:$0xff] %v9405_v53  ;;  %v9413_v14 = vld [vmem:[#allocation11 + $0x30] sm:$0xff] }
 0xa27   : > { %12231 = vst [vmem:[#allocation45_spill] sm:$0xff] %v9413_v14 }
 0xa2f   : > { %v7040_v2 = vpop.eup %7039 }
 0xa30   : > { %v7042_v7 = vpop.eup %7041 }
 0xa31   : > { %v7044_v12 = vpop.eup %7043  ;;  %v2113_v16 = vmul.f32 %v7042_v7, %v7040_v2  ;;  %v12228_v2 = vld [vmem:[#allocation32_spill] sm:$0xff]  ;;  %v9409_v7 = vld [vmem:[#allocation11 + $0x38] sm:$0xff] }
 0xa32   : > { %v2112_v24 = vmul.f32 %v7044_v12, %v9155_v22  ;;  %v7046_v0 = vpop.eup %7045  ;;  %v9377_v22 = vld [vmem:[#allocation11 + $0xb8] sm:$0xff]  ;;  %12229 = vst [vmem:[#allocation44_spill] sm:$0xff] %v9409_v7  ;;  %v12230_v12 = vld [vmem:[#allocation26_spill] sm:$0xff] }
 0xa34   : > { %v9331_v57 = vadd.f32 %v2113_v16, %v2112_v24  ;;  %v9416_v16 = vld [vmem:[#allocation11 + $0x8] sm:$0xff]  ;;  %v9419_v24 = vld [vmem:[#allocation11 + $0x18] sm:$0xff] }
 0xa35   : > { %12232 = vst [vmem:[#allocation36_spill] sm:$0xff] %v9416_v16  ;;  %12233 = vst [vmem:[#allocation48_spill] sm:$0xff] %v9419_v24 }
 0xa36   : > { %7047 = vtanh.f32 %v9331_v57 }
 0xa43   : > { %v7048_v27 = vpop.eup %7047 }
 0xa44   : > { %v9334_v25 = vmul.f32 %v7048_v27, %v7046_v0  ;;  %v9422_v0 = vld [vmem:[#allocation11] sm:$0xff]  ;;  %v12235_v27 = vmov 0.0  }
 0xa45   : > { %12234 = vst [vmem:[#allocation49_spill] sm:$0xff] %v9422_v0 }
 0xa46   : > { %12220 = vst [vmem:[#allocation35_spill] sm:$0xff] %v9334_v25  ;;  %2189 = vmatmul.mubr.f32.vlgmr.msra.gmra.mxu0 %v9334_v25  ;;  %2260 = vmatmul.mubr.f32.vlgmr.msra.gmra.mxu1 %v9334_v25  ;;  %v9426_v25 = vld [vmem:[#allocation11 + $0x10] sm:$0xff] }
 0xa47   : > { %2302 = vmatpush1.msra.mxu0 %v9162_v8  ;;  %2373 = vmatpush1.msra.mxu1 %v9165_v17  ;;  %12236 = vst [vmem:[#allocation50_spill] sm:$0xff] %v9426_v25 }
 0xa48   : > { %2303 = vmatprep.subr.mxu0 %v9168_v49  ;;  %2374 = vmatprep.subr.mxu1 %v9171_v48 }
 0xa49   : > { %2304 = vmatpush1.msra.mxu0 %v9174_v20  ;;  %2375 = vmatpush1.msra.mxu1 %v9177_v19 }
 0xa4a   : > { %2305 = vmatprep.subr.mxu0 %v9180_v3  ;;  %2376 = vmatprep.subr.mxu1 %v9183_v11 }
 0xa4b   : > { %2306 = vmatpush1.msra.mxu0 %v9186_v15  ;;  %2377 = vmatpush1.msra.mxu1 %v9189_v5 }
 0xa4c   : > { %2307 = vmatprep.subr.mxu0 %v9192_v58  ;;  %2378 = vmatprep.subr.mxu1 %v9195_v61 }
 0xa4d   : > { %2308 = vmatpush1.msra.mxu0 %v9198_v51  ;;  %2379 = vmatpush1.msra.mxu1 %v9201_v63 }
 0xa4e   : > { %2309 = vmatprep.subr.mxu0 %v9204_v4  ;;  %2380 = vmatprep.subr.mxu1 %v9207_v9 }
 0xa4f   : > { %2310 = vmatpush1.msra.mxu0 %v9210_v28  ;;  %2381 = vmatpush1.msra.mxu1 %v9213_v29 }
 0xa50   : > { %2311 = vmatprep.subr.mxu0 %v9216_v30  ;;  %2382 = vmatprep.subr.mxu1 %v9219_v31 }
 0xa51   : > { %2312 = vmatpush1.msra.mxu0 %v9222_v32  ;;  %2383 = vmatpush1.msra.mxu1 %v9225_v33 }
 0xa52   : > { %2313 = vmatprep.subr.mxu0 %v9228_v34  ;;  %2384 = vmatprep.subr.mxu1 %v9231_v35 }
 0xa53   : > { %2314 = vmatpush1.msra.mxu0 %v9234_v36  ;;  %2385 = vmatpush1.msra.mxu1 %v9237_v37 }
 0xa54   : > { %2315 = vmatprep.subr.mxu0 %v9240_v38  ;;  %2386 = vmatprep.subr.mxu1 %v9243_v39 }
 0xa55   : > { %2316 = vmatpush1.msra.mxu0 %v9246_v40  ;;  %2387 = vmatpush1.msra.mxu1 %v9249_v41 }
 0xa56   : > { %2317 = vmatprep.subr.mxu0 %v9252_v42  ;;  %2388 = vmatprep.subr.mxu1 %v9255_v44 }
 0xa57   : > { %2318 = vmatpush1.msra.mxu0 %v9258_v46  ;;  %2389 = vmatpush1.msra.mxu1 %v9261_v47 }
 0xa58   : > { %2319 = vmatprep.subr.mxu0 %v9264_v43  ;;  %2390 = vmatprep.subr.mxu1 %v9267_v10 }
 0xa59   : > { %2320 = vmatpush1.msra.mxu0 %v9270_v45  ;;  %2391 = vmatpush1.msra.mxu1 %v9273_v6 }
 0xa5a   : > { %2321 = vmatprep.subr.mxu0 %v9276_v21  ;;  %2392 = vmatprep.subr.mxu1 %v9377_v22 }
 0xa5b   : > { %2322 = vmatpush1.msra.mxu0 %v9280_v59  ;;  %2393 = vmatpush1.msra.mxu1 %v9381_v50 }
 0xa5c   : > { %2323 = vmatprep.subr.mxu0 %v9284_v60  ;;  %2394 = vmatprep.subr.mxu1 %v9385_v52 }
 0xa5d   : > { %2324 = vmatpush1.msra.mxu0 %v9288_v13  ;;  %2395 = vmatpush1.msra.mxu1 %v9389_v62 }
 0xa5e   : > { %2325 = vmatprep.subr.mxu0 %v9292_v55  ;;  %2396 = vmatprep.subr.mxu1 %v9393_v1 }
 0xa5f   : > { %2326 = vmatpush1.msra.mxu0 %v9296_v54  ;;  %2397 = vmatpush1.msra.mxu1 %v9397_v56  ;;  %v6714_v56 = vld [vmem:[%s8119_s15 + $0x158] sm:$0xff] }
 0xa60   : > { %2327 = vmatprep.subr.mxu0 %v12224_v18  ;;  %2398 = vmatprep.subr.mxu1 %v9401_v26 }
 0xa61   : > { %2328 = vmatpush1.msra.mxu0 %v12226_v23  ;;  %2399 = vmatpush1.msra.mxu1 %v9405_v53 }
 0xa62   : > { %2329 = vmatprep.subr.mxu0 %v12228_v2  ;;  %2400 = vmatprep.subr.mxu1 %v9409_v7  ;;  %v6712_v7 = vld [vmem:[%s8119_s15 + $0x148] sm:$0xff] }
 0xa63   : > { %2330 = vmatpush1.msra.mxu0 %v12230_v12  ;;  %2401 = vmatpush1.msra.mxu1 %v9413_v14  ;;  %v12237_v14 = vld [vmem:[#allocation24_spill] sm:$0xff] }
 0xa64   : > { %2331 = vmatprep.subr.mxu0 %v9416_v16  ;;  %2402 = vmatprep.subr.mxu1 %v9419_v24  ;;  %v12238_v16 = vld [vmem:[#allocation39_spill] sm:$0xff]  ;;  %v6711_v12 = vld [vmem:[%s8119_s15 + $0x140] sm:$0xff] }
 0xa65   : > { %2332 = vmatpush1.msra.mxu0 %v9422_v0  ;;  %2365 = vmatprep.mubr.f32.mxu0 %v12235_v27 }
 0xa66   : > { %2403 = vmatpush1.msra.mxu1 %v9426_v25  ;;  %2436 = vmatprep.mubr.f32.mxu1 %v12235_v27  ;;  %v6713_v27 = vld [vmem:[%s8119_s15 + $0x150] sm:$0xff] }
 0xa67   : > { %2478 = vmatprep.subr.mxu0 %v12237_v14  ;;  %2549 = vmatprep.subr.mxu1 %v12238_v16 }
 0xb06   : > { %v2190_v24 = vpop.f32.mrf.mxu0  ;;  %v2261_v26 = vpop.f32.mrf.mxu1 }
 0xb07   : > { %v2266_v2 = vadd.f32 %v6711_v12, %v2190_v24  ;;  %v2268_v55 = vadd.f32 %v6713_v27, %v2261_v26  ;;  %v12244_v26 = vld [vmem:[#allocation25_spill] sm:$0xff] }
 0xb08   : > { %v2192_v53 = vpop.f32.mrf.mxu0  ;;  %v2263_v25 = vpop.f32.mrf.mxu1  ;;  %v12248_v27 = vld [vmem:[#allocation33_spill] sm:$0xff] }
 0xb09   : > { %v6715_v0 = vmul.f32 -1.442695, %v2266_v2  ;;  %v2267_v23 = vadd.f32 %v6712_v7, %v2192_v53  ;;  %v2269_v54 = vadd.f32 %v6714_v56, %v2263_v25 }
 0xb0b   : > { %7049 = vpow2.f32 %v6715_v0  ;;  %v6716_v18 = vmul.f32 -1.442695, %v2267_v23  ;;  %v6717_v1 = vmul.f32 -1.442695, %v2269_v54  ;;  %v12247_v0 = vld [vmem:[#allocation22_spill] sm:$0xff] }
 0xb0d   : > { %7051 = vpow2.f32 %v6716_v18 }
 0xb0e   : > { %7053 = vpow2.f32 %v6717_v1 }
 0xb18   : > { %v7050_v14 = vpop.eup %7049 }
 0xb19   : > { %v2273_v62 = vadd.f32 1.0, %v7050_v14  ;;  %v12245_v14 = vld [vmem:[#allocation40_spill] sm:$0xff] }
 0xb1a   : > { %v7052_v16 = vpop.eup %7051 }
 0xb1b   : > { %7055 = vrcp.f32 %v2273_v62  ;;  %v2279_v13 = vadd.f32 1.0, %v7052_v16  ;;  %v7054_v2 = vpop.eup %7053  ;;  %v12243_v62 = vld [vmem:[#allocation27_spill] sm:$0xff]  ;;  %v12246_v16 = vld [vmem:[#allocation38_spill] sm:$0xff] }
 0xb1c   : > { %7057 = vtanh.f32 %v2268_v55  ;;  %v2286_v23 = vadd.f32 1.0, %v7054_v2  ;;  %v12241_v55 = vld [vmem:[#allocation34_spill] sm:$0xff]  ;;  %v12249_v2 = vld [vmem:[#allocation43_spill] sm:$0xff] }
 0xb1d   : > { %7059 = vrcp.f32 %v2279_v13  ;;  %v12240_v13 = vld [vmem:[#allocation31_spill] sm:$0xff] }
 0xb1e   : > { %7061 = vrcp.f32 %v2286_v23  ;;  %v12253_v23 = vld [vmem:[#allocation45_spill] sm:$0xff] }
 0xb28   : > { %v7056_v53 = vpop.eup %7055 }
 0xb29   : > { %v7058_v7 = vpop.eup %7057 }
 0xb2a   : > { %v7060_v12 = vpop.eup %7059  ;;  %v2290_v18 = vmul.f32 %v7058_v7, %v7056_v53  ;;  %v12250_v53 = vld [vmem:[#allocation32_spill] sm:$0xff] }
 0xb2b   : > { %v2289_v24 = vmul.f32 %v7060_v12, %v9331_v57  ;;  %v7062_v54 = vpop.eup %7061  ;;  %v12242_v57 = vld [vmem:[#allocation30_spill] sm:$0xff]  ;;  %v12251_v7 = vld [vmem:[#allocation44_spill] sm:$0xff] }
 0xb2c   : > { %v12252_v12 = vld [vmem:[#allocation26_spill] sm:$0xff] }
 0xb2d   : > { %v9437_v25 = vadd.f32 %v2290_v18, %v2289_v24  ;;  %v12254_v18 = vld [vmem:[#allocation36_spill] sm:$0xff] }
 0xb2e   : > { %v12255_v24 = vld [vmem:[#allocation48_spill] sm:$0xff] }
 0xb2f   : > { %7063 = vtanh.f32 %v9437_v25 }
 0xb3c   : > { %v7064_v56 = vpop.eup %7063 }
 0xb3d   : > { %v9440_v1 = vmul.f32 %v7064_v56, %v7062_v54  ;;  %v12256_v54 = vld [vmem:[#allocation49_spill] sm:$0xff]  ;;  %v12257_v56 = vmov 0.0  }
 0xb3f   : > { %12239 = vst [vmem:[#allocation51_spill] sm:$0xff] %v9440_v1  ;;  %2366 = vmatmul.mubr.f32.vlgmr.msra.gmra.mxu0 %v9440_v1  ;;  %2437 = vmatmul.mubr.f32.vlgmr.msra.gmra.mxu1 %v9440_v1  ;;  %v12258_v1 = vld [vmem:[#allocation50_spill] sm:$0xff] }
 0xb40   : > { %2479 = vmatpush1.msra.mxu0 %v9162_v8  ;;  %2550 = vmatpush1.msra.mxu1 %v9165_v17 }
 0xb41   : > { %2480 = vmatprep.subr.mxu0 %v9168_v49  ;;  %2551 = vmatprep.subr.mxu1 %v9171_v48 }
 0xb42   : > { %2481 = vmatpush1.msra.mxu0 %v9174_v20  ;;  %2552 = vmatpush1.msra.mxu1 %v9177_v19 }
 0xb43   : > { %2482 = vmatprep.subr.mxu0 %v9180_v3  ;;  %2553 = vmatprep.subr.mxu1 %v9183_v11 }
 0xb44   : > { %2483 = vmatpush1.msra.mxu0 %v9186_v15  ;;  %2554 = vmatpush1.msra.mxu1 %v9189_v5 }
 0xb45   : > { %2484 = vmatprep.subr.mxu0 %v9192_v58  ;;  %2555 = vmatprep.subr.mxu1 %v9195_v61 }
 0xb46   : > { %2485 = vmatpush1.msra.mxu0 %v9198_v51  ;;  %2556 = vmatpush1.msra.mxu1 %v9201_v63 }
 0xb47   : > { %2486 = vmatprep.subr.mxu0 %v9204_v4  ;;  %2557 = vmatprep.subr.mxu1 %v9207_v9 }
 0xb48   : > { %2487 = vmatpush1.msra.mxu0 %v9210_v28  ;;  %2558 = vmatpush1.msra.mxu1 %v9213_v29 }
 0xb49   : > { %2488 = vmatprep.subr.mxu0 %v9216_v30  ;;  %2559 = vmatprep.subr.mxu1 %v9219_v31 }
 0xb4a   : > { %2489 = vmatpush1.msra.mxu0 %v9222_v32  ;;  %2560 = vmatpush1.msra.mxu1 %v9225_v33 }
 0xb4b   : > { %2490 = vmatprep.subr.mxu0 %v9228_v34  ;;  %2561 = vmatprep.subr.mxu1 %v9231_v35 }
 0xb4c   : > { %2491 = vmatpush1.msra.mxu0 %v9234_v36  ;;  %2562 = vmatpush1.msra.mxu1 %v9237_v37 }
 0xb4d   : > { %2492 = vmatprep.subr.mxu0 %v9240_v38  ;;  %2563 = vmatprep.subr.mxu1 %v9243_v39 }
 0xb4e   : > { %2493 = vmatpush1.msra.mxu0 %v9246_v40  ;;  %2564 = vmatpush1.msra.mxu1 %v9249_v41 }
 0xb4f   : > { %2494 = vmatprep.subr.mxu0 %v9252_v42  ;;  %2565 = vmatprep.subr.mxu1 %v9255_v44 }
 0xb50   : > { %2495 = vmatpush1.msra.mxu0 %v9258_v46  ;;  %2566 = vmatpush1.msra.mxu1 %v9261_v47 }
 0xb51   : > { %2496 = vmatprep.subr.mxu0 %v9264_v43  ;;  %2567 = vmatprep.subr.mxu1 %v9267_v10 }
 0xb52   : > { %2497 = vmatpush1.msra.mxu0 %v9270_v45  ;;  %2568 = vmatpush1.msra.mxu1 %v9273_v6 }
 0xb53   : > { %2498 = vmatprep.subr.mxu0 %v9276_v21  ;;  %2569 = vmatprep.subr.mxu1 %v9377_v22 }
 0xb54   : > { %2499 = vmatpush1.msra.mxu0 %v9280_v59  ;;  %2570 = vmatpush1.msra.mxu1 %v9381_v50 }
 0xb55   : > { %2500 = vmatprep.subr.mxu0 %v9284_v60  ;;  %2571 = vmatprep.subr.mxu1 %v9385_v52 }
 0xb56   : > { %2501 = vmatpush1.msra.mxu0 %v12240_v13  ;;  %2572 = vmatpush1.msra.mxu1 %v12241_v55 }
 0xb57   : > { %2502 = vmatprep.subr.mxu0 %v12242_v57  ;;  %2573 = vmatprep.subr.mxu1 %v12243_v62 }
 0xb58   : > { %2503 = vmatpush1.msra.mxu0 %v12244_v26  ;;  %2574 = vmatpush1.msra.mxu1 %v12245_v14  ;;  %v6721_v14 = vld [vmem:[%s8119_s15 + $0x178] sm:$0xff] }
 0xb59   : > { %2504 = vmatprep.subr.mxu0 %v12246_v16  ;;  %2575 = vmatprep.subr.mxu1 %v12247_v0 }
 0xb5a   : > { %2505 = vmatpush1.msra.mxu0 %v12248_v27  ;;  %2576 = vmatpush1.msra.mxu1 %v12249_v2  ;;  %v6719_v2 = vld [vmem:[%s8119_s15 + $0x168] sm:$0xff] }
 0xb5b   : > { %2506 = vmatprep.subr.mxu0 %v12250_v53  ;;  %2577 = vmatprep.subr.mxu1 %v12251_v7  ;;  %v12259_v53 = vld [vmem:[#allocation24_spill] sm:$0xff]  ;;  %v12260_v7 = vld [vmem:[#allocation39_spill] sm:$0xff] }
 0xb5c   : > { %2507 = vmatpush1.msra.mxu0 %v12252_v12  ;;  %2578 = vmatpush1.msra.mxu1 %v12253_v23  ;;  %v6718_v12 = vld [vmem:[%s8119_s15 + $0x160] sm:$0xff] }
 0xb5d   : > { %2508 = vmatprep.subr.mxu0 %v12254_v18  ;;  %2579 = vmatprep.subr.mxu1 %v12255_v24 }
 0xb5e   : > { %2509 = vmatpush1.msra.mxu0 %v12256_v54  ;;  %2542 = vmatprep.mubr.f32.mxu0 %v12257_v56 }
 0xb5f   : > { %2580 = vmatpush1.msra.mxu1 %v12258_v1  ;;  %2613 = vmatprep.mubr.f32.mxu1 %v12257_v56  ;;  %v6720_v56 = vld [vmem:[%s8119_s15 + $0x170] sm:$0xff] }
 0xb60   : > { %2655 = vmatprep.subr.mxu0 %v12259_v53  ;;  %2726 = vmatprep.subr.mxu1 %v12260_v7 }
 0xbff   : > { %v2367_v23 = vpop.f32.mrf.mxu0  ;;  %v2438_v54 = vpop.f32.mrf.mxu1 }
 0xc00   : > { %v2443_v18 = vadd.f32 %v6718_v12, %v2367_v23  ;;  %v2445_v57 = vadd.f32 %v6720_v56, %v2438_v54  ;;  %v12269_v54 = vld [vmem:[#allocation22_spill] sm:$0xff]  ;;  %v12270_v56 = vld [vmem:[#allocation33_spill] sm:$0xff] }
 0xc01   : > { %v2369_v27 = vpop.f32.mrf.mxu0  ;;  %v2440_v1 = vpop.f32.mrf.mxu1 }
 0xc02   : > { %v6722_v24 = vmul.f32 -1.442695, %v2443_v18  ;;  %v2444_v0 = vadd.f32 %v6719_v2, %v2369_v27  ;;  %v2446_v26 = vadd.f32 %v6721_v14, %v2440_v1 }
 0xc04   : > { %7065 = vpow2.f32 %v6722_v24  ;;  %v6723_v16 = vmul.f32 -1.442695, %v2444_v0  ;;  %v6724_v62 = vmul.f32 -1.442695, %v2446_v26  ;;  %v12268_v24 = vld [vmem:[#allocation38_spill] sm:$0xff] }
 0xc06   : > { %7067 = vpow2.f32 %v6723_v16 }
 0xc07   : > { %7069 = vpow2.f32 %v6724_v62 }
 0xc11   : > { %v7066_v53 = vpop.eup %7065 }
 0xc12   : > { %v2450_v55 = vadd.f32 1.0, %v7066_v53  ;;  %v12266_v53 = vld [vmem:[#allocation25_spill] sm:$0xff] }
 0xc13   : > { %v7068_v7 = vpop.eup %7067 }
 0xc14   : > { %7071 = vrcp.f32 %v2450_v55  ;;  %v2456_v13 = vadd.f32 1.0, %v7068_v7  ;;  %v7070_v12 = vpop.eup %7069  ;;  %v12264_v55 = vld [vmem:[#allocation30_spill] sm:$0xff]  ;;  %v12267_v7 = vld [vmem:[#allocation40_spill] sm:$0xff] }
 0xc15   : > { %7073 = vtanh.f32 %v2445_v57  ;;  %v2463_v0 = vadd.f32 1.0, %v7070_v12  ;;  %v12265_v57 = vld [vmem:[#allocation27_spill] sm:$0xff] }
 0xc16   : > { %7075 = vrcp.f32 %v2456_v13  ;;  %v12263_v13 = vld [vmem:[#allocation34_spill] sm:$0xff]  ;;  %v12271_v12 = vld [vmem:[#allocation43_spill] sm:$0xff] }
 0xc17   : > { %7077 = vrcp.f32 %v2463_v0  ;;  %v12275_v0 = vld [vmem:[#allocation45_spill] sm:$0xff] }
 0xc21   : > { %v7072_v27 = vpop.eup %7071 }
 0xc22   : > { %v7074_v2 = vpop.eup %7073 }
 0xc23   : > { %v7076_v23 = vpop.eup %7075  ;;  %v2467_v16 = vmul.f32 %v7074_v2, %v7072_v27  ;;  %v12272_v27 = vld [vmem:[#allocation32_spill] sm:$0xff] }
 0xc24   : > { %v2466_v18 = vmul.f32 %v7076_v23, %v9437_v25  ;;  %v7078_v26 = vpop.eup %7077  ;;  %v12262_v25 = vld [vmem:[#allocation31_spill] sm:$0xff]  ;;  %v12273_v2 = vld [vmem:[#allocation44_spill] sm:$0xff]  ;;  %v12274_v23 = vld [vmem:[#allocation26_spill] sm:$0xff] }
 0xc26   : > { %v9515_v1 = vadd.f32 %v2467_v16, %v2466_v18  ;;  %v12276_v16 = vld [vmem:[#allocation36_spill] sm:$0xff] }
 0xc27   : > { %v12277_v18 = vld [vmem:[#allocation48_spill] sm:$0xff] }
 0xc28   : > { %7079 = vtanh.f32 %v9515_v1 }
 0xc35   : > { %v7080_v14 = vpop.eup %7079 }
 0xc36   : > { %v9518_v62 = vmul.f32 %v7080_v14, %v7078_v26  ;;  %v12278_v26 = vld [vmem:[#allocation49_spill] sm:$0xff]  ;;  %v12279_v14 = vmov 0.0  }
 0xc38   : > { %12261 = vst [vmem:[#allocation52_spill] sm:$0xff] %v9518_v62  ;;  %2543 = vmatmul.mubr.f32.vlgmr.msra.gmra.mxu0 %v9518_v62  ;;  %2614 = vmatmul.mubr.f32.vlgmr.msra.gmra.mxu1 %v9518_v62  ;;  %v12280_v62 = vld [vmem:[#allocation50_spill] sm:$0xff] }
 0xc39   : > { %2656 = vmatpush1.msra.mxu0 %v9162_v8  ;;  %2727 = vmatpush1.msra.mxu1 %v9165_v17 }
 0xc3a   : > { %2657 = vmatprep.subr.mxu0 %v9168_v49  ;;  %2728 = vmatprep.subr.mxu1 %v9171_v48 }
 0xc3b   : > { %2658 = vmatpush1.msra.mxu0 %v9174_v20  ;;  %2729 = vmatpush1.msra.mxu1 %v9177_v19 }
 0xc3c   : > { %2659 = vmatprep.subr.mxu0 %v9180_v3  ;;  %2730 = vmatprep.subr.mxu1 %v9183_v11 }
 0xc3d   : > { %2660 = vmatpush1.msra.mxu0 %v9186_v15  ;;  %2731 = vmatpush1.msra.mxu1 %v9189_v5 }
 0xc3e   : > { %2661 = vmatprep.subr.mxu0 %v9192_v58  ;;  %2732 = vmatprep.subr.mxu1 %v9195_v61 }
 0xc3f   : > { %2662 = vmatpush1.msra.mxu0 %v9198_v51  ;;  %2733 = vmatpush1.msra.mxu1 %v9201_v63 }
 0xc40   : > { %2663 = vmatprep.subr.mxu0 %v9204_v4  ;;  %2734 = vmatprep.subr.mxu1 %v9207_v9 }
 0xc41   : > { %2664 = vmatpush1.msra.mxu0 %v9210_v28  ;;  %2735 = vmatpush1.msra.mxu1 %v9213_v29 }
 0xc42   : > { %2665 = vmatprep.subr.mxu0 %v9216_v30  ;;  %2736 = vmatprep.subr.mxu1 %v9219_v31 }
 0xc43   : > { %2666 = vmatpush1.msra.mxu0 %v9222_v32  ;;  %2737 = vmatpush1.msra.mxu1 %v9225_v33 }
 0xc44   : > { %2667 = vmatprep.subr.mxu0 %v9228_v34  ;;  %2738 = vmatprep.subr.mxu1 %v9231_v35 }
 0xc45   : > { %2668 = vmatpush1.msra.mxu0 %v9234_v36  ;;  %2739 = vmatpush1.msra.mxu1 %v9237_v37 }
 0xc46   : > { %2669 = vmatprep.subr.mxu0 %v9240_v38  ;;  %2740 = vmatprep.subr.mxu1 %v9243_v39 }
 0xc47   : > { %2670 = vmatpush1.msra.mxu0 %v9246_v40  ;;  %2741 = vmatpush1.msra.mxu1 %v9249_v41 }
 0xc48   : > { %2671 = vmatprep.subr.mxu0 %v9252_v42  ;;  %2742 = vmatprep.subr.mxu1 %v9255_v44 }
 0xc49   : > { %2672 = vmatpush1.msra.mxu0 %v9258_v46  ;;  %2743 = vmatpush1.msra.mxu1 %v9261_v47 }
 0xc4a   : > { %2673 = vmatprep.subr.mxu0 %v9264_v43  ;;  %2744 = vmatprep.subr.mxu1 %v9267_v10 }
 0xc4b   : > { %2674 = vmatpush1.msra.mxu0 %v9270_v45  ;;  %2745 = vmatpush1.msra.mxu1 %v9273_v6 }
 0xc4c   : > { %2675 = vmatprep.subr.mxu0 %v9276_v21  ;;  %2746 = vmatprep.subr.mxu1 %v9377_v22 }
 0xc4d   : > { %2676 = vmatpush1.msra.mxu0 %v9280_v59  ;;  %2747 = vmatpush1.msra.mxu1 %v9381_v50 }
 0xc4e   : > { %2677 = vmatprep.subr.mxu0 %v9284_v60  ;;  %2748 = vmatprep.subr.mxu1 %v9385_v52 }
 0xc4f   : > { %2678 = vmatpush1.msra.mxu0 %v12262_v25  ;;  %2749 = vmatpush1.msra.mxu1 %v12263_v13 }
 0xc50   : > { %2679 = vmatprep.subr.mxu0 %v12264_v55  ;;  %2750 = vmatprep.subr.mxu1 %v12265_v57 }
 0xc51   : > { %2680 = vmatpush1.msra.mxu0 %v12266_v53  ;;  %2751 = vmatpush1.msra.mxu1 %v12267_v7  ;;  %v6728_v7 = vld [vmem:[%s8119_s15 + $0x198] sm:$0xff] }
 0xc52   : > { %2681 = vmatprep.subr.mxu0 %v12268_v24  ;;  %2752 = vmatprep.subr.mxu1 %v12269_v54 }
 0xc53   : > { %2682 = vmatpush1.msra.mxu0 %v12270_v56  ;;  %2753 = vmatpush1.msra.mxu1 %v12271_v12  ;;  %v6726_v12 = vld [vmem:[%s8119_s15 + $0x188] sm:$0xff] }
 0xc54   : > { %2683 = vmatprep.subr.mxu0 %v12272_v27  ;;  %2754 = vmatprep.subr.mxu1 %v12273_v2  ;;  %v12281_v27 = vld [vmem:[#allocation24_spill] sm:$0xff]  ;;  %v12282_v2 = vld [vmem:[#allocation39_spill] sm:$0xff] }
 0xc55   : > { %2684 = vmatpush1.msra.mxu0 %v12274_v23  ;;  %2755 = vmatpush1.msra.mxu1 %v12275_v0  ;;  %v6725_v23 = vld [vmem:[%s8119_s15 + $0x180] sm:$0xff] }
 0xc56   : > { %2685 = vmatprep.subr.mxu0 %v12276_v16  ;;  %2756 = vmatprep.subr.mxu1 %v12277_v18 }
 0xc57   : > { %2686 = vmatpush1.msra.mxu0 %v12278_v26  ;;  %2719 = vmatprep.mubr.f32.mxu0 %v12279_v14 }
 0xc58   : > { %2757 = vmatpush1.msra.mxu1 %v12280_v62  ;;  %2790 = vmatprep.mubr.f32.mxu1 %v12279_v14  ;;  %v6727_v14 = vld [vmem:[%s8119_s15 + $0x190] sm:$0xff] }
 0xc59   : > { %2832 = vmatprep.subr.mxu0 %v12281_v27  ;;  %2903 = vmatprep.subr.mxu1 %v12282_v2 }
 0xcf8   : > { %v2544_v0 = vpop.f32.mrf.mxu0  ;;  %v2615_v26 = vpop.f32.mrf.mxu1 }
 0xcf9   : > { %v2620_v16 = vadd.f32 %v6725_v23, %v2544_v0  ;;  %v2622_v55 = vadd.f32 %v6727_v14, %v2615_v26 }
 0xcfa   : > { %v2546_v56 = vpop.f32.mrf.mxu0  ;;  %v2617_v62 = vpop.f32.mrf.mxu1 }
 0xcfb   : > { %v6729_v18 = vmul.f32 -1.442695, %v2620_v16  ;;  %v2621_v54 = vadd.f32 %v6726_v12, %v2546_v56  ;;  %v2623_v53 = vadd.f32 %v6728_v7, %v2617_v62 }
 0xcfd   : > { %7081 = vpow2.f32 %v6729_v18  ;;  %v6730_v24 = vmul.f32 -1.442695, %v2621_v54  ;;  %v6731_v57 = vmul.f32 -1.442695, %v2623_v53 }
 0xcff   : > { %7083 = vpow2.f32 %v6730_v24 }
 0xd00   : > { %7085 = vpow2.f32 %v6731_v57 }
 0xd0a   : > { %v7082_v27 = vpop.eup %7081 }
 0xd0b   : > { %v2627_v13 = vadd.f32 1.0, %v7082_v27 }
 0xd0c   : > { %v7084_v2 = vpop.eup %7083 }
 0xd0d   : > { %7087 = vrcp.f32 %v2627_v13  ;;  %v2633_v25 = vadd.f32 1.0, %v7084_v2  ;;  %v7086_v23 = vpop.eup %7085 }
 0xd0e   : > { %7089 = vtanh.f32 %v2622_v55  ;;  %v2640_v54 = vadd.f32 1.0, %v7086_v23 }
 0xd0f   : > { %7091 = vrcp.f32 %v2633_v25 }
 0xd10   : > { %7093 = vrcp.f32 %v2640_v54  ;;  %v7533_v54 = vld [vmem:[#allocation11 + $0x1d8] sm:$0xff] }
 0xd1a   : > { %v7088_v56 = vpop.eup %7087 }
 0xd1b   : > { %v7090_v12 = vpop.eup %7089 }
 0xd1c   : > { %v7092_v0 = vpop.eup %7091  ;;  %v2644_v24 = vmul.f32 %v7090_v12, %v7088_v56  ;;  %v7530_v56 = vld [vmem:[#allocation11 + $0x1e0] sm:$0xff]  ;;  %v7531_v12 = vld [vmem:[#allocation11 + $0x1f0] sm:$0xff] }
 0xd1d   : > { %v2643_v16 = vmul.f32 %v7092_v0, %v9515_v1  ;;  %v7094_v53 = vpop.eup %7093  ;;  %v7532_v0 = vld [vmem:[#allocation11 + $0x1c8] sm:$0xff] }
 0xd1f   : > { %v9593_v62 = vadd.f32 %v2644_v24, %v2643_v16  ;;  %v7534_v24 = vld [vmem:[#allocation11 + $0x1c0] sm:$0xff]  ;;  %v7535_v16 = vld [vmem:[#allocation11 + $0x1d0] sm:$0xff] }
 0xd21   : > { %7095 = vtanh.f32 %v9593_v62 }
 0xd2e   : > { %v7096_v7 = vpop.eup %7095 }
 0xd2f   : > { %v9596_v57 = vmul.f32 %v7096_v7, %v7094_v53  ;;  %v7537_v53 = vld [vmem:[#allocation11 + $0x1b8] sm:$0xff]  ;;  %v7538_v7 = vld [vmem:[#allocation11 + $0x1a0] sm:$0xff] }
 0xd31   : > { %2720 = vmatmul.mubr.f32.vlgmr.msra.gmra.mxu0 %v9596_v57  ;;  %2791 = vmatmul.mubr.f32.vlgmr.msra.gmra.mxu1 %v9596_v57 }
 0xd32   : > { %2833 = vmatpush1.msra.mxu0 %v9162_v8  ;;  %2904 = vmatpush1.msra.mxu1 %v9165_v17  ;;  %v12283_v8 = vld [vmem:[#allocation31_spill] sm:$0xff]  ;;  %v12284_v17 = vld [vmem:[#allocation34_spill] sm:$0xff] }
 0xd33   : > { %2834 = vmatprep.subr.mxu0 %v9168_v49  ;;  %2905 = vmatprep.subr.mxu1 %v9171_v48  ;;  %v12285_v49 = vld [vmem:[#allocation30_spill] sm:$0xff]  ;;  %v12286_v48 = vld [vmem:[#allocation27_spill] sm:$0xff] }
 0xd34   : > { %2835 = vmatpush1.msra.mxu0 %v9174_v20  ;;  %2906 = vmatpush1.msra.mxu1 %v9177_v19  ;;  %v12287_v20 = vld [vmem:[#allocation25_spill] sm:$0xff]  ;;  %v12288_v19 = vld [vmem:[#allocation40_spill] sm:$0xff] }
 0xd35   : > { %2836 = vmatprep.subr.mxu0 %v9180_v3  ;;  %2907 = vmatprep.subr.mxu1 %v9183_v11  ;;  %v12289_v3 = vld [vmem:[#allocation38_spill] sm:$0xff] }
 0xd36   : > { %2837 = vmatpush1.msra.mxu0 %v9186_v15  ;;  %2908 = vmatpush1.msra.mxu1 %v9189_v5  ;;  %v12290_v11 = vld [vmem:[#allocation22_spill] sm:$0xff]  ;;  %v12291_v15 = vld [vmem:[#allocation33_spill] sm:$0xff]  ;;  %v12292_v5 = vld [vmem:[#allocation43_spill] sm:$0xff] }
 0xd37   : > { %2838 = vmatprep.subr.mxu0 %v9192_v58  ;;  %2909 = vmatprep.subr.mxu1 %v9195_v61  ;;  %v12293_v58 = vld [vmem:[#allocation32_spill] sm:$0xff] }
 0xd38   : > { %2839 = vmatpush1.msra.mxu0 %v9198_v51  ;;  %2910 = vmatpush1.msra.mxu1 %v9201_v63  ;;  %v12294_v61 = vld [vmem:[#allocation44_spill] sm:$0xff]  ;;  %v12295_v51 = vld [vmem:[#allocation26_spill] sm:$0xff]  ;;  %v12296_v63 = vld [vmem:[#allocation45_spill] sm:$0xff] }
 0xd39   : > { %2840 = vmatprep.subr.mxu0 %v9204_v4  ;;  %2911 = vmatprep.subr.mxu1 %v9207_v9  ;;  %v12297_v4 = vld [vmem:[#allocation36_spill] sm:$0xff] }
 0xd3a   : > { %2841 = vmatpush1.msra.mxu0 %v9210_v28  ;;  %2912 = vmatpush1.msra.mxu1 %v9213_v29  ;;  %v12298_v9 = vld [vmem:[#allocation48_spill] sm:$0xff]  ;;  %v12299_v28 = vld [vmem:[#allocation49_spill] sm:$0xff]  ;;  %v12300_v29 = vmov 0.0  }
 0xd3b   : > { %2842 = vmatprep.subr.mxu0 %v9216_v30  ;;  %2913 = vmatprep.subr.mxu1 %v9219_v31  ;;  %v12301_v30 = vld [vmem:[#allocation50_spill] sm:$0xff]  ;;  %v7529_v31 = vld [vmem:[#allocation11 + $0x1e8] sm:$0xff] }
 0xd3c   : > { %2843 = vmatpush1.msra.mxu0 %v9222_v32  ;;  %2914 = vmatpush1.msra.mxu1 %v9225_v33  ;;  %v12302_v32 = vld [vmem:[#allocation39_spill] sm:$0xff]  ;;  %v6732_v33 = vld [vmem:[%s8119_s15 + $0x1a0] sm:$0xff] }
 0xd3d   : > { %2844 = vmatprep.subr.mxu0 %v9228_v34  ;;  %2915 = vmatprep.subr.mxu1 %v9231_v35  ;;  %v6733_v35 = vld [vmem:[%s8119_s15 + $0x1a8] sm:$0xff] }
 0xd3e   : > { %2845 = vmatpush1.msra.mxu0 %v9234_v36  ;;  %2916 = vmatpush1.msra.mxu1 %v9237_v37 }
 0xd3f   : > { %2846 = vmatprep.subr.mxu0 %v9240_v38  ;;  %2917 = vmatprep.subr.mxu1 %v9243_v39 }
 0xd40   : > { %2847 = vmatpush1.msra.mxu0 %v9246_v40  ;;  %2918 = vmatpush1.msra.mxu1 %v9249_v41 }
 0xd41   : > { %2848 = vmatprep.subr.mxu0 %v9252_v42  ;;  %2919 = vmatprep.subr.mxu1 %v9255_v44  ;;  %v6735_v42 = vld [vmem:[%s8119_s15 + $0x1b8] sm:$0xff] }
 0xd42   : > { %2849 = vmatpush1.msra.mxu0 %v9258_v46  ;;  %2920 = vmatpush1.msra.mxu1 %v9261_v47  ;;  %v6734_v47 = vld [vmem:[%s8119_s15 + $0x1b0] sm:$0xff] }
 0xd43   : > { %2850 = vmatprep.subr.mxu0 %v9264_v43  ;;  %2921 = vmatprep.subr.mxu1 %v9267_v10 }
 0xd44   : > { %2851 = vmatpush1.msra.mxu0 %v9270_v45  ;;  %2922 = vmatpush1.msra.mxu1 %v9273_v6 }
 0xd45   : > { %2852 = vmatprep.subr.mxu0 %v9276_v21  ;;  %2923 = vmatprep.subr.mxu1 %v9377_v22 }
 0xd46   : > { %2853 = vmatpush1.msra.mxu0 %v9280_v59  ;;  %2924 = vmatpush1.msra.mxu1 %v9381_v50 }
 0xd47   : > { %2854 = vmatprep.subr.mxu0 %v9284_v60  ;;  %2925 = vmatprep.subr.mxu1 %v9385_v52 }
 0xd48   : > { %2855 = vmatpush1.msra.mxu0 %v12283_v8  ;;  %2926 = vmatpush1.msra.mxu1 %v12284_v17  ;;  %v7539_v8 = vld [vmem:[#allocation11 + $0x1b0] sm:$0xff] }
 0xd49   : > { %2856 = vmatprep.subr.mxu0 %v12285_v49  ;;  %2927 = vmatprep.subr.mxu1 %v12286_v48  ;;  %v7540_v49 = vld [vmem:[#allocation11 + $0x188] sm:$0xff] }
 0xd4a   : > { %2857 = vmatpush1.msra.mxu0 %v12287_v20  ;;  %2928 = vmatpush1.msra.mxu1 %v12288_v19  ;;  %v7541_v20 = vld [vmem:[#allocation11 + $0x198] sm:$0xff] }
 0xd4b   : > { %2858 = vmatprep.subr.mxu0 %v12289_v3  ;;  %2929 = vmatprep.subr.mxu1 %v12290_v11  ;;  %v7542_v3 = vld [vmem:[#allocation11 + $0x180] sm:$0xff] }
 0xd4c   : > { %2859 = vmatpush1.msra.mxu0 %v12291_v15  ;;  %2930 = vmatpush1.msra.mxu1 %v12292_v5  ;;  %v7543_v15 = vld [vmem:[#allocation11 + $0x190] sm:$0xff] }
 0xd4d   : > { %2860 = vmatprep.subr.mxu0 %v12293_v58  ;;  %2931 = vmatprep.subr.mxu1 %v12294_v61  ;;  %v7544_v58 = vld [vmem:[#allocation11 + $0x168] sm:$0xff] }
 0xd4e   : > { %2861 = vmatpush1.msra.mxu0 %v12295_v51  ;;  %2932 = vmatpush1.msra.mxu1 %v12296_v63  ;;  %v7545_v51 = vld [vmem:[#allocation11 + $0x178] sm:$0xff] }
 0xd4f   : > { %2862 = vmatprep.subr.mxu0 %v12297_v4  ;;  %2933 = vmatprep.subr.mxu1 %v12298_v9 }
 0xd50   : > { %2863 = vmatpush1.msra.mxu0 %v12299_v28  ;;  %2896 = vmatprep.mubr.f32.mxu0 %v12300_v29 }
 0xd51   : > { %2934 = vmatpush1.msra.mxu1 %v12301_v30  ;;  %2967 = vmatprep.mubr.f32.mxu1 %v12300_v29 }
 0xd52   : > { %3009 = vmatprep.subr.mxu0 %v7529_v31  ;;  %3080 = vmatprep.subr.mxu1 %v12302_v32  ;;  %v7546_v31 = vld [vmem:[#allocation11 + $0x160] sm:$0xff]  ;;  %v7547_v32 = vld [vmem:[#allocation11 + $0x170] sm:$0xff] }
 0xdf1   : > { %v2721_v34 = vpop.f32.mrf.mxu0  ;;  %v2792_v40 = vpop.f32.mrf.mxu1 }
 0xdf2   : > { %v2797_v36 = vadd.f32 %v6732_v33, %v2721_v34  ;;  %v2799_v45 = vadd.f32 %v6734_v47, %v2792_v40  ;;  %v7548_v33 = vld [vmem:[#allocation11 + $0x148] sm:$0xff]  ;;  %v7549_v34 = vld [vmem:[#allocation11 + $0x158] sm:$0xff]  ;;  %v7555_v40 = vld [vmem:[#allocation11 + $0x130] sm:$0xff] }
 0xdf3   : > { %v2723_v37 = vpop.f32.mrf.mxu0  ;;  %v2794_v44 = vpop.f32.mrf.mxu1  ;;  %v7560_v47 = vld [vmem:[#allocation11 + $0xe8] sm:$0xff] }
 0xdf4   : > { %v6736_v38 = vmul.f32 -1.442695, %v2797_v36  ;;  %v2798_v39 = vadd.f32 %v6733_v35, %v2723_v37  ;;  %v2800_v46 = vadd.f32 %v6735_v42, %v2794_v44  ;;  %v7550_v35 = vld [vmem:[#allocation11 + $0x140] sm:$0xff]  ;;  %v7551_v36 = vld [vmem:[#allocation11 + $0x150] sm:$0xff]  ;;  %v7552_v37 = vld [vmem:[#allocation11 + $0x128] sm:$0xff] }
 0xdf5   : > { %v7557_v42 = vld [vmem:[#allocation11 + $0x118] sm:$0xff]  ;;  %v7558_v44 = vld [vmem:[#allocation11 + $0x100] sm:$0xff] }
 0xdf6   : > { %7097 = vpow2.f32 %v6736_v38  ;;  %v6737_v41 = vmul.f32 -1.442695, %v2798_v39  ;;  %v6738_v43 = vmul.f32 -1.442695, %v2800_v46  ;;  %v7553_v38 = vld [vmem:[#allocation11 + $0x138] sm:$0xff]  ;;  %v7554_v39 = vld [vmem:[#allocation11 + $0x120] sm:$0xff] }
 0xdf7   : > { %v7559_v46 = vld [vmem:[#allocation11 + $0x110] sm:$0xff] }
 0xdf8   : > { %7099 = vpow2.f32 %v6737_v41  ;;  %v7556_v41 = vld [vmem:[#allocation11 + $0x108] sm:$0xff] }
 0xdf9   : > { %7101 = vpow2.f32 %v6738_v43  ;;  %v7561_v43 = vld [vmem:[#allocation11 + $0xf8] sm:$0xff] }
 0xe03   : > { %v7098_v10 = vpop.eup %7097 }
 0xe04   : > { %v2804_v6 = vadd.f32 1.0, %v7098_v10  ;;  %v7562_v10 = vld [vmem:[#allocation11 + $0xe0] sm:$0xff] }
 0xe05   : > { %v7100_v21 = vpop.eup %7099 }
 0xe06   : > { %7103 = vrcp.f32 %v2804_v6  ;;  %v2810_v59 = vadd.f32 1.0, %v7100_v21  ;;  %v7102_v60 = vpop.eup %7101  ;;  %v7564_v6 = vld [vmem:[#allocation11 + $0xc8] sm:$0xff]  ;;  %v7565_v21 = vld [vmem:[#allocation11 + $0xd8] sm:$0xff] }
 0xe07   : > { %7105 = vtanh.f32 %v2799_v45  ;;  %v2817_v55 = vadd.f32 1.0, %v7102_v60  ;;  %v7563_v45 = vld [vmem:[#allocation11 + $0xf0] sm:$0xff] }
 0xe08   : > { %7107 = vrcp.f32 %v2810_v59  ;;  %v7566_v59 = vld [vmem:[#allocation11 + $0xc0] sm:$0xff]  ;;  %v7567_v60 = vld [vmem:[#allocation11 + $0xd0] sm:$0xff] }
 0xe09   : > { %7109 = vrcp.f32 %v2817_v55  ;;  %v7571_v55 = vld [vmem:[#allocation11 + $0x80] sm:$0xff] }
 0xe13   : > { %v7104_v1 = vpop.eup %7103 }
 0xe14   : > { %v7106_v25 = vpop.eup %7105 }
 0xe15   : > { %v7108_v13 = vpop.eup %7107  ;;  %v2821_v2 = vmul.f32 %v7106_v25, %v7104_v1  ;;  %v7568_v1 = vld [vmem:[#allocation11 + $0xa8] sm:$0xff]  ;;  %v7569_v25 = vld [vmem:[#allocation11 + $0xa0] sm:$0xff] }
 0xe16   : > { %v2820_v18 = vmul.f32 %v7108_v13, %v9593_v62  ;;  %v7110_v14 = vpop.eup %7109  ;;  %v7536_v62 = vld [vmem:[#allocation11 + $0x1a8] sm:$0xff] }
 0xe17   : > { %v7570_v13 = vld [vmem:[#allocation11 + $0x88] sm:$0xff] }
 0xe18   : > { %v9670_v26 = vadd.f32 %v2821_v2, %v2820_v18  ;;  %v7572_v2 = vld [vmem:[#allocation11 + $0x68] sm:$0xff]  ;;  %v7573_v18 = vld [vmem:[#allocation11 + $0x60] sm:$0xff] }
 0xe1a   : > { %7111 = vtanh.f32 %v9670_v26 }
 0xe27   : > { %v7112_v27 = vpop.eup %7111 }
 0xe28   : > { %v9673_v23 = vmul.f32 %v7112_v27, %v7110_v14  ;;  %v6742_v27 = vld [vmem:[%s8119_s15 + $0x1d8] sm:$0xff] }
 0xe2a   : > { %2897 = vmatmul.mubr.f32.vlgmr.msra.gmra.mxu0 %v9673_v23  ;;  %2968 = vmatmul.mubr.f32.vlgmr.msra.gmra.mxu1 %v9673_v23 }
 0xe2b   : > { %3010 = vmatpush1.msra.mxu0 %v7530_v56  ;;  %3081 = vmatpush1.msra.mxu1 %v7531_v12 }
 0xe2c   : > { %3011 = vmatprep.subr.mxu0 %v7532_v0  ;;  %3082 = vmatprep.subr.mxu1 %v7533_v54  ;;  %v6741_v0 = vld [vmem:[%s8119_s15 + $0x1d0] sm:$0xff] }
 0xe2d   : > { %3012 = vmatpush1.msra.mxu0 %v7534_v24  ;;  %3083 = vmatpush1.msra.mxu1 %v7535_v16 }
 0xe2e   : > { %3013 = vmatprep.subr.mxu0 %v7536_v62  ;;  %3084 = vmatprep.subr.mxu1 %v7537_v53 }
 0xe2f   : > { %3014 = vmatpush1.msra.mxu0 %v7538_v7  ;;  %3085 = vmatpush1.msra.mxu1 %v7539_v8 }
 0xe30   : > { %3015 = vmatprep.subr.mxu0 %v7540_v49  ;;  %3086 = vmatprep.subr.mxu1 %v7541_v20 }
 0xe31   : > { %3016 = vmatpush1.msra.mxu0 %v7542_v3  ;;  %3087 = vmatpush1.msra.mxu1 %v7543_v15 }
 0xe32   : > { %3017 = vmatprep.subr.mxu0 %v7544_v58  ;;  %3088 = vmatprep.subr.mxu1 %v7545_v51 }
 0xe33   : > { %3018 = vmatpush1.msra.mxu0 %v7546_v31  ;;  %3089 = vmatpush1.msra.mxu1 %v7547_v32 }
 0xe34   : > { %3019 = vmatprep.subr.mxu0 %v7548_v33  ;;  %3090 = vmatprep.subr.mxu1 %v7549_v34 }
 0xe35   : > { %3020 = vmatpush1.msra.mxu0 %v7550_v35  ;;  %3091 = vmatpush1.msra.mxu1 %v7551_v36  ;;  %v3259_v35 = vld [vmem:[#allocation13 + $0x1e0] sm:$0xff]  ;;  %v3261_v36 = vld [vmem:[#allocation13 + $0x1f0] sm:$0xff] }
 0xe36   : > { %3021 = vmatprep.subr.mxu0 %v7552_v37  ;;  %3092 = vmatprep.subr.mxu1 %v7553_v38  ;;  %v3256_v37 = vld [vmem:[#allocation13 + $0x1c8] sm:$0xff]  ;;  %v3258_v38 = vld [vmem:[#allocation13 + $0x1d8] sm:$0xff] }
 0xe37   : > { %3022 = vmatpush1.msra.mxu0 %v7554_v39  ;;  %3093 = vmatpush1.msra.mxu1 %v7555_v40  ;;  %v3255_v39 = vld [vmem:[#allocation13 + $0x1c0] sm:$0xff]  ;;  %v3257_v40 = vld [vmem:[#allocation13 + $0x1d0] sm:$0xff] }
 0xe38   : > { %3023 = vmatprep.subr.mxu0 %v7556_v41  ;;  %3094 = vmatprep.subr.mxu1 %v7557_v42  ;;  %v3254_v41 = vld [vmem:[#allocation13 + $0x1b8] sm:$0xff]  ;;  %v3251_v42 = vld [vmem:[#allocation13 + $0x1a0] sm:$0xff] }
 0xe39   : > { %3024 = vmatpush1.msra.mxu0 %v7558_v44  ;;  %3095 = vmatpush1.msra.mxu1 %v7559_v46  ;;  %v3253_v44 = vld [vmem:[#allocation13 + $0x1b0] sm:$0xff]  ;;  %v3248_v46 = vld [vmem:[#allocation13 + $0x188] sm:$0xff] }
 0xe3a   : > { %3025 = vmatprep.subr.mxu0 %v7560_v47  ;;  %3096 = vmatprep.subr.mxu1 %v7561_v43  ;;  %v3250_v47 = vld [vmem:[#allocation13 + $0x198] sm:$0xff]  ;;  %v3247_v43 = vld [vmem:[#allocation13 + $0x180] sm:$0xff] }
 0xe3b   : > { %3026 = vmatpush1.msra.mxu0 %v7562_v10  ;;  %3097 = vmatpush1.msra.mxu1 %v7563_v45  ;;  %v3249_v10 = vld [vmem:[#allocation13 + $0x190] sm:$0xff]  ;;  %v3244_v45 = vld [vmem:[#allocation13 + $0x168] sm:$0xff] }
 0xe3c   : > { %3027 = vmatprep.subr.mxu0 %v7564_v6  ;;  %3098 = vmatprep.subr.mxu1 %v7565_v21  ;;  %v3246_v6 = vld [vmem:[#allocation13 + $0x178] sm:$0xff]  ;;  %v3243_v21 = vld [vmem:[#allocation13 + $0x160] sm:$0xff] }
 0xe3d   : > { %3028 = vmatpush1.msra.mxu0 %v7566_v59  ;;  %3099 = vmatpush1.msra.mxu1 %v7567_v60  ;;  %v3245_v59 = vld [vmem:[#allocation13 + $0x170] sm:$0xff]  ;;  %v3240_v60 = vld [vmem:[#allocation13 + $0x148] sm:$0xff] }
 0xe3e   : > { %3029 = vmatprep.subr.mxu0 %v7568_v1  ;;  %3100 = vmatprep.subr.mxu1 %v9377_v22  ;;  %v7574_v22 = vld [vmem:[#allocation11 + $0x48] sm:$0xff]  ;;  %v3242_v1 = vld [vmem:[#allocation13 + $0x158] sm:$0xff] }
 0xe3f   : > { %3030 = vmatpush1.msra.mxu0 %v7569_v25  ;;  %3101 = vmatpush1.msra.mxu1 %v9381_v50  ;;  %v7575_v50 = vld [vmem:[#allocation11 + $0x40] sm:$0xff] }
 0xe40   : > { %3031 = vmatprep.subr.mxu0 %v7570_v13  ;;  %3102 = vmatprep.subr.mxu1 %v9385_v52  ;;  %v7576_v52 = vld [vmem:[#allocation11 + $0x28] sm:$0xff]  ;;  %v3239_v25 = vld [vmem:[#allocation13 + $0x140] sm:$0xff]  ;;  %v3241_v13 = vld [vmem:[#allocation13 + $0x150] sm:$0xff] }
 0xe41   : > { %3032 = vmatpush1.msra.mxu0 %v7571_v55  ;;  %3103 = vmatpush1.msra.mxu1 %v12284_v17  ;;  %v7577_v17 = vld [vmem:[#allocation11 + $0x20] sm:$0xff]  ;;  %v3236_v55 = vld [vmem:[#allocation13 + $0x128] sm:$0xff] }
 0xe42   : > { %3033 = vmatprep.subr.mxu0 %v7572_v2  ;;  %3104 = vmatprep.subr.mxu1 %v12286_v48  ;;  %v3260_v48 = vld [vmem:[#allocation13 + $0x1e8] sm:$0xff]  ;;  %v3238_v2 = vld [vmem:[#allocation13 + $0x138] sm:$0xff] }
 0xe43   : > { %3034 = vmatpush1.msra.mxu0 %v7573_v18  ;;  %3105 = vmatpush1.msra.mxu1 %v12288_v19  ;;  %v3262_v19 = vld [vmem:[#allocation13 + $0x1f8] sm:$0xff]  ;;  %v3235_v18 = vld [vmem:[#allocation13 + $0x120] sm:$0xff] }
 0xe44   : > { %3035 = vmatprep.subr.mxu0 %v7574_v22  ;;  %3106 = vmatprep.subr.mxu1 %v12290_v11  ;;  %v6739_v11 = vld [vmem:[%s8119_s15 + $0x1c0] sm:$0xff]  ;;  %v3237_v22 = vld [vmem:[#allocation13 + $0x130] sm:$0xff] }
 0xe45   : > { %3036 = vmatpush1.msra.mxu0 %v7575_v50  ;;  %3107 = vmatpush1.msra.mxu1 %v12292_v5  ;;  %v3232_v50 = vld [vmem:[#allocation13 + $0x108] sm:$0xff] }
 0xe46   : > { %3037 = vmatprep.subr.mxu0 %v7576_v52  ;;  %3108 = vmatprep.subr.mxu1 %v12294_v61  ;;  %v6740_v61 = vld [vmem:[%s8119_s15 + $0x1c8] sm:$0xff]  ;;  %v3234_v52 = vld [vmem:[#allocation13 + $0x118] sm:$0xff] }
 0xe47   : > { %3038 = vmatpush1.msra.mxu0 %v7577_v17  ;;  %3109 = vmatpush1.msra.mxu1 %v12296_v63  ;;  %v3231_v17 = vld [vmem:[#allocation13 + $0x100] sm:$0xff] }
 0xe48   : > { %3039 = vmatprep.subr.mxu0 %v12297_v4  ;;  %3110 = vmatprep.subr.mxu1 %v12298_v9 }
 0xe49   : > { %3040 = vmatpush1.msra.mxu0 %v12299_v28  ;;  %3111 = vmatpush1.msra.mxu1 %v12301_v30 }
 0xe4a   : > { %3073 = vmatprep.mubr.f32.mxu0 %v12300_v29  ;;  %3144 = vmatprep.mubr.f32.mxu1 %v12300_v29 }
 0xe4b   : > { %3285 = vmatprep.subr.mxu0 %v3260_v48  ;;  %3446 = vmatprep.subr.mxu1 %v3262_v19  ;;  %v3233_v48 = vld [vmem:[#allocation13 + $0x110] sm:$0xff]  ;;  %v3228_v19 = vld [vmem:[#allocation13 + $0xe8] sm:$0xff] }
 0xeea   : > { %v2898_v5 = vpop.f32.mrf.mxu0  ;;  %v2969_v28 = vpop.f32.mrf.mxu1 }
 0xeeb   : > { %v2974_v63 = vadd.f32 %v6739_v11, %v2898_v5  ;;  %v2976_v16 = vadd.f32 %v6741_v0, %v2969_v28  ;;  %v3230_v11 = vld [vmem:[#allocation13 + $0xf8] sm:$0xff]  ;;  %v3227_v5 = vld [vmem:[#allocation13 + $0xe0] sm:$0xff]  ;;  %v3220_v28 = vld [vmem:[#allocation13 + $0xa8] sm:$0xff] }
 0xeec   : > { %v2900_v4 = vpop.f32.mrf.mxu0  ;;  %v2971_v56 = vpop.f32.mrf.mxu1  ;;  %v3218_v0 = vld [vmem:[#allocation13 + $0x98] sm:$0xff] }
 0xeed   : > { %v6743_v9 = vmul.f32 -1.442695, %v2974_v63  ;;  %v2975_v14 = vadd.f32 %v6740_v61, %v2900_v4  ;;  %v2977_v12 = vadd.f32 %v6742_v27, %v2971_v56  ;;  %v3229_v61 = vld [vmem:[#allocation13 + $0xf0] sm:$0xff]  ;;  %v3224_v63 = vld [vmem:[#allocation13 + $0xc8] sm:$0xff]  ;;  %v3226_v4 = vld [vmem:[#allocation13 + $0xd8] sm:$0xff] }
 0xeee   : > { %v3219_v27 = vld [vmem:[#allocation13 + $0xa0] sm:$0xff]  ;;  %v3221_v56 = vld [vmem:[#allocation13 + $0xb0] sm:$0xff] }
 0xeef   : > { %7113 = vpow2.f32 %v6743_v9  ;;  %v6744_v30 = vmul.f32 -1.442695, %v2975_v14  ;;  %v6745_v54 = vmul.f32 -1.442695, %v2977_v12  ;;  %v3223_v9 = vld [vmem:[#allocation13 + $0xc0] sm:$0xff]  ;;  %v3225_v14 = vld [vmem:[#allocation13 + $0xd0] sm:$0xff] }
 0xef0   : > { %v3216_v12 = vld [vmem:[#allocation13 + $0x88] sm:$0xff] }
 0xef1   : > { %7115 = vpow2.f32 %v6744_v30  ;;  %v3222_v30 = vld [vmem:[#allocation13 + $0xb8] sm:$0xff] }
 0xef2   : > { %7117 = vpow2.f32 %v6745_v54  ;;  %v3215_v54 = vld [vmem:[#allocation13 + $0x80] sm:$0xff] }
 0xefc   : > { %v7114_v24 = vpop.eup %7113 }
 0xefd   : > { %v2981_v62 = vadd.f32 1.0, %v7114_v24  ;;  %v3217_v24 = vld [vmem:[#allocation13 + $0x90] sm:$0xff] }
 0xefe   : > { %v7116_v53 = vpop.eup %7115 }
 0xeff   : > { %7119 = vrcp.f32 %v2981_v62  ;;  %v2987_v7 = vadd.f32 1.0, %v7116_v53  ;;  %v7118_v8 = vpop.eup %7117  ;;  %v3214_v62 = vld [vmem:[#allocation13 + $0x78] sm:$0xff]  ;;  %v3211_v53 = vld [vmem:[#allocation13 + $0x60] sm:$0xff] }
 0xf00   : > { %7121 = vtanh.f32 %v2976_v16  ;;  %v2994_v15 = vadd.f32 1.0, %v7118_v8  ;;  %v3212_v16 = vld [vmem:[#allocation13 + $0x68] sm:$0xff] }
 0xf01   : > { %7123 = vrcp.f32 %v2987_v7  ;;  %v3213_v7 = vld [vmem:[#allocation13 + $0x70] sm:$0xff]  ;;  %v3208_v8 = vld [vmem:[#allocation13 + $0x48] sm:$0xff] }
 0xf02   : > { %7125 = vrcp.f32 %v2994_v15  ;;  %v3204_v15 = vld [vmem:[#allocation13 + $0x28] sm:$0xff] }
 0xf0c   : > { %v7120_v49 = vpop.eup %7119 }
 0xf0d   : > { %v7122_v20 = vpop.eup %7121 }
 0xf0e   : > { %v7124_v3 = vpop.eup %7123  ;;  %v2998_v58 = vmul.f32 %v7122_v20, %v7120_v49  ;;  %v3210_v49 = vld [vmem:[#allocation13 + $0x58] sm:$0xff]  ;;  %v3207_v20 = vld [vmem:[#allocation13 + $0x40] sm:$0xff] }
 0xf0f   : > { %v2997_v51 = vmul.f32 %v7124_v3, %v9670_v26  ;;  %v7126_v32 = vpop.eup %7125  ;;  %v3252_v26 = vld [vmem:[#allocation13 + $0x1a8] sm:$0xff]  ;;  %v3209_v3 = vld [vmem:[#allocation13 + $0x50] sm:$0xff] }
 0xf11   : > { %v9698_v31 = vadd.f32 %v2998_v58, %v2997_v51  ;;  %v3206_v58 = vld [vmem:[#allocation13 + $0x38] sm:$0xff]  ;;  %v3203_v51 = vld [vmem:[#allocation13 + $0x20] sm:$0xff] }
 0xf13   : > { %7127 = vtanh.f32 %v9698_v31 }
 0xf20   : > { %v7128_v33 = vpop.eup %7127 }
 0xf21   : > { %v9701_v34 = vmul.f32 %v7128_v33, %v7126_v32  ;;  %v3205_v32 = vld [vmem:[#allocation13 + $0x30] sm:$0xff]  ;;  %v3200_v33 = vld [vmem:[#allocation13 + $0x8] sm:$0xff] }
 0xf23   : > { %3074 = vmatmul.mubr.f32.vlgmr.msra.gmra.mxu0 %v9701_v34  ;;  %3145 = vmatmul.mubr.f32.vlgmr.msra.gmra.mxu1 %v9701_v34 }
 0xf24   : > { %3286 = vmatpush1.msra.mxu0 %v3259_v35  ;;  %3447 = vmatpush1.msra.mxu1 %v3261_v36  ;;  %v3202_v35 = vld [vmem:[#allocation13 + $0x18] sm:$0xff]  ;;  %v3199_v36 = vld [vmem:[#allocation13] sm:$0xff] }
 0xf25   : > { %3287 = vmatprep.subr.mxu0 %v3256_v37  ;;  %3448 = vmatprep.subr.mxu1 %v3258_v38  ;;  %v3201_v37 = vld [vmem:[#allocation13 + $0x10] sm:$0xff]  ;;  %v9707_v38 = vld [vmem:[#allocation14 + $0x1e8] sm:$0xff] }
 0xf26   : > { %3288 = vmatpush1.msra.mxu0 %v3255_v39  ;;  %3449 = vmatpush1.msra.mxu1 %v3257_v40  ;;  %12303 = vst [vmem:[#allocation24_spill] sm:$0xff] %v9707_v38  ;;  %v12304_v39 = vld [vmem:[#allocation41_spill] sm:$0xff]  ;;  %v9711_v40 = vld [vmem:[#allocation14 + $0x1e0] sm:$0xff] }
 0xf27   : > { %3289 = vmatprep.subr.mxu0 %v3252_v26  ;;  %3450 = vmatprep.subr.mxu1 %v3254_v41  ;;  %v12305_v26 = vld [vmem:[#allocation42_spill] sm:$0xff]  ;;  %v12306_v41 = vld [vmem:[#allocation21_spill] sm:$0xff] }
 0xf28   : > { %3290 = vmatpush1.msra.mxu0 %v3251_v42  ;;  %3451 = vmatpush1.msra.mxu1 %v3253_v44  ;;  %v12307_v42 = vld [vmem:[#allocation29_spill] sm:$0xff]  ;;  %v12308_v44 = vld [vmem:[#allocation28_spill] sm:$0xff] }
 0xf29   : > { %3291 = vmatprep.subr.mxu0 %v3248_v46  ;;  %3452 = vmatprep.subr.mxu1 %v3250_v47  ;;  %v12309_v46 = vld [vmem:[#allocation46_spill] sm:$0xff]  ;;  %v12310_v47 = vld [vmem:[#allocation47_spill] sm:$0xff] }
 0xf2a   : > { %3292 = vmatpush1.msra.mxu0 %v3247_v43  ;;  %3453 = vmatpush1.msra.mxu1 %v3249_v10  ;;  %v12311_v43 = vld [vmem:[#allocation23_spill] sm:$0xff]  ;;  %v12312_v10 = vld [vmem:[#allocation37_spill] sm:$0xff] }
 0xf2b   : > { %3293 = vmatprep.subr.mxu0 %v3244_v45  ;;  %3454 = vmatprep.subr.mxu1 %v3246_v6  ;;  %v12313_v45 = vld [vmem:[#allocation35_spill] sm:$0xff] }
 0xf2c   : > { %3294 = vmatpush1.msra.mxu0 %v3243_v21  ;;  %3455 = vmatpush1.msra.mxu1 %v3245_v59  ;;  %v12314_v6 = vld [vmem:[#allocation51_spill] sm:$0xff]  ;;  %v12315_v21 = vld [vmem:[#allocation52_spill] sm:$0xff]  ;;  %v9776_v59 = vld [vmem:[#allocation14 + $0x1f0] sm:$0xff] }
 0xf2d   : > { %3295 = vmatprep.subr.mxu0 %v3240_v60  ;;  %3456 = vmatprep.subr.mxu1 %v3242_v1  ;;  %v9778_v60 = vld [vmem:[#allocation14 + $0x1c8] sm:$0xff]  ;;  %v9784_v1 = vld [vmem:[#allocation14 + $0x1c0] sm:$0xff] }
 0xf2e   : > { %3296 = vmatpush1.msra.mxu0 %v3239_v25  ;;  %3457 = vmatpush1.msra.mxu1 %v3241_v13  ;;  %v9790_v25 = vld [vmem:[#allocation14 + $0x1a8] sm:$0xff]  ;;  %v9793_v13 = vld [vmem:[#allocation14 + $0x1b8] sm:$0xff] }
 0xf2f   : > { %3297 = vmatprep.subr.mxu0 %v3236_v55  ;;  %3458 = vmatprep.subr.mxu1 %v3238_v2  ;;  %v9796_v55 = vld [vmem:[#allocation14 + $0x1a0] sm:$0xff]  ;;  %v9799_v2 = vld [vmem:[#allocation14 + $0x1b0] sm:$0xff] }
 0xf30   : > { %3298 = vmatpush1.msra.mxu0 %v3235_v18  ;;  %3459 = vmatpush1.msra.mxu1 %v3237_v22  ;;  %v9802_v18 = vld [vmem:[#allocation14 + $0x188] sm:$0xff]  ;;  %v9805_v22 = vld [vmem:[#allocation14 + $0x198] sm:$0xff] }
 0xf31   : > { %3299 = vmatprep.subr.mxu0 %v3232_v50  ;;  %3460 = vmatprep.subr.mxu1 %v3234_v52  ;;  %v9808_v50 = vld [vmem:[#allocation14 + $0x180] sm:$0xff]  ;;  %v9810_v52 = vld [vmem:[#allocation14 + $0x168] sm:$0xff] }
 0xf32   : > { %3300 = vmatpush1.msra.mxu0 %v3231_v17  ;;  %3461 = vmatpush1.msra.mxu1 %v3233_v48  ;;  %v9812_v17 = vld [vmem:[#allocation14 + $0x160] sm:$0xff]  ;;  %v9816_v48 = vld [vmem:[#allocation14 + $0x148] sm:$0xff] }
 0xf33   : > { %3301 = vmatprep.subr.mxu0 %v3228_v19  ;;  %3462 = vmatprep.subr.mxu1 %v3230_v11  ;;  %v9819_v19 = vld [vmem:[#allocation14 + $0x140] sm:$0xff]  ;;  %v9822_v11 = vld [vmem:[#allocation14 + $0x128] sm:$0xff] }
 0xf34   : > { %3302 = vmatpush1.msra.mxu0 %v3227_v5  ;;  %3463 = vmatpush1.msra.mxu1 %v3229_v61  ;;  %v9824_v5 = vld [vmem:[#allocation14 + $0x190] sm:$0xff]  ;;  %v9827_v61 = vld [vmem:[#allocation14 + $0x120] sm:$0xff] }
 0xf35   : > { %3303 = vmatprep.subr.mxu0 %v3224_v63  ;;  %3464 = vmatprep.subr.mxu1 %v3226_v4  ;;  %v9830_v63 = vld [vmem:[#allocation14 + $0x178] sm:$0xff]  ;;  %v9832_v4 = vld [vmem:[#allocation14 + $0x170] sm:$0xff] }
 0xf36   : > { %3304 = vmatpush1.msra.mxu0 %v3223_v9  ;;  %3465 = vmatpush1.msra.mxu1 %v3225_v14  ;;  %v9835_v9 = vld [vmem:[#allocation14 + $0x108] sm:$0xff]  ;;  %v9838_v14 = vld [vmem:[#allocation14 + $0x158] sm:$0xff] }
 0xf37   : > { %3305 = vmatprep.subr.mxu0 %v3220_v28  ;;  %3466 = vmatprep.subr.mxu1 %v3222_v30  ;;  %v9840_v28 = vld [vmem:[#allocation14 + $0x150] sm:$0xff]  ;;  %v9843_v30 = vld [vmem:[#allocation14 + $0x100] sm:$0xff] }
 0xf38   : > { %3306 = vmatpush1.msra.mxu0 %v3219_v27  ;;  %3467 = vmatpush1.msra.mxu1 %v3221_v56  ;;  %v9846_v27 = vld [vmem:[#allocation14 + $0x138] sm:$0xff]  ;;  %v9849_v56 = vld [vmem:[#allocation14 + $0xe8] sm:$0xff] }
 0xf39   : > { %3307 = vmatprep.subr.mxu0 %v3216_v12  ;;  %3468 = vmatprep.subr.mxu1 %v3218_v0  ;;  %v9852_v12 = vld [vmem:[#allocation14 + $0x130] sm:$0xff]  ;;  %v9855_v0 = vld [vmem:[#allocation14 + $0xe0] sm:$0xff] }
 0xf3a   : > { %3308 = vmatpush1.msra.mxu0 %v3215_v54  ;;  %3469 = vmatpush1.msra.mxu1 %v3217_v24  ;;  %v9858_v54 = vld [vmem:[#allocation14 + $0x118] sm:$0xff]  ;;  %v9861_v24 = vld [vmem:[#allocation14 + $0xc8] sm:$0xff] }
 0xf3b   : > { %3309 = vmatprep.subr.mxu0 %v3212_v16  ;;  %3470 = vmatprep.subr.mxu1 %v3214_v62  ;;  %v9864_v16 = vld [vmem:[#allocation14 + $0x110] sm:$0xff]  ;;  %v9867_v62 = vld [vmem:[#allocation14 + $0xc0] sm:$0xff] }
 0xf3c   : > { %3310 = vmatpush1.msra.mxu0 %v3211_v53  ;;  %3471 = vmatpush1.msra.mxu1 %v3213_v7  ;;  %v9870_v53 = vld [vmem:[#allocation14 + $0xf8] sm:$0xff]  ;;  %v9873_v7 = vld [vmem:[#allocation14 + $0xa8] sm:$0xff] }
 0xf3d   : > { %3311 = vmatprep.subr.mxu0 %v3208_v8  ;;  %3472 = vmatprep.subr.mxu1 %v3210_v49  ;;  %v9876_v8 = vld [vmem:[#allocation14 + $0xf0] sm:$0xff]  ;;  %v9879_v49 = vld [vmem:[#allocation14 + $0xa0] sm:$0xff] }
 0xf3e   : > { %3312 = vmatpush1.msra.mxu0 %v3207_v20  ;;  %3473 = vmatpush1.msra.mxu1 %v3209_v3  ;;  %v9882_v20 = vld [vmem:[#allocation14 + $0xd8] sm:$0xff]  ;;  %v9885_v3 = vld [vmem:[#allocation14 + $0x88] sm:$0xff] }
 0xf3f   : > { %3313 = vmatprep.subr.mxu0 %v3204_v15  ;;  %3474 = vmatprep.subr.mxu1 %v3206_v58  ;;  %12317 = vst [vmem:[#allocation34_spill] sm:$0xff] %v9885_v3  ;;  %v9888_v15 = vld [vmem:[#allocation14 + $0xd0] sm:$0xff]  ;;  %v9891_v58 = vld [vmem:[#allocation14 + $0x80] sm:$0xff] }
 0xf40   : > { %3314 = vmatpush1.msra.mxu0 %v3203_v51  ;;  %3475 = vmatpush1.msra.mxu1 %v3205_v32  ;;  %12318 = vst [vmem:[#allocation30_spill] sm:$0xff] %v9891_v58  ;;  %v9894_v51 = vld [vmem:[#allocation14 + $0xb8] sm:$0xff]  ;;  %v9897_v32 = vld [vmem:[#allocation14 + $0x68] sm:$0xff] }
 0xf41   : > { %3315 = vmatprep.subr.mxu0 %v3200_v33  ;;  %3476 = vmatprep.subr.mxu1 %v3202_v35  ;;  %12319 = vst [vmem:[#allocation27_spill] sm:$0xff] %v9897_v32  ;;  %v9900_v33 = vld [vmem:[#allocation14 + $0xb0] sm:$0xff]  ;;  %v9903_v35 = vld [vmem:[#allocation14 + $0x60] sm:$0xff] }
 0xf42   : > { %3316 = vmatpush1.msra.mxu0 %v3199_v36  ;;  %3349 = vmatprep.mubr.f32.mxu0 %v12300_v29  ;;  %12320 = vst [vmem:[#allocation25_spill] sm:$0xff] %v9903_v35  ;;  %v9906_v36 = vld [vmem:[#allocation14 + $0x98] sm:$0xff] }
 0xf43   : > { %3477 = vmatpush1.msra.mxu1 %v3201_v37  ;;  %3510 = vmatprep.mubr.f32.mxu1 %v12300_v29  ;;  %12321 = vst [vmem:[#allocation40_spill] sm:$0xff] %v9906_v36  ;;  %v9909_v37 = vld [vmem:[#allocation14 + $0x48] sm:$0xff] }
 0xf44   : > { %3350 = vmatmul.mubr.f32.vlgmr.msra.gmra.mxu0 %v12304_v39  ;;  %3511 = vmatmul.mubr.f32.vlgmr.msra.gmra.mxu1 %v12304_v39  ;;  %12322 = vst [vmem:[#allocation38_spill] sm:$0xff] %v9909_v37  ;;  %v9912_v39 = vld [vmem:[#allocation14 + $0x90] sm:$0xff] }
 0xf45   : > { %3355 = vmatprep.mubr.f32.mxu0 %v12300_v29  ;;  %3516 = vmatprep.mubr.f32.mxu1 %v12300_v29  ;;  %12323 = vst [vmem:[#allocation22_spill] sm:$0xff] %v9912_v39 }
 0xf46   : > { %3741 = vmatprep.subr.mxu0 %v9707_v38 }
 0xf47   : > { %3742 = vmatpush1.msra.mxu0 %v9711_v40 }
 0xf48   : > { %3356 = vmatmul.mubr.f32.gmra.mxu0 %v12305_v26  ;;  %3517 = vmatmul.mubr.f32.gmra.mxu1 %v12305_v26  ;;  %v9915_v26 = vld [vmem:[#allocation14 + $0x40] sm:$0xff] }
 0xf49   : > { %3361 = vmatprep.mubr.f32.mxu0 %v12300_v29  ;;  %3522 = vmatprep.mubr.f32.mxu1 %v12300_v29  ;;  %12324 = vst [vmem:[#allocation33_spill] sm:$0xff] %v9915_v26 }
 0xf4a   : > { %3743 = vmatprep.subr.mxu0 %v9778_v60 }
 0xf4b   : > { %3744 = vmatpush1.msra.mxu0 %v9784_v1 }
 0xf4c   : > { %3362 = vmatmul.mubr.f32.gmra.mxu0 %v12306_v41  ;;  %3523 = vmatmul.mubr.f32.gmra.mxu1 %v12306_v41  ;;  %v9918_v41 = vld [vmem:[#allocation14 + $0x78] sm:$0xff] }
 0xf4d   : > { %3367 = vmatprep.mubr.f32.mxu0 %v12300_v29  ;;  %3528 = vmatprep.mubr.f32.mxu1 %v12300_v29  ;;  %12325 = vst [vmem:[#allocation43_spill] sm:$0xff] %v9918_v41 }
 0xf4e   : > { %3745 = vmatprep.subr.mxu0 %v9790_v25 }
 0xf4f   : > { %3746 = vmatpush1.msra.mxu0 %v9796_v55 }
 0xf50   : > { %3368 = vmatmul.mubr.f32.gmra.mxu0 %v12307_v42  ;;  %3529 = vmatmul.mubr.f32.gmra.mxu1 %v12307_v42  ;;  %v9922_v42 = vld [vmem:[#allocation14 + $0x28] sm:$0xff] }
 0xf51   : > { %3373 = vmatprep.mubr.f32.mxu0 %v12300_v29  ;;  %3534 = vmatprep.mubr.f32.mxu1 %v12300_v29  ;;  %12326 = vst [vmem:[#allocation32_spill] sm:$0xff] %v9922_v42 }
 0xf52   : > { %3747 = vmatprep.subr.mxu0 %v9802_v18 }
 0xf53   : > { %3748 = vmatpush1.msra.mxu0 %v9808_v50 }
 0xf54   : > { %3374 = vmatmul.mubr.f32.gmra.mxu0 %v12308_v44  ;;  %3535 = vmatmul.mubr.f32.gmra.mxu1 %v12308_v44  ;;  %v9924_v44 = vld [vmem:[#allocation14 + $0x70] sm:$0xff] }
 0xf55   : > { %3379 = vmatprep.mubr.f32.mxu0 %v12300_v29  ;;  %3540 = vmatprep.mubr.f32.mxu1 %v12300_v29  ;;  %12327 = vst [vmem:[#allocation44_spill] sm:$0xff] %v9924_v44 }
 0xf56   : > { %3749 = vmatprep.subr.mxu0 %v9810_v52 }
 0xf57   : > { %3750 = vmatpush1.msra.mxu0 %v9812_v17 }
 0xf58   : > { %3380 = vmatmul.mubr.f32.gmra.mxu0 %v12309_v46  ;;  %3541 = vmatmul.mubr.f32.gmra.mxu1 %v12309_v46  ;;  %v9928_v46 = vld [vmem:[#allocation14 + $0x20] sm:$0xff] }
 0xf59   : > { %3385 = vmatprep.mubr.f32.mxu0 %v12300_v29  ;;  %3546 = vmatprep.mubr.f32.mxu1 %v12300_v29  ;;  %12328 = vst [vmem:[#allocation26_spill] sm:$0xff] %v9928_v46 }
 0xf5a   : > { %3751 = vmatprep.subr.mxu0 %v9816_v48 }
 0xf5b   : > { %3752 = vmatpush1.msra.mxu0 %v9819_v19 }
 0xf5c   : > { %3386 = vmatmul.mubr.f32.gmra.mxu0 %v12310_v47  ;;  %3547 = vmatmul.mubr.f32.gmra.mxu1 %v12310_v47  ;;  %v9930_v47 = vld [vmem:[#allocation14 + $0x58] sm:$0xff] }
 0xf5d   : > { %3391 = vmatprep.mubr.f32.mxu0 %v12300_v29  ;;  %3552 = vmatprep.mubr.f32.mxu1 %v12300_v29  ;;  %12329 = vst [vmem:[#allocation45_spill] sm:$0xff] %v9930_v47 }
 0xf5e   : > { %3753 = vmatprep.subr.mxu0 %v9822_v11 }
 0xf5f   : > { %3754 = vmatpush1.msra.mxu0 %v9827_v61 }
 0xf60   : > { %3392 = vmatmul.mubr.f32.gmra.mxu0 %v12311_v43  ;;  %3553 = vmatmul.mubr.f32.gmra.mxu1 %v12311_v43  ;;  %v9934_v43 = vld [vmem:[#allocation14 + $0x8] sm:$0xff] }
 0xf61   : > { %3397 = vmatprep.mubr.f32.mxu0 %v12300_v29  ;;  %3558 = vmatprep.mubr.f32.mxu1 %v12300_v29  ;;  %12330 = vst [vmem:[#allocation36_spill] sm:$0xff] %v9934_v43 }
 0xf62   : > { %3755 = vmatprep.subr.mxu0 %v9835_v9 }
 0xf63   : > { %3756 = vmatpush1.msra.mxu0 %v9843_v30 }
 0xf64   : > { %3398 = vmatmul.mubr.f32.gmra.mxu0 %v12312_v10  ;;  %3559 = vmatmul.mubr.f32.gmra.mxu1 %v12312_v10  ;;  %v9936_v10 = vld [vmem:[#allocation14 + $0x50] sm:$0xff] }
 0xf65   : > { %3403 = vmatprep.mubr.f32.mxu0 %v12300_v29  ;;  %3564 = vmatprep.mubr.f32.mxu1 %v12300_v29  ;;  %12331 = vst [vmem:[#allocation48_spill] sm:$0xff] %v9936_v10 }
 0xf66   : > { %3757 = vmatprep.subr.mxu0 %v9849_v56 }
 0xf67   : > { %3758 = vmatpush1.msra.mxu0 %v9855_v0 }
 0xf68   : > { %3404 = vmatmul.mubr.f32.gmra.mxu0 %v12313_v45  ;;  %3565 = vmatmul.mubr.f32.gmra.mxu1 %v12313_v45  ;;  %v9940_v45 = vld [vmem:[#allocation14 + $0x38] sm:$0xff] }
 0xf69   : > { %3409 = vmatprep.mubr.f32.mxu0 %v12300_v29  ;;  %3570 = vmatprep.mubr.f32.mxu1 %v12300_v29  ;;  %12332 = vst [vmem:[#allocation49_spill] sm:$0xff] %v9940_v45 }
 0xf6a   : > { %3759 = vmatprep.subr.mxu0 %v9861_v24 }
 0xf6b   : > { %3760 = vmatpush1.msra.mxu0 %v9867_v62 }
 0xf6c   : > { %3410 = vmatmul.mubr.f32.gmra.mxu0 %v12314_v6  ;;  %3571 = vmatmul.mubr.f32.gmra.mxu1 %v12314_v6  ;;  %v9944_v6 = vld [vmem:[#allocation14] sm:$0xff] }
 0xf6d   : > { %3415 = vmatprep.mubr.f32.mxu0 %v12300_v29  ;;  %3576 = vmatprep.mubr.f32.mxu1 %v12300_v29  ;;  %12333 = vst [vmem:[#allocation50_spill] sm:$0xff] %v9944_v6 }
 0xf6e   : > { %3761 = vmatprep.subr.mxu0 %v9873_v7 }
 0xf6f   : > { %3762 = vmatpush1.msra.mxu0 %v9879_v49 }
 0xf70   : > { %3416 = vmatmul.mubr.f32.gmra.mxu0 %v12315_v21  ;;  %3577 = vmatmul.mubr.f32.gmra.mxu1 %v12315_v21  ;;  %v9946_v21 = vld [vmem:[#allocation14 + $0x30] sm:$0xff] }
 0xf71   : > { %3421 = vmatprep.mubr.f32.mxu0 %v12300_v29  ;;  %3582 = vmatprep.mubr.f32.mxu1 %v12300_v29  ;;  %12334 = vst [vmem:[#allocation39_spill] sm:$0xff] %v9946_v21 }
 0xf72   : > { %3763 = vmatprep.subr.mxu0 %v9885_v3 }
 0xf73   : > { %3764 = vmatpush1.msra.mxu0 %v9891_v58 }
 0xf74   : > { %3422 = vmatmul.mubr.f32.gmra.mxu0 %v9596_v57  ;;  %3583 = vmatmul.mubr.f32.gmra.mxu1 %v9596_v57  ;;  %v9773_v57 = vld [vmem:[#allocation14 + $0x1f8] sm:$0xff] }
 0xf75   : > { %3427 = vmatprep.mubr.f32.mxu0 %v12300_v29  ;;  %3588 = vmatprep.mubr.f32.mxu1 %v12300_v29  ;;  %12316 = vst [vmem:[#allocation31_spill] sm:$0xff] %v9773_v57 }
 0xf76   : > { %3812 = vmatprep.subr.mxu1 %v9773_v57  ;;  %3765 = vmatprep.subr.mxu0 %v9897_v32 }
 0xf77   : > { %3813 = vmatpush1.msra.mxu1 %v9776_v59  ;;  %3766 = vmatpush1.msra.mxu0 %v9903_v35  ;;  %v6749_v35 = vld [vmem:[%s8119_s15 + $0x1f8] sm:$0xff] }
 0xf78   : > { %3428 = vmatmul.mubr.f32.gmra.mxu0 %v9673_v23  ;;  %3589 = vmatmul.mubr.f32.gmra.mxu1 %v9673_v23  ;;  %v9781_v23 = vld [vmem:[#allocation14 + $0x1d8] sm:$0xff] }
 0xf79   : > { %3433 = vmatprep.mubr.f32.mxu0 %v12300_v29  ;;  %3594 = vmatprep.mubr.f32.mxu1 %v12300_v29 }
 0xf7a   : > { %3814 = vmatprep.subr.mxu1 %v9781_v23  ;;  %3767 = vmatprep.subr.mxu0 %v9909_v37 }
 0xf7b   : > { %3768 = vmatpush1.msra.mxu0 %v9915_v26  ;;  %v9950_v26 = vld [vmem:[#allocation14 + $0x18] sm:$0xff] }
 0xf7c   : > { %3434 = vmatmul.mubr.f32.gmra.mxu0 %v9701_v34  ;;  %3595 = vmatmul.mubr.f32.gmra.mxu1 %v9701_v34  ;;  %v9787_v34 = vld [vmem:[#allocation14 + $0x1d0] sm:$0xff]  ;;  %12335 = vst [vmem:[#allocation41_spill] sm:$0xff] %v9950_v26 }
 0xf7d   : > { %3439 = vmatprep.mubr.f32.mxu0 %v12300_v29  ;;  %3600 = vmatprep.mubr.f32.mxu1 %v12300_v29 }
 0xf7e   : > { %3815 = vmatpush1.msra.mxu1 %v9787_v34  ;;  %3769 = vmatprep.subr.mxu0 %v9922_v42  ;;  %v9954_v42 = vld [vmem:[#allocation14 + $0x10] sm:$0xff] }
 0xf7f   : > { %3816 = vmatprep.subr.mxu1 %v9793_v13  ;;  %3770 = vmatpush1.msra.mxu0 %v9928_v46  ;;  %12336 = vst [vmem:[#allocation42_spill] sm:$0xff] %v9954_v42 }
 0xf80   : > { %3817 = vmatpush1.msra.mxu1 %v9799_v2  ;;  %3771 = vmatprep.subr.mxu0 %v9934_v43  ;;  %v6746_v43 = vld [vmem:[%s8119_s15 + $0x1e0] sm:$0xff] }
 0xf81   : > { %3818 = vmatprep.subr.mxu1 %v9805_v22  ;;  %3772 = vmatpush1.msra.mxu0 %v9944_v6 }
 0xf82   : > { %3819 = vmatpush1.msra.mxu1 %v9824_v5  ;;  %3916 = vmatprep.subr.mxu0 %v9707_v38 }
 0xf83   : > { %3820 = vmatprep.subr.mxu1 %v9830_v63 }
 0xf84   : > { %3821 = vmatpush1.msra.mxu1 %v9832_v4 }
 0xf85   : > { %3822 = vmatprep.subr.mxu1 %v9838_v14 }
 0xf86   : > { %3823 = vmatpush1.msra.mxu1 %v9840_v28 }
 0xf87   : > { %3824 = vmatprep.subr.mxu1 %v9846_v27 }
 0xf88   : > { %3825 = vmatpush1.msra.mxu1 %v9852_v12 }
 0xf89   : > { %3826 = vmatprep.subr.mxu1 %v9858_v54 }
 0xf8a   : > { %3827 = vmatpush1.msra.mxu1 %v9864_v16 }
 0xf8b   : > { %3828 = vmatprep.subr.mxu1 %v9870_v53 }
 0xf8c   : > { %3829 = vmatpush1.msra.mxu1 %v9876_v8 }
 0xf8d   : > { %3830 = vmatprep.subr.mxu1 %v9882_v20 }
 0xf8e   : > { %3831 = vmatpush1.msra.mxu1 %v9888_v15 }
 0xf8f   : > { %3832 = vmatprep.subr.mxu1 %v9894_v51 }
 0xf90   : > { %3833 = vmatpush1.msra.mxu1 %v9900_v33 }
 0xf91   : > { %3834 = vmatprep.subr.mxu1 %v9906_v36 }
 0xf92   : > { %3835 = vmatpush1.msra.mxu1 %v9912_v39 }
 0xf93   : > { %3836 = vmatprep.subr.mxu1 %v9918_v41 }
 0xf94   : > { %3837 = vmatpush1.msra.mxu1 %v9924_v44 }
 0xf95   : > { %3838 = vmatprep.subr.mxu1 %v9930_v47 }
 0xf96   : > { %3839 = vmatpush1.msra.mxu1 %v9936_v10  ;;  %v6747_v10 = vld [vmem:[%s8119_s15 + $0x1e8] sm:$0xff] }
 0xf97   : > { %3840 = vmatprep.subr.mxu1 %v9940_v45 }
 0xf98   : > { %3841 = vmatpush1.msra.mxu1 %v9946_v21 }
 0xf99   : > { %3842 = vmatprep.subr.mxu1 %v9950_v26  ;;  %v6748_v26 = vld [vmem:[%s8119_s15 + $0x1f0] sm:$0xff] }
 0xf9a   : > { %3843 = vmatpush1.msra.mxu1 %v9954_v42 }
 0xf9b   : > { %3987 = vmatprep.subr.mxu1 %v9773_v57 }
 0xfe3   : > { %v3075_v46 = vpop.f32.mrf.mxu0  ;;  %v3146_v44 = vpop.f32.mrf.mxu1 }
 0xfe4   : > { %v3151_v6 = vadd.f32 %v6746_v43, %v3075_v46  ;;  %v3153_v39 = vadd.f32 %v6748_v26, %v3146_v44  ;;  %v12343_v44 = vld [vmem:[#allocation44_spill] sm:$0xff] }
 0xfe5   : > { %v3077_v47 = vpop.f32.mrf.mxu0  ;;  %v3148_v38 = vpop.f32.mrf.mxu1 }
 0xfe6   : > { %v6750_v45 = vmul.f32 -1.442695, %v3151_v6  ;;  %v3152_v37 = vadd.f32 %v6747_v10, %v3077_v47  ;;  %v3154_v41 = vadd.f32 %v6749_v35, %v3148_v38 }
 0xfe8   : > { %7129 = vpow2.f32 %v6750_v45  ;;  %v6751_v21 = vmul.f32 -1.442695, %v3152_v37  ;;  %v6752_v32 = vmul.f32 -1.442695, %v3154_v41 }
 0xfea   : > { %7131 = vpow2.f32 %v6751_v21  ;;  %v12344_v21 = vld [vmem:[#allocation38_spill] sm:$0xff] }
 0xfeb   : > { %7133 = vpow2.f32 %v6752_v32  ;;  %v12339_v32 = vld [vmem:[#allocation22_spill] sm:$0xff] }
 0xff5   : > { %v7130_v42 = vpop.eup %7129 }
 0xff6   : > { %v3158_v58 = vadd.f32 1.0, %v7130_v42  ;;  %v12342_v42 = vld [vmem:[#allocation25_spill] sm:$0xff] }
 0xff7   : > { %v7132_v57 = vpop.eup %7131 }
 0xff8   : > { %7135 = vrcp.f32 %v3158_v58  ;;  %v3164_v36 = vadd.f32 1.0, %v7132_v57  ;;  %v7134_v46 = vpop.eup %7133  ;;  %v3735_v57 = vld [vmem:[#allocation4] sm:$0xff] }
 0xff9   : > { %7137 = vtanh.f32 %v3153_v39  ;;  %v3171_v37 = vadd.f32 1.0, %v7134_v46  ;;  %v12338_v58 = vld [vmem:[#allocation30_spill] sm:$0xff]  ;;  %v12341_v39 = vld [vmem:[#allocation43_spill] sm:$0xff]  ;;  %v12345_v46 = vld [vmem:[#allocation45_spill] sm:$0xff] }
 0xffa   : > { %7139 = vrcp.f32 %v3164_v36  ;;  %v12340_v36 = vld [vmem:[#allocation27_spill] sm:$0xff] }
 0xffb   : > { %7141 = vrcp.f32 %v3171_v37  ;;  %v12349_v37 = vld [vmem:[#allocation49_spill] sm:$0xff] }
0x1005   : > { %v7136_v47 = vpop.eup %7135 }
0x1006   : > { %v7138_v43 = vpop.eup %7137 }
0x1007   : > { %v7140_v10 = vpop.eup %7139  ;;  %v3175_v45 = vmul.f32 %v7138_v43, %v7136_v47  ;;  %v12346_v47 = vld [vmem:[#allocation33_spill] sm:$0xff]  ;;  %v12347_v43 = vld [vmem:[#allocation48_spill] sm:$0xff] }
0x1008   : > { %v3174_v6 = vmul.f32 %v7140_v10, %v9698_v31  ;;  %v7142_v35 = vpop.eup %7141  ;;  %v12337_v31 = vld [vmem:[#allocation40_spill] sm:$0xff] }
0x1009   : > { %v12348_v10 = vld [vmem:[#allocation32_spill] sm:$0xff] }
0x100a   : > { %v3176_v38 = vadd.f32 %v3175_v45, %v3174_v6  ;;  %v12350_v45 = vld [vmem:[#allocation26_spill] sm:$0xff]  ;;  %v12351_v6 = vld [vmem:[#allocation39_spill] sm:$0xff] }
0x100c   : > { %7143 = vtanh.f32 %v3176_v38  ;;  %3182 = vst [vmem:[#allocation3] sm:$0xff] %v3176_v38  ;;  %v12352_v38 = vld [vmem:[#allocation36_spill] sm:$0xff] }
0x1019   : > { %v7144_v26 = vpop.eup %7143 }
0x101a   : > { %v3178_v41 = vmul.f32 %v7144_v26, %v7142_v35  ;;  %v12353_v35 = vld [vmem:[#allocation41_spill] sm:$0xff]  ;;  %v12354_v26 = vld [vmem:[#allocation50_spill] sm:$0xff] }
0x101c   : > { %3181 = vst [vmem:[#allocation2] sm:$0xff] %v3178_v41  ;;  %3440 = vmatmul.mubr.f32.gmra.mxu0 %v3178_v41  ;;  %3601 = vmatmul.mubr.f32.gmra.mxu1 %v3178_v41  ;;  %v12355_v41 = vld [vmem:[#allocation42_spill] sm:$0xff] }
0x101d   : > { %3805 = vmatprep.mubr.f32.mxu0 %v12300_v29  ;;  %3876 = vmatprep.mubr.f32.mxu1 %v12300_v29 }
0x1020   : > { %3806 = vmatmul.mubr.f32.vlgmr.msra.gmra.mxu0 %v3735_v57  ;;  %3877 = vmatmul.mubr.f32.vlgmr.msra.gmra.mxu1 %v3735_v57  ;;  %v12356_v57 = vld [vmem:[#allocation24_spill] sm:$0xff] }
0x1021   : > { %3917 = vmatpush1.msra.mxu0 %v9711_v40  ;;  %3988 = vmatpush1.msra.mxu1 %v9776_v59 }
0x1022   : > { %3918 = vmatprep.subr.mxu0 %v9778_v60  ;;  %3989 = vmatprep.subr.mxu1 %v9781_v23 }
0x1023   : > { %3919 = vmatpush1.msra.mxu0 %v9784_v1  ;;  %3990 = vmatpush1.msra.mxu1 %v9787_v34 }
0x1024   : > { %3920 = vmatprep.subr.mxu0 %v9790_v25  ;;  %3991 = vmatprep.subr.mxu1 %v9793_v13 }
0x1025   : > { %3921 = vmatpush1.msra.mxu0 %v9796_v55  ;;  %3992 = vmatpush1.msra.mxu1 %v9799_v2 }
0x1026   : > { %3922 = vmatprep.subr.mxu0 %v9802_v18  ;;  %3993 = vmatprep.subr.mxu1 %v9805_v22 }
0x1027   : > { %3923 = vmatpush1.msra.mxu0 %v9808_v50  ;;  %3994 = vmatpush1.msra.mxu1 %v9824_v5 }
0x1028   : > { %3924 = vmatprep.subr.mxu0 %v9810_v52  ;;  %3995 = vmatprep.subr.mxu1 %v9830_v63 }
0x1029   : > { %3925 = vmatpush1.msra.mxu0 %v9812_v17  ;;  %3996 = vmatpush1.msra.mxu1 %v9832_v4 }
0x102a   : > { %3926 = vmatprep.subr.mxu0 %v9816_v48  ;;  %3997 = vmatprep.subr.mxu1 %v9838_v14 }
0x102b   : > { %3927 = vmatpush1.msra.mxu0 %v9819_v19  ;;  %3998 = vmatpush1.msra.mxu1 %v9840_v28 }
0x102c   : > { %3928 = vmatprep.subr.mxu0 %v9822_v11  ;;  %3999 = vmatprep.subr.mxu1 %v9846_v27 }
0x102d   : > { %3929 = vmatpush1.msra.mxu0 %v9827_v61  ;;  %4000 = vmatpush1.msra.mxu1 %v9852_v12 }
0x102e   : > { %3930 = vmatprep.subr.mxu0 %v9835_v9  ;;  %4001 = vmatprep.subr.mxu1 %v9858_v54 }
0x102f   : > { %3931 = vmatpush1.msra.mxu0 %v9843_v30  ;;  %4002 = vmatpush1.msra.mxu1 %v9864_v16 }
0x1030   : > { %3932 = vmatprep.subr.mxu0 %v9849_v56  ;;  %4003 = vmatprep.subr.mxu1 %v9870_v53 }
0x1031   : > { %3933 = vmatpush1.msra.mxu0 %v9855_v0  ;;  %4004 = vmatpush1.msra.mxu1 %v9876_v8 }
0x1032   : > { %3934 = vmatprep.subr.mxu0 %v9861_v24  ;;  %4005 = vmatprep.subr.mxu1 %v9882_v20 }
0x1033   : > { %3935 = vmatpush1.msra.mxu0 %v9867_v62  ;;  %4006 = vmatpush1.msra.mxu1 %v9888_v15 }
0x1034   : > { %3936 = vmatprep.subr.mxu0 %v9873_v7  ;;  %4007 = vmatprep.subr.mxu1 %v9894_v51 }
0x1035   : > { %3937 = vmatpush1.msra.mxu0 %v9879_v49  ;;  %4008 = vmatpush1.msra.mxu1 %v9900_v33 }
0x1036   : > { %3938 = vmatprep.subr.mxu0 %v9885_v3  ;;  %4009 = vmatprep.subr.mxu1 %v12337_v31 }
0x1037   : > { %3939 = vmatpush1.msra.mxu0 %v12338_v58  ;;  %4010 = vmatpush1.msra.mxu1 %v12339_v32 }
0x1038   : > { %3940 = vmatprep.subr.mxu0 %v12340_v36  ;;  %4011 = vmatprep.subr.mxu1 %v12341_v39 }
0x1039   : > { %3941 = vmatpush1.msra.mxu0 %v12342_v42  ;;  %4012 = vmatpush1.msra.mxu1 %v12343_v44 }
0x103a   : > { %3942 = vmatprep.subr.mxu0 %v12344_v21  ;;  %4013 = vmatprep.subr.mxu1 %v12345_v46 }
0x103b   : > { %3943 = vmatpush1.msra.mxu0 %v12346_v47  ;;  %4014 = vmatpush1.msra.mxu1 %v12347_v43 }
0x103c   : > { %3944 = vmatprep.subr.mxu0 %v12348_v10  ;;  %4015 = vmatprep.subr.mxu1 %v12349_v37  ;;  %v12357_v10 = vld [vmem:[#allocation31_spill] sm:$0xff]  ;;  %v10034_v37 = vpop.f32.mrf.mxu0 }
0x103d   : > { %3945 = vmatpush1.msra.mxu0 %v12350_v45  ;;  %4016 = vmatpush1.msra.mxu1 %v12351_v6  ;;  %v10036_v45 = vpop.f32.mrf.mxu1 }
0x103e   : > { %3946 = vmatprep.subr.mxu0 %v12352_v38  ;;  %4017 = vmatprep.subr.mxu1 %v12353_v35  ;;  %v10038_v6 = vpop.f32.mrf.mxu0 }
0x103f   : > { %3947 = vmatpush1.msra.mxu0 %v12354_v26  ;;  %3980 = vmatprep.mubr.f32.mxu0 %v12300_v29  ;;  %v10040_v38 = vpop.f32.mrf.mxu1 }
0x1040   : > { %4018 = vmatpush1.msra.mxu1 %v12355_v41  ;;  %4051 = vmatprep.mubr.f32.mxu1 %v12300_v29  ;;  %v10042_v35 = vpop.f32.mrf.mxu0 }
0x1041   : > { %4091 = vmatprep.subr.mxu0 %v12356_v57  ;;  %4162 = vmatprep.subr.mxu1 %v12357_v10  ;;  %12358 = vst [vmem:[#allocation21_spill] sm:$0xff] %v10042_v35  ;;  %v10044_v26 = vpop.f32.mrf.mxu1 }
0x1042   : > { %12359 = vst [vmem:[#allocation29_spill] sm:$0xff] %v10044_v26  ;;  %v10046_v43 = vpop.f32.mrf.mxu0 }
0x1043   : > { %12360 = vst [vmem:[#allocation28_spill] sm:$0xff] %v10046_v43  ;;  %v10048_v41 = vpop.f32.mrf.mxu1 }
0x1044   : > { %12361 = vst [vmem:[#allocation46_spill] sm:$0xff] %v10048_v41  ;;  %v10050_v29 = vpop.f32.mrf.mxu0 }
0x1045   : > { %12362 = vst [vmem:[#allocation47_spill] sm:$0xff] %v10050_v29  ;;  %v10052_v57 = vpop.f32.mrf.mxu1 }
0x1046   : > { %12363 = vst [vmem:[#allocation23_spill] sm:$0xff] %v10052_v57  ;;  %v10054_v10 = vpop.f32.mrf.mxu0 }
0x1047   : > { %12364 = vst [vmem:[#allocation37_spill] sm:$0xff] %v10054_v10  ;;  %v10056_v47 = vpop.f32.mrf.mxu1 }
0x1048   : > { %12365 = vst [vmem:[#allocation35_spill] sm:$0xff] %v10056_v47  ;;  %v10058_v46 = vpop.f32.mrf.mxu0 }
0x1049   : > { %12366 = vst [vmem:[#allocation51_spill] sm:$0xff] %v10058_v46  ;;  %v10060_v21 = vpop.f32.mrf.mxu1 }
0x104a   : > { %12367 = vst [vmem:[#allocation52_spill] sm:$0xff] %v10060_v21  ;;  %v10062_v44 = vpop.f32.mrf.mxu0 }
0x104b   : > { %12368 = vst [vmem:[#allocation53_spill] sm:$0xff] %v10062_v44  ;;  %v10064_v35 = vpop.f32.mrf.mxu1 }
0x104c   : > { %12369 = vst [vmem:[#allocation54_spill] sm:$0xff] %v10064_v35  ;;  %v10066_v26 = vpop.f32.mrf.mxu0 }
0x104d   : > { %12370 = vst [vmem:[#allocation55_spill] sm:$0xff] %v10066_v26  ;;  %v10068_v43 = vpop.f32.mrf.mxu1 }
0x104e   : > { %12371 = vst [vmem:[#allocation56_spill] sm:$0xff] %v10068_v43  ;;  %v10070_v41 = vpop.f32.mrf.mxu0 }
0x104f   : > { %12372 = vst [vmem:[#allocation57_spill] sm:$0xff] %v10070_v41  ;;  %v10072_v29 = vpop.f32.mrf.mxu1 }
0x1050   : > { %12373 = vst [vmem:[#allocation58_spill] sm:$0xff] %v10072_v29  ;;  %v10074_v57 = vpop.f32.mrf.mxu0 }
0x1051   : > { %12374 = vst [vmem:[#allocation59_spill] sm:$0xff] %v10074_v57  ;;  %v10076_v10 = vpop.f32.mrf.mxu1 }
0x1052   : > { %12375 = vst [vmem:[#allocation60_spill] sm:$0xff] %v10076_v10  ;;  %v10078_v47 = vpop.f32.mrf.mxu0 }
0x1053   : > { %12376 = vst [vmem:[#allocation61_spill] sm:$0xff] %v10078_v47  ;;  %v10080_v46 = vpop.f32.mrf.mxu1 }
0x1054   : > { %12377 = vst [vmem:[#allocation62_spill] sm:$0xff] %v10080_v46  ;;  %v10082_v21 = vpop.f32.mrf.mxu0 }
0x1055   : > { %12378 = vst [vmem:[#allocation63_spill] sm:$0xff] %v10082_v21  ;;  %v10084_v44 = vpop.f32.mrf.mxu1 }
0x1056   : > { %12379 = vst [vmem:[#allocation64_spill] sm:$0xff] %v10084_v44  ;;  %v10086_v35 = vpop.f32.mrf.mxu0 }
0x1057   : > { %12380 = vst [vmem:[#allocation65_spill] sm:$0xff] %v10086_v35  ;;  %v10088_v26 = vpop.f32.mrf.mxu1 }
0x1058   : > { %12381 = vst [vmem:[#allocation66_spill] sm:$0xff] %v10088_v26  ;;  %v10090_v43 = vpop.f32.mrf.mxu0 }
0x1059   : > { %12382 = vst [vmem:[#allocation67_spill] sm:$0xff] %v10090_v43  ;;  %v10092_v41 = vpop.f32.mrf.mxu1 }
0x105a   : > { %12383 = vst [vmem:[#allocation68_spill] sm:$0xff] %v10092_v41  ;;  %v10094_v29 = vpop.f32.mrf.mxu0 }
0x105b   : > { %12384 = vst [vmem:[#allocation69_spill] sm:$0xff] %v10094_v29  ;;  %v10096_v57 = vpop.f32.mrf.mxu1 }
0x105c   : > { %12385 = vst [vmem:[#allocation70_spill] sm:$0xff] %v10096_v57  ;;  %v10098_v10 = vpop.f32.mrf.mxu0 }
0x105d   : > { %12386 = vst [vmem:[#allocation71_spill] sm:$0xff] %v10098_v10  ;;  %v10100_v47 = vpop.f32.mrf.mxu1 }
0x105e   : > { %12387 = vst [vmem:[#allocation72_spill] sm:$0xff] %v10100_v47  ;;  %v10102_v46 = vpop.f32.mrf.mxu0 }
0x105f   : > { %12388 = vst [vmem:[#allocation73_spill] sm:$0xff] %v10102_v46  ;;  %v10104_v21 = vpop.f32.mrf.mxu1 }
0x1060   : > { %12389 = vst [vmem:[#allocation74_spill] sm:$0xff] %v10104_v21  ;;  %v10106_v44 = vpop.f32.mrf.mxu0 }
0x1061   : > { %12390 = vst [vmem:[#allocation75_spill] sm:$0xff] %v10106_v44  ;;  %v10108_v35 = vpop.f32.mrf.mxu1 }
0x1062   : > { %12391 = vst [vmem:[#allocation76_spill] sm:$0xff] %v10108_v35  ;;  %v10110_v26 = vpop.f32.mrf.mxu0 }
0x1063   : > { %12392 = vst [vmem:[#allocation77_spill] sm:$0xff] %v10110_v26  ;;  %v10112_v43 = vpop.f32.mrf.mxu1 }
0x1064   : > { %12393 = vst [vmem:[#allocation78_spill] sm:$0xff] %v10112_v43  ;;  %v10114_v41 = vpop.f32.mrf.mxu0 }
0x1065   : > { %12394 = vst [vmem:[#allocation79_spill] sm:$0xff] %v10114_v41  ;;  %v10116_v29 = vpop.f32.mrf.mxu1 }
0x1066   : > { %12395 = vst [vmem:[#allocation80_spill] sm:$0xff] %v10116_v29  ;;  %v10118_v57 = vpop.f32.mrf.mxu0 }
0x1067   : > { %12396 = vst [vmem:[#allocation81_spill] sm:$0xff] %v10118_v57  ;;  %v10120_v10 = vpop.f32.mrf.mxu1  ;;  %v3265_v57 = vlaneseq }
0x1068   : > { %12397 = vst [vmem:[#allocation82_spill] sm:$0xff] %v10120_v10  ;;  %v10122_v47 = vpop.f32.mrf.mxu0 }
0x1069   : > { %12398 = vst [vmem:[#allocation83_spill] sm:$0xff] %v10122_v47  ;;  %v10124_v46 = vpop.f32.mrf.mxu1 }
0x106a   : > { %12399 = vst [vmem:[#allocation84_spill] sm:$0xff] %v10124_v46  ;;  %v10126_v21 = vpop.f32.mrf.mxu0  ;;  %v3266_v46 = vshrl.u32 %v3265_v57, 7 }
0x106b   : > { %12400 = vst [vmem:[#allocation85_spill] sm:$0xff] %v10126_v21  ;;  %v10128_v44 = vpop.f32.mrf.mxu1 }
0x106c   : > { %12401 = vst [vmem:[#allocation86_spill] sm:$0xff] %v10128_v44  ;;  %v10130_v35 = vpop.f32.mrf.mxu0  ;;  %v3267_v44 = vsub.s32 0, %v3266_v46  ;;  %v3279_v32 = vsub.s32 3, %v3266_v46 }
0x106d   : > { %12402 = vst [vmem:[#allocation87_spill] sm:$0xff] %v10130_v35  ;;  %v10132_v26 = vpop.f32.mrf.mxu1 }
0x106e   : > { %12403 = vst [vmem:[#allocation88_spill] sm:$0xff] %v10132_v26  ;;  %v10134_v43 = vpop.f32.mrf.mxu0  ;;  %v3263_v26 = vld [vmem:[%s11684_s4] sm:$0xf] }
0x106f   : > { %12404 = vst [vmem:[#allocation89_spill] sm:$0xff] %v10134_v43  ;;  %v10136_v41 = vpop.f32.mrf.mxu1  ;;  %v10173_v3 = vrot.slane %v3263_v26, %v3279_v32 }
0x1070   : > { %12405 = vst [vmem:[#allocation90_spill] sm:$0xff] %v10136_v41  ;;  %v10138_v29 = vpop.f32.mrf.mxu0  ;;  %v3271_v41 = vsub.s32 1, %v3266_v46 }
0x1071   : > { %12406 = vst [vmem:[#allocation91_spill] sm:$0xff] %v10138_v29  ;;  %v10140_v10 = vpop.f32.mrf.mxu1  ;;  %v10155_v29 = vrot.slane %v3263_v26, %v3267_v44 }
0x1072   : > { %12407 = vst [vmem:[#allocation92_spill] sm:$0xff] %v10140_v10  ;;  %v10142_v47 = vpop.f32.mrf.mxu0  ;;  %v10161_v57 = vrot.slane %v3263_v26, %v3271_v41  ;;  %v3275_v41 = vsub.s32 2, %v3266_v46 }
0x1073   : > { %12408 = vst [vmem:[#allocation93_spill] sm:$0xff] %v10142_v47  ;;  %v10144_v42 = vpop.f32.mrf.mxu1  ;;  %12413 = vst [vmem:[#allocation98_spill] sm:$0xff] %v10155_v29 }
0x1074   : > { %12409 = vst [vmem:[#allocation94_spill] sm:$0xff] %v10144_v42  ;;  %v10146_v21 = vpop.f32.mrf.mxu0  ;;  %12416 = vst [vmem:[#allocation101_spill] sm:$0xff] %v10161_v57  ;;  %v3354_v36 = vadd.f32 %v10038_v6, %v10161_v57  ;;  %v3515_v6 = vadd.f32 %v10040_v38, %v10173_v3 }
0x1075   : > { %12410 = vst [vmem:[#allocation95_spill] sm:$0xff] %v10146_v21  ;;  %v10148_v35 = vpop.f32.mrf.mxu1 }
0x1076   : > { %12411 = vst [vmem:[#allocation96_spill] sm:$0xff] %v10148_v35  ;;  %v10153_v43 = vpop.f32.mrf.mxu0  ;;  %v3352_v35 = vadd.f32 %v10034_v37, %v10155_v29 }
0x1077   : > { %12412 = vst [vmem:[#allocation97_spill] sm:$0xff] %v10153_v43  ;;  %v10157_v10 = vpop.f32.mrf.mxu1 }
0x1078   : > { %12414 = vst [vmem:[#allocation99_spill] sm:$0xff] %v10157_v10 }
0x10dc   : > { %v10159_v47 = vpop.f32.mrf.mxu0  ;;  %v10163_v42 = vpop.f32.mrf.mxu1 }
0x10dd   : > { %12415 = vst [vmem:[#allocation100_spill] sm:$0xff] %v10159_v47  ;;  %12417 = vst [vmem:[#allocation102_spill] sm:$0xff] %v10163_v42 }
0x10de   : > { %v10165_v21 = vpop.f32.mrf.mxu0  ;;  %v10171_v43 = vpop.f32.mrf.mxu1 }
0x10df   : > { %12418 = vst [vmem:[#allocation103_spill] sm:$0xff] %v10165_v21  ;;  %12419 = vst [vmem:[#allocation104_spill] sm:$0xff] %v10171_v43  ;;  %v10175_v21 = vrot.slane %v3263_v26, %v3275_v41  ;;  %v3736_v26 = vld [vmem:[#allocation5] sm:$0xff] }
0x10e0   : > { %v3807_v39 = vpop.f32.mrf.mxu0  ;;  %v3878_v31 = vpop.f32.mrf.mxu1 }
0x10e1   : > { %v3883_v44 = vadd.f32 %v3807_v39, %v3352_v35  ;;  %v3513_v39 = vadd.f32 %v10036_v45, %v10175_v21 }
0x10e2   : > { %v3809_v10 = vpop.f32.mrf.mxu0  ;;  %v3880_v37 = vpop.f32.mrf.mxu1 }
0x10e3   : > { %v6753_v58 = vmul.f32 -1.442695, %v3883_v44  ;;  %v3884_v47 = vadd.f32 %v3809_v10, %v3354_v36  ;;  %v3886_v57 = vadd.f32 %v3880_v37, %v3515_v6  ;;  %v3885_v35 = vadd.f32 %v3878_v31, %v3513_v39  ;;  %v12421_v39 = vld [vmem:[#allocation40_spill] sm:$0xff] }
0x10e5   : > { %7145 = vpow2.f32 %v6753_v58  ;;  %v6754_v42 = vmul.f32 -1.442695, %v3884_v47  ;;  %v6755_v44 = vmul.f32 -1.442695, %v3886_v57 }
0x10e7   : > { %7147 = vpow2.f32 %v6754_v42 }
0x10e8   : > { %7149 = vtanh.f32 %v3885_v35  ;;  %v12422_v35 = vld [vmem:[#allocation30_spill] sm:$0xff] }
0x10e9   : > { %7151 = vpow2.f32 %v6755_v44  ;;  %v12423_v44 = vld [vmem:[#allocation22_spill] sm:$0xff] }
0x10f2   : > { %v7146_v36 = vpop.eup %7145 }
0x10f3   : > { %v3890_v46 = vadd.f32 1.0, %v7146_v36  ;;  %v12424_v36 = vld [vmem:[#allocation27_spill] sm:$0xff] }
0x10f4   : > { %v7148_v58 = vpop.eup %7147 }
0x10f5   : > { %7153 = vrcp.f32 %v3890_v46  ;;  %v3896_v32 = vadd.f32 1.0, %v7148_v58  ;;  %v7150_v42 = vpop.eup %7149  ;;  %v12425_v46 = vld [vmem:[#allocation43_spill] sm:$0xff]  ;;  %v12426_v58 = vld [vmem:[#allocation25_spill] sm:$0xff] }
0x10f6   : > { %v7152_v47 = vpop.eup %7151 }
0x10f7   : > { %7155 = vrcp.f32 %v3896_v32  ;;  %v3903_v37 = vadd.f32 1.0, %v7152_v47  ;;  %v12427_v32 = vld [vmem:[#allocation44_spill] sm:$0xff]  ;;  %v12429_v47 = vld [vmem:[#allocation45_spill] sm:$0xff] }
0x10f9   : > { %7157 = vrcp.f32 %v3903_v37  ;;  %v12434_v37 = vld [vmem:[#allocation26_spill] sm:$0xff] }
0x1102   : > { %v7154_v10 = vpop.eup %7153 }
0x1103   : > { %v3907_v41 = vmul.f32 %v7154_v10, %v7150_v42  ;;  %v12428_v42 = vld [vmem:[#allocation38_spill] sm:$0xff]  ;;  %v12430_v10 = vld [vmem:[#allocation33_spill] sm:$0xff] }
0x1104   : > { %v7156_v38 = vpop.eup %7155 }
0x1105   : > { %v3906_v6 = vmul.f32 %v7156_v38, %v3736_v26  ;;  %v12431_v26 = vld [vmem:[#allocation48_spill] sm:$0xff]  ;;  %v12433_v38 = vld [vmem:[#allocation49_spill] sm:$0xff] }
0x1106   : > { %v7158_v31 = vpop.eup %7157 }
0x1107   : > { %v10181_v43 = vadd.f32 %v3907_v41, %v3906_v6  ;;  %v12432_v41 = vld [vmem:[#allocation32_spill] sm:$0xff]  ;;  %v12435_v6 = vld [vmem:[#allocation39_spill] sm:$0xff] }
0x1109   : > { %7159 = vtanh.f32 %v10181_v43 }
0x1116   : > { %v7160_v45 = vpop.eup %7159 }
0x1117   : > { %v3910_v57 = vmul.f32 %v7160_v45, %v7158_v31  ;;  %v12436_v31 = vld [vmem:[#allocation36_spill] sm:$0xff]  ;;  %v12437_v45 = vld [vmem:[#allocation41_spill] sm:$0xff] }
0x1119   : > { %3981 = vmatmul.mubr.f32.vlgmr.msra.gmra.mxu0 %v3910_v57  ;;  %4052 = vmatmul.mubr.f32.vlgmr.msra.gmra.mxu1 %v3910_v57  ;;  %v12438_v57 = vld [vmem:[#allocation50_spill] sm:$0xff] }
0x111a   : > { %4092 = vmatpush1.msra.mxu0 %v9711_v40  ;;  %4163 = vmatpush1.msra.mxu1 %v9776_v59  ;;  %v12420_v40 = vld [vmem:[#allocation34_spill] sm:$0xff] }
0x111b   : > { %4093 = vmatprep.subr.mxu0 %v9778_v60  ;;  %4164 = vmatprep.subr.mxu1 %v9781_v23 }
0x111c   : > { %4094 = vmatpush1.msra.mxu0 %v9784_v1  ;;  %4165 = vmatpush1.msra.mxu1 %v9787_v34 }
0x111d   : > { %4095 = vmatprep.subr.mxu0 %v9790_v25  ;;  %4166 = vmatprep.subr.mxu1 %v9793_v13 }
0x111e   : > { %4096 = vmatpush1.msra.mxu0 %v9796_v55  ;;  %4167 = vmatpush1.msra.mxu1 %v9799_v2 }
0x111f   : > { %4097 = vmatprep.subr.mxu0 %v9802_v18  ;;  %4168 = vmatprep.subr.mxu1 %v9805_v22 }
0x1120   : > { %4098 = vmatpush1.msra.mxu0 %v9808_v50  ;;  %4169 = vmatpush1.msra.mxu1 %v9824_v5 }
0x1121   : > { %4099 = vmatprep.subr.mxu0 %v9810_v52  ;;  %4170 = vmatprep.subr.mxu1 %v9830_v63 }
0x1122   : > { %4100 = vmatpush1.msra.mxu0 %v9812_v17  ;;  %4171 = vmatpush1.msra.mxu1 %v9832_v4 }
0x1123   : > { %4101 = vmatprep.subr.mxu0 %v9816_v48  ;;  %4172 = vmatprep.subr.mxu1 %v9838_v14 }
0x1124   : > { %4102 = vmatpush1.msra.mxu0 %v9819_v19  ;;  %4173 = vmatpush1.msra.mxu1 %v9840_v28 }
0x1125   : > { %4103 = vmatprep.subr.mxu0 %v9822_v11  ;;  %4174 = vmatprep.subr.mxu1 %v9846_v27 }
0x1126   : > { %4104 = vmatpush1.msra.mxu0 %v9827_v61  ;;  %4175 = vmatpush1.msra.mxu1 %v9852_v12 }
0x1127   : > { %4105 = vmatprep.subr.mxu0 %v9835_v9  ;;  %4176 = vmatprep.subr.mxu1 %v9858_v54 }
0x1128   : > { %4106 = vmatpush1.msra.mxu0 %v9843_v30  ;;  %4177 = vmatpush1.msra.mxu1 %v9864_v16 }
0x1129   : > { %4107 = vmatprep.subr.mxu0 %v9849_v56  ;;  %4178 = vmatprep.subr.mxu1 %v9870_v53 }
0x112a   : > { %4108 = vmatpush1.msra.mxu0 %v9855_v0  ;;  %4179 = vmatpush1.msra.mxu1 %v9876_v8 }
0x112b   : > { %4109 = vmatprep.subr.mxu0 %v9861_v24  ;;  %4180 = vmatprep.subr.mxu1 %v9882_v20 }
0x112c   : > { %4110 = vmatpush1.msra.mxu0 %v9867_v62  ;;  %4181 = vmatpush1.msra.mxu1 %v9888_v15 }
0x112d   : > { %4111 = vmatprep.subr.mxu0 %v9873_v7  ;;  %4182 = vmatprep.subr.mxu1 %v9894_v51 }
0x112e   : > { %4112 = vmatpush1.msra.mxu0 %v9879_v49  ;;  %4183 = vmatpush1.msra.mxu1 %v9900_v33 }
0x112f   : > { %4113 = vmatprep.subr.mxu0 %v12420_v40  ;;  %4184 = vmatprep.subr.mxu1 %v12421_v39 }
0x1130   : > { %4114 = vmatpush1.msra.mxu0 %v12422_v35  ;;  %4185 = vmatpush1.msra.mxu1 %v12423_v44  ;;  %v12447_v35 = vld [vmem:[#allocation29_spill] sm:$0xff] }
0x1131   : > { %4115 = vmatprep.subr.mxu0 %v12424_v36  ;;  %4186 = vmatprep.subr.mxu1 %v12425_v46 }
0x1132   : > { %4116 = vmatpush1.msra.mxu0 %v12426_v58  ;;  %4187 = vmatpush1.msra.mxu1 %v12427_v32 }
0x1133   : > { %4117 = vmatprep.subr.mxu0 %v12428_v42  ;;  %4188 = vmatprep.subr.mxu1 %v12429_v47  ;;  %v12439_v42 = vmov 0.0   ;;  %v12440_v47 = vld [vmem:[#allocation42_spill] sm:$0xff] }
0x1134   : > { %4118 = vmatpush1.msra.mxu0 %v12430_v10  ;;  %4189 = vmatpush1.msra.mxu1 %v12431_v26  ;;  %v12441_v26 = vld [vmem:[#allocation24_spill] sm:$0xff]  ;;  %v12444_v10 = vld [vmem:[#allocation101_spill] sm:$0xff] }
0x1135   : > { %4119 = vmatprep.subr.mxu0 %v12432_v41  ;;  %4190 = vmatprep.subr.mxu1 %v12433_v38  ;;  %v12442_v41 = vld [vmem:[#allocation31_spill] sm:$0xff] }
0x1136   : > { %4120 = vmatpush1.msra.mxu0 %v12434_v37  ;;  %4191 = vmatpush1.msra.mxu1 %v12435_v6  ;;  %v12443_v37 = vld [vmem:[#allocation21_spill] sm:$0xff] }
0x1137   : > { %4121 = vmatprep.subr.mxu0 %v12436_v31  ;;  %4192 = vmatprep.subr.mxu1 %v12437_v45  ;;  %v3358_v38 = vadd.f32 %v12443_v37, %v10155_v29  ;;  %v12445_v31 = vld [vmem:[#allocation28_spill] sm:$0xff]  ;;  %v3519_v37 = vadd.f32 %v12447_v35, %v10175_v21 }
0x1138   : > { %4122 = vmatpush1.msra.mxu0 %v12438_v57  ;;  %4155 = vmatprep.mubr.f32.mxu0 %v12439_v42  ;;  %v3360_v32 = vadd.f32 %v12445_v31, %v12444_v10 }
0x1139   : > { %4193 = vmatpush1.msra.mxu1 %v12440_v47  ;;  %4226 = vmatprep.mubr.f32.mxu1 %v12439_v42 }
0x113a   : > { %4266 = vmatprep.subr.mxu0 %v12441_v26  ;;  %4337 = vmatprep.subr.mxu1 %v12442_v41  ;;  %v12446_v26 = vld [vmem:[#allocation46_spill] sm:$0xff] }
0x113b   : > { %v3521_v44 = vadd.f32 %v12446_v26, %v10173_v3 }
0x11d9   : > { %v3982_v6 = vpop.f32.mrf.mxu0  ;;  %v4053_v36 = vpop.f32.mrf.mxu1 }
0x11da   : > { %v4058_v45 = vadd.f32 %v3982_v6, %v3358_v38  ;;  %v4060_v29 = vadd.f32 %v4053_v36, %v3519_v37 }
0x11db   : > { %v3984_v58 = vpop.f32.mrf.mxu0  ;;  %v4055_v42 = vpop.f32.mrf.mxu1 }
0x11dc   : > { %v6756_v57 = vmul.f32 -1.442695, %v4058_v45  ;;  %v4059_v46 = vadd.f32 %v3984_v58, %v3360_v32  ;;  %v4061_v41 = vadd.f32 %v4055_v42, %v3521_v44 }
0x11de   : > { %7161 = vpow2.f32 %v6756_v57  ;;  %v6757_v47 = vmul.f32 -1.442695, %v4059_v46  ;;  %v6758_v39 = vmul.f32 -1.442695, %v4061_v41 }
0x11e0   : > { %7163 = vpow2.f32 %v6757_v47 }
0x11e1   : > { %7165 = vtanh.f32 %v4060_v29 }
0x11e2   : > { %7167 = vpow2.f32 %v6758_v39  ;;  %v10262_v39 = vld [vmem:[#allocation14 + $0x1e0] sm:$0xff] }
0x11eb   : > { %v7162_v40 = vpop.eup %7161 }
0x11ec   : > { %v4065_v31 = vadd.f32 1.0, %v7162_v40 }
0x11ed   : > { %v7164_v38 = vpop.eup %7163 }
0x11ee   : > { %7169 = vrcp.f32 %v4065_v31  ;;  %v4071_v58 = vadd.f32 1.0, %v7164_v38  ;;  %v7166_v46 = vpop.eup %7165 }
0x11ef   : > { %v7168_v32 = vpop.eup %7167 }
0x11f0   : > { %7171 = vrcp.f32 %v4071_v58  ;;  %v4078_v57 = vadd.f32 1.0, %v7168_v32 }
0x11f2   : > { %7173 = vrcp.f32 %v4078_v57 }
0x11fb   : > { %v7170_v47 = vpop.eup %7169 }
0x11fc   : > { %v4082_v6 = vmul.f32 %v7170_v47, %v7166_v46 }
0x11fd   : > { %v7172_v45 = vpop.eup %7171 }
0x11fe   : > { %v4081_v44 = vmul.f32 %v7172_v45, %v10181_v43 }
0x11ff   : > { %v7174_v40 = vpop.eup %7173 }
0x1200   : > { %v10259_v42 = vadd.f32 %v4082_v6, %v4081_v44 }
0x1202   : > { %7175 = vtanh.f32 %v10259_v42 }
0x120f   : > { %v7176_v29 = vpop.eup %7175 }
0x1210   : > { %v4085_v35 = vmul.f32 %v7176_v29, %v7174_v40 }
0x1212   : > { %4156 = vmatmul.mubr.f32.vlgmr.msra.gmra.mxu0 %v4085_v35  ;;  %4227 = vmatmul.mubr.f32.vlgmr.msra.gmra.mxu1 %v4085_v35  ;;  %v10347_v35 = vld [vmem:[#allocation14 + $0x1f0] sm:$0xff] }
0x1213   : > { %4267 = vmatpush1.msra.mxu0 %v10262_v39  ;;  %4338 = vmatpush1.msra.mxu1 %v9776_v59  ;;  %v12448_v59 = vld [vmem:[#allocation34_spill] sm:$0xff] }
0x1214   : > { %4268 = vmatprep.subr.mxu0 %v9778_v60  ;;  %4339 = vmatprep.subr.mxu1 %v9781_v23  ;;  %v12449_v60 = vld [vmem:[#allocation40_spill] sm:$0xff]  ;;  %v12450_v23 = vld [vmem:[#allocation30_spill] sm:$0xff] }
0x1215   : > { %4269 = vmatpush1.msra.mxu0 %v9784_v1  ;;  %4340 = vmatpush1.msra.mxu1 %v9787_v34  ;;  %v12451_v1 = vld [vmem:[#allocation22_spill] sm:$0xff]  ;;  %v12452_v34 = vld [vmem:[#allocation27_spill] sm:$0xff] }
0x1216   : > { %4270 = vmatprep.subr.mxu0 %v9790_v25  ;;  %4341 = vmatprep.subr.mxu1 %v9793_v13  ;;  %v12453_v25 = vld [vmem:[#allocation43_spill] sm:$0xff]  ;;  %v12454_v13 = vld [vmem:[#allocation25_spill] sm:$0xff] }
0x1217   : > { %4271 = vmatpush1.msra.mxu0 %v9796_v55  ;;  %4342 = vmatpush1.msra.mxu1 %v9799_v2  ;;  %v12455_v55 = vld [vmem:[#allocation44_spill] sm:$0xff]  ;;  %v12456_v2 = vld [vmem:[#allocation38_spill] sm:$0xff] }
0x1218   : > { %4272 = vmatprep.subr.mxu0 %v9802_v18  ;;  %4343 = vmatprep.subr.mxu1 %v9805_v22  ;;  %v12457_v18 = vld [vmem:[#allocation45_spill] sm:$0xff] }
0x1219   : > { %4273 = vmatpush1.msra.mxu0 %v9808_v50  ;;  %4344 = vmatpush1.msra.mxu1 %v9824_v5  ;;  %v12458_v22 = vld [vmem:[#allocation33_spill] sm:$0xff]  ;;  %v12459_v50 = vld [vmem:[#allocation48_spill] sm:$0xff] }
0x121a   : > { %4274 = vmatprep.subr.mxu0 %v9810_v52  ;;  %4345 = vmatprep.subr.mxu1 %v9830_v63  ;;  %v12460_v52 = vld [vmem:[#allocation32_spill] sm:$0xff]  ;;  %v12465_v5 = vld [vmem:[#allocation41_spill] sm:$0xff]  ;;  %v12467_v63 = vmov 0.0  }
0x121b   : > { %4275 = vmatpush1.msra.mxu0 %v9812_v17  ;;  %4346 = vmatpush1.msra.mxu1 %v9832_v4  ;;  %v12461_v17 = vld [vmem:[#allocation49_spill] sm:$0xff]  ;;  %v12468_v4 = vld [vmem:[#allocation42_spill] sm:$0xff] }
0x121c   : > { %4276 = vmatprep.subr.mxu0 %v9816_v48  ;;  %4347 = vmatprep.subr.mxu1 %v9838_v14  ;;  %v12462_v48 = vld [vmem:[#allocation26_spill] sm:$0xff]  ;;  %v10331_v14 = vld [vmem:[#allocation14 + $0x1f8] sm:$0xff] }
0x121d   : > { %4277 = vmatpush1.msra.mxu0 %v9819_v19  ;;  %4348 = vmatpush1.msra.mxu1 %v9840_v28  ;;  %v12463_v19 = vld [vmem:[#allocation39_spill] sm:$0xff]  ;;  %12470 = vst [vmem:[#allocation31_spill] sm:$0xff] %v10331_v14  ;;  %v12471_v28 = vld [vmem:[#allocation98_spill] sm:$0xff] }
0x121e   : > { %4278 = vmatprep.subr.mxu0 %v9822_v11  ;;  %4349 = vmatprep.subr.mxu1 %v9846_v27  ;;  %v12464_v11 = vld [vmem:[#allocation36_spill] sm:$0xff] }
0x121f   : > { %4279 = vmatpush1.msra.mxu0 %v9827_v61  ;;  %4350 = vmatpush1.msra.mxu1 %v9852_v12  ;;  %v12466_v61 = vld [vmem:[#allocation50_spill] sm:$0xff]  ;;  %v12473_v12 = vld [vmem:[#allocation37_spill] sm:$0xff] }
0x1220   : > { %4280 = vmatprep.subr.mxu0 %v9835_v9  ;;  %4351 = vmatprep.subr.mxu1 %v9858_v54  ;;  %v10328_v9 = vld [vmem:[#allocation14 + $0x1e8] sm:$0xff] }
0x1221   : > { %4281 = vmatpush1.msra.mxu0 %v9843_v30  ;;  %4352 = vmatpush1.msra.mxu1 %v9864_v16  ;;  %12469 = vst [vmem:[#allocation24_spill] sm:$0xff] %v10328_v9  ;;  %v12472_v30 = vld [vmem:[#allocation47_spill] sm:$0xff] }
0x1222   : > { %4282 = vmatprep.subr.mxu0 %v9849_v56  ;;  %4353 = vmatprep.subr.mxu1 %v9870_v53  ;;  %v3364_v27 = vadd.f32 %v12472_v30, %v12471_v28  ;;  %v10404_v30 = vld [vmem:[#allocation14 + $0x140] sm:$0xff] }
0x1223   : > { %4283 = vmatpush1.msra.mxu0 %v9855_v0  ;;  %4354 = vmatpush1.msra.mxu1 %v9876_v8  ;;  %v3366_v0 = vadd.f32 %v12473_v12, %v12444_v10  ;;  %v10413_v12 = vld [vmem:[#allocation14 + $0x138] sm:$0xff] }
0x1224   : > { %4284 = vmatprep.subr.mxu0 %v9861_v24  ;;  %4355 = vmatprep.subr.mxu1 %v9882_v20 }
0x1225   : > { %4285 = vmatpush1.msra.mxu0 %v9867_v62  ;;  %4356 = vmatpush1.msra.mxu1 %v9888_v15 }
0x1226   : > { %4286 = vmatprep.subr.mxu0 %v9873_v7  ;;  %4357 = vmatprep.subr.mxu1 %v9894_v51  ;;  %v12475_v51 = vld [vmem:[#allocation23_spill] sm:$0xff] }
0x1227   : > { %4287 = vmatpush1.msra.mxu0 %v9879_v49  ;;  %4358 = vmatpush1.msra.mxu1 %v9900_v33  ;;  %v12474_v49 = vld [vmem:[#allocation35_spill] sm:$0xff]  ;;  %v3525_v33 = vadd.f32 %v12475_v51, %v10175_v21 }
0x1228   : > { %4288 = vmatprep.subr.mxu0 %v12448_v59  ;;  %4359 = vmatprep.subr.mxu1 %v12449_v60  ;;  %v3527_v20 = vadd.f32 %v12474_v49, %v10173_v3  ;;  %v10350_v59 = vld [vmem:[#allocation14 + $0x1c8] sm:$0xff]  ;;  %v10356_v60 = vld [vmem:[#allocation14 + $0x1c0] sm:$0xff]  ;;  %v10449_v51 = vld [vmem:[#allocation14 + $0xd8] sm:$0xff] }
0x1229   : > { %4289 = vmatpush1.msra.mxu0 %v12450_v23  ;;  %4360 = vmatpush1.msra.mxu1 %v12451_v1  ;;  %v10359_v23 = vld [vmem:[#allocation14 + $0x1d0] sm:$0xff]  ;;  %v10362_v1 = vld [vmem:[#allocation14 + $0x1a8] sm:$0xff]  ;;  %v10440_v49 = vld [vmem:[#allocation14 + $0xe0] sm:$0xff] }
0x122a   : > { %4290 = vmatprep.subr.mxu0 %v12452_v34  ;;  %4361 = vmatprep.subr.mxu1 %v12453_v25  ;;  %v10365_v34 = vld [vmem:[#allocation14 + $0x1b8] sm:$0xff]  ;;  %v10368_v25 = vld [vmem:[#allocation14 + $0x1a0] sm:$0xff] }
0x122b   : > { %4291 = vmatpush1.msra.mxu0 %v12454_v13  ;;  %4362 = vmatpush1.msra.mxu1 %v12455_v55  ;;  %v10371_v13 = vld [vmem:[#allocation14 + $0x1b0] sm:$0xff]  ;;  %v10374_v55 = vld [vmem:[#allocation14 + $0x188] sm:$0xff] }
0x122c   : > { %4292 = vmatprep.subr.mxu0 %v12456_v2  ;;  %4363 = vmatprep.subr.mxu1 %v12457_v18  ;;  %v10377_v2 = vld [vmem:[#allocation14 + $0x198] sm:$0xff]  ;;  %v10380_v18 = vld [vmem:[#allocation14 + $0x180] sm:$0xff] }
0x122d   : > { %4293 = vmatpush1.msra.mxu0 %v12458_v22  ;;  %4364 = vmatpush1.msra.mxu1 %v12459_v50  ;;  %v10383_v22 = vld [vmem:[#allocation14 + $0x190] sm:$0xff]  ;;  %v10386_v50 = vld [vmem:[#allocation14 + $0x168] sm:$0xff] }
0x122e   : > { %4294 = vmatprep.subr.mxu0 %v12460_v52  ;;  %4365 = vmatprep.subr.mxu1 %v12461_v17  ;;  %v10389_v52 = vld [vmem:[#allocation14 + $0x178] sm:$0xff]  ;;  %v10392_v17 = vld [vmem:[#allocation14 + $0x160] sm:$0xff] }
0x122f   : > { %4295 = vmatpush1.msra.mxu0 %v12462_v48  ;;  %4366 = vmatpush1.msra.mxu1 %v12463_v19  ;;  %v10395_v48 = vld [vmem:[#allocation14 + $0x170] sm:$0xff] }
0x1230   : > { %4296 = vmatprep.subr.mxu0 %v12464_v11  ;;  %4367 = vmatprep.subr.mxu1 %v12465_v5  ;;  %v10398_v11 = vld [vmem:[#allocation14 + $0x148] sm:$0xff] }
0x1231   : > { %4297 = vmatpush1.msra.mxu0 %v12466_v61  ;;  %4330 = vmatprep.mubr.f32.mxu0 %v12467_v63  ;;  %v10401_v61 = vld [vmem:[#allocation14 + $0x158] sm:$0xff] }
0x1232   : > { %4368 = vmatpush1.msra.mxu1 %v12468_v4  ;;  %4401 = vmatprep.mubr.f32.mxu1 %v12467_v63 }
0x1233   : > { %4441 = vmatprep.subr.mxu0 %v10328_v9  ;;  %4512 = vmatprep.subr.mxu1 %v10331_v14 }
0x12d2   : > { %v4157_v56 = vpop.f32.mrf.mxu0  ;;  %v4228_v53 = vpop.f32.mrf.mxu1 }
0x12d3   : > { %v4233_v54 = vadd.f32 %v4157_v56, %v3364_v27  ;;  %v4235_v43 = vadd.f32 %v4228_v53, %v3525_v33  ;;  %v10407_v27 = vld [vmem:[#allocation14 + $0x150] sm:$0xff]  ;;  %v10410_v56 = vld [vmem:[#allocation14 + $0x128] sm:$0xff]  ;;  %v10452_v33 = vld [vmem:[#allocation14 + $0xc0] sm:$0xff] }
0x12d4   : > { %v4159_v24 = vpop.f32.mrf.mxu0  ;;  %v4230_v8 = vpop.f32.mrf.mxu1  ;;  %v10431_v53 = vld [vmem:[#allocation14 + $0x110] sm:$0xff] }
0x12d5   : > { %v6759_v16 = vmul.f32 -1.442695, %v4233_v54  ;;  %v4234_v62 = vadd.f32 %v4159_v24, %v3366_v0  ;;  %v4236_v15 = vadd.f32 %v4230_v8, %v3527_v20  ;;  %v10416_v0 = vld [vmem:[#allocation14 + $0x120] sm:$0xff]  ;;  %v10419_v54 = vld [vmem:[#allocation14 + $0x130] sm:$0xff]  ;;  %v10422_v24 = vld [vmem:[#allocation14 + $0x108] sm:$0xff] }
0x12d6   : > { %v10437_v8 = vld [vmem:[#allocation14 + $0xf8] sm:$0xff]  ;;  %v10443_v20 = vld [vmem:[#allocation14 + $0xf0] sm:$0xff] }
0x12d7   : > { %7177 = vpow2.f32 %v6759_v16  ;;  %v6760_v7 = vmul.f32 -1.442695, %v4234_v62  ;;  %v6761_v36 = vmul.f32 -1.442695, %v4236_v15  ;;  %v10425_v16 = vld [vmem:[#allocation14 + $0x118] sm:$0xff]  ;;  %v10428_v62 = vld [vmem:[#allocation14 + $0x100] sm:$0xff] }
0x12d8   : > { %v10446_v15 = vld [vmem:[#allocation14 + $0xc8] sm:$0xff] }
0x12d9   : > { %7179 = vpow2.f32 %v6760_v7  ;;  %v10434_v7 = vld [vmem:[#allocation14 + $0xe8] sm:$0xff] }
0x12da   : > { %7181 = vtanh.f32 %v4235_v43  ;;  %v10455_v43 = vld [vmem:[#allocation14 + $0xd0] sm:$0xff] }
0x12db   : > { %7183 = vpow2.f32 %v6761_v36  ;;  %v10458_v36 = vld [vmem:[#allocation14 + $0xa8] sm:$0xff] }
0x12e4   : > { %v7178_v26 = vpop.eup %7177 }
0x12e5   : > { %v4240_v41 = vadd.f32 1.0, %v7178_v26  ;;  %v10461_v26 = vld [vmem:[#allocation14 + $0xb8] sm:$0xff] }
0x12e6   : > { %v7180_v37 = vpop.eup %7179 }
0x12e7   : > { %7185 = vrcp.f32 %v4240_v41  ;;  %v4246_v31 = vadd.f32 1.0, %v7180_v37  ;;  %v7182_v38 = vpop.eup %7181  ;;  %v10464_v41 = vld [vmem:[#allocation14 + $0xa0] sm:$0xff]  ;;  %v10467_v37 = vld [vmem:[#allocation14 + $0xb0] sm:$0xff] }
0x12e8   : > { %v7184_v58 = vpop.eup %7183  ;;  %12476 = vst [vmem:[#allocation21_spill] sm:$0xff] %v10467_v37 }
0x12e9   : > { %7187 = vrcp.f32 %v4246_v31  ;;  %v4253_v6 = vadd.f32 1.0, %v7184_v58  ;;  %v10470_v31 = vld [vmem:[#allocation14 + $0x88] sm:$0xff]  ;;  %v10476_v58 = vld [vmem:[#allocation14 + $0x80] sm:$0xff] }
0x12ea   : > { %12477 = vst [vmem:[#allocation101_spill] sm:$0xff] %v10470_v31  ;;  %12479 = vst [vmem:[#allocation46_spill] sm:$0xff] %v10476_v58 }
0x12eb   : > { %7189 = vrcp.f32 %v4253_v6  ;;  %v10488_v6 = vld [vmem:[#allocation14 + $0x60] sm:$0xff] }
0x12ec   : > { %12483 = vst [vmem:[#allocation30_spill] sm:$0xff] %v10488_v6 }
0x12f4   : > { %v7186_v46 = vpop.eup %7185 }
0x12f5   : > { %v4257_v32 = vmul.f32 %v7186_v46, %v7182_v38  ;;  %v10473_v38 = vld [vmem:[#allocation14 + $0x98] sm:$0xff]  ;;  %v10479_v46 = vld [vmem:[#allocation14 + $0x90] sm:$0xff] }
0x12f6   : > { %v7188_v47 = vpop.eup %7187  ;;  %12478 = vst [vmem:[#allocation28_spill] sm:$0xff] %v10473_v38  ;;  %12480 = vst [vmem:[#allocation29_spill] sm:$0xff] %v10479_v46 }
0x12f7   : > { %v4256_v45 = vmul.f32 %v7188_v47, %v10259_v42  ;;  %v10353_v42 = vld [vmem:[#allocation14 + $0x1d8] sm:$0xff] }
0x12f8   : > { %v7190_v44 = vpop.eup %7189  ;;  %v10485_v47 = vld [vmem:[#allocation14 + $0x78] sm:$0xff] }
0x12f9   : > { %v10343_v57 = vadd.f32 %v4257_v32, %v4256_v45  ;;  %v10482_v32 = vld [vmem:[#allocation14 + $0x68] sm:$0xff]  ;;  %12482 = vst [vmem:[#allocation40_spill] sm:$0xff] %v10485_v47  ;;  %v10491_v45 = vld [vmem:[#allocation14 + $0x70] sm:$0xff] }
0x12fa   : > { %12481 = vst [vmem:[#allocation34_spill] sm:$0xff] %v10482_v32  ;;  %12484 = vst [vmem:[#allocation22_spill] sm:$0xff] %v10491_v45 }
0x12fb   : > { %7191 = vtanh.f32 %v10343_v57 }
0x1308   : > { %v7192_v40 = vpop.eup %7191 }
0x1309   : > { %v4260_v29 = vmul.f32 %v7192_v40, %v7190_v44  ;;  %v10494_v44 = vld [vmem:[#allocation14 + $0x48] sm:$0xff]  ;;  %v10497_v40 = vld [vmem:[#allocation14 + $0x58] sm:$0xff] }
0x130a   : > { %12485 = vst [vmem:[#allocation27_spill] sm:$0xff] %v10494_v44  ;;  %12486 = vst [vmem:[#allocation43_spill] sm:$0xff] %v10497_v40 }
0x130b   : > { %4331 = vmatmul.mubr.f32.vlgmr.msra.gmra.mxu0 %v4260_v29  ;;  %4402 = vmatmul.mubr.f32.vlgmr.msra.gmra.mxu1 %v4260_v29  ;;  %v10500_v29 = vld [vmem:[#allocation14 + $0x40] sm:$0xff] }
0x130c   : > { %4442 = vmatpush1.msra.mxu0 %v10262_v39  ;;  %4513 = vmatpush1.msra.mxu1 %v10347_v35  ;;  %12487 = vst [vmem:[#allocation25_spill] sm:$0xff] %v10500_v29 }
0x130d   : > { %4443 = vmatprep.subr.mxu0 %v10350_v59  ;;  %4514 = vmatprep.subr.mxu1 %v10353_v42 }
0x130e   : > { %4444 = vmatpush1.msra.mxu0 %v10356_v60  ;;  %4515 = vmatpush1.msra.mxu1 %v10359_v23 }
0x130f   : > { %4445 = vmatprep.subr.mxu0 %v10362_v1  ;;  %4516 = vmatprep.subr.mxu1 %v10365_v34 }
0x1310   : > { %4446 = vmatpush1.msra.mxu0 %v10368_v25  ;;  %4517 = vmatpush1.msra.mxu1 %v10371_v13 }
0x1311   : > { %4447 = vmatprep.subr.mxu0 %v10374_v55  ;;  %4518 = vmatprep.subr.mxu1 %v10377_v2 }
0x1312   : > { %4448 = vmatpush1.msra.mxu0 %v10380_v18  ;;  %4519 = vmatpush1.msra.mxu1 %v10383_v22 }
0x1313   : > { %4449 = vmatprep.subr.mxu0 %v10386_v50  ;;  %4520 = vmatprep.subr.mxu1 %v10389_v52 }
0x1314   : > { %4450 = vmatpush1.msra.mxu0 %v10392_v17  ;;  %4521 = vmatpush1.msra.mxu1 %v10395_v48 }
0x1315   : > { %4451 = vmatprep.subr.mxu0 %v10398_v11  ;;  %4522 = vmatprep.subr.mxu1 %v10401_v61 }
0x1316   : > { %4452 = vmatpush1.msra.mxu0 %v10404_v30  ;;  %4523 = vmatpush1.msra.mxu1 %v10407_v27 }
0x1317   : > { %4453 = vmatprep.subr.mxu0 %v10410_v56  ;;  %4524 = vmatprep.subr.mxu1 %v10413_v12 }
0x1318   : > { %4454 = vmatpush1.msra.mxu0 %v10416_v0  ;;  %4525 = vmatpush1.msra.mxu1 %v10419_v54 }
0x1319   : > { %4455 = vmatprep.subr.mxu0 %v10422_v24  ;;  %4526 = vmatprep.subr.mxu1 %v10425_v16 }
0x131a   : > { %4456 = vmatpush1.msra.mxu0 %v10428_v62  ;;  %4527 = vmatpush1.msra.mxu1 %v10431_v53 }
0x131b   : > { %4457 = vmatprep.subr.mxu0 %v10434_v7  ;;  %4528 = vmatprep.subr.mxu1 %v10437_v8 }
0x131c   : > { %4458 = vmatpush1.msra.mxu0 %v10440_v49  ;;  %4529 = vmatpush1.msra.mxu1 %v10443_v20 }
0x131d   : > { %4459 = vmatprep.subr.mxu0 %v10446_v15  ;;  %4530 = vmatprep.subr.mxu1 %v10449_v51 }
0x131e   : > { %4460 = vmatpush1.msra.mxu0 %v10452_v33  ;;  %4531 = vmatpush1.msra.mxu1 %v10455_v43 }
0x131f   : > { %4461 = vmatprep.subr.mxu0 %v10458_v36  ;;  %4532 = vmatprep.subr.mxu1 %v10461_v26 }
0x1320   : > { %4462 = vmatpush1.msra.mxu0 %v10464_v41  ;;  %4533 = vmatpush1.msra.mxu1 %v10467_v37 }
0x1321   : > { %4463 = vmatprep.subr.mxu0 %v10470_v31  ;;  %4534 = vmatprep.subr.mxu1 %v10473_v38  ;;  %v12497_v38 = vld [vmem:[#allocation52_spill] sm:$0xff] }
0x1322   : > { %4464 = vmatpush1.msra.mxu0 %v10476_v58  ;;  %4535 = vmatpush1.msra.mxu1 %v10479_v46 }
0x1323   : > { %4465 = vmatprep.subr.mxu0 %v10482_v32  ;;  %4536 = vmatprep.subr.mxu1 %v10485_v47  ;;  %v10503_v47 = vld [vmem:[#allocation14 + $0x50] sm:$0xff] }
0x1324   : > { %4466 = vmatpush1.msra.mxu0 %v10488_v6  ;;  %4537 = vmatpush1.msra.mxu1 %v10491_v45  ;;  %12488 = vst [vmem:[#allocation44_spill] sm:$0xff] %v10503_v47  ;;  %v10506_v6 = vld [vmem:[#allocation14 + $0x28] sm:$0xff]  ;;  %v10509_v45 = vld [vmem:[#allocation14 + $0x38] sm:$0xff] }
0x1325   : > { %4467 = vmatprep.subr.mxu0 %v10494_v44  ;;  %4538 = vmatprep.subr.mxu1 %v10497_v40  ;;  %12489 = vst [vmem:[#allocation38_spill] sm:$0xff] %v10506_v6  ;;  %12490 = vst [vmem:[#allocation45_spill] sm:$0xff] %v10509_v45  ;;  %v10512_v44 = vld [vmem:[#allocation14 + $0x20] sm:$0xff]  ;;  %v10516_v40 = vld [vmem:[#allocation14 + $0x8] sm:$0xff] }
0x1326   : > { %4468 = vmatpush1.msra.mxu0 %v10500_v29  ;;  %4539 = vmatpush1.msra.mxu1 %v10503_v47  ;;  %12491 = vst [vmem:[#allocation33_spill] sm:$0xff] %v10512_v44  ;;  %12492 = vst [vmem:[#allocation48_spill] sm:$0xff] %v10516_v40  ;;  %v10520_v47 = vld [vmem:[#allocation14] sm:$0xff] }
0x1327   : > { %4469 = vmatprep.subr.mxu0 %v10506_v6  ;;  %4540 = vmatprep.subr.mxu1 %v10509_v45  ;;  %12493 = vst [vmem:[#allocation32_spill] sm:$0xff] %v10520_v47 }
0x1328   : > { %4470 = vmatpush1.msra.mxu0 %v10512_v44  ;;  %4541 = vmatpush1.msra.mxu1 %v12463_v19  ;;  %v12494_v19 = vld [vmem:[#allocation51_spill] sm:$0xff] }
0x1329   : > { %4471 = vmatprep.subr.mxu0 %v10516_v40  ;;  %4542 = vmatprep.subr.mxu1 %v12465_v5  ;;  %v3370_v44 = vadd.f32 %v12494_v19, %v12471_v28  ;;  %v12495_v5 = vld [vmem:[#allocation53_spill] sm:$0xff]  ;;  %v3531_v19 = vadd.f32 %v12497_v38, %v10175_v21  ;;  %v12500_v38 = vld [vmem:[#allocation28_spill] sm:$0xff] }
0x132a   : > { %4472 = vmatpush1.msra.mxu0 %v10520_v47  ;;  %4505 = vmatprep.mubr.f32.mxu0 %v12467_v63  ;;  %v3372_v45 = vadd.f32 %v12495_v5, %v12444_v10 }
0x132b   : > { %4543 = vmatpush1.msra.mxu1 %v12468_v4  ;;  %4576 = vmatprep.mubr.f32.mxu1 %v12467_v63 }
0x132c   : > { %4616 = vmatprep.subr.mxu0 %v10328_v9  ;;  %4687 = vmatprep.subr.mxu1 %v10331_v14  ;;  %v12496_v9 = vld [vmem:[#allocation54_spill] sm:$0xff] }
0x132d   : > { %v3533_v58 = vadd.f32 %v12496_v9, %v10173_v3 }
0x13cb   : > { %v4332_v40 = vpop.f32.mrf.mxu0  ;;  %v4403_v46 = vpop.f32.mrf.mxu1 }
0x13cc   : > { %v4408_v6 = vadd.f32 %v4332_v40, %v3370_v44  ;;  %v4410_v28 = vadd.f32 %v4403_v46, %v3531_v19  ;;  %v12501_v46 = vld [vmem:[#allocation46_spill] sm:$0xff] }
0x13cd   : > { %v4334_v29 = vpop.f32.mrf.mxu0  ;;  %v4405_v63 = vpop.f32.mrf.mxu1  ;;  %v12503_v19 = vld [vmem:[#allocation34_spill] sm:$0xff] }
0x13ce   : > { %v6762_v47 = vmul.f32 -1.442695, %v4408_v6  ;;  %v4409_v32 = vadd.f32 %v4334_v29, %v3372_v45  ;;  %v4411_v14 = vadd.f32 %v4405_v63, %v3533_v58 }
0x13d0   : > { %7193 = vpow2.f32 %v6762_v47  ;;  %v6763_v4 = vmul.f32 -1.442695, %v4409_v32  ;;  %v6764_v31 = vmul.f32 -1.442695, %v4411_v14 }
0x13d2   : > { %7195 = vpow2.f32 %v6763_v4  ;;  %v12502_v4 = vld [vmem:[#allocation29_spill] sm:$0xff] }
0x13d3   : > { %7197 = vtanh.f32 %v4410_v28 }
0x13d4   : > { %7199 = vpow2.f32 %v6764_v31  ;;  %v12499_v31 = vld [vmem:[#allocation101_spill] sm:$0xff] }
0x13dd   : > { %v7194_v37 = vpop.eup %7193 }
0x13de   : > { %v4415_v5 = vadd.f32 1.0, %v7194_v37 }
0x13df   : > { %v7196_v44 = vpop.eup %7195 }
0x13e0   : > { %7201 = vrcp.f32 %v4415_v5  ;;  %v4421_v47 = vadd.f32 1.0, %v7196_v44  ;;  %v7198_v32 = vpop.eup %7197  ;;  %v12504_v5 = vld [vmem:[#allocation40_spill] sm:$0xff]  ;;  %v12505_v44 = vld [vmem:[#allocation30_spill] sm:$0xff] }
0x13e1   : > { %v7200_v6 = vpop.eup %7199 }
0x13e2   : > { %7203 = vrcp.f32 %v4421_v47  ;;  %v4428_v9 = vadd.f32 1.0, %v7200_v6  ;;  %v12506_v47 = vld [vmem:[#allocation22_spill] sm:$0xff]  ;;  %v12508_v6 = vld [vmem:[#allocation43_spill] sm:$0xff] }
0x13e4   : > { %7205 = vrcp.f32 %v4428_v9  ;;  %v12512_v9 = vld [vmem:[#allocation45_spill] sm:$0xff] }
0x13ed   : > { %v7202_v45 = vpop.eup %7201 }
0x13ee   : > { %v4432_v40 = vmul.f32 %v7202_v45, %v7198_v32  ;;  %v12507_v32 = vld [vmem:[#allocation27_spill] sm:$0xff]  ;;  %v12509_v45 = vld [vmem:[#allocation25_spill] sm:$0xff] }
0x13ef   : > { %v7204_v29 = vpop.eup %7203 }
0x13f0   : > { %v4431_v63 = vmul.f32 %v7204_v29, %v10343_v57  ;;  %v12498_v57 = vld [vmem:[#allocation21_spill] sm:$0xff]  ;;  %v12511_v29 = vld [vmem:[#allocation38_spill] sm:$0xff] }
0x13f1   : > { %v7206_v14 = vpop.eup %7205 }
0x13f2   : > { %v10537_v58 = vadd.f32 %v4432_v40, %v4431_v63  ;;  %v12510_v40 = vld [vmem:[#allocation44_spill] sm:$0xff]  ;;  %v12513_v63 = vld [vmem:[#allocation33_spill] sm:$0xff] }
0x13f4   : > { %7207 = vtanh.f32 %v10537_v58 }
0x1401   : > { %v7208_v28 = vpop.eup %7207 }
0x1402   : > { %v4435_v37 = vmul.f32 %v7208_v28, %v7206_v14  ;;  %v10597_v14 = vld [vmem:[#allocation14 + $0x30] sm:$0xff]  ;;  %v12515_v28 = vld [vmem:[#allocation48_spill] sm:$0xff] }
0x1403   : > { %12514 = vst [vmem:[#allocation49_spill] sm:$0xff] %v10597_v14 }
0x1404   : > { %4506 = vmatmul.mubr.f32.vlgmr.msra.gmra.mxu0 %v4435_v37  ;;  %4577 = vmatmul.mubr.f32.vlgmr.msra.gmra.mxu1 %v4435_v37  ;;  %v10601_v37 = vld [vmem:[#allocation14 + $0x18] sm:$0xff] }
0x1405   : > { %4617 = vmatpush1.msra.mxu0 %v10262_v39  ;;  %4688 = vmatpush1.msra.mxu1 %v10347_v35  ;;  %12516 = vst [vmem:[#allocation26_spill] sm:$0xff] %v10601_v37 }
0x1406   : > { %4618 = vmatprep.subr.mxu0 %v10350_v59  ;;  %4689 = vmatprep.subr.mxu1 %v10353_v42 }
0x1407   : > { %4619 = vmatpush1.msra.mxu0 %v10356_v60  ;;  %4690 = vmatpush1.msra.mxu1 %v10359_v23 }
0x1408   : > { %4620 = vmatprep.subr.mxu0 %v10362_v1  ;;  %4691 = vmatprep.subr.mxu1 %v10365_v34 }
0x1409   : > { %4621 = vmatpush1.msra.mxu0 %v10368_v25  ;;  %4692 = vmatpush1.msra.mxu1 %v10371_v13 }
0x140a   : > { %4622 = vmatprep.subr.mxu0 %v10374_v55  ;;  %4693 = vmatprep.subr.mxu1 %v10377_v2 }
0x140b   : > { %4623 = vmatpush1.msra.mxu0 %v10380_v18  ;;  %4694 = vmatpush1.msra.mxu1 %v10383_v22 }
0x140c   : > { %4624 = vmatprep.subr.mxu0 %v10386_v50  ;;  %4695 = vmatprep.subr.mxu1 %v10389_v52 }
0x140d   : > { %4625 = vmatpush1.msra.mxu0 %v10392_v17  ;;  %4696 = vmatpush1.msra.mxu1 %v10395_v48 }
0x140e   : > { %4626 = vmatprep.subr.mxu0 %v10398_v11  ;;  %4697 = vmatprep.subr.mxu1 %v10401_v61 }
0x140f   : > { %4627 = vmatpush1.msra.mxu0 %v10404_v30  ;;  %4698 = vmatpush1.msra.mxu1 %v10407_v27 }
0x1410   : > { %4628 = vmatprep.subr.mxu0 %v10410_v56  ;;  %4699 = vmatprep.subr.mxu1 %v10413_v12 }
0x1411   : > { %4629 = vmatpush1.msra.mxu0 %v10416_v0  ;;  %4700 = vmatpush1.msra.mxu1 %v10419_v54 }
0x1412   : > { %4630 = vmatprep.subr.mxu0 %v10422_v24  ;;  %4701 = vmatprep.subr.mxu1 %v10425_v16 }
0x1413   : > { %4631 = vmatpush1.msra.mxu0 %v10428_v62  ;;  %4702 = vmatpush1.msra.mxu1 %v10431_v53 }
0x1414   : > { %4632 = vmatprep.subr.mxu0 %v10434_v7  ;;  %4703 = vmatprep.subr.mxu1 %v10437_v8 }
0x1415   : > { %4633 = vmatpush1.msra.mxu0 %v10440_v49  ;;  %4704 = vmatpush1.msra.mxu1 %v10443_v20 }
0x1416   : > { %4634 = vmatprep.subr.mxu0 %v10446_v15  ;;  %4705 = vmatprep.subr.mxu1 %v10449_v51 }
0x1417   : > { %4635 = vmatpush1.msra.mxu0 %v10452_v33  ;;  %4706 = vmatpush1.msra.mxu1 %v10455_v43 }
0x1418   : > { %4636 = vmatprep.subr.mxu0 %v10458_v36  ;;  %4707 = vmatprep.subr.mxu1 %v10461_v26 }
0x1419   : > { %4637 = vmatpush1.msra.mxu0 %v10464_v41  ;;  %4708 = vmatpush1.msra.mxu1 %v12498_v57 }
0x141a   : > { %4638 = vmatprep.subr.mxu0 %v12499_v31  ;;  %4709 = vmatprep.subr.mxu1 %v12500_v38  ;;  %v12526_v38 = vld [vmem:[#allocation56_spill] sm:$0xff] }
0x141b   : > { %4639 = vmatpush1.msra.mxu0 %v12501_v46  ;;  %4710 = vmatpush1.msra.mxu1 %v12502_v4 }
0x141c   : > { %4640 = vmatprep.subr.mxu0 %v12503_v19  ;;  %4711 = vmatprep.subr.mxu1 %v12504_v5 }
0x141d   : > { %4641 = vmatpush1.msra.mxu0 %v12505_v44  ;;  %4712 = vmatpush1.msra.mxu1 %v12506_v47 }
0x141e   : > { %4642 = vmatprep.subr.mxu0 %v12507_v32  ;;  %4713 = vmatprep.subr.mxu1 %v12508_v6  ;;  %v12517_v6 = vld [vmem:[#allocation32_spill] sm:$0xff] }
0x141f   : > { %4643 = vmatpush1.msra.mxu0 %v12509_v45  ;;  %4714 = vmatpush1.msra.mxu1 %v12510_v40  ;;  %v12518_v45 = vmov 0.0   ;;  %v10606_v40 = vld [vmem:[#allocation14 + $0x10] sm:$0xff] }
0x1420   : > { %4644 = vmatprep.subr.mxu0 %v12511_v29  ;;  %4715 = vmatprep.subr.mxu1 %v12512_v9  ;;  %12519 = vst [vmem:[#allocation39_spill] sm:$0xff] %v10606_v40  ;;  %v12521_v9 = vld [vmem:[#allocation31_spill] sm:$0xff] }
0x1421   : > { %4645 = vmatpush1.msra.mxu0 %v12513_v63  ;;  %4716 = vmatpush1.msra.mxu1 %v10597_v14  ;;  %v12520_v63 = vld [vmem:[#allocation24_spill] sm:$0xff]  ;;  %v12522_v14 = vld [vmem:[#allocation98_spill] sm:$0xff] }
0x1422   : > { %4646 = vmatprep.subr.mxu0 %v12515_v28  ;;  %4717 = vmatprep.subr.mxu1 %v10601_v37  ;;  %v12523_v28 = vld [vmem:[#allocation55_spill] sm:$0xff]  ;;  %v12524_v37 = vld [vmem:[#allocation57_spill] sm:$0xff] }
0x1423   : > { %4647 = vmatpush1.msra.mxu0 %v12517_v6  ;;  %4680 = vmatprep.mubr.f32.mxu0 %v12518_v45  ;;  %v3376_v29 = vadd.f32 %v12523_v28, %v12522_v14  ;;  %v3378_v47 = vadd.f32 %v12524_v37, %v12444_v10  ;;  %v3537_v28 = vadd.f32 %v12526_v38, %v10175_v21 }
0x1424   : > { %4718 = vmatpush1.msra.mxu1 %v10606_v40  ;;  %4751 = vmatprep.mubr.f32.mxu1 %v12518_v45 }
0x1425   : > { %4791 = vmatprep.subr.mxu0 %v12520_v63  ;;  %4862 = vmatprep.subr.mxu1 %v12521_v9  ;;  %v12525_v63 = vld [vmem:[#allocation58_spill] sm:$0xff] }
0x1426   : > { %v3539_v46 = vadd.f32 %v12525_v63, %v10173_v3  ;;  %v12530_v63 = vld [vmem:[#allocation46_spill] sm:$0xff] }
0x14c4   : > { %v4507_v32 = vpop.f32.mrf.mxu0  ;;  %v4578_v4 = vpop.f32.mrf.mxu1 }
0x14c5   : > { %v4583_v6 = vadd.f32 %v4507_v32, %v3376_v29  ;;  %v4585_v14 = vadd.f32 %v4578_v4, %v3537_v28  ;;  %v12532_v28 = vld [vmem:[#allocation34_spill] sm:$0xff] }
0x14c6   : > { %v4509_v44 = vpop.f32.mrf.mxu0  ;;  %v4580_v45 = vpop.f32.mrf.mxu1 }
0x14c7   : > { %v6765_v5 = vmul.f32 -1.442695, %v4583_v6  ;;  %v4584_v19 = vadd.f32 %v4509_v44, %v3378_v47  ;;  %v4586_v9 = vadd.f32 %v4580_v45, %v3539_v46 }
0x14c9   : > { %7209 = vpow2.f32 %v6765_v5  ;;  %v6766_v40 = vmul.f32 -1.442695, %v4584_v19  ;;  %v6767_v31 = vmul.f32 -1.442695, %v4586_v9  ;;  %v12529_v9 = vld [vmem:[#allocation28_spill] sm:$0xff] }
0x14cb   : > { %7211 = vpow2.f32 %v6766_v40 }
0x14cc   : > { %7213 = vtanh.f32 %v4585_v14  ;;  %v12531_v14 = vld [vmem:[#allocation29_spill] sm:$0xff] }
0x14cd   : > { %7215 = vpow2.f32 %v6767_v31  ;;  %v12528_v31 = vld [vmem:[#allocation101_spill] sm:$0xff] }
0x14d6   : > { %v7210_v57 = vpop.eup %7209 }
0x14d7   : > { %v4590_v37 = vadd.f32 1.0, %v7210_v57 }
0x14d8   : > { %v7212_v32 = vpop.eup %7211 }
0x14d9   : > { %7217 = vrcp.f32 %v4590_v37  ;;  %v4596_v5 = vadd.f32 1.0, %v7212_v32  ;;  %v7214_v19 = vpop.eup %7213  ;;  %v12533_v37 = vld [vmem:[#allocation40_spill] sm:$0xff]  ;;  %v12534_v32 = vld [vmem:[#allocation30_spill] sm:$0xff] }
0x14da   : > { %v7216_v44 = vpop.eup %7215 }
0x14db   : > { %7219 = vrcp.f32 %v4596_v5  ;;  %v4603_v29 = vadd.f32 1.0, %v7216_v44  ;;  %v12535_v5 = vld [vmem:[#allocation22_spill] sm:$0xff]  ;;  %v12537_v44 = vld [vmem:[#allocation43_spill] sm:$0xff] }
0x14dd   : > { %7221 = vrcp.f32 %v4603_v29  ;;  %v12541_v29 = vld [vmem:[#allocation45_spill] sm:$0xff] }
0x14e6   : > { %v7218_v47 = vpop.eup %7217 }
0x14e7   : > { %v4607_v6 = vmul.f32 %v7218_v47, %v7214_v19  ;;  %v12536_v19 = vld [vmem:[#allocation27_spill] sm:$0xff]  ;;  %v12538_v47 = vld [vmem:[#allocation25_spill] sm:$0xff] }
0x14e8   : > { %v7220_v40 = vpop.eup %7219 }
0x14e9   : > { %v4606_v46 = vmul.f32 %v7220_v40, %v10537_v58  ;;  %v12527_v58 = vld [vmem:[#allocation21_spill] sm:$0xff]  ;;  %v12540_v40 = vld [vmem:[#allocation38_spill] sm:$0xff] }
0x14ea   : > { %v7222_v57 = vpop.eup %7221 }
0x14eb   : > { %v10621_v45 = vadd.f32 %v4607_v6, %v4606_v46  ;;  %v12539_v6 = vld [vmem:[#allocation44_spill] sm:$0xff]  ;;  %v12542_v46 = vld [vmem:[#allocation33_spill] sm:$0xff] }
0x14ed   : > { %7223 = vtanh.f32 %v10621_v45 }
0x14fa   : > { %v7224_v38 = vpop.eup %7223 }
0x14fb   : > { %v4610_v4 = vmul.f32 %v7224_v38, %v7222_v57  ;;  %v12543_v57 = vld [vmem:[#allocation49_spill] sm:$0xff]  ;;  %v12544_v38 = vld [vmem:[#allocation48_spill] sm:$0xff] }
0x14fd   : > { %4681 = vmatmul.mubr.f32.vlgmr.msra.gmra.mxu0 %v4610_v4  ;;  %4752 = vmatmul.mubr.f32.vlgmr.msra.gmra.mxu1 %v4610_v4  ;;  %v12545_v4 = vld [vmem:[#allocation26_spill] sm:$0xff] }
0x14fe   : > { %4792 = vmatpush1.msra.mxu0 %v10262_v39  ;;  %4863 = vmatpush1.msra.mxu1 %v10347_v35 }
0x14ff   : > { %4793 = vmatprep.subr.mxu0 %v10350_v59  ;;  %4864 = vmatprep.subr.mxu1 %v10353_v42 }
0x1500   : > { %4794 = vmatpush1.msra.mxu0 %v10356_v60  ;;  %4865 = vmatpush1.msra.mxu1 %v10359_v23 }
0x1501   : > { %4795 = vmatprep.subr.mxu0 %v10362_v1  ;;  %4866 = vmatprep.subr.mxu1 %v10365_v34 }
0x1502   : > { %4796 = vmatpush1.msra.mxu0 %v10368_v25  ;;  %4867 = vmatpush1.msra.mxu1 %v10371_v13 }
0x1503   : > { %4797 = vmatprep.subr.mxu0 %v10374_v55  ;;  %4868 = vmatprep.subr.mxu1 %v10377_v2 }
0x1504   : > { %4798 = vmatpush1.msra.mxu0 %v10380_v18  ;;  %4869 = vmatpush1.msra.mxu1 %v10383_v22 }
0x1505   : > { %4799 = vmatprep.subr.mxu0 %v10386_v50  ;;  %4870 = vmatprep.subr.mxu1 %v10389_v52 }
0x1506   : > { %4800 = vmatpush1.msra.mxu0 %v10392_v17  ;;  %4871 = vmatpush1.msra.mxu1 %v10395_v48 }
0x1507   : > { %4801 = vmatprep.subr.mxu0 %v10398_v11  ;;  %4872 = vmatprep.subr.mxu1 %v10401_v61 }
0x1508   : > { %4802 = vmatpush1.msra.mxu0 %v10404_v30  ;;  %4873 = vmatpush1.msra.mxu1 %v10407_v27 }
0x1509   : > { %4803 = vmatprep.subr.mxu0 %v10410_v56  ;;  %4874 = vmatprep.subr.mxu1 %v10413_v12 }
0x150a   : > { %4804 = vmatpush1.msra.mxu0 %v10416_v0  ;;  %4875 = vmatpush1.msra.mxu1 %v10419_v54 }
0x150b   : > { %4805 = vmatprep.subr.mxu0 %v10422_v24  ;;  %4876 = vmatprep.subr.mxu1 %v10425_v16 }
0x150c   : > { %4806 = vmatpush1.msra.mxu0 %v10428_v62  ;;  %4877 = vmatpush1.msra.mxu1 %v10431_v53 }
0x150d   : > { %4807 = vmatprep.subr.mxu0 %v10434_v7  ;;  %4878 = vmatprep.subr.mxu1 %v10437_v8 }
0x150e   : > { %4808 = vmatpush1.msra.mxu0 %v10440_v49  ;;  %4879 = vmatpush1.msra.mxu1 %v10443_v20 }
0x150f   : > { %4809 = vmatprep.subr.mxu0 %v10446_v15  ;;  %4880 = vmatprep.subr.mxu1 %v10449_v51 }
0x1510   : > { %4810 = vmatpush1.msra.mxu0 %v10452_v33  ;;  %4881 = vmatpush1.msra.mxu1 %v10455_v43 }
0x1511   : > { %4811 = vmatprep.subr.mxu0 %v10458_v36  ;;  %4882 = vmatprep.subr.mxu1 %v10461_v26 }
0x1512   : > { %4812 = vmatpush1.msra.mxu0 %v10464_v41  ;;  %4883 = vmatpush1.msra.mxu1 %v12527_v58 }
0x1513   : > { %4813 = vmatprep.subr.mxu0 %v12528_v31  ;;  %4884 = vmatprep.subr.mxu1 %v12529_v9  ;;  %v12555_v9 = vld [vmem:[#allocation60_spill] sm:$0xff] }
0x1514   : > { %4814 = vmatpush1.msra.mxu0 %v12530_v63  ;;  %4885 = vmatpush1.msra.mxu1 %v12531_v14 }
0x1515   : > { %4815 = vmatprep.subr.mxu0 %v12532_v28  ;;  %4886 = vmatprep.subr.mxu1 %v12533_v37 }
0x1516   : > { %4816 = vmatpush1.msra.mxu0 %v12534_v32  ;;  %4887 = vmatpush1.msra.mxu1 %v12535_v5  ;;  %v12546_v5 = vld [vmem:[#allocation32_spill] sm:$0xff] }
0x1517   : > { %4817 = vmatprep.subr.mxu0 %v12536_v19  ;;  %4888 = vmatprep.subr.mxu1 %v12537_v44  ;;  %v12547_v19 = vmov 0.0   ;;  %v12548_v44 = vld [vmem:[#allocation39_spill] sm:$0xff] }
0x1518   : > { %4818 = vmatpush1.msra.mxu0 %v12538_v47  ;;  %4889 = vmatpush1.msra.mxu1 %v12539_v6  ;;  %v12549_v6 = vld [vmem:[#allocation24_spill] sm:$0xff] }
0x1519   : > { %4819 = vmatprep.subr.mxu0 %v12540_v40  ;;  %4890 = vmatprep.subr.mxu1 %v12541_v29  ;;  %v12550_v40 = vld [vmem:[#allocation31_spill] sm:$0xff]  ;;  %v12551_v29 = vld [vmem:[#allocation98_spill] sm:$0xff] }
0x151a   : > { %4820 = vmatpush1.msra.mxu0 %v12542_v46  ;;  %4891 = vmatpush1.msra.mxu1 %v12543_v57  ;;  %v12552_v46 = vld [vmem:[#allocation59_spill] sm:$0xff] }
0x151b   : > { %4821 = vmatprep.subr.mxu0 %v12544_v38  ;;  %4892 = vmatprep.subr.mxu1 %v12545_v4  ;;  %v3382_v47 = vadd.f32 %v12552_v46, %v12551_v29  ;;  %v12553_v38 = vld [vmem:[#allocation61_spill] sm:$0xff]  ;;  %v3543_v46 = vadd.f32 %v12555_v9, %v10175_v21 }
0x151c   : > { %4822 = vmatpush1.msra.mxu0 %v12546_v5  ;;  %4855 = vmatprep.mubr.f32.mxu0 %v12547_v19  ;;  %v3384_v32 = vadd.f32 %v12553_v38, %v12444_v10 }
0x151d   : > { %4893 = vmatpush1.msra.mxu1 %v12548_v44  ;;  %4926 = vmatprep.mubr.f32.mxu1 %v12547_v19 }
0x151e   : > { %4966 = vmatprep.subr.mxu0 %v12549_v6  ;;  %5037 = vmatprep.subr.mxu1 %v12550_v40  ;;  %v12554_v6 = vld [vmem:[#allocation62_spill] sm:$0xff] }
0x151f   : > { %v3545_v63 = vadd.f32 %v12554_v6, %v10173_v3 }
0x15bd   : > { %v4682_v57 = vpop.f32.mrf.mxu0  ;;  %v4753_v14 = vpop.f32.mrf.mxu1 }
0x15be   : > { %v4758_v4 = vadd.f32 %v4682_v57, %v3382_v47  ;;  %v4760_v29 = vadd.f32 %v4753_v14, %v3543_v46  ;;  %v12562_v46 = vld [vmem:[#allocation40_spill] sm:$0xff] }
0x15bf   : > { %v4684_v37 = vpop.f32.mrf.mxu0  ;;  %v4755_v19 = vpop.f32.mrf.mxu1 }
0x15c0   : > { %v6768_v5 = vmul.f32 -1.442695, %v4758_v4  ;;  %v4759_v28 = vadd.f32 %v4684_v37, %v3384_v32  ;;  %v4761_v40 = vadd.f32 %v4755_v19, %v3545_v63  ;;  %v12561_v4 = vld [vmem:[#allocation34_spill] sm:$0xff] }
0x15c2   : > { %7225 = vpow2.f32 %v6768_v5  ;;  %v6769_v44 = vmul.f32 -1.442695, %v4759_v28  ;;  %v6770_v31 = vmul.f32 -1.442695, %v4761_v40  ;;  %v12559_v40 = vld [vmem:[#allocation46_spill] sm:$0xff] }
0x15c4   : > { %7227 = vpow2.f32 %v6769_v44 }
0x15c5   : > { %7229 = vtanh.f32 %v4760_v29  ;;  %v12560_v29 = vld [vmem:[#allocation29_spill] sm:$0xff] }
0x15c6   : > { %7231 = vpow2.f32 %v6770_v31  ;;  %v12558_v31 = vld [vmem:[#allocation28_spill] sm:$0xff] }
0x15cf   : > { %v7226_v58 = vpop.eup %7225 }
0x15d0   : > { %v4765_v38 = vadd.f32 1.0, %v7226_v58 }
0x15d1   : > { %v7228_v47 = vpop.eup %7227 }
0x15d2   : > { %7233 = vrcp.f32 %v4765_v38  ;;  %v4771_v37 = vadd.f32 1.0, %v7228_v47  ;;  %v7230_v28 = vpop.eup %7229  ;;  %v12563_v38 = vld [vmem:[#allocation30_spill] sm:$0xff] }
0x15d3   : > { %v7232_v32 = vpop.eup %7231  ;;  %v12564_v47 = vld [vmem:[#allocation22_spill] sm:$0xff] }
0x15d4   : > { %7235 = vrcp.f32 %v4771_v37  ;;  %v4778_v6 = vadd.f32 1.0, %v7232_v32  ;;  %v12565_v37 = vld [vmem:[#allocation27_spill] sm:$0xff]  ;;  %v12567_v32 = vld [vmem:[#allocation25_spill] sm:$0xff] }
0x15d6   : > { %7237 = vrcp.f32 %v4778_v6  ;;  %v12571_v6 = vld [vmem:[#allocation33_spill] sm:$0xff] }
0x15df   : > { %v7234_v5 = vpop.eup %7233 }
0x15e0   : > { %v4782_v44 = vmul.f32 %v7234_v5, %v7230_v28  ;;  %v12566_v28 = vld [vmem:[#allocation43_spill] sm:$0xff]  ;;  %v12568_v5 = vld [vmem:[#allocation44_spill] sm:$0xff] }
0x15e1   : > { %v7236_v57 = vpop.eup %7235 }
0x15e2   : > { %v4781_v63 = vmul.f32 %v7236_v57, %v10621_v45  ;;  %v12557_v45 = vld [vmem:[#allocation101_spill] sm:$0xff] }
0x15e3   : > { %v7238_v58 = vpop.eup %7237  ;;  %v12570_v57 = vld [vmem:[#allocation45_spill] sm:$0xff] }
0x15e4   : > { %v10699_v19 = vadd.f32 %v4782_v44, %v4781_v63  ;;  %v12569_v44 = vld [vmem:[#allocation38_spill] sm:$0xff]  ;;  %v12572_v63 = vld [vmem:[#allocation49_spill] sm:$0xff] }
0x15e6   : > { %7239 = vtanh.f32 %v10699_v19 }
0x15f3   : > { %v7240_v9 = vpop.eup %7239 }
0x15f4   : > { %v4785_v14 = vmul.f32 %v7240_v9, %v7238_v58  ;;  %v12573_v58 = vld [vmem:[#allocation48_spill] sm:$0xff]  ;;  %v12574_v9 = vld [vmem:[#allocation26_spill] sm:$0xff] }
0x15f6   : > { %4856 = vmatmul.mubr.f32.vlgmr.msra.gmra.mxu0 %v4785_v14  ;;  %4927 = vmatmul.mubr.f32.vlgmr.msra.gmra.mxu1 %v4785_v14  ;;  %v12575_v14 = vld [vmem:[#allocation32_spill] sm:$0xff] }
0x15f7   : > { %4967 = vmatpush1.msra.mxu0 %v10262_v39  ;;  %5038 = vmatpush1.msra.mxu1 %v10347_v35  ;;  %v12556_v39 = vld [vmem:[#allocation21_spill] sm:$0xff] }
0x15f8   : > { %4968 = vmatprep.subr.mxu0 %v10350_v59  ;;  %5039 = vmatprep.subr.mxu1 %v10353_v42 }
0x15f9   : > { %4969 = vmatpush1.msra.mxu0 %v10356_v60  ;;  %5040 = vmatpush1.msra.mxu1 %v10359_v23 }
0x15fa   : > { %4970 = vmatprep.subr.mxu0 %v10362_v1  ;;  %5041 = vmatprep.subr.mxu1 %v10365_v34 }
0x15fb   : > { %4971 = vmatpush1.msra.mxu0 %v10368_v25  ;;  %5042 = vmatpush1.msra.mxu1 %v10371_v13 }
0x15fc   : > { %4972 = vmatprep.subr.mxu0 %v10374_v55  ;;  %5043 = vmatprep.subr.mxu1 %v10377_v2 }
0x15fd   : > { %4973 = vmatpush1.msra.mxu0 %v10380_v18  ;;  %5044 = vmatpush1.msra.mxu1 %v10383_v22 }
0x15fe   : > { %4974 = vmatprep.subr.mxu0 %v10386_v50  ;;  %5045 = vmatprep.subr.mxu1 %v10389_v52 }
0x15ff   : > { %4975 = vmatpush1.msra.mxu0 %v10392_v17  ;;  %5046 = vmatpush1.msra.mxu1 %v10395_v48 }
0x1600   : > { %4976 = vmatprep.subr.mxu0 %v10398_v11  ;;  %5047 = vmatprep.subr.mxu1 %v10401_v61 }
0x1601   : > { %4977 = vmatpush1.msra.mxu0 %v10404_v30  ;;  %5048 = vmatpush1.msra.mxu1 %v10407_v27 }
0x1602   : > { %4978 = vmatprep.subr.mxu0 %v10410_v56  ;;  %5049 = vmatprep.subr.mxu1 %v10413_v12 }
0x1603   : > { %4979 = vmatpush1.msra.mxu0 %v10416_v0  ;;  %5050 = vmatpush1.msra.mxu1 %v10419_v54 }
0x1604   : > { %4980 = vmatprep.subr.mxu0 %v10422_v24  ;;  %5051 = vmatprep.subr.mxu1 %v10425_v16 }
0x1605   : > { %4981 = vmatpush1.msra.mxu0 %v10428_v62  ;;  %5052 = vmatpush1.msra.mxu1 %v10431_v53 }
0x1606   : > { %4982 = vmatprep.subr.mxu0 %v10434_v7  ;;  %5053 = vmatprep.subr.mxu1 %v10437_v8 }
0x1607   : > { %4983 = vmatpush1.msra.mxu0 %v10440_v49  ;;  %5054 = vmatpush1.msra.mxu1 %v10443_v20 }
0x1608   : > { %4984 = vmatprep.subr.mxu0 %v10446_v15  ;;  %5055 = vmatprep.subr.mxu1 %v10449_v51 }
0x1609   : > { %4985 = vmatpush1.msra.mxu0 %v10452_v33  ;;  %5056 = vmatpush1.msra.mxu1 %v10455_v43 }
0x160a   : > { %4986 = vmatprep.subr.mxu0 %v10458_v36  ;;  %5057 = vmatprep.subr.mxu1 %v10461_v26 }
0x160b   : > { %4987 = vmatpush1.msra.mxu0 %v10464_v41  ;;  %5058 = vmatpush1.msra.mxu1 %v12556_v39 }
0x160c   : > { %4988 = vmatprep.subr.mxu0 %v12557_v45  ;;  %5059 = vmatprep.subr.mxu1 %v12558_v31 }
0x160d   : > { %4989 = vmatpush1.msra.mxu0 %v12559_v40  ;;  %5060 = vmatpush1.msra.mxu1 %v12560_v29  ;;  %v12584_v40 = vld [vmem:[#allocation64_spill] sm:$0xff] }
0x160e   : > { %4990 = vmatprep.subr.mxu0 %v12561_v4  ;;  %5061 = vmatprep.subr.mxu1 %v12562_v46 }
0x160f   : > { %4991 = vmatpush1.msra.mxu0 %v12563_v38  ;;  %5062 = vmatpush1.msra.mxu1 %v12564_v47 }
0x1610   : > { %4992 = vmatprep.subr.mxu0 %v12565_v37  ;;  %5063 = vmatprep.subr.mxu1 %v12566_v28  ;;  %v12576_v37 = vmov 0.0   ;;  %v12577_v28 = vld [vmem:[#allocation39_spill] sm:$0xff] }
0x1611   : > { %4993 = vmatpush1.msra.mxu0 %v12567_v32  ;;  %5064 = vmatpush1.msra.mxu1 %v12568_v5  ;;  %v12578_v5 = vld [vmem:[#allocation24_spill] sm:$0xff] }
0x1612   : > { %4994 = vmatprep.subr.mxu0 %v12569_v44  ;;  %5065 = vmatprep.subr.mxu1 %v12570_v57  ;;  %v12579_v44 = vld [vmem:[#allocation31_spill] sm:$0xff]  ;;  %v12580_v57 = vld [vmem:[#allocation98_spill] sm:$0xff] }
0x1613   : > { %4995 = vmatpush1.msra.mxu0 %v12571_v6  ;;  %5066 = vmatpush1.msra.mxu1 %v12572_v63  ;;  %v12581_v6 = vld [vmem:[#allocation63_spill] sm:$0xff] }
0x1614   : > { %4996 = vmatprep.subr.mxu0 %v12573_v58  ;;  %5067 = vmatprep.subr.mxu1 %v12574_v9  ;;  %v3388_v32 = vadd.f32 %v12581_v6, %v12580_v57  ;;  %v12582_v58 = vld [vmem:[#allocation65_spill] sm:$0xff]  ;;  %v3549_v6 = vadd.f32 %v12584_v40, %v10175_v21 }
0x1615   : > { %4997 = vmatpush1.msra.mxu0 %v12575_v14  ;;  %5030 = vmatprep.mubr.f32.mxu0 %v12576_v37  ;;  %v3390_v47 = vadd.f32 %v12582_v58, %v12444_v10 }
0x1616   : > { %5068 = vmatpush1.msra.mxu1 %v12577_v28  ;;  %5101 = vmatprep.mubr.f32.mxu1 %v12576_v37 }
0x1617   : > { %5141 = vmatprep.subr.mxu0 %v12578_v5  ;;  %5212 = vmatprep.subr.mxu1 %v12579_v44  ;;  %v12583_v5 = vld [vmem:[#allocation66_spill] sm:$0xff] }
0x1618   : > { %v3551_v29 = vadd.f32 %v12583_v5, %v10173_v3 }
0x16b6   : > { %v4857_v63 = vpop.f32.mrf.mxu0  ;;  %v4928_v4 = vpop.f32.mrf.mxu1 }
0x16b7   : > { %v4933_v9 = vadd.f32 %v4857_v63, %v3388_v32  ;;  %v4935_v57 = vadd.f32 %v4928_v4, %v3549_v6 }
0x16b8   : > { %v4859_v38 = vpop.f32.mrf.mxu0  ;;  %v4930_v37 = vpop.f32.mrf.mxu1 }
0x16b9   : > { %v6771_v14 = vmul.f32 -1.442695, %v4933_v9  ;;  %v4934_v46 = vadd.f32 %v4859_v38, %v3390_v47  ;;  %v4936_v44 = vadd.f32 %v4930_v37, %v3551_v29 }
0x16bb   : > { %7241 = vpow2.f32 %v6771_v14  ;;  %v6772_v28 = vmul.f32 -1.442695, %v4934_v46  ;;  %v6773_v31 = vmul.f32 -1.442695, %v4936_v44 }
0x16bd   : > { %7243 = vpow2.f32 %v6772_v28 }
0x16be   : > { %7245 = vtanh.f32 %v4935_v57 }
0x16bf   : > { %7247 = vpow2.f32 %v6773_v31  ;;  %v10780_v31 = vld [vmem:[#allocation14 + $0x1e0] sm:$0xff] }
0x16c8   : > { %v7242_v45 = vpop.eup %7241 }
0x16c9   : > { %v4940_v58 = vadd.f32 1.0, %v7242_v45 }
0x16ca   : > { %v7244_v32 = vpop.eup %7243 }
0x16cb   : > { %7249 = vrcp.f32 %v4940_v58  ;;  %v4946_v38 = vadd.f32 1.0, %v7244_v32  ;;  %v7246_v46 = vpop.eup %7245 }
0x16cc   : > { %v7248_v47 = vpop.eup %7247 }
0x16cd   : > { %7251 = vrcp.f32 %v4946_v38  ;;  %v4953_v14 = vadd.f32 1.0, %v7248_v47 }
0x16cf   : > { %7253 = vrcp.f32 %v4953_v14 }
0x16d8   : > { %v7250_v28 = vpop.eup %7249 }
0x16d9   : > { %v4957_v63 = vmul.f32 %v7250_v28, %v7246_v46 }
0x16da   : > { %v7252_v9 = vpop.eup %7251 }
0x16db   : > { %v4956_v29 = vmul.f32 %v7252_v9, %v10699_v19 }
0x16dc   : > { %v7254_v45 = vpop.eup %7253 }
0x16dd   : > { %v10777_v37 = vadd.f32 %v4957_v63, %v4956_v29 }
0x16df   : > { %7255 = vtanh.f32 %v10777_v37 }
0x16ec   : > { %v7256_v40 = vpop.eup %7255 }
0x16ed   : > { %v4960_v4 = vmul.f32 %v7256_v40, %v7254_v45 }
0x16ef   : > { %5031 = vmatmul.mubr.f32.vlgmr.msra.gmra.mxu0 %v4960_v4  ;;  %5102 = vmatmul.mubr.f32.vlgmr.msra.gmra.mxu1 %v4960_v4  ;;  %v10865_v4 = vld [vmem:[#allocation14 + $0x1f0] sm:$0xff] }
0x16f0   : > { %5142 = vmatpush1.msra.mxu0 %v10780_v31  ;;  %5213 = vmatpush1.msra.mxu1 %v10347_v35  ;;  %v12585_v35 = vld [vmem:[#allocation101_spill] sm:$0xff] }
0x16f1   : > { %5143 = vmatprep.subr.mxu0 %v10350_v59  ;;  %5214 = vmatprep.subr.mxu1 %v10353_v42  ;;  %v12586_v59 = vld [vmem:[#allocation28_spill] sm:$0xff]  ;;  %v12587_v42 = vld [vmem:[#allocation46_spill] sm:$0xff] }
0x16f2   : > { %5144 = vmatpush1.msra.mxu0 %v10356_v60  ;;  %5215 = vmatpush1.msra.mxu1 %v10359_v23  ;;  %v12588_v60 = vld [vmem:[#allocation29_spill] sm:$0xff]  ;;  %v12589_v23 = vld [vmem:[#allocation34_spill] sm:$0xff] }
0x16f3   : > { %5145 = vmatprep.subr.mxu0 %v10362_v1  ;;  %5216 = vmatprep.subr.mxu1 %v10365_v34  ;;  %v12590_v1 = vld [vmem:[#allocation40_spill] sm:$0xff]  ;;  %v12591_v34 = vld [vmem:[#allocation30_spill] sm:$0xff] }
0x16f4   : > { %5146 = vmatpush1.msra.mxu0 %v10368_v25  ;;  %5217 = vmatpush1.msra.mxu1 %v10371_v13  ;;  %v12592_v25 = vld [vmem:[#allocation22_spill] sm:$0xff]  ;;  %v12593_v13 = vld [vmem:[#allocation27_spill] sm:$0xff] }
0x16f5   : > { %5147 = vmatprep.subr.mxu0 %v10374_v55  ;;  %5218 = vmatprep.subr.mxu1 %v10377_v2  ;;  %v12594_v55 = vld [vmem:[#allocation43_spill] sm:$0xff]  ;;  %v12595_v2 = vld [vmem:[#allocation25_spill] sm:$0xff] }
0x16f6   : > { %5148 = vmatpush1.msra.mxu0 %v10380_v18  ;;  %5219 = vmatpush1.msra.mxu1 %v10383_v22  ;;  %v12596_v18 = vld [vmem:[#allocation44_spill] sm:$0xff]  ;;  %v12597_v22 = vld [vmem:[#allocation38_spill] sm:$0xff] }
0x16f7   : > { %5149 = vmatprep.subr.mxu0 %v10386_v50  ;;  %5220 = vmatprep.subr.mxu1 %v10389_v52  ;;  %v12598_v50 = vld [vmem:[#allocation45_spill] sm:$0xff] }
0x16f8   : > { %5150 = vmatpush1.msra.mxu0 %v10392_v17  ;;  %5221 = vmatpush1.msra.mxu1 %v10395_v48  ;;  %v12599_v52 = vld [vmem:[#allocation33_spill] sm:$0xff]  ;;  %v12601_v48 = vld [vmem:[#allocation48_spill] sm:$0xff] }
0x16f9   : > { %5151 = vmatprep.subr.mxu0 %v10398_v11  ;;  %5222 = vmatprep.subr.mxu1 %v10401_v61  ;;  %v12600_v17 = vld [vmem:[#allocation49_spill] sm:$0xff]  ;;  %v12602_v11 = vld [vmem:[#allocation26_spill] sm:$0xff]  ;;  %v12603_v61 = vld [vmem:[#allocation32_spill] sm:$0xff] }
0x16fa   : > { %5152 = vmatpush1.msra.mxu0 %v10404_v30  ;;  %5223 = vmatpush1.msra.mxu1 %v10407_v27  ;;  %v12604_v30 = vmov 0.0   ;;  %v12605_v27 = vld [vmem:[#allocation39_spill] sm:$0xff] }
0x16fb   : > { %5153 = vmatprep.subr.mxu0 %v10410_v56  ;;  %5224 = vmatprep.subr.mxu1 %v10413_v12  ;;  %v10846_v56 = vld [vmem:[#allocation14 + $0x1e8] sm:$0xff]  ;;  %v10849_v12 = vld [vmem:[#allocation14 + $0x1f8] sm:$0xff] }
0x16fc   : > { %5154 = vmatpush1.msra.mxu0 %v10416_v0  ;;  %5225 = vmatpush1.msra.mxu1 %v10419_v54  ;;  %12606 = vst [vmem:[#allocation36_spill] sm:$0xff] %v10846_v56  ;;  %12607 = vst [vmem:[#allocation41_spill] sm:$0xff] %v10849_v12  ;;  %v12608_v0 = vld [vmem:[#allocation98_spill] sm:$0xff]  ;;  %v12609_v54 = vld [vmem:[#allocation67_spill] sm:$0xff] }
0x16fd   : > { %5155 = vmatprep.subr.mxu0 %v10422_v24  ;;  %5226 = vmatprep.subr.mxu1 %v10425_v16  ;;  %v3394_v24 = vadd.f32 %v12609_v54, %v12608_v0  ;;  %v10922_v54 = vld [vmem:[#allocation14 + $0x140] sm:$0xff] }
0x16fe   : > { %5156 = vmatpush1.msra.mxu0 %v10428_v62  ;;  %5227 = vmatpush1.msra.mxu1 %v10431_v53  ;;  %v12610_v62 = vld [vmem:[#allocation69_spill] sm:$0xff] }
0x16ff   : > { %5157 = vmatprep.subr.mxu0 %v10434_v7  ;;  %5228 = vmatprep.subr.mxu1 %v10437_v8  ;;  %v3396_v53 = vadd.f32 %v12610_v62, %v12444_v10  ;;  %v10931_v62 = vld [vmem:[#allocation14 + $0x138] sm:$0xff] }
0x1700   : > { %5158 = vmatpush1.msra.mxu0 %v10440_v49  ;;  %5229 = vmatpush1.msra.mxu1 %v10443_v20 }
0x1701   : > { %5159 = vmatprep.subr.mxu0 %v10446_v15  ;;  %5230 = vmatprep.subr.mxu1 %v10449_v51 }
0x1702   : > { %5160 = vmatpush1.msra.mxu0 %v10452_v33  ;;  %5231 = vmatpush1.msra.mxu1 %v10455_v43  ;;  %v12611_v43 = vld [vmem:[#allocation70_spill] sm:$0xff] }
0x1703   : > { %5161 = vmatprep.subr.mxu0 %v10458_v36  ;;  %5232 = vmatprep.subr.mxu1 %v10461_v26  ;;  %v3557_v36 = vadd.f32 %v12611_v43, %v10173_v3  ;;  %v10958_v43 = vld [vmem:[#allocation14 + $0xe0] sm:$0xff] }
0x1704   : > { %5162 = vmatpush1.msra.mxu0 %v10464_v41  ;;  %5233 = vmatpush1.msra.mxu1 %v12556_v39  ;;  %v12612_v41 = vld [vmem:[#allocation68_spill] sm:$0xff] }
0x1705   : > { %5163 = vmatprep.subr.mxu0 %v12585_v35  ;;  %5234 = vmatprep.subr.mxu1 %v12586_v59  ;;  %v3555_v19 = vadd.f32 %v12612_v41, %v10175_v21  ;;  %v10868_v35 = vld [vmem:[#allocation14 + $0x1c8] sm:$0xff]  ;;  %v10874_v59 = vld [vmem:[#allocation14 + $0x1c0] sm:$0xff]  ;;  %v10967_v41 = vld [vmem:[#allocation14 + $0xd8] sm:$0xff] }
0x1706   : > { %5164 = vmatpush1.msra.mxu0 %v12587_v42  ;;  %5235 = vmatpush1.msra.mxu1 %v12588_v60  ;;  %v10877_v42 = vld [vmem:[#allocation14 + $0x1d0] sm:$0xff]  ;;  %v10880_v60 = vld [vmem:[#allocation14 + $0x1a8] sm:$0xff] }
0x1707   : > { %5165 = vmatprep.subr.mxu0 %v12589_v23  ;;  %5236 = vmatprep.subr.mxu1 %v12590_v1  ;;  %v10883_v23 = vld [vmem:[#allocation14 + $0x1b8] sm:$0xff]  ;;  %v10886_v1 = vld [vmem:[#allocation14 + $0x1a0] sm:$0xff] }
0x1708   : > { %5166 = vmatpush1.msra.mxu0 %v12591_v34  ;;  %5237 = vmatpush1.msra.mxu1 %v12592_v25  ;;  %v10889_v34 = vld [vmem:[#allocation14 + $0x1b0] sm:$0xff]  ;;  %v10892_v25 = vld [vmem:[#allocation14 + $0x188] sm:$0xff] }
0x1709   : > { %5167 = vmatprep.subr.mxu0 %v12593_v13  ;;  %5238 = vmatprep.subr.mxu1 %v12594_v55  ;;  %v10895_v13 = vld [vmem:[#allocation14 + $0x198] sm:$0xff]  ;;  %v10898_v55 = vld [vmem:[#allocation14 + $0x180] sm:$0xff] }
0x170a   : > { %5168 = vmatpush1.msra.mxu0 %v12595_v2  ;;  %5239 = vmatpush1.msra.mxu1 %v12596_v18  ;;  %v10901_v2 = vld [vmem:[#allocation14 + $0x190] sm:$0xff]  ;;  %v10904_v18 = vld [vmem:[#allocation14 + $0x168] sm:$0xff] }
0x170b   : > { %5169 = vmatprep.subr.mxu0 %v12597_v22  ;;  %5240 = vmatprep.subr.mxu1 %v12598_v50  ;;  %v10907_v22 = vld [vmem:[#allocation14 + $0x178] sm:$0xff]  ;;  %v10910_v50 = vld [vmem:[#allocation14 + $0x160] sm:$0xff] }
0x170c   : > { %5170 = vmatpush1.msra.mxu0 %v12599_v52  ;;  %5241 = vmatpush1.msra.mxu1 %v12600_v17  ;;  %v10913_v52 = vld [vmem:[#allocation14 + $0x170] sm:$0xff] }
0x170d   : > { %5171 = vmatprep.subr.mxu0 %v12601_v48  ;;  %5242 = vmatprep.subr.mxu1 %v12602_v11  ;;  %v10916_v48 = vld [vmem:[#allocation14 + $0x148] sm:$0xff] }
0x170e   : > { %5172 = vmatpush1.msra.mxu0 %v12603_v61  ;;  %5205 = vmatprep.mubr.f32.mxu0 %v12604_v30  ;;  %v10919_v61 = vld [vmem:[#allocation14 + $0x158] sm:$0xff] }
0x170f   : > { %5243 = vmatpush1.msra.mxu1 %v12605_v27  ;;  %5276 = vmatprep.mubr.f32.mxu1 %v12604_v30 }
0x1710   : > { %5316 = vmatprep.subr.mxu0 %v10846_v56  ;;  %5387 = vmatprep.subr.mxu1 %v10849_v12 }
0x17af   : > { %v5032_v16 = vpop.f32.mrf.mxu0  ;;  %v5103_v15 = vpop.f32.mrf.mxu1 }
0x17b0   : > { %v5108_v7 = vadd.f32 %v5032_v16, %v3394_v24  ;;  %v5110_v39 = vadd.f32 %v5103_v15, %v3555_v19  ;;  %v10925_v24 = vld [vmem:[#allocation14 + $0x150] sm:$0xff]  ;;  %v10928_v16 = vld [vmem:[#allocation14 + $0x128] sm:$0xff]  ;;  %v10970_v19 = vld [vmem:[#allocation14 + $0xc0] sm:$0xff] }
0x17b1   : > { %v5034_v8 = vpop.f32.mrf.mxu0  ;;  %v5105_v33 = vpop.f32.mrf.mxu1  ;;  %v10949_v15 = vld [vmem:[#allocation14 + $0x110] sm:$0xff] }
0x17b2   : > { %v6774_v49 = vmul.f32 -1.442695, %v5108_v7  ;;  %v5109_v20 = vadd.f32 %v5034_v8, %v3396_v53  ;;  %v5111_v26 = vadd.f32 %v5105_v33, %v3557_v36  ;;  %v10934_v53 = vld [vmem:[#allocation14 + $0x120] sm:$0xff]  ;;  %v10937_v7 = vld [vmem:[#allocation14 + $0x130] sm:$0xff]  ;;  %v10940_v8 = vld [vmem:[#allocation14 + $0x108] sm:$0xff] }
0x17b3   : > { %v10955_v33 = vld [vmem:[#allocation14 + $0xf8] sm:$0xff]  ;;  %v10961_v36 = vld [vmem:[#allocation14 + $0xf0] sm:$0xff] }
0x17b4   : > { %7257 = vpow2.f32 %v6774_v49  ;;  %v6775_v51 = vmul.f32 -1.442695, %v5109_v20  ;;  %v6776_v57 = vmul.f32 -1.442695, %v5111_v26  ;;  %v10943_v49 = vld [vmem:[#allocation14 + $0x118] sm:$0xff]  ;;  %v10946_v20 = vld [vmem:[#allocation14 + $0x100] sm:$0xff] }
0x17b5   : > { %v10964_v26 = vld [vmem:[#allocation14 + $0xc8] sm:$0xff] }
0x17b6   : > { %7259 = vpow2.f32 %v6775_v51  ;;  %v10952_v51 = vld [vmem:[#allocation14 + $0xe8] sm:$0xff] }
0x17b7   : > { %7261 = vtanh.f32 %v5110_v39  ;;  %v10973_v39 = vld [vmem:[#allocation14 + $0xd0] sm:$0xff] }
0x17b8   : > { %7263 = vpow2.f32 %v6776_v57  ;;  %v10976_v57 = vld [vmem:[#allocation14 + $0xa8] sm:$0xff] }
0x17c1   : > { %v7258_v5 = vpop.eup %7257 }
0x17c2   : > { %v5115_v44 = vadd.f32 1.0, %v7258_v5  ;;  %v10979_v5 = vld [vmem:[#allocation14 + $0xb8] sm:$0xff] }
0x17c3   : > { %v7260_v6 = vpop.eup %7259 }
0x17c4   : > { %7265 = vrcp.f32 %v5115_v44  ;;  %v5121_v58 = vadd.f32 1.0, %v7260_v6  ;;  %v7262_v32 = vpop.eup %7261  ;;  %v10982_v44 = vld [vmem:[#allocation14 + $0xa0] sm:$0xff]  ;;  %v10985_v6 = vld [vmem:[#allocation14 + $0xb0] sm:$0xff] }
0x17c5   : > { %v7264_v38 = vpop.eup %7263  ;;  %12613 = vst [vmem:[#allocation50_spill] sm:$0xff] %v10985_v6 }
0x17c6   : > { %7267 = vrcp.f32 %v5121_v58  ;;  %v5128_v63 = vadd.f32 1.0, %v7264_v38  ;;  %v10988_v58 = vld [vmem:[#allocation14 + $0x88] sm:$0xff]  ;;  %v10994_v38 = vld [vmem:[#allocation14 + $0x80] sm:$0xff] }
0x17c7   : > { %12614 = vst [vmem:[#allocation42_spill] sm:$0xff] %v10988_v58  ;;  %12616 = vst [vmem:[#allocation37_spill] sm:$0xff] %v10994_v38 }
0x17c8   : > { %7269 = vrcp.f32 %v5128_v63  ;;  %v11006_v63 = vld [vmem:[#allocation14 + $0x60] sm:$0xff] }
0x17c9   : > { %12620 = vst [vmem:[#allocation53_spill] sm:$0xff] %v11006_v63 }
0x17d1   : > { %v7266_v46 = vpop.eup %7265 }
0x17d2   : > { %v5132_v47 = vmul.f32 %v7266_v46, %v7262_v32  ;;  %v10991_v32 = vld [vmem:[#allocation14 + $0x98] sm:$0xff]  ;;  %v10997_v46 = vld [vmem:[#allocation14 + $0x90] sm:$0xff] }
0x17d3   : > { %v7268_v28 = vpop.eup %7267  ;;  %12615 = vst [vmem:[#allocation47_spill] sm:$0xff] %v10991_v32  ;;  %12617 = vst [vmem:[#allocation35_spill] sm:$0xff] %v10997_v46 }
0x17d4   : > { %v5131_v9 = vmul.f32 %v7268_v28, %v10777_v37  ;;  %v10871_v37 = vld [vmem:[#allocation14 + $0x1d8] sm:$0xff] }
0x17d5   : > { %v7270_v29 = vpop.eup %7269  ;;  %v11003_v28 = vld [vmem:[#allocation14 + $0x78] sm:$0xff] }
0x17d6   : > { %v10861_v14 = vadd.f32 %v5132_v47, %v5131_v9  ;;  %v11000_v47 = vld [vmem:[#allocation14 + $0x68] sm:$0xff]  ;;  %12619 = vst [vmem:[#allocation51_spill] sm:$0xff] %v11003_v28  ;;  %v11009_v9 = vld [vmem:[#allocation14 + $0x70] sm:$0xff] }
0x17d7   : > { %12618 = vst [vmem:[#allocation23_spill] sm:$0xff] %v11000_v47  ;;  %12621 = vst [vmem:[#allocation54_spill] sm:$0xff] %v11009_v9 }
0x17d8   : > { %7271 = vtanh.f32 %v10861_v14 }
0x17e5   : > { %v7272_v45 = vpop.eup %7271 }
0x17e6   : > { %v5135_v40 = vmul.f32 %v7272_v45, %v7270_v29  ;;  %v11012_v29 = vld [vmem:[#allocation14 + $0x48] sm:$0xff]  ;;  %v11015_v45 = vld [vmem:[#allocation14 + $0x58] sm:$0xff] }
0x17e7   : > { %12622 = vst [vmem:[#allocation52_spill] sm:$0xff] %v11012_v29  ;;  %12623 = vst [vmem:[#allocation55_spill] sm:$0xff] %v11015_v45 }
0x17e8   : > { %5206 = vmatmul.mubr.f32.vlgmr.msra.gmra.mxu0 %v5135_v40  ;;  %5277 = vmatmul.mubr.f32.vlgmr.msra.gmra.mxu1 %v5135_v40  ;;  %v11018_v40 = vld [vmem:[#allocation14 + $0x40] sm:$0xff] }
0x17e9   : > { %5317 = vmatpush1.msra.mxu0 %v10780_v31  ;;  %5388 = vmatpush1.msra.mxu1 %v10865_v4  ;;  %12624 = vst [vmem:[#allocation57_spill] sm:$0xff] %v11018_v40 }
0x17ea   : > { %5318 = vmatprep.subr.mxu0 %v10868_v35  ;;  %5389 = vmatprep.subr.mxu1 %v10871_v37 }
0x17eb   : > { %5319 = vmatpush1.msra.mxu0 %v10874_v59  ;;  %5390 = vmatpush1.msra.mxu1 %v10877_v42 }
0x17ec   : > { %5320 = vmatprep.subr.mxu0 %v10880_v60  ;;  %5391 = vmatprep.subr.mxu1 %v10883_v23 }
0x17ed   : > { %5321 = vmatpush1.msra.mxu0 %v10886_v1  ;;  %5392 = vmatpush1.msra.mxu1 %v10889_v34 }
0x17ee   : > { %5322 = vmatprep.subr.mxu0 %v10892_v25  ;;  %5393 = vmatprep.subr.mxu1 %v10895_v13 }
0x17ef   : > { %5323 = vmatpush1.msra.mxu0 %v10898_v55  ;;  %5394 = vmatpush1.msra.mxu1 %v10901_v2 }
0x17f0   : > { %5324 = vmatprep.subr.mxu0 %v10904_v18  ;;  %5395 = vmatprep.subr.mxu1 %v10907_v22 }
0x17f1   : > { %5325 = vmatpush1.msra.mxu0 %v10910_v50  ;;  %5396 = vmatpush1.msra.mxu1 %v10913_v52 }
0x17f2   : > { %5326 = vmatprep.subr.mxu0 %v10916_v48  ;;  %5397 = vmatprep.subr.mxu1 %v10919_v61 }
0x17f3   : > { %5327 = vmatpush1.msra.mxu0 %v10922_v54  ;;  %5398 = vmatpush1.msra.mxu1 %v10925_v24 }
0x17f4   : > { %5328 = vmatprep.subr.mxu0 %v10928_v16  ;;  %5399 = vmatprep.subr.mxu1 %v10931_v62 }
0x17f5   : > { %5329 = vmatpush1.msra.mxu0 %v10934_v53  ;;  %5400 = vmatpush1.msra.mxu1 %v10937_v7 }
0x17f6   : > { %5330 = vmatprep.subr.mxu0 %v10940_v8  ;;  %5401 = vmatprep.subr.mxu1 %v10943_v49 }
0x17f7   : > { %5331 = vmatpush1.msra.mxu0 %v10946_v20  ;;  %5402 = vmatpush1.msra.mxu1 %v10949_v15 }
0x17f8   : > { %5332 = vmatprep.subr.mxu0 %v10952_v51  ;;  %5403 = vmatprep.subr.mxu1 %v10955_v33 }
0x17f9   : > { %5333 = vmatpush1.msra.mxu0 %v10958_v43  ;;  %5404 = vmatpush1.msra.mxu1 %v10961_v36 }
0x17fa   : > { %5334 = vmatprep.subr.mxu0 %v10964_v26  ;;  %5405 = vmatprep.subr.mxu1 %v10967_v41 }
0x17fb   : > { %5335 = vmatpush1.msra.mxu0 %v10970_v19  ;;  %5406 = vmatpush1.msra.mxu1 %v10973_v39 }
0x17fc   : > { %5336 = vmatprep.subr.mxu0 %v10976_v57  ;;  %5407 = vmatprep.subr.mxu1 %v10979_v5 }
0x17fd   : > { %5337 = vmatpush1.msra.mxu0 %v10982_v44  ;;  %5408 = vmatpush1.msra.mxu1 %v10985_v6 }
0x17fe   : > { %5338 = vmatprep.subr.mxu0 %v10988_v58  ;;  %5409 = vmatprep.subr.mxu1 %v10991_v32  ;;  %v12634_v32 = vld [vmem:[#allocation72_spill] sm:$0xff] }
0x17ff   : > { %5339 = vmatpush1.msra.mxu0 %v10994_v38  ;;  %5410 = vmatpush1.msra.mxu1 %v10997_v46 }
0x1800   : > { %5340 = vmatprep.subr.mxu0 %v11000_v47  ;;  %5411 = vmatprep.subr.mxu1 %v11003_v28  ;;  %v11021_v28 = vld [vmem:[#allocation14 + $0x50] sm:$0xff] }
0x1801   : > { %5341 = vmatpush1.msra.mxu0 %v11006_v63  ;;  %5412 = vmatpush1.msra.mxu1 %v11009_v9  ;;  %12625 = vst [vmem:[#allocation58_spill] sm:$0xff] %v11021_v28  ;;  %v11024_v63 = vld [vmem:[#allocation14 + $0x28] sm:$0xff]  ;;  %v11027_v9 = vld [vmem:[#allocation14 + $0x38] sm:$0xff] }
0x1802   : > { %5342 = vmatprep.subr.mxu0 %v11012_v29  ;;  %5413 = vmatprep.subr.mxu1 %v11015_v45  ;;  %12626 = vst [vmem:[#allocation56_spill] sm:$0xff] %v11024_v63  ;;  %12627 = vst [vmem:[#allocation59_spill] sm:$0xff] %v11027_v9  ;;  %v11030_v29 = vld [vmem:[#allocation14 + $0x20] sm:$0xff]  ;;  %v11034_v45 = vld [vmem:[#allocation14 + $0x8] sm:$0xff] }
0x1803   : > { %5343 = vmatpush1.msra.mxu0 %v11018_v40  ;;  %5414 = vmatpush1.msra.mxu1 %v11021_v28  ;;  %12628 = vst [vmem:[#allocation61_spill] sm:$0xff] %v11030_v29  ;;  %12629 = vst [vmem:[#allocation62_spill] sm:$0xff] %v11034_v45  ;;  %v11038_v28 = vld [vmem:[#allocation14] sm:$0xff] }
0x1804   : > { %5344 = vmatprep.subr.mxu0 %v11024_v63  ;;  %5415 = vmatprep.subr.mxu1 %v11027_v9  ;;  %12630 = vst [vmem:[#allocation60_spill] sm:$0xff] %v11038_v28 }
0x1805   : > { %5345 = vmatpush1.msra.mxu0 %v11030_v29  ;;  %5416 = vmatpush1.msra.mxu1 %v12600_v17  ;;  %v12631_v17 = vld [vmem:[#allocation71_spill] sm:$0xff] }
0x1806   : > { %5346 = vmatprep.subr.mxu0 %v11034_v45  ;;  %5417 = vmatprep.subr.mxu1 %v12602_v11  ;;  %v3400_v29 = vadd.f32 %v12631_v17, %v12608_v0  ;;  %v12632_v11 = vld [vmem:[#allocation73_spill] sm:$0xff]  ;;  %v3561_v17 = vadd.f32 %v12634_v32, %v10175_v21  ;;  %v12637_v32 = vld [vmem:[#allocation47_spill] sm:$0xff] }
0x1807   : > { %5347 = vmatpush1.msra.mxu0 %v11038_v28  ;;  %5380 = vmatprep.mubr.f32.mxu0 %v12604_v30  ;;  %v3402_v9 = vadd.f32 %v12632_v11, %v12444_v10 }
0x1808   : > { %5418 = vmatpush1.msra.mxu1 %v12605_v27  ;;  %5451 = vmatprep.mubr.f32.mxu1 %v12604_v30 }
0x1809   : > { %5491 = vmatprep.subr.mxu0 %v10846_v56  ;;  %5562 = vmatprep.subr.mxu1 %v10849_v12  ;;  %v12633_v56 = vld [vmem:[#allocation74_spill] sm:$0xff] }
0x180a   : > { %v3563_v38 = vadd.f32 %v12633_v56, %v10173_v3 }
0x18a8   : > { %v5207_v45 = vpop.f32.mrf.mxu0  ;;  %v5278_v46 = vpop.f32.mrf.mxu1 }
0x18a9   : > { %v5283_v63 = vadd.f32 %v5207_v45, %v3400_v29  ;;  %v5285_v0 = vadd.f32 %v5278_v46, %v3561_v17  ;;  %v12638_v46 = vld [vmem:[#allocation37_spill] sm:$0xff]  ;;  %v12640_v17 = vld [vmem:[#allocation23_spill] sm:$0xff] }
0x18aa   : > { %v5209_v40 = vpop.f32.mrf.mxu0  ;;  %v5280_v30 = vpop.f32.mrf.mxu1 }
0x18ab   : > { %v6777_v28 = vmul.f32 -1.442695, %v5283_v63  ;;  %v5284_v47 = vadd.f32 %v5209_v40, %v3402_v9  ;;  %v5286_v12 = vadd.f32 %v5280_v30, %v3563_v38 }
0x18ad   : > { %7273 = vpow2.f32 %v6777_v28  ;;  %v6778_v27 = vmul.f32 -1.442695, %v5284_v47  ;;  %v6779_v58 = vmul.f32 -1.442695, %v5286_v12 }
0x18af   : > { %7275 = vpow2.f32 %v6778_v27  ;;  %v12639_v27 = vld [vmem:[#allocation35_spill] sm:$0xff] }
0x18b0   : > { %7277 = vtanh.f32 %v5285_v0 }
0x18b1   : > { %7279 = vpow2.f32 %v6779_v58  ;;  %v12636_v58 = vld [vmem:[#allocation42_spill] sm:$0xff] }
0x18ba   : > { %v7274_v6 = vpop.eup %7273 }
0x18bb   : > { %v5290_v11 = vadd.f32 1.0, %v7274_v6 }
0x18bc   : > { %v7276_v29 = vpop.eup %7275 }
0x18bd   : > { %7281 = vrcp.f32 %v5290_v11  ;;  %v5296_v28 = vadd.f32 1.0, %v7276_v29  ;;  %v7278_v47 = vpop.eup %7277  ;;  %v12641_v11 = vld [vmem:[#allocation51_spill] sm:$0xff]  ;;  %v12642_v29 = vld [vmem:[#allocation53_spill] sm:$0xff] }
0x18be   : > { %v7280_v63 = vpop.eup %7279 }
0x18bf   : > { %7283 = vrcp.f32 %v5296_v28  ;;  %v5303_v56 = vadd.f32 1.0, %v7280_v63  ;;  %v12643_v28 = vld [vmem:[#allocation54_spill] sm:$0xff]  ;;  %v12645_v63 = vld [vmem:[#allocation55_spill] sm:$0xff] }
0x18c1   : > { %7285 = vrcp.f32 %v5303_v56  ;;  %v12649_v56 = vld [vmem:[#allocation59_spill] sm:$0xff] }
0x18ca   : > { %v7282_v9 = vpop.eup %7281 }
0x18cb   : > { %v5307_v45 = vmul.f32 %v7282_v9, %v7278_v47  ;;  %v12644_v47 = vld [vmem:[#allocation52_spill] sm:$0xff]  ;;  %v12646_v9 = vld [vmem:[#allocation57_spill] sm:$0xff] }
0x18cc   : > { %v7284_v40 = vpop.eup %7283 }
0x18cd   : > { %v5306_v30 = vmul.f32 %v7284_v40, %v10861_v14  ;;  %v12635_v14 = vld [vmem:[#allocation50_spill] sm:$0xff]  ;;  %v12648_v40 = vld [vmem:[#allocation56_spill] sm:$0xff] }
0x18ce   : > { %v7286_v12 = vpop.eup %7285 }
0x18cf   : > { %v11055_v38 = vadd.f32 %v5307_v45, %v5306_v30  ;;  %v12647_v45 = vld [vmem:[#allocation58_spill] sm:$0xff]  ;;  %v12650_v30 = vld [vmem:[#allocation61_spill] sm:$0xff] }
0x18d1   : > { %7287 = vtanh.f32 %v11055_v38 }
0x18de   : > { %v7288_v0 = vpop.eup %7287 }
0x18df   : > { %v5310_v6 = vmul.f32 %v7288_v0, %v7286_v12  ;;  %v11115_v12 = vld [vmem:[#allocation14 + $0x30] sm:$0xff] }
0x18e0   : > { %12651 = vst [vmem:[#allocation21_spill] sm:$0xff] %v11115_v12  ;;  %v12652_v0 = vld [vmem:[#allocation62_spill] sm:$0xff] }
0x18e1   : > { %5381 = vmatmul.mubr.f32.vlgmr.msra.gmra.mxu0 %v5310_v6  ;;  %5452 = vmatmul.mubr.f32.vlgmr.msra.gmra.mxu1 %v5310_v6  ;;  %v11119_v6 = vld [vmem:[#allocation14 + $0x18] sm:$0xff] }
0x18e2   : > { %5492 = vmatpush1.msra.mxu0 %v10780_v31  ;;  %5563 = vmatpush1.msra.mxu1 %v10865_v4  ;;  %12653 = vst [vmem:[#allocation24_spill] sm:$0xff] %v11119_v6 }
0x18e3   : > { %5493 = vmatprep.subr.mxu0 %v10868_v35  ;;  %5564 = vmatprep.subr.mxu1 %v10871_v37 }
0x18e4   : > { %5494 = vmatpush1.msra.mxu0 %v10874_v59  ;;  %5565 = vmatpush1.msra.mxu1 %v10877_v42 }
0x18e5   : > { %5495 = vmatprep.subr.mxu0 %v10880_v60  ;;  %5566 = vmatprep.subr.mxu1 %v10883_v23 }
0x18e6   : > { %5496 = vmatpush1.msra.mxu0 %v10886_v1  ;;  %5567 = vmatpush1.msra.mxu1 %v10889_v34 }
0x18e7   : > { %5497 = vmatprep.subr.mxu0 %v10892_v25  ;;  %5568 = vmatprep.subr.mxu1 %v10895_v13 }
0x18e8   : > { %5498 = vmatpush1.msra.mxu0 %v10898_v55  ;;  %5569 = vmatpush1.msra.mxu1 %v10901_v2 }
0x18e9   : > { %5499 = vmatprep.subr.mxu0 %v10904_v18  ;;  %5570 = vmatprep.subr.mxu1 %v10907_v22 }
0x18ea   : > { %5500 = vmatpush1.msra.mxu0 %v10910_v50  ;;  %5571 = vmatpush1.msra.mxu1 %v10913_v52 }
0x18eb   : > { %5501 = vmatprep.subr.mxu0 %v10916_v48  ;;  %5572 = vmatprep.subr.mxu1 %v10919_v61 }
0x18ec   : > { %5502 = vmatpush1.msra.mxu0 %v10922_v54  ;;  %5573 = vmatpush1.msra.mxu1 %v10925_v24 }
0x18ed   : > { %5503 = vmatprep.subr.mxu0 %v10928_v16  ;;  %5574 = vmatprep.subr.mxu1 %v10931_v62 }
0x18ee   : > { %5504 = vmatpush1.msra.mxu0 %v10934_v53  ;;  %5575 = vmatpush1.msra.mxu1 %v10937_v7 }
0x18ef   : > { %5505 = vmatprep.subr.mxu0 %v10940_v8  ;;  %5576 = vmatprep.subr.mxu1 %v10943_v49 }
0x18f0   : > { %5506 = vmatpush1.msra.mxu0 %v10946_v20  ;;  %5577 = vmatpush1.msra.mxu1 %v10949_v15 }
0x18f1   : > { %5507 = vmatprep.subr.mxu0 %v10952_v51  ;;  %5578 = vmatprep.subr.mxu1 %v10955_v33 }
0x18f2   : > { %5508 = vmatpush1.msra.mxu0 %v10958_v43  ;;  %5579 = vmatpush1.msra.mxu1 %v10961_v36 }
0x18f3   : > { %5509 = vmatprep.subr.mxu0 %v10964_v26  ;;  %5580 = vmatprep.subr.mxu1 %v10967_v41 }
0x18f4   : > { %5510 = vmatpush1.msra.mxu0 %v10970_v19  ;;  %5581 = vmatpush1.msra.mxu1 %v10973_v39 }
0x18f5   : > { %5511 = vmatprep.subr.mxu0 %v10976_v57  ;;  %5582 = vmatprep.subr.mxu1 %v10979_v5 }
0x18f6   : > { %5512 = vmatpush1.msra.mxu0 %v10982_v44  ;;  %5583 = vmatpush1.msra.mxu1 %v12635_v14 }
0x18f7   : > { %5513 = vmatprep.subr.mxu0 %v12636_v58  ;;  %5584 = vmatprep.subr.mxu1 %v12637_v32  ;;  %v12663_v32 = vld [vmem:[#allocation76_spill] sm:$0xff] }
0x18f8   : > { %5514 = vmatpush1.msra.mxu0 %v12638_v46  ;;  %5585 = vmatpush1.msra.mxu1 %v12639_v27 }
0x18f9   : > { %5515 = vmatprep.subr.mxu0 %v12640_v17  ;;  %5586 = vmatprep.subr.mxu1 %v12641_v11 }
0x18fa   : > { %5516 = vmatpush1.msra.mxu0 %v12642_v29  ;;  %5587 = vmatpush1.msra.mxu1 %v12643_v28 }
0x18fb   : > { %5517 = vmatprep.subr.mxu0 %v12644_v47  ;;  %5588 = vmatprep.subr.mxu1 %v12645_v63  ;;  %v12654_v63 = vld [vmem:[#allocation60_spill] sm:$0xff] }
0x18fc   : > { %5518 = vmatpush1.msra.mxu0 %v12646_v9  ;;  %5589 = vmatpush1.msra.mxu1 %v12647_v45  ;;  %v12655_v9 = vmov 0.0   ;;  %v11124_v45 = vld [vmem:[#allocation14 + $0x10] sm:$0xff] }
0x18fd   : > { %5519 = vmatprep.subr.mxu0 %v12648_v40  ;;  %5590 = vmatprep.subr.mxu1 %v12649_v56  ;;  %12656 = vst [vmem:[#allocation31_spill] sm:$0xff] %v11124_v45  ;;  %v12658_v56 = vld [vmem:[#allocation41_spill] sm:$0xff] }
0x18fe   : > { %5520 = vmatpush1.msra.mxu0 %v12650_v30  ;;  %5591 = vmatpush1.msra.mxu1 %v11115_v12  ;;  %v12657_v30 = vld [vmem:[#allocation36_spill] sm:$0xff]  ;;  %v12659_v12 = vld [vmem:[#allocation98_spill] sm:$0xff] }
0x18ff   : > { %5521 = vmatprep.subr.mxu0 %v12652_v0  ;;  %5592 = vmatprep.subr.mxu1 %v11119_v6  ;;  %v12660_v0 = vld [vmem:[#allocation75_spill] sm:$0xff]  ;;  %v12661_v6 = vld [vmem:[#allocation77_spill] sm:$0xff] }
0x1900   : > { %5522 = vmatpush1.msra.mxu0 %v12654_v63  ;;  %5555 = vmatprep.mubr.f32.mxu0 %v12655_v9  ;;  %v3406_v40 = vadd.f32 %v12660_v0, %v12659_v12  ;;  %v3408_v28 = vadd.f32 %v12661_v6, %v12444_v10  ;;  %v3567_v0 = vadd.f32 %v12663_v32, %v10175_v21 }
0x1901   : > { %5593 = vmatpush1.msra.mxu1 %v11124_v45  ;;  %5626 = vmatprep.mubr.f32.mxu1 %v12655_v9 }
0x1902   : > { %5666 = vmatprep.subr.mxu0 %v12657_v30  ;;  %5737 = vmatprep.subr.mxu1 %v12658_v56  ;;  %v12662_v30 = vld [vmem:[#allocation78_spill] sm:$0xff] }
0x1903   : > { %v3569_v46 = vadd.f32 %v12662_v30, %v10173_v3  ;;  %v12667_v30 = vld [vmem:[#allocation37_spill] sm:$0xff] }
0x19a1   : > { %v5382_v47 = vpop.f32.mrf.mxu0  ;;  %v5453_v27 = vpop.f32.mrf.mxu1 }
0x19a2   : > { %v5458_v63 = vadd.f32 %v5382_v47, %v3406_v40  ;;  %v5460_v12 = vadd.f32 %v5453_v27, %v3567_v0  ;;  %v12669_v0 = vld [vmem:[#allocation23_spill] sm:$0xff] }
0x19a3   : > { %v5384_v29 = vpop.f32.mrf.mxu0  ;;  %v5455_v9 = vpop.f32.mrf.mxu1 }
0x19a4   : > { %v6780_v11 = vmul.f32 -1.442695, %v5458_v63  ;;  %v5459_v17 = vadd.f32 %v5384_v29, %v3408_v28  ;;  %v5461_v56 = vadd.f32 %v5455_v9, %v3569_v46 }
0x19a6   : > { %7289 = vpow2.f32 %v6780_v11  ;;  %v6781_v45 = vmul.f32 -1.442695, %v5459_v17  ;;  %v6782_v58 = vmul.f32 -1.442695, %v5461_v56  ;;  %v12666_v56 = vld [vmem:[#allocation47_spill] sm:$0xff] }
0x19a8   : > { %7291 = vpow2.f32 %v6781_v45 }
0x19a9   : > { %7293 = vtanh.f32 %v5460_v12  ;;  %v12668_v12 = vld [vmem:[#allocation35_spill] sm:$0xff] }
0x19aa   : > { %7295 = vpow2.f32 %v6782_v58  ;;  %v12665_v58 = vld [vmem:[#allocation42_spill] sm:$0xff] }
0x19b3   : > { %v7290_v14 = vpop.eup %7289 }
0x19b4   : > { %v5465_v6 = vadd.f32 1.0, %v7290_v14 }
0x19b5   : > { %v7292_v47 = vpop.eup %7291 }
0x19b6   : > { %7297 = vrcp.f32 %v5465_v6  ;;  %v5471_v11 = vadd.f32 1.0, %v7292_v47  ;;  %v7294_v17 = vpop.eup %7293  ;;  %v12670_v6 = vld [vmem:[#allocation51_spill] sm:$0xff]  ;;  %v12671_v47 = vld [vmem:[#allocation53_spill] sm:$0xff] }
0x19b7   : > { %v7296_v29 = vpop.eup %7295 }
0x19b8   : > { %7299 = vrcp.f32 %v5471_v11  ;;  %v5478_v40 = vadd.f32 1.0, %v7296_v29  ;;  %v12672_v11 = vld [vmem:[#allocation54_spill] sm:$0xff]  ;;  %v12674_v29 = vld [vmem:[#allocation55_spill] sm:$0xff] }
0x19ba   : > { %7301 = vrcp.f32 %v5478_v40  ;;  %v12678_v40 = vld [vmem:[#allocation59_spill] sm:$0xff] }
0x19c3   : > { %v7298_v28 = vpop.eup %7297 }
0x19c4   : > { %v5482_v63 = vmul.f32 %v7298_v28, %v7294_v17  ;;  %v12673_v17 = vld [vmem:[#allocation52_spill] sm:$0xff]  ;;  %v12675_v28 = vld [vmem:[#allocation57_spill] sm:$0xff] }
0x19c5   : > { %v7300_v45 = vpop.eup %7299 }
0x19c6   : > { %v5481_v46 = vmul.f32 %v7300_v45, %v11055_v38  ;;  %v12664_v38 = vld [vmem:[#allocation50_spill] sm:$0xff]  ;;  %v12677_v45 = vld [vmem:[#allocation56_spill] sm:$0xff] }
0x19c7   : > { %v7302_v14 = vpop.eup %7301 }
0x19c8   : > { %v11139_v9 = vadd.f32 %v5482_v63, %v5481_v46  ;;  %v12676_v63 = vld [vmem:[#allocation58_spill] sm:$0xff]  ;;  %v12679_v46 = vld [vmem:[#allocation61_spill] sm:$0xff] }
0x19ca   : > { %7303 = vtanh.f32 %v11139_v9 }
0x19d7   : > { %v7304_v32 = vpop.eup %7303 }
0x19d8   : > { %v5485_v27 = vmul.f32 %v7304_v32, %v7302_v14  ;;  %v12680_v14 = vld [vmem:[#allocation21_spill] sm:$0xff]  ;;  %v12681_v32 = vld [vmem:[#allocation62_spill] sm:$0xff] }
0x19da   : > { %5556 = vmatmul.mubr.f32.vlgmr.msra.gmra.mxu0 %v5485_v27  ;;  %5627 = vmatmul.mubr.f32.vlgmr.msra.gmra.mxu1 %v5485_v27  ;;  %v12682_v27 = vld [vmem:[#allocation24_spill] sm:$0xff] }
0x19db   : > { %5667 = vmatpush1.msra.mxu0 %v10780_v31  ;;  %5738 = vmatpush1.msra.mxu1 %v10865_v4 }
0x19dc   : > { %5668 = vmatprep.subr.mxu0 %v10868_v35  ;;  %5739 = vmatprep.subr.mxu1 %v10871_v37 }
0x19dd   : > { %5669 = vmatpush1.msra.mxu0 %v10874_v59  ;;  %5740 = vmatpush1.msra.mxu1 %v10877_v42 }
0x19de   : > { %5670 = vmatprep.subr.mxu0 %v10880_v60  ;;  %5741 = vmatprep.subr.mxu1 %v10883_v23 }
0x19df   : > { %5671 = vmatpush1.msra.mxu0 %v10886_v1  ;;  %5742 = vmatpush1.msra.mxu1 %v10889_v34 }
0x19e0   : > { %5672 = vmatprep.subr.mxu0 %v10892_v25  ;;  %5743 = vmatprep.subr.mxu1 %v10895_v13 }
0x19e1   : > { %5673 = vmatpush1.msra.mxu0 %v10898_v55  ;;  %5744 = vmatpush1.msra.mxu1 %v10901_v2 }
0x19e2   : > { %5674 = vmatprep.subr.mxu0 %v10904_v18  ;;  %5745 = vmatprep.subr.mxu1 %v10907_v22 }
0x19e3   : > { %5675 = vmatpush1.msra.mxu0 %v10910_v50  ;;  %5746 = vmatpush1.msra.mxu1 %v10913_v52 }
0x19e4   : > { %5676 = vmatprep.subr.mxu0 %v10916_v48  ;;  %5747 = vmatprep.subr.mxu1 %v10919_v61 }
0x19e5   : > { %5677 = vmatpush1.msra.mxu0 %v10922_v54  ;;  %5748 = vmatpush1.msra.mxu1 %v10925_v24 }
0x19e6   : > { %5678 = vmatprep.subr.mxu0 %v10928_v16  ;;  %5749 = vmatprep.subr.mxu1 %v10931_v62 }
0x19e7   : > { %5679 = vmatpush1.msra.mxu0 %v10934_v53  ;;  %5750 = vmatpush1.msra.mxu1 %v10937_v7 }
0x19e8   : > { %5680 = vmatprep.subr.mxu0 %v10940_v8  ;;  %5751 = vmatprep.subr.mxu1 %v10943_v49 }
0x19e9   : > { %5681 = vmatpush1.msra.mxu0 %v10946_v20  ;;  %5752 = vmatpush1.msra.mxu1 %v10949_v15 }
0x19ea   : > { %5682 = vmatprep.subr.mxu0 %v10952_v51  ;;  %5753 = vmatprep.subr.mxu1 %v10955_v33 }
0x19eb   : > { %5683 = vmatpush1.msra.mxu0 %v10958_v43  ;;  %5754 = vmatpush1.msra.mxu1 %v10961_v36 }
0x19ec   : > { %5684 = vmatprep.subr.mxu0 %v10964_v26  ;;  %5755 = vmatprep.subr.mxu1 %v10967_v41 }
0x19ed   : > { %5685 = vmatpush1.msra.mxu0 %v10970_v19  ;;  %5756 = vmatpush1.msra.mxu1 %v10973_v39 }
0x19ee   : > { %5686 = vmatprep.subr.mxu0 %v10976_v57  ;;  %5757 = vmatprep.subr.mxu1 %v10979_v5 }
0x19ef   : > { %5687 = vmatpush1.msra.mxu0 %v10982_v44  ;;  %5758 = vmatpush1.msra.mxu1 %v12664_v38 }
0x19f0   : > { %5688 = vmatprep.subr.mxu0 %v12665_v58  ;;  %5759 = vmatprep.subr.mxu1 %v12666_v56  ;;  %v12692_v56 = vld [vmem:[#allocation80_spill] sm:$0xff] }
0x19f1   : > { %5689 = vmatpush1.msra.mxu0 %v12667_v30  ;;  %5760 = vmatpush1.msra.mxu1 %v12668_v12 }
0x19f2   : > { %5690 = vmatprep.subr.mxu0 %v12669_v0  ;;  %5761 = vmatprep.subr.mxu1 %v12670_v6 }
0x19f3   : > { %5691 = vmatpush1.msra.mxu0 %v12671_v47  ;;  %5762 = vmatpush1.msra.mxu1 %v12672_v11  ;;  %v12683_v11 = vld [vmem:[#allocation60_spill] sm:$0xff] }
0x19f4   : > { %5692 = vmatprep.subr.mxu0 %v12673_v17  ;;  %5763 = vmatprep.subr.mxu1 %v12674_v29  ;;  %v12684_v17 = vmov 0.0   ;;  %v12685_v29 = vld [vmem:[#allocation31_spill] sm:$0xff] }
0x19f5   : > { %5693 = vmatpush1.msra.mxu0 %v12675_v28  ;;  %5764 = vmatpush1.msra.mxu1 %v12676_v63  ;;  %v12686_v63 = vld [vmem:[#allocation36_spill] sm:$0xff] }
0x19f6   : > { %5694 = vmatprep.subr.mxu0 %v12677_v45  ;;  %5765 = vmatprep.subr.mxu1 %v12678_v40  ;;  %v12687_v45 = vld [vmem:[#allocation41_spill] sm:$0xff]  ;;  %v12688_v40 = vld [vmem:[#allocation98_spill] sm:$0xff] }
0x19f7   : > { %5695 = vmatpush1.msra.mxu0 %v12679_v46  ;;  %5766 = vmatpush1.msra.mxu1 %v12680_v14  ;;  %v12689_v46 = vld [vmem:[#allocation79_spill] sm:$0xff] }
0x19f8   : > { %5696 = vmatprep.subr.mxu0 %v12681_v32  ;;  %5767 = vmatprep.subr.mxu1 %v12682_v27  ;;  %v3412_v28 = vadd.f32 %v12689_v46, %v12688_v40  ;;  %v12690_v32 = vld [vmem:[#allocation81_spill] sm:$0xff]  ;;  %v3573_v46 = vadd.f32 %v12692_v56, %v10175_v21 }
0x19f9   : > { %5697 = vmatpush1.msra.mxu0 %v12683_v11  ;;  %5730 = vmatprep.mubr.f32.mxu0 %v12684_v17  ;;  %v3414_v47 = vadd.f32 %v12690_v32, %v12444_v10 }
0x19fa   : > { %5768 = vmatpush1.msra.mxu1 %v12685_v29  ;;  %5801 = vmatprep.mubr.f32.mxu1 %v12684_v17 }
0x19fb   : > { %5841 = vmatprep.subr.mxu0 %v12686_v63  ;;  %5912 = vmatprep.subr.mxu1 %v12687_v45  ;;  %v12691_v63 = vld [vmem:[#allocation82_spill] sm:$0xff] }
0x19fc   : > { %v3575_v30 = vadd.f32 %v12691_v63, %v10173_v3 }
0x1a9a   : > { %v5557_v14 = vpop.f32.mrf.mxu0  ;;  %v5628_v12 = vpop.f32.mrf.mxu1 }
0x1a9b   : > { %v5633_v27 = vadd.f32 %v5557_v14, %v3412_v28  ;;  %v5635_v40 = vadd.f32 %v5628_v12, %v3573_v46  ;;  %v12699_v46 = vld [vmem:[#allocation51_spill] sm:$0xff] }
0x1a9c   : > { %v5559_v6 = vpop.f32.mrf.mxu0  ;;  %v5630_v17 = vpop.f32.mrf.mxu1 }
0x1a9d   : > { %v6783_v11 = vmul.f32 -1.442695, %v5633_v27  ;;  %v5634_v0 = vadd.f32 %v5559_v6, %v3414_v47  ;;  %v5636_v45 = vadd.f32 %v5630_v17, %v3575_v30  ;;  %v12698_v27 = vld [vmem:[#allocation23_spill] sm:$0xff] }
0x1a9f   : > { %7305 = vpow2.f32 %v6783_v11  ;;  %v6784_v29 = vmul.f32 -1.442695, %v5634_v0  ;;  %v6785_v58 = vmul.f32 -1.442695, %v5636_v45  ;;  %v12696_v45 = vld [vmem:[#allocation37_spill] sm:$0xff] }
0x1aa1   : > { %7307 = vpow2.f32 %v6784_v29 }
0x1aa2   : > { %7309 = vtanh.f32 %v5635_v40  ;;  %v12697_v40 = vld [vmem:[#allocation35_spill] sm:$0xff] }
0x1aa3   : > { %7311 = vpow2.f32 %v6785_v58  ;;  %v12695_v58 = vld [vmem:[#allocation47_spill] sm:$0xff] }
0x1aac   : > { %v7306_v38 = vpop.eup %7305 }
0x1aad   : > { %v5640_v32 = vadd.f32 1.0, %v7306_v38 }
0x1aae   : > { %v7308_v28 = vpop.eup %7307 }
0x1aaf   : > { %7313 = vrcp.f32 %v5640_v32  ;;  %v5646_v6 = vadd.f32 1.0, %v7308_v28  ;;  %v7310_v0 = vpop.eup %7309  ;;  %v12700_v32 = vld [vmem:[#allocation53_spill] sm:$0xff]  ;;  %v12701_v28 = vld [vmem:[#allocation54_spill] sm:$0xff] }
0x1ab0   : > { %v7312_v47 = vpop.eup %7311 }
0x1ab1   : > { %7315 = vrcp.f32 %v5646_v6  ;;  %v5653_v63 = vadd.f32 1.0, %v7312_v47  ;;  %v12702_v6 = vld [vmem:[#allocation52_spill] sm:$0xff]  ;;  %v12704_v47 = vld [vmem:[#allocation57_spill] sm:$0xff] }
0x1ab3   : > { %7317 = vrcp.f32 %v5653_v63  ;;  %v12708_v63 = vld [vmem:[#allocation61_spill] sm:$0xff] }
0x1abc   : > { %v7314_v11 = vpop.eup %7313 }
0x1abd   : > { %v5657_v29 = vmul.f32 %v7314_v11, %v7310_v0  ;;  %v12703_v0 = vld [vmem:[#allocation55_spill] sm:$0xff]  ;;  %v12705_v11 = vld [vmem:[#allocation58_spill] sm:$0xff] }
0x1abe   : > { %v7316_v14 = vpop.eup %7315 }
0x1abf   : > { %v5656_v30 = vmul.f32 %v7316_v14, %v11139_v9  ;;  %v12694_v9 = vld [vmem:[#allocation42_spill] sm:$0xff]  ;;  %v12707_v14 = vld [vmem:[#allocation59_spill] sm:$0xff] }
0x1ac0   : > { %v7318_v38 = vpop.eup %7317 }
0x1ac1   : > { %v11217_v17 = vadd.f32 %v5657_v29, %v5656_v30  ;;  %v12706_v29 = vld [vmem:[#allocation56_spill] sm:$0xff]  ;;  %v12709_v30 = vld [vmem:[#allocation21_spill] sm:$0xff] }
0x1ac3   : > { %7319 = vtanh.f32 %v11217_v17 }
0x1ad0   : > { %v7320_v56 = vpop.eup %7319 }
0x1ad1   : > { %v5660_v12 = vmul.f32 %v7320_v56, %v7318_v38  ;;  %v12710_v38 = vld [vmem:[#allocation62_spill] sm:$0xff]  ;;  %v12711_v56 = vld [vmem:[#allocation24_spill] sm:$0xff] }
0x1ad3   : > { %5731 = vmatmul.mubr.f32.vlgmr.msra.gmra.mxu0 %v5660_v12  ;;  %5802 = vmatmul.mubr.f32.vlgmr.msra.gmra.mxu1 %v5660_v12  ;;  %v12712_v12 = vld [vmem:[#allocation60_spill] sm:$0xff] }
0x1ad4   : > { %5842 = vmatpush1.msra.mxu0 %v10780_v31  ;;  %5913 = vmatpush1.msra.mxu1 %v10865_v4  ;;  %v12693_v31 = vld [vmem:[#allocation50_spill] sm:$0xff] }
0x1ad5   : > { %5843 = vmatprep.subr.mxu0 %v10868_v35  ;;  %5914 = vmatprep.subr.mxu1 %v10871_v37 }
0x1ad6   : > { %5844 = vmatpush1.msra.mxu0 %v10874_v59  ;;  %5915 = vmatpush1.msra.mxu1 %v10877_v42 }
0x1ad7   : > { %5845 = vmatprep.subr.mxu0 %v10880_v60  ;;  %5916 = vmatprep.subr.mxu1 %v10883_v23 }
0x1ad8   : > { %5846 = vmatpush1.msra.mxu0 %v10886_v1  ;;  %5917 = vmatpush1.msra.mxu1 %v10889_v34 }
0x1ad9   : > { %5847 = vmatprep.subr.mxu0 %v10892_v25  ;;  %5918 = vmatprep.subr.mxu1 %v10895_v13 }
0x1ada   : > { %5848 = vmatpush1.msra.mxu0 %v10898_v55  ;;  %5919 = vmatpush1.msra.mxu1 %v10901_v2 }
0x1adb   : > { %5849 = vmatprep.subr.mxu0 %v10904_v18  ;;  %5920 = vmatprep.subr.mxu1 %v10907_v22 }
0x1adc   : > { %5850 = vmatpush1.msra.mxu0 %v10910_v50  ;;  %5921 = vmatpush1.msra.mxu1 %v10913_v52 }
0x1add   : > { %5851 = vmatprep.subr.mxu0 %v10916_v48  ;;  %5922 = vmatprep.subr.mxu1 %v10919_v61 }
0x1ade   : > { %5852 = vmatpush1.msra.mxu0 %v10922_v54  ;;  %5923 = vmatpush1.msra.mxu1 %v10925_v24 }
0x1adf   : > { %5853 = vmatprep.subr.mxu0 %v10928_v16  ;;  %5924 = vmatprep.subr.mxu1 %v10931_v62 }
0x1ae0   : > { %5854 = vmatpush1.msra.mxu0 %v10934_v53  ;;  %5925 = vmatpush1.msra.mxu1 %v10937_v7 }
0x1ae1   : > { %5855 = vmatprep.subr.mxu0 %v10940_v8  ;;  %5926 = vmatprep.subr.mxu1 %v10943_v49 }
0x1ae2   : > { %5856 = vmatpush1.msra.mxu0 %v10946_v20  ;;  %5927 = vmatpush1.msra.mxu1 %v10949_v15 }
0x1ae3   : > { %5857 = vmatprep.subr.mxu0 %v10952_v51  ;;  %5928 = vmatprep.subr.mxu1 %v10955_v33 }
0x1ae4   : > { %5858 = vmatpush1.msra.mxu0 %v10958_v43  ;;  %5929 = vmatpush1.msra.mxu1 %v10961_v36 }
0x1ae5   : > { %5859 = vmatprep.subr.mxu0 %v10964_v26  ;;  %5930 = vmatprep.subr.mxu1 %v10967_v41 }
0x1ae6   : > { %5860 = vmatpush1.msra.mxu0 %v10970_v19  ;;  %5931 = vmatpush1.msra.mxu1 %v10973_v39 }
0x1ae7   : > { %5861 = vmatprep.subr.mxu0 %v10976_v57  ;;  %5932 = vmatprep.subr.mxu1 %v10979_v5 }
0x1ae8   : > { %5862 = vmatpush1.msra.mxu0 %v10982_v44  ;;  %5933 = vmatpush1.msra.mxu1 %v12693_v31 }
0x1ae9   : > { %5863 = vmatprep.subr.mxu0 %v12694_v9  ;;  %5934 = vmatprep.subr.mxu1 %v12695_v58 }
0x1aea   : > { %5864 = vmatpush1.msra.mxu0 %v12696_v45  ;;  %5935 = vmatpush1.msra.mxu1 %v12697_v40  ;;  %v12721_v45 = vld [vmem:[#allocation84_spill] sm:$0xff] }
0x1aeb   : > { %5865 = vmatprep.subr.mxu0 %v12698_v27  ;;  %5936 = vmatprep.subr.mxu1 %v12699_v46 }
0x1aec   : > { %5866 = vmatpush1.msra.mxu0 %v12700_v32  ;;  %5937 = vmatpush1.msra.mxu1 %v12701_v28 }
0x1aed   : > { %5867 = vmatprep.subr.mxu0 %v12702_v6  ;;  %5938 = vmatprep.subr.mxu1 %v12703_v0  ;;  %v12713_v6 = vmov 0.0   ;;  %v12714_v0 = vld [vmem:[#allocation31_spill] sm:$0xff] }
0x1aee   : > { %5868 = vmatpush1.msra.mxu0 %v12704_v47  ;;  %5939 = vmatpush1.msra.mxu1 %v12705_v11  ;;  %v12715_v11 = vld [vmem:[#allocation36_spill] sm:$0xff] }
0x1aef   : > { %5869 = vmatprep.subr.mxu0 %v12706_v29  ;;  %5940 = vmatprep.subr.mxu1 %v12707_v14  ;;  %v12716_v29 = vld [vmem:[#allocation41_spill] sm:$0xff]  ;;  %v12717_v14 = vld [vmem:[#allocation98_spill] sm:$0xff] }
0x1af0   : > { %5870 = vmatpush1.msra.mxu0 %v12708_v63  ;;  %5941 = vmatpush1.msra.mxu1 %v12709_v30  ;;  %v12718_v63 = vld [vmem:[#allocation83_spill] sm:$0xff] }
0x1af1   : > { %5871 = vmatprep.subr.mxu0 %v12710_v38  ;;  %5942 = vmatprep.subr.mxu1 %v12711_v56  ;;  %v3418_v47 = vadd.f32 %v12718_v63, %v12717_v14  ;;  %v12719_v38 = vld [vmem:[#allocation85_spill] sm:$0xff]  ;;  %v3579_v63 = vadd.f32 %v12721_v45, %v10175_v21 }
0x1af2   : > { %5872 = vmatpush1.msra.mxu0 %v12712_v12  ;;  %5905 = vmatprep.mubr.f32.mxu0 %v12713_v6  ;;  %v3420_v28 = vadd.f32 %v12719_v38, %v12444_v10 }
0x1af3   : > { %5943 = vmatpush1.msra.mxu1 %v12714_v0  ;;  %5976 = vmatprep.mubr.f32.mxu1 %v12713_v6 }
0x1af4   : > { %6016 = vmatprep.subr.mxu0 %v12715_v11  ;;  %6087 = vmatprep.subr.mxu1 %v12716_v29  ;;  %v12720_v11 = vld [vmem:[#allocation86_spill] sm:$0xff] }
0x1af5   : > { %v3581_v40 = vadd.f32 %v12720_v11, %v10173_v3 }
0x1b93   : > { %v5732_v30 = vpop.f32.mrf.mxu0  ;;  %v5803_v27 = vpop.f32.mrf.mxu1 }
0x1b94   : > { %v5808_v56 = vadd.f32 %v5732_v30, %v3418_v47  ;;  %v5810_v14 = vadd.f32 %v5803_v27, %v3579_v63 }
0x1b95   : > { %v5734_v32 = vpop.f32.mrf.mxu0  ;;  %v5805_v6 = vpop.f32.mrf.mxu1 }
0x1b96   : > { %v6786_v12 = vmul.f32 -1.442695, %v5808_v56  ;;  %v5809_v46 = vadd.f32 %v5734_v32, %v3420_v28  ;;  %v5811_v29 = vadd.f32 %v5805_v6, %v3581_v40 }
0x1b98   : > { %7321 = vpow2.f32 %v6786_v12  ;;  %v6787_v0 = vmul.f32 -1.442695, %v5809_v46  ;;  %v6788_v58 = vmul.f32 -1.442695, %v5811_v29 }
0x1b9a   : > { %7323 = vpow2.f32 %v6787_v0 }
0x1b9b   : > { %7325 = vtanh.f32 %v5810_v14 }
0x1b9c   : > { %7327 = vpow2.f32 %v6788_v58  ;;  %v11298_v58 = vld [vmem:[#allocation14 + $0x1e0] sm:$0xff] }
0x1ba5   : > { %v7322_v9 = vpop.eup %7321 }
0x1ba6   : > { %v5815_v38 = vadd.f32 1.0, %v7322_v9 }
0x1ba7   : > { %v7324_v47 = vpop.eup %7323 }
0x1ba8   : > { %7329 = vrcp.f32 %v5815_v38  ;;  %v5821_v32 = vadd.f32 1.0, %v7324_v47  ;;  %v7326_v46 = vpop.eup %7325 }
0x1ba9   : > { %v7328_v28 = vpop.eup %7327 }
0x1baa   : > { %7331 = vrcp.f32 %v5821_v32  ;;  %v5828_v12 = vadd.f32 1.0, %v7328_v28 }
0x1bac   : > { %7333 = vrcp.f32 %v5828_v12 }
0x1bb5   : > { %v7330_v0 = vpop.eup %7329 }
0x1bb6   : > { %v5832_v30 = vmul.f32 %v7330_v0, %v7326_v46 }
0x1bb7   : > { %v7332_v56 = vpop.eup %7331 }
0x1bb8   : > { %v5831_v40 = vmul.f32 %v7332_v56, %v11217_v17 }
0x1bb9   : > { %v7334_v9 = vpop.eup %7333 }
0x1bba   : > { %v11295_v6 = vadd.f32 %v5832_v30, %v5831_v40 }
0x1bbc   : > { %7335 = vtanh.f32 %v11295_v6 }
0x1bc9   : > { %v7336_v45 = vpop.eup %7335 }
0x1bca   : > { %v5835_v27 = vmul.f32 %v7336_v45, %v7334_v9 }
0x1bcc   : > { %5906 = vmatmul.mubr.f32.vlgmr.msra.gmra.mxu0 %v5835_v27  ;;  %5977 = vmatmul.mubr.f32.vlgmr.msra.gmra.mxu1 %v5835_v27  ;;  %v11383_v27 = vld [vmem:[#allocation14 + $0x1f0] sm:$0xff] }
0x1bcd   : > { %6017 = vmatpush1.msra.mxu0 %v11298_v58  ;;  %6088 = vmatpush1.msra.mxu1 %v10865_v4  ;;  %v12722_v4 = vld [vmem:[#allocation42_spill] sm:$0xff] }
0x1bce   : > { %6018 = vmatprep.subr.mxu0 %v10868_v35  ;;  %6089 = vmatprep.subr.mxu1 %v10871_v37  ;;  %v12723_v35 = vld [vmem:[#allocation47_spill] sm:$0xff]  ;;  %v12724_v37 = vld [vmem:[#allocation37_spill] sm:$0xff] }
0x1bcf   : > { %6019 = vmatpush1.msra.mxu0 %v10874_v59  ;;  %6090 = vmatpush1.msra.mxu1 %v10877_v42  ;;  %v12725_v59 = vld [vmem:[#allocation35_spill] sm:$0xff] }
0x1bd0   : > { %6020 = vmatprep.subr.mxu0 %v10880_v60  ;;  %6091 = vmatprep.subr.mxu1 %v10883_v23  ;;  %v12726_v42 = vld [vmem:[#allocation23_spill] sm:$0xff]  ;;  %v12728_v23 = vld [vmem:[#allocation53_spill] sm:$0xff] }
0x1bd1   : > { %6021 = vmatpush1.msra.mxu0 %v10886_v1  ;;  %6092 = vmatpush1.msra.mxu1 %v10889_v34  ;;  %v12727_v60 = vld [vmem:[#allocation51_spill] sm:$0xff]  ;;  %v12729_v1 = vld [vmem:[#allocation54_spill] sm:$0xff]  ;;  %v12730_v34 = vld [vmem:[#allocation52_spill] sm:$0xff] }
0x1bd2   : > { %6022 = vmatprep.subr.mxu0 %v10892_v25  ;;  %6093 = vmatprep.subr.mxu1 %v10895_v13  ;;  %v12731_v25 = vld [vmem:[#allocation55_spill] sm:$0xff]  ;;  %v12732_v13 = vld [vmem:[#allocation57_spill] sm:$0xff] }
0x1bd3   : > { %6023 = vmatpush1.msra.mxu0 %v10898_v55  ;;  %6094 = vmatpush1.msra.mxu1 %v10901_v2  ;;  %v12733_v55 = vld [vmem:[#allocation58_spill] sm:$0xff]  ;;  %v12734_v2 = vld [vmem:[#allocation56_spill] sm:$0xff] }
0x1bd4   : > { %6024 = vmatprep.subr.mxu0 %v10904_v18  ;;  %6095 = vmatprep.subr.mxu1 %v10907_v22  ;;  %v12735_v18 = vld [vmem:[#allocation59_spill] sm:$0xff]  ;;  %v12736_v22 = vld [vmem:[#allocation61_spill] sm:$0xff] }
0x1bd5   : > { %6025 = vmatpush1.msra.mxu0 %v10910_v50  ;;  %6096 = vmatpush1.msra.mxu1 %v10913_v52  ;;  %v12737_v50 = vld [vmem:[#allocation21_spill] sm:$0xff]  ;;  %v12738_v52 = vld [vmem:[#allocation62_spill] sm:$0xff] }
0x1bd6   : > { %6026 = vmatprep.subr.mxu0 %v10916_v48  ;;  %6097 = vmatprep.subr.mxu1 %v10919_v61  ;;  %v12739_v48 = vld [vmem:[#allocation24_spill] sm:$0xff] }
0x1bd7   : > { %6027 = vmatpush1.msra.mxu0 %v10922_v54  ;;  %6098 = vmatpush1.msra.mxu1 %v10925_v24  ;;  %v12740_v61 = vld [vmem:[#allocation60_spill] sm:$0xff]  ;;  %v12741_v54 = vmov 0.0   ;;  %v12742_v24 = vld [vmem:[#allocation31_spill] sm:$0xff] }
0x1bd8   : > { %6028 = vmatprep.subr.mxu0 %v10928_v16  ;;  %6099 = vmatprep.subr.mxu1 %v10931_v62  ;;  %v11364_v16 = vld [vmem:[#allocation14 + $0x1e8] sm:$0xff]  ;;  %v11367_v62 = vld [vmem:[#allocation14 + $0x1f8] sm:$0xff] }
0x1bd9   : > { %6029 = vmatpush1.msra.mxu0 %v10934_v53  ;;  %6100 = vmatpush1.msra.mxu1 %v10937_v7  ;;  %v12743_v53 = vld [vmem:[#allocation98_spill] sm:$0xff]  ;;  %v12744_v7 = vld [vmem:[#allocation87_spill] sm:$0xff] }
0x1bda   : > { %6030 = vmatprep.subr.mxu0 %v10940_v8  ;;  %6101 = vmatprep.subr.mxu1 %v10943_v49  ;;  %v3424_v8 = vadd.f32 %v12744_v7, %v12743_v53  ;;  %v11440_v7 = vld [vmem:[#allocation14 + $0x140] sm:$0xff] }
0x1bdb   : > { %6031 = vmatpush1.msra.mxu0 %v10946_v20  ;;  %6102 = vmatpush1.msra.mxu1 %v10949_v15  ;;  %v12745_v20 = vld [vmem:[#allocation89_spill] sm:$0xff] }
0x1bdc   : > { %6032 = vmatprep.subr.mxu0 %v10952_v51  ;;  %6103 = vmatprep.subr.mxu1 %v10955_v33  ;;  %v3426_v15 = vadd.f32 %v12745_v20, %v12444_v10  ;;  %v11449_v20 = vld [vmem:[#allocation14 + $0x138] sm:$0xff] }
0x1bdd   : > { %6033 = vmatpush1.msra.mxu0 %v10958_v43  ;;  %6104 = vmatpush1.msra.mxu1 %v10961_v36 }
0x1bde   : > { %6034 = vmatprep.subr.mxu0 %v10964_v26  ;;  %6105 = vmatprep.subr.mxu1 %v10967_v41 }
0x1bdf   : > { %6035 = vmatpush1.msra.mxu0 %v10970_v19  ;;  %6106 = vmatpush1.msra.mxu1 %v10973_v39  ;;  %v12746_v39 = vld [vmem:[#allocation90_spill] sm:$0xff] }
0x1be0   : > { %6036 = vmatprep.subr.mxu0 %v10976_v57  ;;  %6107 = vmatprep.subr.mxu1 %v10979_v5  ;;  %v3587_v57 = vadd.f32 %v12746_v39, %v10173_v3  ;;  %v11476_v39 = vld [vmem:[#allocation14 + $0xe0] sm:$0xff] }
0x1be1   : > { %6037 = vmatpush1.msra.mxu0 %v10982_v44  ;;  %6108 = vmatpush1.msra.mxu1 %v12693_v31  ;;  %v12747_v44 = vld [vmem:[#allocation88_spill] sm:$0xff] }
0x1be2   : > { %6038 = vmatprep.subr.mxu0 %v12722_v4  ;;  %6109 = vmatprep.subr.mxu1 %v12723_v35  ;;  %v3585_v17 = vadd.f32 %v12747_v44, %v10175_v21  ;;  %v11386_v4 = vld [vmem:[#allocation14 + $0x1c8] sm:$0xff]  ;;  %v11392_v35 = vld [vmem:[#allocation14 + $0x1c0] sm:$0xff]  ;;  %v11485_v44 = vld [vmem:[#allocation14 + $0xd8] sm:$0xff] }
0x1be3   : > { %6039 = vmatpush1.msra.mxu0 %v12724_v37  ;;  %6110 = vmatpush1.msra.mxu1 %v12725_v59  ;;  %v11395_v37 = vld [vmem:[#allocation14 + $0x1d0] sm:$0xff]  ;;  %v11398_v59 = vld [vmem:[#allocation14 + $0x1a8] sm:$0xff] }
0x1be4   : > { %6040 = vmatprep.subr.mxu0 %v12726_v42  ;;  %6111 = vmatprep.subr.mxu1 %v12727_v60  ;;  %v11401_v42 = vld [vmem:[#allocation14 + $0x1b8] sm:$0xff]  ;;  %v11404_v60 = vld [vmem:[#allocation14 + $0x1a0] sm:$0xff] }
0x1be5   : > { %6041 = vmatpush1.msra.mxu0 %v12728_v23  ;;  %6112 = vmatpush1.msra.mxu1 %v12729_v1  ;;  %v11407_v23 = vld [vmem:[#allocation14 + $0x1b0] sm:$0xff]  ;;  %v11410_v1 = vld [vmem:[#allocation14 + $0x188] sm:$0xff] }
0x1be6   : > { %6042 = vmatprep.subr.mxu0 %v12730_v34  ;;  %6113 = vmatprep.subr.mxu1 %v12731_v25  ;;  %v11413_v34 = vld [vmem:[#allocation14 + $0x198] sm:$0xff]  ;;  %v11416_v25 = vld [vmem:[#allocation14 + $0x180] sm:$0xff] }
0x1be7   : > { %6043 = vmatpush1.msra.mxu0 %v12732_v13  ;;  %6114 = vmatpush1.msra.mxu1 %v12733_v55  ;;  %v11419_v13 = vld [vmem:[#allocation14 + $0x190] sm:$0xff]  ;;  %v11422_v55 = vld [vmem:[#allocation14 + $0x168] sm:$0xff] }
0x1be8   : > { %6044 = vmatprep.subr.mxu0 %v12734_v2  ;;  %6115 = vmatprep.subr.mxu1 %v12735_v18  ;;  %v11425_v2 = vld [vmem:[#allocation14 + $0x178] sm:$0xff]  ;;  %v11428_v18 = vld [vmem:[#allocation14 + $0x160] sm:$0xff] }
0x1be9   : > { %6045 = vmatpush1.msra.mxu0 %v12736_v22  ;;  %6116 = vmatpush1.msra.mxu1 %v12737_v50  ;;  %v11431_v22 = vld [vmem:[#allocation14 + $0x170] sm:$0xff] }
0x1bea   : > { %6046 = vmatprep.subr.mxu0 %v12738_v52  ;;  %6117 = vmatprep.subr.mxu1 %v12739_v48  ;;  %v11434_v52 = vld [vmem:[#allocation14 + $0x148] sm:$0xff] }
0x1beb   : > { %6047 = vmatpush1.msra.mxu0 %v12740_v61  ;;  %6080 = vmatprep.mubr.f32.mxu0 %v12741_v54  ;;  %v11437_v61 = vld [vmem:[#allocation14 + $0x158] sm:$0xff] }
0x1bec   : > { %6118 = vmatpush1.msra.mxu1 %v12742_v24  ;;  %6151 = vmatprep.mubr.f32.mxu1 %v12741_v54 }
0x1bed   : > { %6191 = vmatprep.subr.mxu0 %v11364_v16  ;;  %6262 = vmatprep.subr.mxu1 %v11367_v62 }
0x1c8c   : > { %v5907_v49 = vpop.f32.mrf.mxu0  ;;  %v5978_v26 = vpop.f32.mrf.mxu1 }
0x1c8d   : > { %v5983_v51 = vadd.f32 %v5907_v49, %v3424_v8  ;;  %v5985_v31 = vadd.f32 %v5978_v26, %v3585_v17  ;;  %v11443_v8 = vld [vmem:[#allocation14 + $0x150] sm:$0xff]  ;;  %v11446_v49 = vld [vmem:[#allocation14 + $0x128] sm:$0xff]  ;;  %v11488_v17 = vld [vmem:[#allocation14 + $0xc0] sm:$0xff] }
0x1c8e   : > { %v5909_v33 = vpop.f32.mrf.mxu0  ;;  %v5980_v19 = vpop.f32.mrf.mxu1  ;;  %v11467_v26 = vld [vmem:[#allocation14 + $0x110] sm:$0xff] }
0x1c8f   : > { %v6789_v43 = vmul.f32 -1.442695, %v5983_v51  ;;  %v5984_v36 = vadd.f32 %v5909_v33, %v3426_v15  ;;  %v5986_v5 = vadd.f32 %v5980_v19, %v3587_v57  ;;  %v11452_v15 = vld [vmem:[#allocation14 + $0x120] sm:$0xff]  ;;  %v11455_v51 = vld [vmem:[#allocation14 + $0x130] sm:$0xff]  ;;  %v11458_v33 = vld [vmem:[#allocation14 + $0x108] sm:$0xff] }
0x1c90   : > { %v11473_v19 = vld [vmem:[#allocation14 + $0xf8] sm:$0xff]  ;;  %v11479_v57 = vld [vmem:[#allocation14 + $0xf0] sm:$0xff] }
0x1c91   : > { %7337 = vpow2.f32 %v6789_v43  ;;  %v6790_v41 = vmul.f32 -1.442695, %v5984_v36  ;;  %v6791_v14 = vmul.f32 -1.442695, %v5986_v5  ;;  %v11461_v43 = vld [vmem:[#allocation14 + $0x118] sm:$0xff]  ;;  %v11464_v36 = vld [vmem:[#allocation14 + $0x100] sm:$0xff] }
0x1c92   : > { %v11482_v5 = vld [vmem:[#allocation14 + $0xc8] sm:$0xff] }
0x1c93   : > { %7339 = vpow2.f32 %v6790_v41  ;;  %v11470_v41 = vld [vmem:[#allocation14 + $0xe8] sm:$0xff] }
0x1c94   : > { %7341 = vtanh.f32 %v5985_v31  ;;  %v11491_v31 = vld [vmem:[#allocation14 + $0xd0] sm:$0xff] }
0x1c95   : > { %7343 = vpow2.f32 %v6791_v14  ;;  %v11494_v14 = vld [vmem:[#allocation14 + $0xa8] sm:$0xff] }
0x1c9e   : > { %v7338_v11 = vpop.eup %7337 }
0x1c9f   : > { %v5990_v29 = vadd.f32 1.0, %v7338_v11  ;;  %v11497_v11 = vld [vmem:[#allocation14 + $0xb8] sm:$0xff] }
0x1ca0   : > { %v7340_v63 = vpop.eup %7339 }
0x1ca1   : > { %7345 = vrcp.f32 %v5990_v29  ;;  %v5996_v38 = vadd.f32 1.0, %v7340_v63  ;;  %v7342_v47 = vpop.eup %7341  ;;  %v11500_v29 = vld [vmem:[#allocation14 + $0xa0] sm:$0xff]  ;;  %v11503_v63 = vld [vmem:[#allocation14 + $0xb0] sm:$0xff] }
0x1ca2   : > { %v7344_v32 = vpop.eup %7343  ;;  %12748 = vst [vmem:[#allocation63_spill] sm:$0xff] %v11503_v63 }
0x1ca3   : > { %7347 = vrcp.f32 %v5996_v38  ;;  %v6003_v30 = vadd.f32 1.0, %v7344_v32  ;;  %v11506_v38 = vld [vmem:[#allocation14 + $0x88] sm:$0xff]  ;;  %v11512_v32 = vld [vmem:[#allocation14 + $0x80] sm:$0xff] }
0x1ca4   : > { %12749 = vst [vmem:[#allocation65_spill] sm:$0xff] %v11506_v38  ;;  %12751 = vst [vmem:[#allocation64_spill] sm:$0xff] %v11512_v32 }
0x1ca5   : > { %7349 = vrcp.f32 %v6003_v30  ;;  %v11524_v30 = vld [vmem:[#allocation14 + $0x60] sm:$0xff] }
0x1ca6   : > { %12755 = vst [vmem:[#allocation29_spill] sm:$0xff] %v11524_v30 }
0x1cae   : > { %v7346_v46 = vpop.eup %7345 }
0x1caf   : > { %v6007_v28 = vmul.f32 %v7346_v46, %v7342_v47  ;;  %v11509_v47 = vld [vmem:[#allocation14 + $0x98] sm:$0xff]  ;;  %v11515_v46 = vld [vmem:[#allocation14 + $0x90] sm:$0xff] }
0x1cb0   : > { %v7348_v0 = vpop.eup %7347  ;;  %12750 = vst [vmem:[#allocation66_spill] sm:$0xff] %v11509_v47  ;;  %12752 = vst [vmem:[#allocation101_spill] sm:$0xff] %v11515_v46 }
0x1cb1   : > { %v6006_v56 = vmul.f32 %v7348_v0, %v11295_v6  ;;  %v11389_v6 = vld [vmem:[#allocation14 + $0x1d8] sm:$0xff] }
0x1cb2   : > { %v7350_v40 = vpop.eup %7349  ;;  %v11521_v0 = vld [vmem:[#allocation14 + $0x78] sm:$0xff] }
0x1cb3   : > { %v11379_v12 = vadd.f32 %v6007_v28, %v6006_v56  ;;  %v11518_v28 = vld [vmem:[#allocation14 + $0x68] sm:$0xff]  ;;  %12754 = vst [vmem:[#allocation46_spill] sm:$0xff] %v11521_v0  ;;  %v11527_v56 = vld [vmem:[#allocation14 + $0x70] sm:$0xff] }
0x1cb4   : > { %12753 = vst [vmem:[#allocation28_spill] sm:$0xff] %v11518_v28  ;;  %12756 = vst [vmem:[#allocation34_spill] sm:$0xff] %v11527_v56 }
0x1cb5   : > { %7351 = vtanh.f32 %v11379_v12 }
0x1cc2   : > { %v7352_v9 = vpop.eup %7351 }
0x1cc3   : > { %v6010_v45 = vmul.f32 %v7352_v9, %v7350_v40  ;;  %v11530_v40 = vld [vmem:[#allocation14 + $0x48] sm:$0xff]  ;;  %v11533_v9 = vld [vmem:[#allocation14 + $0x58] sm:$0xff] }
0x1cc4   : > { %12757 = vst [vmem:[#allocation40_spill] sm:$0xff] %v11530_v40  ;;  %12758 = vst [vmem:[#allocation30_spill] sm:$0xff] %v11533_v9 }
0x1cc5   : > { %6081 = vmatmul.mubr.f32.vlgmr.msra.gmra.mxu0 %v6010_v45  ;;  %6152 = vmatmul.mubr.f32.vlgmr.msra.gmra.mxu1 %v6010_v45  ;;  %v11536_v45 = vld [vmem:[#allocation14 + $0x40] sm:$0xff] }
0x1cc6   : > { %6192 = vmatpush1.msra.mxu0 %v11298_v58  ;;  %6263 = vmatpush1.msra.mxu1 %v11383_v27  ;;  %12759 = vst [vmem:[#allocation22_spill] sm:$0xff] %v11536_v45 }
0x1cc7   : > { %6193 = vmatprep.subr.mxu0 %v11386_v4  ;;  %6264 = vmatprep.subr.mxu1 %v11389_v6 }
0x1cc8   : > { %6194 = vmatpush1.msra.mxu0 %v11392_v35  ;;  %6265 = vmatpush1.msra.mxu1 %v11395_v37 }
0x1cc9   : > { %6195 = vmatprep.subr.mxu0 %v11398_v59  ;;  %6266 = vmatprep.subr.mxu1 %v11401_v42 }
0x1cca   : > { %6196 = vmatpush1.msra.mxu0 %v11404_v60  ;;  %6267 = vmatpush1.msra.mxu1 %v11407_v23 }
0x1ccb   : > { %6197 = vmatprep.subr.mxu0 %v11410_v1  ;;  %6268 = vmatprep.subr.mxu1 %v11413_v34 }
0x1ccc   : > { %6198 = vmatpush1.msra.mxu0 %v11416_v25  ;;  %6269 = vmatpush1.msra.mxu1 %v11419_v13 }
0x1ccd   : > { %6199 = vmatprep.subr.mxu0 %v11422_v55  ;;  %6270 = vmatprep.subr.mxu1 %v11425_v2 }
0x1cce   : > { %6200 = vmatpush1.msra.mxu0 %v11428_v18  ;;  %6271 = vmatpush1.msra.mxu1 %v11431_v22 }
0x1ccf   : > { %6201 = vmatprep.subr.mxu0 %v11434_v52  ;;  %6272 = vmatprep.subr.mxu1 %v11437_v61 }
0x1cd0   : > { %6202 = vmatpush1.msra.mxu0 %v11440_v7  ;;  %6273 = vmatpush1.msra.mxu1 %v11443_v8 }
0x1cd1   : > { %6203 = vmatprep.subr.mxu0 %v11446_v49  ;;  %6274 = vmatprep.subr.mxu1 %v11449_v20 }
0x1cd2   : > { %6204 = vmatpush1.msra.mxu0 %v11452_v15  ;;  %6275 = vmatpush1.msra.mxu1 %v11455_v51 }
0x1cd3   : > { %6205 = vmatprep.subr.mxu0 %v11458_v33  ;;  %6276 = vmatprep.subr.mxu1 %v11461_v43 }
0x1cd4   : > { %6206 = vmatpush1.msra.mxu0 %v11464_v36  ;;  %6277 = vmatpush1.msra.mxu1 %v11467_v26 }
0x1cd5   : > { %6207 = vmatprep.subr.mxu0 %v11470_v41  ;;  %6278 = vmatprep.subr.mxu1 %v11473_v19 }
0x1cd6   : > { %6208 = vmatpush1.msra.mxu0 %v11476_v39  ;;  %6279 = vmatpush1.msra.mxu1 %v11479_v57 }
0x1cd7   : > { %6209 = vmatprep.subr.mxu0 %v11482_v5  ;;  %6280 = vmatprep.subr.mxu1 %v11485_v44 }
0x1cd8   : > { %6210 = vmatpush1.msra.mxu0 %v11488_v17  ;;  %6281 = vmatpush1.msra.mxu1 %v11491_v31 }
0x1cd9   : > { %6211 = vmatprep.subr.mxu0 %v11494_v14  ;;  %6282 = vmatprep.subr.mxu1 %v11497_v11 }
0x1cda   : > { %6212 = vmatpush1.msra.mxu0 %v11500_v29  ;;  %6283 = vmatpush1.msra.mxu1 %v11503_v63 }
0x1cdb   : > { %6213 = vmatprep.subr.mxu0 %v11506_v38  ;;  %6284 = vmatprep.subr.mxu1 %v11509_v47  ;;  %v12769_v47 = vld [vmem:[#allocation92_spill] sm:$0xff] }
0x1cdc   : > { %6214 = vmatpush1.msra.mxu0 %v11512_v32  ;;  %6285 = vmatpush1.msra.mxu1 %v11515_v46 }
0x1cdd   : > { %6215 = vmatprep.subr.mxu0 %v11518_v28  ;;  %6286 = vmatprep.subr.mxu1 %v11521_v0  ;;  %v11539_v0 = vld [vmem:[#allocation14 + $0x50] sm:$0xff] }
0x1cde   : > { %6216 = vmatpush1.msra.mxu0 %v11524_v30  ;;  %6287 = vmatpush1.msra.mxu1 %v11527_v56  ;;  %12760 = vst [vmem:[#allocation27_spill] sm:$0xff] %v11539_v0  ;;  %v11542_v30 = vld [vmem:[#allocation14 + $0x28] sm:$0xff]  ;;  %v11545_v56 = vld [vmem:[#allocation14 + $0x38] sm:$0xff] }
0x1cdf   : > { %6217 = vmatprep.subr.mxu0 %v11530_v40  ;;  %6288 = vmatprep.subr.mxu1 %v11533_v9  ;;  %12761 = vst [vmem:[#allocation43_spill] sm:$0xff] %v11542_v30  ;;  %12762 = vst [vmem:[#allocation25_spill] sm:$0xff] %v11545_v56  ;;  %v11548_v40 = vld [vmem:[#allocation14 + $0x20] sm:$0xff]  ;;  %v11552_v9 = vld [vmem:[#allocation14 + $0x8] sm:$0xff] }
0x1ce0   : > { %6218 = vmatpush1.msra.mxu0 %v11536_v45  ;;  %6289 = vmatpush1.msra.mxu1 %v11539_v0  ;;  %12763 = vst [vmem:[#allocation44_spill] sm:$0xff] %v11548_v40  ;;  %12764 = vst [vmem:[#allocation38_spill] sm:$0xff] %v11552_v9  ;;  %v11556_v0 = vld [vmem:[#allocation14] sm:$0xff] }
0x1ce1   : > { %6219 = vmatprep.subr.mxu0 %v11542_v30  ;;  %6290 = vmatprep.subr.mxu1 %v11545_v56  ;;  %12765 = vst [vmem:[#allocation45_spill] sm:$0xff] %v11556_v0 }
0x1ce2   : > { %6220 = vmatpush1.msra.mxu0 %v11548_v40  ;;  %6291 = vmatpush1.msra.mxu1 %v12737_v50  ;;  %v12766_v50 = vld [vmem:[#allocation91_spill] sm:$0xff] }
0x1ce3   : > { %6221 = vmatprep.subr.mxu0 %v11552_v9  ;;  %6292 = vmatprep.subr.mxu1 %v12739_v48  ;;  %v3430_v40 = vadd.f32 %v12766_v50, %v12743_v53  ;;  %v12767_v48 = vld [vmem:[#allocation93_spill] sm:$0xff]  ;;  %v3591_v50 = vadd.f32 %v12769_v47, %v10175_v21 }
0x1ce4   : > { %6222 = vmatpush1.msra.mxu0 %v11556_v0  ;;  %6255 = vmatprep.mubr.f32.mxu0 %v12741_v54  ;;  %v3432_v56 = vadd.f32 %v12767_v48, %v12444_v10 }
0x1ce5   : > { %6293 = vmatpush1.msra.mxu1 %v12742_v24  ;;  %6326 = vmatprep.mubr.f32.mxu1 %v12741_v54 }
0x1ce6   : > { %6366 = vmatprep.subr.mxu0 %v11364_v16  ;;  %6437 = vmatprep.subr.mxu1 %v11367_v62  ;;  %v12768_v16 = vld [vmem:[#allocation94_spill] sm:$0xff] }
0x1ce7   : > { %v3593_v32 = vadd.f32 %v12768_v16, %v10173_v3 }
0x1d85   : > { %v6082_v9 = vpop.f32.mrf.mxu0  ;;  %v6153_v46 = vpop.f32.mrf.mxu1 }
0x1d86   : > { %v6158_v30 = vadd.f32 %v6082_v9, %v3430_v40  ;;  %v6160_v53 = vadd.f32 %v6153_v46, %v3591_v50 }
0x1d87   : > { %v6084_v45 = vpop.f32.mrf.mxu0  ;;  %v6155_v54 = vpop.f32.mrf.mxu1 }
0x1d88   : > { %v6792_v0 = vmul.f32 -1.442695, %v6158_v30  ;;  %v6159_v28 = vadd.f32 %v6084_v45, %v3432_v56  ;;  %v6161_v62 = vadd.f32 %v6155_v54, %v3593_v32 }
0x1d8a   : > { %7353 = vpow2.f32 %v6792_v0  ;;  %v6793_v24 = vmul.f32 -1.442695, %v6159_v28  ;;  %v6794_v38 = vmul.f32 -1.442695, %v6161_v62 }
0x1d8c   : > { %7355 = vpow2.f32 %v6793_v24 }
0x1d8d   : > { %7357 = vtanh.f32 %v6160_v53 }
0x1d8e   : > { %7359 = vpow2.f32 %v6794_v38 }
0x1d97   : > { %v7354_v63 = vpop.eup %7353 }
0x1d98   : > { %v6165_v48 = vadd.f32 1.0, %v7354_v63 }
0x1d99   : > { %v7356_v40 = vpop.eup %7355 }
0x1d9a   : > { %7361 = vrcp.f32 %v6165_v48  ;;  %v6171_v0 = vadd.f32 1.0, %v7356_v40  ;;  %v7358_v28 = vpop.eup %7357 }
0x1d9b   : > { %v7360_v30 = vpop.eup %7359 }
0x1d9c   : > { %7363 = vrcp.f32 %v6171_v0  ;;  %v6178_v24 = vadd.f32 1.0, %v7360_v30 }
0x1d9e   : > { %7365 = vrcp.f32 %v6178_v24 }
0x1da7   : > { %v7362_v56 = vpop.eup %7361 }
0x1da8   : > { %v6182_v9 = vmul.f32 %v7362_v56, %v7358_v28 }
0x1da9   : > { %v7364_v45 = vpop.eup %7363 }
0x1daa   : > { %v6181_v54 = vmul.f32 %v7364_v45, %v11379_v12  ;;  %v12771_v12 = vld [vmem:[#allocation65_spill] sm:$0xff] }
0x1dab   : > { %v7366_v63 = vpop.eup %7365 }
0x1dac   : > { %v11573_v32 = vadd.f32 %v6182_v9, %v6181_v54 }
0x1dae   : > { %7367 = vtanh.f32 %v11573_v32 }
0x1dbb   : > { %v7368_v53 = vpop.eup %7367 }
0x1dbc   : > { %v6185_v47 = vmul.f32 %v7368_v53, %v7366_v63  ;;  %v12794_v63 = vld [vmem:[#allocation100_spill] sm:$0xff] }
0x1dbe   : > { %6256 = vmatmul.mubr.f32.vlgmr.msra.gmra.mxu0 %v6185_v47  ;;  %6327 = vmatmul.mubr.f32.vlgmr.msra.gmra.mxu1 %v6185_v47 }
0x1dbf   : > { %6367 = vmatpush1.msra.mxu0 %v11298_v58  ;;  %6438 = vmatpush1.msra.mxu1 %v11383_v27  ;;  %v12770_v58 = vld [vmem:[#allocation63_spill] sm:$0xff]  ;;  %v12772_v27 = vld [vmem:[#allocation66_spill] sm:$0xff] }
0x1dc0   : > { %6368 = vmatprep.subr.mxu0 %v11386_v4  ;;  %6439 = vmatprep.subr.mxu1 %v11389_v6  ;;  %v12773_v4 = vld [vmem:[#allocation64_spill] sm:$0xff]  ;;  %v12774_v6 = vld [vmem:[#allocation101_spill] sm:$0xff] }
0x1dc1   : > { %6369 = vmatpush1.msra.mxu0 %v11392_v35  ;;  %6440 = vmatpush1.msra.mxu1 %v11395_v37  ;;  %v12775_v35 = vld [vmem:[#allocation28_spill] sm:$0xff]  ;;  %v12776_v37 = vld [vmem:[#allocation46_spill] sm:$0xff] }
0x1dc2   : > { %6370 = vmatprep.subr.mxu0 %v11398_v59  ;;  %6441 = vmatprep.subr.mxu1 %v11401_v42  ;;  %v12777_v59 = vld [vmem:[#allocation29_spill] sm:$0xff]  ;;  %v12778_v42 = vld [vmem:[#allocation34_spill] sm:$0xff] }
0x1dc3   : > { %6371 = vmatpush1.msra.mxu0 %v11404_v60  ;;  %6442 = vmatpush1.msra.mxu1 %v11407_v23  ;;  %v12779_v60 = vld [vmem:[#allocation40_spill] sm:$0xff]  ;;  %v12780_v23 = vld [vmem:[#allocation30_spill] sm:$0xff] }
0x1dc4   : > { %6372 = vmatprep.subr.mxu0 %v11410_v1  ;;  %6443 = vmatprep.subr.mxu1 %v11413_v34  ;;  %v12781_v1 = vld [vmem:[#allocation22_spill] sm:$0xff]  ;;  %v12782_v34 = vld [vmem:[#allocation27_spill] sm:$0xff] }
0x1dc5   : > { %6373 = vmatpush1.msra.mxu0 %v11416_v25  ;;  %6444 = vmatpush1.msra.mxu1 %v11419_v13  ;;  %v12783_v25 = vld [vmem:[#allocation43_spill] sm:$0xff]  ;;  %v12784_v13 = vld [vmem:[#allocation25_spill] sm:$0xff] }
0x1dc6   : > { %6374 = vmatprep.subr.mxu0 %v11422_v55  ;;  %6445 = vmatprep.subr.mxu1 %v11425_v2  ;;  %v12785_v55 = vld [vmem:[#allocation44_spill] sm:$0xff]  ;;  %v7767_v2 = vld [vmem:[#allocation14 + $0x30] sm:$0xff] }
0x1dc7   : > { %6375 = vmatpush1.msra.mxu0 %v11428_v18  ;;  %6446 = vmatpush1.msra.mxu1 %v11431_v22  ;;  %v12786_v18 = vld [vmem:[#allocation38_spill] sm:$0xff]  ;;  %v7768_v22 = vld [vmem:[#allocation14 + $0x18] sm:$0xff] }
0x1dc8   : > { %6376 = vmatprep.subr.mxu0 %v11434_v52  ;;  %6447 = vmatprep.subr.mxu1 %v11437_v61  ;;  %v12787_v52 = vld [vmem:[#allocation45_spill] sm:$0xff]  ;;  %v12788_v61 = vmov 0.0  }
0x1dc9   : > { %6377 = vmatpush1.msra.mxu0 %v11440_v7  ;;  %6448 = vmatpush1.msra.mxu1 %v11443_v8  ;;  %v7769_v7 = vld [vmem:[#allocation14 + $0x10] sm:$0xff] }
0x1dca   : > { %6378 = vmatprep.subr.mxu0 %v11446_v49  ;;  %6449 = vmatprep.subr.mxu1 %v11449_v20  ;;  %v12789_v8 = vld [vmem:[#allocation98_spill] sm:$0xff]  ;;  %v12790_v49 = vld [vmem:[#allocation95_spill] sm:$0xff] }
0x1dcb   : > { %6379 = vmatpush1.msra.mxu0 %v11452_v15  ;;  %6450 = vmatpush1.msra.mxu1 %v11455_v51  ;;  %v3436_v20 = vadd.f32 %v12790_v49, %v12789_v8  ;;  %v12791_v51 = vld [vmem:[#allocation97_spill] sm:$0xff]  ;;  %v3442_v53 = vadd.f32 %v12794_v63, %v12789_v8 }
0x1dcc   : > { %6380 = vmatprep.subr.mxu0 %v11458_v33  ;;  %6451 = vmatprep.subr.mxu1 %v11461_v43  ;;  %v3438_v33 = vadd.f32 %v12791_v51, %v12444_v10 }
0x1dcd   : > { %6381 = vmatpush1.msra.mxu0 %v11464_v36  ;;  %6452 = vmatpush1.msra.mxu1 %v11467_v26 }
0x1dce   : > { %6382 = vmatprep.subr.mxu0 %v11470_v41  ;;  %6453 = vmatprep.subr.mxu1 %v11473_v19 }
0x1dcf   : > { %6383 = vmatpush1.msra.mxu0 %v11476_v39  ;;  %6454 = vmatpush1.msra.mxu1 %v11479_v57 }
0x1dd0   : > { %6384 = vmatprep.subr.mxu0 %v11482_v5  ;;  %6455 = vmatprep.subr.mxu1 %v11485_v44  ;;  %v12792_v5 = vld [vmem:[#allocation99_spill] sm:$0xff] }
0x1dd1   : > { %6385 = vmatpush1.msra.mxu0 %v11488_v17  ;;  %6456 = vmatpush1.msra.mxu1 %v11491_v31  ;;  %v3599_v44 = vadd.f32 %v12792_v5, %v10173_v3  ;;  %v12793_v31 = vld [vmem:[#allocation96_spill] sm:$0xff] }
0x1dd2   : > { %6386 = vmatprep.subr.mxu0 %v11494_v14  ;;  %6457 = vmatprep.subr.mxu1 %v11497_v11  ;;  %v3597_v14 = vadd.f32 %v12793_v31, %v10175_v21 }
0x1dd3   : > { %6387 = vmatpush1.msra.mxu0 %v11500_v29  ;;  %6458 = vmatpush1.msra.mxu1 %v12770_v58  ;;  %v12795_v58 = vld [vmem:[#allocation103_spill] sm:$0xff] }
0x1dd4   : > { %6388 = vmatprep.subr.mxu0 %v12771_v12  ;;  %6459 = vmatprep.subr.mxu1 %v12772_v27  ;;  %v3444_v12 = vadd.f32 %v12795_v58, %v12444_v10 }
0x1dd5   : > { %6389 = vmatpush1.msra.mxu0 %v12773_v4  ;;  %6460 = vmatpush1.msra.mxu1 %v12774_v6 }
0x1dd6   : > { %6390 = vmatprep.subr.mxu0 %v12775_v35  ;;  %6461 = vmatprep.subr.mxu1 %v12776_v37 }
0x1dd7   : > { %6391 = vmatpush1.msra.mxu0 %v12777_v59  ;;  %6462 = vmatpush1.msra.mxu1 %v12778_v42  ;;  %v12796_v42 = vld [vmem:[#allocation104_spill] sm:$0xff] }
0x1dd8   : > { %6392 = vmatprep.subr.mxu0 %v12779_v60  ;;  %6463 = vmatprep.subr.mxu1 %v12780_v23  ;;  %v3605_v60 = vadd.f32 %v12796_v42, %v10173_v3 }
0x1dd9   : > { %6393 = vmatpush1.msra.mxu0 %v12781_v1  ;;  %6464 = vmatpush1.msra.mxu1 %v12782_v34  ;;  %v12797_v1 = vld [vmem:[#allocation102_spill] sm:$0xff] }
0x1dda   : > { %6394 = vmatprep.subr.mxu0 %v12783_v25  ;;  %6465 = vmatprep.subr.mxu1 %v12784_v13  ;;  %v3603_v34 = vadd.f32 %v12797_v1, %v10175_v21 }
0x1ddb   : > { %6395 = vmatpush1.msra.mxu0 %v12785_v55  ;;  %6466 = vmatpush1.msra.mxu1 %v7767_v2 }
0x1ddc   : > { %6396 = vmatprep.subr.mxu0 %v12786_v18  ;;  %6467 = vmatprep.subr.mxu1 %v7768_v22 }
0x1ddd   : > { %6397 = vmatpush1.msra.mxu0 %v12787_v52  ;;  %6430 = vmatprep.mubr.f32.mxu0 %v12788_v61 }
0x1dde   : > { %6468 = vmatpush1.msra.mxu1 %v7769_v7  ;;  %6501 = vmatprep.mubr.f32.mxu1 %v12788_v61 }
0x1e7e   : > { %v6257_v15 = vpop.f32.mrf.mxu0  ;;  %v6328_v19 = vpop.f32.mrf.mxu1 }
0x1e7f   : > { %v6333_v43 = vadd.f32 %v6257_v15, %v3436_v20  ;;  %v6335_v11 = vadd.f32 %v6328_v19, %v3597_v14 }
0x1e80   : > { %v6259_v36 = vpop.f32.mrf.mxu0  ;;  %v6330_v57 = vpop.f32.mrf.mxu1 }
0x1e81   : > { %v6795_v26 = vmul.f32 -1.442695, %v6333_v43  ;;  %v6334_v41 = vadd.f32 %v6259_v36, %v3438_v33  ;;  %v6336_v17 = vadd.f32 %v6330_v57, %v3599_v44 }
0x1e83   : > { %7369 = vpow2.f32 %v6795_v26  ;;  %v6796_v39 = vmul.f32 -1.442695, %v6334_v41  ;;  %v6797_v29 = vmul.f32 -1.442695, %v6336_v17 }
0x1e85   : > { %7371 = vpow2.f32 %v6796_v39 }
0x1e86   : > { %7373 = vtanh.f32 %v6335_v11 }
0x1e87   : > { %7375 = vpow2.f32 %v6797_v29 }
0x1e90   : > { %v7370_v38 = vpop.eup %7369 }
0x1e91   : > { %v6340_v46 = vadd.f32 1.0, %v7370_v38 }
0x1e92   : > { %v7372_v16 = vpop.eup %7371 }
0x1e93   : > { %7377 = vrcp.f32 %v6340_v46  ;;  %v6346_v62 = vadd.f32 1.0, %v7372_v16  ;;  %v7374_v50 = vpop.eup %7373 }
0x1e94   : > { %v7376_v48 = vpop.eup %7375 }
0x1e95   : > { %7379 = vrcp.f32 %v6346_v62  ;;  %v6353_v30 = vadd.f32 1.0, %v7376_v48 }
0x1e97   : > { %7381 = vrcp.f32 %v6353_v30 }
0x1ea0   : > { %v7378_v40 = vpop.eup %7377 }
0x1ea1   : > { %v6357_v0 = vmul.f32 %v7378_v40, %v7374_v50 }
0x1ea2   : > { %v7380_v28 = vpop.eup %7379 }
0x1ea3   : > { %v6356_v56 = vmul.f32 %v7380_v28, %v11573_v32 }
0x1ea4   : > { %v7382_v45 = vpop.eup %7381 }
0x1ea5   : > { %v6358_v9 = vadd.f32 %v6357_v0, %v6356_v56 }
0x1ea7   : > { %7383 = vtanh.f32 %v6358_v9 }
0x1eb4   : > { %v7384_v24 = vpop.eup %7383 }
0x1eb5   : > { %v6360_v54 = vmul.f32 %v7384_v24, %v7382_v45 }
0x1eb7   : > { %6431 = vmatmul.mubr.f32.vlgmr.msra.gmra.mxu0 %v6360_v54  ;;  %6502 = vmatmul.mubr.f32.vlgmr.msra.gmra.mxu1 %v6360_v54 }
0x1f77   : > { %v6432_v47 = vpop.f32.mrf.mxu0  ;;  %v6503_v32 = vpop.f32.mrf.mxu1 }
0x1f78   : > { %v6508_v27 = vadd.f32 %v6432_v47, %v3442_v53  ;;  %v6510_v25 = vadd.f32 %v6503_v32, %v3603_v34 }
0x1f79   : > { %v6434_v4 = vpop.f32.mrf.mxu0  ;;  %v6505_v59 = vpop.f32.mrf.mxu1 }
0x1f7a   : > { %v6798_v6 = vmul.f32 -1.442695, %v6508_v27  ;;  %v6509_v35 = vadd.f32 %v6434_v4, %v3444_v12  ;;  %v6511_v23 = vadd.f32 %v6505_v59, %v3605_v60 }
0x1f7c   : > { %7385 = vpow2.f32 %v6798_v6  ;;  %v6799_v37 = vmul.f32 -1.442695, %v6509_v35  ;;  %v6800_v13 = vmul.f32 -1.442695, %v6511_v23 }
0x1f7e   : > { %7387 = vpow2.f32 %v6799_v37 }
0x1f7f   : > { %7389 = vtanh.f32 %v6510_v25 }
0x1f80   : > { %7391 = vpow2.f32 %v6800_v13 }
0x1f89   : > { %v7386_v55 = vpop.eup %7385 }
0x1f8a   : > { %v6515_v10 = vadd.f32 1.0, %v7386_v55 }
0x1f8b   : > { %v7388_v2 = vpop.eup %7387 }
0x1f8c   : > { %7393 = vrcp.f32 %v6515_v10  ;;  %v6521_v18 = vadd.f32 1.0, %v7388_v2  ;;  %v7390_v22 = vpop.eup %7389 }
0x1f8d   : > { %v7392_v52 = vpop.eup %7391 }
0x1f8e   : > { %7395 = vrcp.f32 %v6521_v18  ;;  %v6528_v3 = vadd.f32 1.0, %v7392_v52 }
0x1f90   : > { %7397 = vrcp.f32 %v6528_v3 }
0x1f99   : > { %v7394_v61 = vpop.eup %7393 }
0x1f9a   : > { %v6532_v7 = vmul.f32 %v7394_v61, %v7390_v22 }
0x1f9b   : > { %v7396_v8 = vpop.eup %7395 }
0x1f9c   : > { %v6531_v49 = vmul.f32 %v7396_v8, %v6358_v9 }
0x1f9d   : > { %v7398_v21 = vpop.eup %7397 }
0x1f9e   : > { %v6533_v20 = vadd.f32 %v6532_v7, %v6531_v49 }
0x1fa0   : > { %7399 = vtanh.f32 %v6533_v20  ;;  %6537 = vst [vmem:[#allocation5] sm:$0xff] %v6533_v20 }
0x1fac   : > { %6541 = sbr.rel (%p6801_p9) target bundleno = 8114 (0x1fb2), region = 64 }
0x1fad   : > { %v7400_v15 = vpop.eup %7399 }
0x1fae   : > { %v6535_v51 = vmul.f32 %v7400_v15, %v7398_v21 }
0x1fb0   : > { %6536 = vst [vmem:[#allocation4] sm:$0xff] %v6535_v51 }
0x1fb1   : > { %6542 = vst [vmem:[#allocation16] sm:$0xff] %v6535_v51 }
0x1fb2 PF: > { %p6847_p2 = scmp.eq.s32.totalorder %s8006_s22, 1  ;;  %s7956_s8 = smov [#allocation16]  }
0x1fb3   : > { %s6550_s9 = sshll.u32 %s7956_s8, 4  ;;  %s6551_s9 = int_to_ptr.vmem [resolvable:$true] %s6550_s9 }
0x1fb4   : > { %s7876_s11 = scalar_lea.vmem %s6551_s9, 128  ;;  %p7883_p12 = scmp.lt.s32.totalorder %s6551_s9, %s6551_s9 }
0x1fb5   : > { %p7877_p3 = scmp.ne.s32.totalorder %s6551_s9, %s7876_s11  ;;  %p7884_p13 = scmp.lt.s32.totalorder %s7876_s11, %s7876_s11 }
0x1fb7   : > { %p7878_p7 = pnand %p7877_p3, %p6847_p2  ;;  %p7885_p4 = por %p7884_p13, %p7883_p12 }
0x1fb9   : > { %p7879_p10 = pneg %p7878_p7 }
0x1fbb   : > { %p7886_p1 = pnand %p7885_p4, %p7879_p10 }
0x1fbd   : > { %7889 = shalt.err (!%p7886_p1)
}
0x1fbe   : > { %6823 = dma.vmem_to_hbm [thread:$0]  (%p6847_p2), %s6551_s9, 128, %s11685_s5, [#allocation10]  }
0x1fbf   : > { %7929 = dma.done.wait (%p6847_p2), [#allocation10], 128  }
0x1fc0   : > { %7931 = vsyncadd (%p6847_p2), [#allocation10], 4294967168 }
0x1fc1 PF: > { %s12798_s14 = smov %s8067_s18  ;;  %p18_p5 = scmp.ge.s32.totalorder %s8067_s18, 4  }
0x1fc2   : > { %s12799_s18 = smov %s7938_s19  ;;  %s12800_s19 = smov %s7942_s20 }
0x1fc3   : > { %s12801_s20 = smov %s8077_s27  ;;  %s12802_s21 = smov %s12798_s14 }
0x1fc4   :  { %20 = sbr.rel (!%p18_p5) target bundleno = 6 (0x6), region = 142 }
0x1fc9   :  { %6563 = vsyncpa [#allocation9], 1 }
0x1fca   :  { %6565 = vsyncpa [#allocation9 + $0x1], 1 }
0x1fcb   :  { %6566 = vsyncpa [#allocation12], 1 }
0x1fcc   :  { %6567 = vsyncpa [#allocation15], 1 }
0x1fcd   :  { %6568 = vsyncpa [#allocation10], 1 }
0x1fce   :  { %6570 = vsyncpa [#allocation10 + $0x1], 1 }

</bundles_post_ra>
